<compile_context>
chip_gen: v7x
topology: tpu7x:2x2x1
jax: 0.10.0
libtpu: 0.0.40
codegen_flags: <defaults>
</compile_context>

<pallas_src>
import jax
import jax.numpy as jnp
from jax import lax
from jax.experimental import pallas as pl
from jax.experimental.pallas import tpu as pltpu

# Hardware-tile padding constants.
H_PAD = 128     # per-gate hidden width -> full 128-lane vregs
E_PAD = 128     # embedding width (contraction dim, zero-padded)
B_PAD = 8       # batch -> full 8-sublane tiles
OUT_PAD = 128   # final-linear output width -> unmasked stores


def _pad_to(x, shape):
    return jnp.pad(x, [(0, s - d) for d, s in zip(x.shape, shape)])


# ----------------------------------------------------------------------------
# Fused kernel: 2-layer bidirectional GRU + final linear, single grid point.
# PyTorch GRU gate equations (gates stacked [r | z | n] along the lane axis,
# each gate lane-padded to H_PAD):
#   r = sigmoid(W_ir x + b_ir + W_hr h + b_hr)
#   z = sigmoid(W_iz x + b_iz + W_hz h + b_hz)
#   n = tanh  (W_in x + b_in + r * (W_hn h + b_hn))
#   h' = (1 - z) * n + z * h
# ----------------------------------------------------------------------------
def bert_gru_kernel(
    x_ref,                                     # (S, B_PAD, E_PAD)
    wih0f_ref, whh0f_ref, b0f_ref,             # layer0 fwd: (E_PAD,3H),(H,3H),(2,3H)
    wih0b_ref, whh0b_ref, b0b_ref,             # layer0 bwd
    w1ff_ref, w1fb_ref, whh1f_ref, b1f_ref,    # layer1 fwd (input split fwd/bwd half)
    w1bf_ref, w1bb_ref, whh1b_ref, b1b_ref,    # layer1 bwd
    linwf_ref, linwb_ref, linb_ref,            # final linear (split by direction)
    out_ref,                                   # (B_PAD, OUT_PAD)
    gi_f, gi_b, seq_f, seq_b,                  # VMEM scratch
):
    S, B, _ = x_ref.shape
    H = whh0f_ref.shape[0]          # = H_PAD
    G = 3 * H

    # ---- layer 0: hoisted input projections (one big matmul per direction) --
    x2d = x_ref[...].reshape(S * B, -1)
    gi_f[...] = (jnp.dot(x2d, wih0f_ref[...], preferred_element_type=jnp.float32)
                 + b0f_ref[0:1]).reshape(S, B, G)
    gi_b[...] = (jnp.dot(x2d, wih0b_ref[...], preferred_element_type=jnp.float32)
                 + b0b_ref[0:1]).reshape(S, B, G)

    def run_recurrence(gi_ref, whh_ref, b_hh, seq_ref, reverse):
        whh = whh_ref[...]          # hoist weight load out of the loop

        def step(i, h):
            t = (S - 1 - i) if reverse else i
            gi = gi_ref[t]                                     # (B, 3H)
            gh = jnp.dot(h, whh, preferred_element_type=jnp.float32) + b_hh
            r = jax.nn.sigmoid(gi[:, 0:H] + gh[:, 0:H])
            z = jax.nn.sigmoid(gi[:, H:2 * H] + gh[:, H:2 * H])
            n = jnp.tanh(gi[:, 2 * H:G] + r * gh[:, 2 * H:G])
            h_new = (1.0 - z) * n + z * h
            if seq_ref is not None:
                seq_ref[t] = h_new
            return h_new

        h0 = jnp.zeros((B, H), jnp.float32)
        return lax.fori_loop(0, S, step, h0, unroll=True)

    run_recurrence(gi_f, whh0f_ref, b0f_ref[1:2], seq_f, reverse=False)
    run_recurrence(gi_b, whh0b_ref, b0b_ref[1:2], seq_b, reverse=True)

    # ---- layer 1: hoisted input projections from layer-0 outputs -----------
    # (concat of directions expressed as two matmuls: no concatenate needed)
    sf2d = seq_f[...].reshape(S * B, H)
    sb2d = seq_b[...].reshape(S * B, H)
    gi_f[...] = (jnp.dot(sf2d, w1ff_ref[...], preferred_element_type=jnp.float32)
                 + jnp.dot(sb2d, w1fb_ref[...], preferred_element_type=jnp.float32)
                 + b1f_ref[0:1]).reshape(S, B, G)
    gi_b[...] = (jnp.dot(sf2d, w1bf_ref[...], preferred_element_type=jnp.float32)
                 + jnp.dot(sb2d, w1bb_ref[...], preferred_element_type=jnp.float32)
                 + b1b_ref[0:1]).reshape(S, B, G)

    h1f = run_recurrence(gi_f, whh1f_ref, b1f_ref[1:2], None, reverse=False)
    h1b = run_recurrence(gi_b, whh1b_ref, b1b_ref[1:2], None, reverse=True)

    # ---- final linear fused in the epilogue (lane-padded output) -----------
    # torch.cat((hidden[-2], hidden[-1]), 1) @ W^T + b, expressed per-half.
    out_ref[...] = (
        jnp.dot(h1f, linwf_ref[...], preferred_element_type=jnp.float32)
        + jnp.dot(h1b, linwb_ref[...], preferred_element_type=jnp.float32)
        + linb_ref[...]
    )


# ----------------------------------------------------------------------------
# Parameter construction (deterministic, synthetic; logical / unpadded shapes)
# ----------------------------------------------------------------------------
def init_params(key, vocab, n_emb, n_hidden, n_lyr, n_out):
    params = {"gru": []}
    key, k_emb = jax.random.split(key)
    params["emb"] = 0.1 * jax.random.normal(k_emb, (vocab, n_emb), jnp.float32)

    scale = 1.0 / jnp.sqrt(jnp.float32(n_hidden))
    for layer in range(n_lyr):
        d_in = n_emb if layer == 0 else 2 * n_hidden
        layer_params = {}
        for direction in ("fwd", "bwd"):
            key, k1, k2, k3 = jax.random.split(key, 4)
            wih_t = jax.random.uniform(
                k1, (d_in, 3 * n_hidden), jnp.float32, -scale, scale)
            whh_t = jax.random.uniform(
                k2, (n_hidden, 3 * n_hidden), jnp.float32, -scale, scale)
            b = jax.random.uniform(
                k3, (2, 3 * n_hidden), jnp.float32, -scale, scale)
            layer_params[direction] = (wih_t, whh_t, b)
        params["gru"].append(layer_params)

    key, k_w, k_b = jax.random.split(key, 3)
    lin_scale = 1.0 / jnp.sqrt(jnp.float32(2 * n_hidden))
    params["lin_w_t"] = jax.random.uniform(
        k_w, (2 * n_hidden, n_out), jnp.float32, -lin_scale, lin_scale)
    params["lin_b"] = jax.random.uniform(
        k_b, (1, n_out), jnp.float32, -lin_scale, lin_scale)
    return params


# ----------------------------------------------------------------------------
# Padding of logical params to hardware-tile shapes (per-gate lane padding).
# ----------------------------------------------------------------------------
def prepare_kernel_inputs(params, n_hidden):
    H = n_hidden

    def pad_gates_mat(w, rows_pad):
        rows, g3 = w.shape
        h = g3 // 3
        w = w.reshape(rows, 3, h)
        w = jnp.pad(w, ((0, rows_pad - rows), (0, 0), (0, H_PAD - h)))
        return w.reshape(rows_pad, 3 * H_PAD)

    def pad_gates_bias(b):
        h = b.shape[1] // 3
        b = b.reshape(2, 3, h)
        b = jnp.pad(b, ((0, 0), (0, 0), (0, H_PAD - h)))
        return b.reshape(2, 3 * H_PAD)

    wih0f, whh0f, b0f = params["gru"][0]["fwd"]
    wih0b, whh0b, b0b = params["gru"][0]["bwd"]
    wih1f, whh1f, b1f = params["gru"][1]["fwd"]
    wih1b, whh1b, b1b = params["gru"][1]["bwd"]

    return (
        # layer 0
        pad_gates_mat(wih0f, E_PAD), pad_gates_mat(whh0f, H_PAD), pad_gates_bias(b0f),
        pad_gates_mat(wih0b, E_PAD), pad_gates_mat(whh0b, H_PAD), pad_gates_bias(b0b),
        # layer 1 fwd (input rows split: fwd-half / bwd-half of layer-0 output)
        pad_gates_mat(wih1f[:H], H_PAD), pad_gates_mat(wih1f[H:], H_PAD),
        pad_gates_mat(whh1f, H_PAD), pad_gates_bias(b1f),
        # layer 1 bwd
        pad_gates_mat(wih1b[:H], H_PAD), pad_gates_mat(wih1b[H:], H_PAD),
        pad_gates_mat(whh1b, H_PAD), pad_gates_bias(b1b),
        # final linear, split by direction, lane-padded output
        _pad_to(params["lin_w_t"][:H], (H_PAD, OUT_PAD)),
        _pad_to(params["lin_w_t"][H:], (H_PAD, OUT_PAD)),
        _pad_to(params["lin_b"], (1, OUT_PAD)),
    )


# ----------------------------------------------------------------------------
# Full forward: bert(stand-in) -> fused bidirectional 2-layer GRU + linear.
# ----------------------------------------------------------------------------
def bert_gru_forward(txt, params, n_hidden):
    assert len(params["gru"]) == 2, "fused kernel is specialized to n_lyr=2"
    B, S = txt.shape
    n_out = params["lin_b"].shape[1]

    # "bert" stand-in: frozen embedding lookup producing (B, S, E).
    emb = jnp.take(params["emb"], txt, axis=0)           # (B, S, E)
    x = jnp.transpose(emb, (1, 0, 2))                    # (S, B, E) time-major
    x = _pad_to(x, (S, B_PAD, E_PAD))                    # tile-padded

    kargs = prepare_kernel_inputs(params, n_hidden)

    out_padded = pl.pallas_call(
        bert_gru_kernel,
        out_shape=jax.ShapeDtypeStruct((B_PAD, OUT_PAD), jnp.float32),
        scratch_shapes=[
            pltpu.VMEM((S, B_PAD, 3 * H_PAD), jnp.float32),   # gi_f
            pltpu.VMEM((S, B_PAD, 3 * H_PAD), jnp.float32),   # gi_b
            pltpu.VMEM((S, B_PAD, H_PAD), jnp.float32),       # seq_f
            pltpu.VMEM((S, B_PAD, H_PAD), jnp.float32),       # seq_b
        ],
    )(x, *kargs)

    return out_padded[:B, :n_out]


# ----------------------------------------------------------------------------
# Pure-JAX reference (unpadded) for a correctness sanity check.
# ----------------------------------------------------------------------------
def _ref_gru_dir(x_seq, wih_t, whh_t, b, reverse):
    H = whh_t.shape[0]
    b_ih, b_hh = b[0], b[1]

    def step(h, x):
        gi = x @ wih_t + b_ih
        gh = h @ whh_t + b_hh
        r = jax.nn.sigmoid(gi[:, :H] + gh[:, :H])
        z = jax.nn.sigmoid(gi[:, H:2 * H] + gh[:, H:2 * H])
        n = jnp.tanh(gi[:, 2 * H:] + r * gh[:, 2 * H:])
        h_new = (1.0 - z) * n + z * h
        return h_new, h_new

    xs = x_seq[::-1] if reverse else x_seq
    h0 = jnp.zeros((x_seq.shape[1], H), jnp.float32)
    h_final, outs = lax.scan(step, h0, xs)
    if reverse:
        outs = outs[::-1]
    return outs, h_final


def reference_forward(txt, params, n_hidden, n_lyr):
    emb = jnp.take(params["emb"], txt, axis=0)
    x = jnp.transpose(emb, (1, 0, 2))
    h_f = h_b = None
    for layer in range(n_lyr):
        wih_f, whh_f, b_f = params["gru"][layer]["fwd"]
        wih_b, whh_b, b_b = params["gru"][layer]["bwd"]
        out_f, h_f = _ref_gru_dir(x, wih_f, whh_f, b_f, reverse=False)
        out_b, h_b = _ref_gru_dir(x, wih_b, whh_b, b_b, reverse=True)
        x = jnp.concatenate([out_f, out_b], axis=-1)
    h_cat = jnp.concatenate([h_f, h_b], axis=1)
    return h_cat @ params["lin_w_t"] + params["lin_b"]


if __name__ == "__main__":
    B, S = 2, 8          # batch, sequence length
    VOCAB = 50
    N_EMB = 32           # bert.config.hidden_size (stand-in)
    N_HIDDEN = 32
    N_LYR = 2
    N_OUT = 3

    key = jax.random.PRNGKey(0)
    key, k_tok = jax.random.split(key)
    txt = jax.random.randint(k_tok, (B, S), 0, VOCAB, dtype=jnp.int32)

    params = init_params(key, VOCAB, N_EMB, N_HIDDEN, N_LYR, N_OUT)

    out = bert_gru_forward(txt, params, N_HIDDEN)
    out = jax.block_until_ready(out)
    assert out.shape == (B, N_OUT)

    ref = jax.block_until_ready(reference_forward(txt, params, N_HIDDEN, N_LYR))
    assert jnp.allclose(out, ref, atol=2e-3, rtol=2e-3)

    print("KERNEL_OK")
</pallas_src>

<mosaic_0001>
module attributes {stable_mosaic.version = 11 : i64} {
  func.func @bert_gru_kernel(%arg0: memref<8x8x128xf32, #tpu.memory_space<vmem>>, %arg1: memref<128x384xf32, #tpu.memory_space<vmem>>, %arg2: memref<128x384xf32, #tpu.memory_space<vmem>>, %arg3: memref<2x384xf32, #tpu.memory_space<vmem>>, %arg4: memref<128x384xf32, #tpu.memory_space<vmem>>, %arg5: memref<128x384xf32, #tpu.memory_space<vmem>>, %arg6: memref<2x384xf32, #tpu.memory_space<vmem>>, %arg7: memref<128x384xf32, #tpu.memory_space<vmem>>, %arg8: memref<128x384xf32, #tpu.memory_space<vmem>>, %arg9: memref<128x384xf32, #tpu.memory_space<vmem>>, %arg10: memref<2x384xf32, #tpu.memory_space<vmem>>, %arg11: memref<128x384xf32, #tpu.memory_space<vmem>>, %arg12: memref<128x384xf32, #tpu.memory_space<vmem>>, %arg13: memref<128x384xf32, #tpu.memory_space<vmem>>, %arg14: memref<2x384xf32, #tpu.memory_space<vmem>>, %arg15: memref<128x128xf32, #tpu.memory_space<vmem>>, %arg16: memref<128x128xf32, #tpu.memory_space<vmem>>, %arg17: memref<1x128xf32, #tpu.memory_space<vmem>>, %arg18: memref<8x128xf32, #tpu.memory_space<vmem>>, %arg19: memref<8x8x384xf32, #tpu.memory_space<vmem>>, %arg20: memref<8x8x384xf32, #tpu.memory_space<vmem>>, %arg21: memref<8x8x128xf32, #tpu.memory_space<vmem>>, %arg22: memref<8x8x128xf32, #tpu.memory_space<vmem>>) attributes {dimension_semantics = [], scalar_prefetch = 0 : i64, scratch_operands = 4 : i64, tpu.core_type = #tpu.core_type<tc>} {
    %c0 = arith.constant 0 : index
    %c0_0 = arith.constant 0 : index
    %c0_1 = arith.constant 0 : index
    %0 = vector.load %arg0[%c0, %c0_0, %c0_1] : memref<8x8x128xf32, #tpu.memory_space<vmem>>, vector<8x8x128xf32>
    %1 = vector.shape_cast %0 : vector<8x8x128xf32> to vector<64x128xf32>
    %c0_2 = arith.constant 0 : index
    %c0_3 = arith.constant 0 : index
    %2 = vector.load %arg1[%c0_2, %c0_3] : memref<128x384xf32, #tpu.memory_space<vmem>>, vector<128x384xf32>
    %cst = arith.constant dense<0.000000e+00> : vector<64x384xf32>
    %3 = tpu.matmul %1, %2, %cst {dimension_numbers = #tpu.dot_dimension_numbers<[1], [0], [0], [1], [0, 0, 1, 1], [], []>} : vector<64x128xf32>, vector<128x384xf32>, vector<64x384xf32> -> vector<64x384xf32>
    %c0_4 = arith.constant 0 : index
    %c0_5 = arith.constant 0 : index
    %4 = vector.load %arg3[%c0_4, %c0_5] : memref<2x384xf32, #tpu.memory_space<vmem>>, vector<1x384xf32>
    %5 = vector.broadcast %4 : vector<1x384xf32> to vector<64x384xf32>
    %6 = arith.addf %3, %5 : vector<64x384xf32>
    %7 = vector.shape_cast %6 : vector<64x384xf32> to vector<8x8x384xf32>
    %c0_6 = arith.constant 0 : index
    %c0_7 = arith.constant 0 : index
    %c0_8 = arith.constant 0 : index
    %8 = vector.load %arg19[%c0_6, %c0_7, %c0_8] : memref<8x8x384xf32, #tpu.memory_space<vmem>>, vector<8x8x384xf32>
    tpu.vector_store %arg19[%c0_6, %c0_7, %c0_8], %7 {strides = array<i32>} : memref<8x8x384xf32, #tpu.memory_space<vmem>>, vector<8x8x384xf32>,
    %c0_9 = arith.constant 0 : index
    %c0_10 = arith.constant 0 : index
    %9 = vector.load %arg4[%c0_9, %c0_10] : memref<128x384xf32, #tpu.memory_space<vmem>>, vector<128x384xf32>
    %cst_11 = arith.constant dense<0.000000e+00> : vector<64x384xf32>
    %10 = tpu.matmul %1, %9, %cst_11 {dimension_numbers = #tpu.dot_dimension_numbers<[1], [0], [0], [1], [0, 0, 1, 1], [], []>} : vector<64x128xf32>, vector<128x384xf32>, vector<64x384xf32> -> vector<64x384xf32>
    %c0_12 = arith.constant 0 : index
    %c0_13 = arith.constant 0 : index
    %11 = vector.load %arg6[%c0_12, %c0_13] : memref<2x384xf32, #tpu.memory_space<vmem>>, vector<1x384xf32>
    %12 = vector.broadcast %11 : vector<1x384xf32> to vector<64x384xf32>
    %13 = arith.addf %10, %12 : vector<64x384xf32>
    %14 = vector.shape_cast %13 : vector<64x384xf32> to vector<8x8x384xf32>
    %c0_14 = arith.constant 0 : index
    %c0_15 = arith.constant 0 : index
    %c0_16 = arith.constant 0 : index
    %15 = vector.load %arg20[%c0_14, %c0_15, %c0_16] : memref<8x8x384xf32, #tpu.memory_space<vmem>>, vector<8x8x384xf32>
    tpu.vector_store %arg20[%c0_14, %c0_15, %c0_16], %14 {strides = array<i32>} : memref<8x8x384xf32, #tpu.memory_space<vmem>>, vector<8x8x384xf32>,
    %c1 = arith.constant 1 : index
    %c0_17 = arith.constant 0 : index
    %16 = vector.load %arg3[%c1, %c0_17] : memref<2x384xf32, #tpu.memory_space<vmem>>, vector<1x384xf32>
    %c0_18 = arith.constant 0 : index
    %c0_19 = arith.constant 0 : index
    %17 = vector.load %arg2[%c0_18, %c0_19] : memref<128x384xf32, #tpu.memory_space<vmem>>, vector<128x384xf32>
    %cst_20 = arith.constant 0.000000e+00 : f32
    %18 = vector.broadcast %cst_20 : f32 to vector<8x128xf32>
    %c0_i32 = arith.constant 0 : i32
    %19 = arith.index_cast %c0_i32 : i32 to index
    %c0_21 = arith.constant 0 : index
    %c0_22 = arith.constant 0 : index
    %20 = vector.load %arg19[%19, %c0_21, %c0_22] : memref<8x8x384xf32, #tpu.memory_space<vmem>>, vector<1x8x384xf32>
    %21 = vector.shape_cast %20 : vector<1x8x384xf32> to vector<8x384xf32>
    %cst_23 = arith.constant dense<0.000000e+00> : vector<8x384xf32>
    %22 = tpu.matmul %18, %17, %cst_23 {dimension_numbers = #tpu.dot_dimension_numbers<[1], [0], [0], [1], [0, 0, 1, 1], [], []>} : vector<8x128xf32>, vector<128x384xf32>, vector<8x384xf32> -> vector<8x384xf32>
    %23 = vector.broadcast %16 : vector<1x384xf32> to vector<8x384xf32>
    %24 = arith.addf %22, %23 : vector<8x384xf32>
    %25 = vector.extract_strided_slice %21 {offsets = [0, 0], sizes = [8, 128], strides = [1, 1]} : vector<8x384xf32> to vector<8x128xf32>
    %26 = vector.extract_strided_slice %24 {offsets = [0, 0], sizes = [8, 128], strides = [1, 1]} : vector<8x384xf32> to vector<8x128xf32>
    %27 = arith.addf %25, %26 : vector<8x128xf32>
    %28 = arith.negf %27 : vector<8x128xf32>
    %29 = math.exp %28 : vector<8x128xf32>
    %cst_24 = arith.constant 1.000000e+00 : f32
    %30 = vector.broadcast %cst_24 : f32 to vector<8x128xf32>
    %31 = arith.addf %30, %29 : vector<8x128xf32>
    %32 = arith.divf %30, %31 : vector<8x128xf32>
    %33 = vector.extract_strided_slice %21 {offsets = [0, 128], sizes = [8, 128], strides = [1, 1]} : vector<8x384xf32> to vector<8x128xf32>
    %34 = vector.extract_strided_slice %24 {offsets = [0, 128], sizes = [8, 128], strides = [1, 1]} : vector<8x384xf32> to vector<8x128xf32>
    %35 = arith.addf %33, %34 : vector<8x128xf32>
    %36 = arith.negf %35 : vector<8x128xf32>
    %37 = math.exp %36 : vector<8x128xf32>
    %cst_25 = arith.constant 1.000000e+00 : f32
    %38 = vector.broadcast %cst_25 : f32 to vector<8x128xf32>
    %39 = arith.addf %38, %37 : vector<8x128xf32>
    %40 = arith.divf %38, %39 : vector<8x128xf32>
    %41 = vector.extract_strided_slice %21 {offsets = [0, 256], sizes = [8, 128], strides = [1, 1]} : vector<8x384xf32> to vector<8x128xf32>
    %42 = vector.extract_strided_slice %24 {offsets = [0, 256], sizes = [8, 128], strides = [1, 1]} : vector<8x384xf32> to vector<8x128xf32>
    %43 = arith.mulf %32, %42 : vector<8x128xf32>
    %44 = arith.addf %41, %43 : vector<8x128xf32>
    %45 = math.tanh %44 : vector<8x128xf32>
    %cst_26 = arith.constant 1.000000e+00 : f32
    %46 = vector.broadcast %cst_26 : f32 to vector<8x128xf32>
    %47 = arith.subf %46, %40 : vector<8x128xf32>
    %48 = arith.mulf %47, %45 : vector<8x128xf32>
    %49 = arith.mulf %40, %18 : vector<8x128xf32>
    %50 = arith.addf %48, %49 : vector<8x128xf32>
    %51 = arith.index_cast %c0_i32 : i32 to index
    %c0_27 = arith.constant 0 : index
    %c0_28 = arith.constant 0 : index
    %52 = vector.load %arg21[%51, %c0_27, %c0_28] : memref<8x8x128xf32, #tpu.memory_space<vmem>>, vector<1x8x128xf32>
    %53 = vector.shape_cast %52 : vector<1x8x128xf32> to vector<8x128xf32>
    %54 = vector.shape_cast %50 : vector<8x128xf32> to vector<1x8x128xf32>
    tpu.vector_store %arg21[%51, %c0_27, %c0_28], %54 {strides = array<i32>} : memref<8x8x128xf32, #tpu.memory_space<vmem>>, vector<1x8x128xf32>,
    %c1_i32 = arith.constant 1 : i32
    %55 = arith.index_cast %c1_i32 : i32 to index
    %c0_29 = arith.constant 0 : index
    %c0_30 = arith.constant 0 : index
    %56 = vector.load %arg19[%55, %c0_29, %c0_30] : memref<8x8x384xf32, #tpu.memory_space<vmem>>, vector<1x8x384xf32>
    %57 = vector.shape_cast %56 : vector<1x8x384xf32> to vector<8x384xf32>
    %cst_31 = arith.constant dense<0.000000e+00> : vector<8x384xf32>
    %58 = tpu.matmul %50, %17, %cst_31 {dimension_numbers = #tpu.dot_dimension_numbers<[1], [0], [0], [1], [0, 0, 1, 1], [], []>} : vector<8x128xf32>, vector<128x384xf32>, vector<8x384xf32> -> vector<8x384xf32>
    %59 = vector.broadcast %16 : vector<1x384xf32> to vector<8x384xf32>
    %60 = arith.addf %58, %59 : vector<8x384xf32>
    %61 = vector.extract_strided_slice %57 {offsets = [0, 0], sizes = [8, 128], strides = [1, 1]} : vector<8x384xf32> to vector<8x128xf32>
    %62 = vector.extract_strided_slice %60 {offsets = [0, 0], sizes = [8, 128], strides = [1, 1]} : vector<8x384xf32> to vector<8x128xf32>
    %63 = arith.addf %61, %62 : vector<8x128xf32>
    %64 = arith.negf %63 : vector<8x128xf32>
    %65 = math.exp %64 : vector<8x128xf32>
    %cst_32 = arith.constant 1.000000e+00 : f32
    %66 = vector.broadcast %cst_32 : f32 to vector<8x128xf32>
    %67 = arith.addf %66, %65 : vector<8x128xf32>
    %68 = arith.divf %66, %67 : vector<8x128xf32>
    %69 = vector.extract_strided_slice %57 {offsets = [0, 128], sizes = [8, 128], strides = [1, 1]} : vector<8x384xf32> to vector<8x128xf32>
    %70 = vector.extract_strided_slice %60 {offsets = [0, 128], sizes = [8, 128], strides = [1, 1]} : vector<8x384xf32> to vector<8x128xf32>
    %71 = arith.addf %69, %70 : vector<8x128xf32>
    %72 = arith.negf %71 : vector<8x128xf32>
    %73 = math.exp %72 : vector<8x128xf32>
    %cst_33 = arith.constant 1.000000e+00 : f32
    %74 = vector.broadcast %cst_33 : f32 to vector<8x128xf32>
    %75 = arith.addf %74, %73 : vector<8x128xf32>
    %76 = arith.divf %74, %75 : vector<8x128xf32>
    %77 = vector.extract_strided_slice %57 {offsets = [0, 256], sizes = [8, 128], strides = [1, 1]} : vector<8x384xf32> to vector<8x128xf32>
    %78 = vector.extract_strided_slice %60 {offsets = [0, 256], sizes = [8, 128], strides = [1, 1]} : vector<8x384xf32> to vector<8x128xf32>
    %79 = arith.mulf %68, %78 : vector<8x128xf32>
    %80 = arith.addf %77, %79 : vector<8x128xf32>
    %81 = math.tanh %80 : vector<8x128xf32>
    %cst_34 = arith.constant 1.000000e+00 : f32
    %82 = vector.broadcast %cst_34 : f32 to vector<8x128xf32>
    %83 = arith.subf %82, %76 : vector<8x128xf32>
    %84 = arith.mulf %83, %81 : vector<8x128xf32>
    %85 = arith.mulf %76, %50 : vector<8x128xf32>
    %86 = arith.addf %84, %85 : vector<8x128xf32>
    %87 = arith.index_cast %c1_i32 : i32 to index
    %c0_35 = arith.constant 0 : index
    %c0_36 = arith.constant 0 : index
    %88 = vector.load %arg21[%87, %c0_35, %c0_36] : memref<8x8x128xf32, #tpu.memory_space<vmem>>, vector<1x8x128xf32>
    %89 = vector.shape_cast %88 : vector<1x8x128xf32> to vector<8x128xf32>
    %90 = vector.shape_cast %86 : vector<8x128xf32> to vector<1x8x128xf32>
    tpu.vector_store %arg21[%87, %c0_35, %c0_36], %90 {strides = array<i32>} : memref<8x8x128xf32, #tpu.memory_space<vmem>>, vector<1x8x128xf32>,
    %c2_i32 = arith.constant 2 : i32
    %91 = arith.index_cast %c2_i32 : i32 to index
    %c0_37 = arith.constant 0 : index
    %c0_38 = arith.constant 0 : index
    %92 = vector.load %arg19[%91, %c0_37, %c0_38] : memref<8x8x384xf32, #tpu.memory_space<vmem>>, vector<1x8x384xf32>
    %93 = vector.shape_cast %92 : vector<1x8x384xf32> to vector<8x384xf32>
    %cst_39 = arith.constant dense<0.000000e+00> : vector<8x384xf32>
    %94 = tpu.matmul %86, %17, %cst_39 {dimension_numbers = #tpu.dot_dimension_numbers<[1], [0], [0], [1], [0, 0, 1, 1], [], []>} : vector<8x128xf32>, vector<128x384xf32>, vector<8x384xf32> -> vector<8x384xf32>
    %95 = vector.broadcast %16 : vector<1x384xf32> to vector<8x384xf32>
    %96 = arith.addf %94, %95 : vector<8x384xf32>
    %97 = vector.extract_strided_slice %93 {offsets = [0, 0], sizes = [8, 128], strides = [1, 1]} : vector<8x384xf32> to vector<8x128xf32>
    %98 = vector.extract_strided_slice %96 {offsets = [0, 0], sizes = [8, 128], strides = [1, 1]} : vector<8x384xf32> to vector<8x128xf32>
    %99 = arith.addf %97, %98 : vector<8x128xf32>
    %100 = arith.negf %99 : vector<8x128xf32>
    %101 = math.exp %100 : vector<8x128xf32>
    %cst_40 = arith.constant 1.000000e+00 : f32
    %102 = vector.broadcast %cst_40 : f32 to vector<8x128xf32>
    %103 = arith.addf %102, %101 : vector<8x128xf32>
    %104 = arith.divf %102, %103 : vector<8x128xf32>
    %105 = vector.extract_strided_slice %93 {offsets = [0, 128], sizes = [8, 128], strides = [1, 1]} : vector<8x384xf32> to vector<8x128xf32>
    %106 = vector.extract_strided_slice %96 {offsets = [0, 128], sizes = [8, 128], strides = [1, 1]} : vector<8x384xf32> to vector<8x128xf32>
    %107 = arith.addf %105, %106 : vector<8x128xf32>
    %108 = arith.negf %107 : vector<8x128xf32>
    %109 = math.exp %108 : vector<8x128xf32>
    %cst_41 = arith.constant 1.000000e+00 : f32
    %110 = vector.broadcast %cst_41 : f32 to vector<8x128xf32>
    %111 = arith.addf %110, %109 : vector<8x128xf32>
    %112 = arith.divf %110, %111 : vector<8x128xf32>
    %113 = vector.extract_strided_slice %93 {offsets = [0, 256], sizes = [8, 128], strides = [1, 1]} : vector<8x384xf32> to vector<8x128xf32>
    %114 = vector.extract_strided_slice %96 {offsets = [0, 256], sizes = [8, 128], strides = [1, 1]} : vector<8x384xf32> to vector<8x128xf32>
    %115 = arith.mulf %104, %114 : vector<8x128xf32>
    %116 = arith.addf %113, %115 : vector<8x128xf32>
    %117 = math.tanh %116 : vector<8x128xf32>
    %cst_42 = arith.constant 1.000000e+00 : f32
    %118 = vector.broadcast %cst_42 : f32 to vector<8x128xf32>
    %119 = arith.subf %118, %112 : vector<8x128xf32>
    %120 = arith.mulf %119, %117 : vector<8x128xf32>
    %121 = arith.mulf %112, %86 : vector<8x128xf32>
    %122 = arith.addf %120, %121 : vector<8x128xf32>
    %123 = arith.index_cast %c2_i32 : i32 to index
    %c0_43 = arith.constant 0 : index
    %c0_44 = arith.constant 0 : index
    %124 = vector.load %arg21[%123, %c0_43, %c0_44] : memref<8x8x128xf32, #tpu.memory_space<vmem>>, vector<1x8x128xf32>
    %125 = vector.shape_cast %124 : vector<1x8x128xf32> to vector<8x128xf32>
    %126 = vector.shape_cast %122 : vector<8x128xf32> to vector<1x8x128xf32>
    tpu.vector_store %arg21[%123, %c0_43, %c0_44], %126 {strides = array<i32>} : memref<8x8x128xf32, #tpu.memory_space<vmem>>, vector<1x8x128xf32>,
    %c3_i32 = arith.constant 3 : i32
    %127 = arith.index_cast %c3_i32 : i32 to index
    %c0_45 = arith.constant 0 : index
    %c0_46 = arith.constant 0 : index
    %128 = vector.load %arg19[%127, %c0_45, %c0_46] : memref<8x8x384xf32, #tpu.memory_space<vmem>>, vector<1x8x384xf32>
    %129 = vector.shape_cast %128 : vector<1x8x384xf32> to vector<8x384xf32>
    %cst_47 = arith.constant dense<0.000000e+00> : vector<8x384xf32>
    %130 = tpu.matmul %122, %17, %cst_47 {dimension_numbers = #tpu.dot_dimension_numbers<[1], [0], [0], [1], [0, 0, 1, 1], [], []>} : vector<8x128xf32>, vector<128x384xf32>, vector<8x384xf32> -> vector<8x384xf32>
    %131 = vector.broadcast %16 : vector<1x384xf32> to vector<8x384xf32>
    %132 = arith.addf %130, %131 : vector<8x384xf32>
    %133 = vector.extract_strided_slice %129 {offsets = [0, 0], sizes = [8, 128], strides = [1, 1]} : vector<8x384xf32> to vector<8x128xf32>
    %134 = vector.extract_strided_slice %132 {offsets = [0, 0], sizes = [8, 128], strides = [1, 1]} : vector<8x384xf32> to vector<8x128xf32>
    %135 = arith.addf %133, %134 : vector<8x128xf32>
    %136 = arith.negf %135 : vector<8x128xf32>
    %137 = math.exp %136 : vector<8x128xf32>
    %cst_48 = arith.constant 1.000000e+00 : f32
    %138 = vector.broadcast %cst_48 : f32 to vector<8x128xf32>
    %139 = arith.addf %138, %137 : vector<8x128xf32>
    %140 = arith.divf %138, %139 : vector<8x128xf32>
    %141 = vector.extract_strided_slice %129 {offsets = [0, 128], sizes = [8, 128], strides = [1, 1]} : vector<8x384xf32> to vector<8x128xf32>
    %142 = vector.extract_strided_slice %132 {offsets = [0, 128], sizes = [8, 128], strides = [1, 1]} : vector<8x384xf32> to vector<8x128xf32>
    %143 = arith.addf %141, %142 : vector<8x128xf32>
    %144 = arith.negf %143 : vector<8x128xf32>
    %145 = math.exp %144 : vector<8x128xf32>
    %cst_49 = arith.constant 1.000000e+00 : f32
    %146 = vector.broadcast %cst_49 : f32 to vector<8x128xf32>
    %147 = arith.addf %146, %145 : vector<8x128xf32>
    %148 = arith.divf %146, %147 : vector<8x128xf32>
    %149 = vector.extract_strided_slice %129 {offsets = [0, 256], sizes = [8, 128], strides = [1, 1]} : vector<8x384xf32> to vector<8x128xf32>
    %150 = vector.extract_strided_slice %132 {offsets = [0, 256], sizes = [8, 128], strides = [1, 1]} : vector<8x384xf32> to vector<8x128xf32>
    %151 = arith.mulf %140, %150 : vector<8x128xf32>
    %152 = arith.addf %149, %151 : vector<8x128xf32>
    %153 = math.tanh %152 : vector<8x128xf32>
    %cst_50 = arith.constant 1.000000e+00 : f32
    %154 = vector.broadcast %cst_50 : f32 to vector<8x128xf32>
    %155 = arith.subf %154, %148 : vector<8x128xf32>
    %156 = arith.mulf %155, %153 : vector<8x128xf32>
    %157 = arith.mulf %148, %122 : vector<8x128xf32>
    %158 = arith.addf %156, %157 : vector<8x128xf32>
    %159 = arith.index_cast %c3_i32 : i32 to index
    %c0_51 = arith.constant 0 : index
    %c0_52 = arith.constant 0 : index
    %160 = vector.load %arg21[%159, %c0_51, %c0_52] : memref<8x8x128xf32, #tpu.memory_space<vmem>>, vector<1x8x128xf32>
    %161 = vector.shape_cast %160 : vector<1x8x128xf32> to vector<8x128xf32>
    %162 = vector.shape_cast %158 : vector<8x128xf32> to vector<1x8x128xf32>
    tpu.vector_store %arg21[%159, %c0_51, %c0_52], %162 {strides = array<i32>} : memref<8x8x128xf32, #tpu.memory_space<vmem>>, vector<1x8x128xf32>,
    %c4_i32 = arith.constant 4 : i32
    %163 = arith.index_cast %c4_i32 : i32 to index
    %c0_53 = arith.constant 0 : index
    %c0_54 = arith.constant 0 : index
    %164 = vector.load %arg19[%163, %c0_53, %c0_54] : memref<8x8x384xf32, #tpu.memory_space<vmem>>, vector<1x8x384xf32>
    %165 = vector.shape_cast %164 : vector<1x8x384xf32> to vector<8x384xf32>
    %cst_55 = arith.constant dense<0.000000e+00> : vector<8x384xf32>
    %166 = tpu.matmul %158, %17, %cst_55 {dimension_numbers = #tpu.dot_dimension_numbers<[1], [0], [0], [1], [0, 0, 1, 1], [], []>} : vector<8x128xf32>, vector<128x384xf32>, vector<8x384xf32> -> vector<8x384xf32>
    %167 = vector.broadcast %16 : vector<1x384xf32> to vector<8x384xf32>
    %168 = arith.addf %166, %167 : vector<8x384xf32>
    %169 = vector.extract_strided_slice %165 {offsets = [0, 0], sizes = [8, 128], strides = [1, 1]} : vector<8x384xf32> to vector<8x128xf32>
    %170 = vector.extract_strided_slice %168 {offsets = [0, 0], sizes = [8, 128], strides = [1, 1]} : vector<8x384xf32> to vector<8x128xf32>
    %171 = arith.addf %169, %170 : vector<8x128xf32>
    %172 = arith.negf %171 : vector<8x128xf32>
    %173 = math.exp %172 : vector<8x128xf32>
    %cst_56 = arith.constant 1.000000e+00 : f32
    %174 = vector.broadcast %cst_56 : f32 to vector<8x128xf32>
    %175 = arith.addf %174, %173 : vector<8x128xf32>
    %176 = arith.divf %174, %175 : vector<8x128xf32>
    %177 = vector.extract_strided_slice %165 {offsets = [0, 128], sizes = [8, 128], strides = [1, 1]} : vector<8x384xf32> to vector<8x128xf32>
    %178 = vector.extract_strided_slice %168 {offsets = [0, 128], sizes = [8, 128], strides = [1, 1]} : vector<8x384xf32> to vector<8x128xf32>
    %179 = arith.addf %177, %178 : vector<8x128xf32>
    %180 = arith.negf %179 : vector<8x128xf32>
    %181 = math.exp %180 : vector<8x128xf32>
    %cst_57 = arith.constant 1.000000e+00 : f32
    %182 = vector.broadcast %cst_57 : f32 to vector<8x128xf32>
    %183 = arith.addf %182, %181 : vector<8x128xf32>
    %184 = arith.divf %182, %183 : vector<8x128xf32>
    %185 = vector.extract_strided_slice %165 {offsets = [0, 256], sizes = [8, 128], strides = [1, 1]} : vector<8x384xf32> to vector<8x128xf32>
    %186 = vector.extract_strided_slice %168 {offsets = [0, 256], sizes = [8, 128], strides = [1, 1]} : vector<8x384xf32> to vector<8x128xf32>
    %187 = arith.mulf %176, %186 : vector<8x128xf32>
    %188 = arith.addf %185, %187 : vector<8x128xf32>
    %189 = math.tanh %188 : vector<8x128xf32>
    %cst_58 = arith.constant 1.000000e+00 : f32
    %190 = vector.broadcast %cst_58 : f32 to vector<8x128xf32>
    %191 = arith.subf %190, %184 : vector<8x128xf32>
    %192 = arith.mulf %191, %189 : vector<8x128xf32>
    %193 = arith.mulf %184, %158 : vector<8x128xf32>
    %194 = arith.addf %192, %193 : vector<8x128xf32>
    %195 = arith.index_cast %c4_i32 : i32 to index
    %c0_59 = arith.constant 0 : index
    %c0_60 = arith.constant 0 : index
    %196 = vector.load %arg21[%195, %c0_59, %c0_60] : memref<8x8x128xf32, #tpu.memory_space<vmem>>, vector<1x8x128xf32>
    %197 = vector.shape_cast %196 : vector<1x8x128xf32> to vector<8x128xf32>
    %198 = vector.shape_cast %194 : vector<8x128xf32> to vector<1x8x128xf32>
    tpu.vector_store %arg21[%195, %c0_59, %c0_60], %198 {strides = array<i32>} : memref<8x8x128xf32, #tpu.memory_space<vmem>>, vector<1x8x128xf32>,
    %c5_i32 = arith.constant 5 : i32
    %199 = arith.index_cast %c5_i32 : i32 to index
    %c0_61 = arith.constant 0 : index
    %c0_62 = arith.constant 0 : index
    %200 = vector.load %arg19[%199, %c0_61, %c0_62] : memref<8x8x384xf32, #tpu.memory_space<vmem>>, vector<1x8x384xf32>
    %201 = vector.shape_cast %200 : vector<1x8x384xf32> to vector<8x384xf32>
    %cst_63 = arith.constant dense<0.000000e+00> : vector<8x384xf32>
    %202 = tpu.matmul %194, %17, %cst_63 {dimension_numbers = #tpu.dot_dimension_numbers<[1], [0], [0], [1], [0, 0, 1, 1], [], []>} : vector<8x128xf32>, vector<128x384xf32>, vector<8x384xf32> -> vector<8x384xf32>
    %203 = vector.broadcast %16 : vector<1x384xf32> to vector<8x384xf32>
    %204 = arith.addf %202, %203 : vector<8x384xf32>
    %205 = vector.extract_strided_slice %201 {offsets = [0, 0], sizes = [8, 128], strides = [1, 1]} : vector<8x384xf32> to vector<8x128xf32>
    %206 = vector.extract_strided_slice %204 {offsets = [0, 0], sizes = [8, 128], strides = [1, 1]} : vector<8x384xf32> to vector<8x128xf32>
    %207 = arith.addf %205, %206 : vector<8x128xf32>
    %208 = arith.negf %207 : vector<8x128xf32>
    %209 = math.exp %208 : vector<8x128xf32>
    %cst_64 = arith.constant 1.000000e+00 : f32
    %210 = vector.broadcast %cst_64 : f32 to vector<8x128xf32>
    %211 = arith.addf %210, %209 : vector<8x128xf32>
    %212 = arith.divf %210, %211 : vector<8x128xf32>
    %213 = vector.extract_strided_slice %201 {offsets = [0, 128], sizes = [8, 128], strides = [1, 1]} : vector<8x384xf32> to vector<8x128xf32>
    %214 = vector.extract_strided_slice %204 {offsets = [0, 128], sizes = [8, 128], strides = [1, 1]} : vector<8x384xf32> to vector<8x128xf32>
    %215 = arith.addf %213, %214 : vector<8x128xf32>
    %216 = arith.negf %215 : vector<8x128xf32>
    %217 = math.exp %216 : vector<8x128xf32>
    %cst_65 = arith.constant 1.000000e+00 : f32
    %218 = vector.broadcast %cst_65 : f32 to vector<8x128xf32>
    %219 = arith.addf %218, %217 : vector<8x128xf32>
    %220 = arith.divf %218, %219 : vector<8x128xf32>
    %221 = vector.extract_strided_slice %201 {offsets = [0, 256], sizes = [8, 128], strides = [1, 1]} : vector<8x384xf32> to vector<8x128xf32>
    %222 = vector.extract_strided_slice %204 {offsets = [0, 256], sizes = [8, 128], strides = [1, 1]} : vector<8x384xf32> to vector<8x128xf32>
    %223 = arith.mulf %212, %222 : vector<8x128xf32>
    %224 = arith.addf %221, %223 : vector<8x128xf32>
    %225 = math.tanh %224 : vector<8x128xf32>
    %cst_66 = arith.constant 1.000000e+00 : f32
    %226 = vector.broadcast %cst_66 : f32 to vector<8x128xf32>
    %227 = arith.subf %226, %220 : vector<8x128xf32>
    %228 = arith.mulf %227, %225 : vector<8x128xf32>
    %229 = arith.mulf %220, %194 : vector<8x128xf32>
    %230 = arith.addf %228, %229 : vector<8x128xf32>
    %231 = arith.index_cast %c5_i32 : i32 to index
    %c0_67 = arith.constant 0 : index
    %c0_68 = arith.constant 0 : index
    %232 = vector.load %arg21[%231, %c0_67, %c0_68] : memref<8x8x128xf32, #tpu.memory_space<vmem>>, vector<1x8x128xf32>
    %233 = vector.shape_cast %232 : vector<1x8x128xf32> to vector<8x128xf32>
    %234 = vector.shape_cast %230 : vector<8x128xf32> to vector<1x8x128xf32>
    tpu.vector_store %arg21[%231, %c0_67, %c0_68], %234 {strides = array<i32>} : memref<8x8x128xf32, #tpu.memory_space<vmem>>, vector<1x8x128xf32>,
    %c6_i32 = arith.constant 6 : i32
    %235 = arith.index_cast %c6_i32 : i32 to index
    %c0_69 = arith.constant 0 : index
    %c0_70 = arith.constant 0 : index
    %236 = vector.load %arg19[%235, %c0_69, %c0_70] : memref<8x8x384xf32, #tpu.memory_space<vmem>>, vector<1x8x384xf32>
    %237 = vector.shape_cast %236 : vector<1x8x384xf32> to vector<8x384xf32>
    %cst_71 = arith.constant dense<0.000000e+00> : vector<8x384xf32>
    %238 = tpu.matmul %230, %17, %cst_71 {dimension_numbers = #tpu.dot_dimension_numbers<[1], [0], [0], [1], [0, 0, 1, 1], [], []>} : vector<8x128xf32>, vector<128x384xf32>, vector<8x384xf32> -> vector<8x384xf32>
    %239 = vector.broadcast %16 : vector<1x384xf32> to vector<8x384xf32>
    %240 = arith.addf %238, %239 : vector<8x384xf32>
    %241 = vector.extract_strided_slice %237 {offsets = [0, 0], sizes = [8, 128], strides = [1, 1]} : vector<8x384xf32> to vector<8x128xf32>
    %242 = vector.extract_strided_slice %240 {offsets = [0, 0], sizes = [8, 128], strides = [1, 1]} : vector<8x384xf32> to vector<8x128xf32>
    %243 = arith.addf %241, %242 : vector<8x128xf32>
    %244 = arith.negf %243 : vector<8x128xf32>
    %245 = math.exp %244 : vector<8x128xf32>
    %cst_72 = arith.constant 1.000000e+00 : f32
    %246 = vector.broadcast %cst_72 : f32 to vector<8x128xf32>
    %247 = arith.addf %246, %245 : vector<8x128xf32>
    %248 = arith.divf %246, %247 : vector<8x128xf32>
    %249 = vector.extract_strided_slice %237 {offsets = [0, 128], sizes = [8, 128], strides = [1, 1]} : vector<8x384xf32> to vector<8x128xf32>
    %250 = vector.extract_strided_slice %240 {offsets = [0, 128], sizes = [8, 128], strides = [1, 1]} : vector<8x384xf32> to vector<8x128xf32>
    %251 = arith.addf %249, %250 : vector<8x128xf32>
    %252 = arith.negf %251 : vector<8x128xf32>
    %253 = math.exp %252 : vector<8x128xf32>
    %cst_73 = arith.constant 1.000000e+00 : f32
    %254 = vector.broadcast %cst_73 : f32 to vector<8x128xf32>
    %255 = arith.addf %254, %253 : vector<8x128xf32>
    %256 = arith.divf %254, %255 : vector<8x128xf32>
    %257 = vector.extract_strided_slice %237 {offsets = [0, 256], sizes = [8, 128], strides = [1, 1]} : vector<8x384xf32> to vector<8x128xf32>
    %258 = vector.extract_strided_slice %240 {offsets = [0, 256], sizes = [8, 128], strides = [1, 1]} : vector<8x384xf32> to vector<8x128xf32>
    %259 = arith.mulf %248, %258 : vector<8x128xf32>
    %260 = arith.addf %257, %259 : vector<8x128xf32>
    %261 = math.tanh %260 : vector<8x128xf32>
    %cst_74 = arith.constant 1.000000e+00 : f32
    %262 = vector.broadcast %cst_74 : f32 to vector<8x128xf32>
    %263 = arith.subf %262, %256 : vector<8x128xf32>
    %264 = arith.mulf %263, %261 : vector<8x128xf32>
    %265 = arith.mulf %256, %230 : vector<8x128xf32>
    %266 = arith.addf %264, %265 : vector<8x128xf32>
    %267 = arith.index_cast %c6_i32 : i32 to index
    %c0_75 = arith.constant 0 : index
    %c0_76 = arith.constant 0 : index
    %268 = vector.load %arg21[%267, %c0_75, %c0_76] : memref<8x8x128xf32, #tpu.memory_space<vmem>>, vector<1x8x128xf32>
    %269 = vector.shape_cast %268 : vector<1x8x128xf32> to vector<8x128xf32>
    %270 = vector.shape_cast %266 : vector<8x128xf32> to vector<1x8x128xf32>
    tpu.vector_store %arg21[%267, %c0_75, %c0_76], %270 {strides = array<i32>} : memref<8x8x128xf32, #tpu.memory_space<vmem>>, vector<1x8x128xf32>,
    %c7_i32 = arith.constant 7 : i32
    %271 = arith.index_cast %c7_i32 : i32 to index
    %c0_77 = arith.constant 0 : index
    %c0_78 = arith.constant 0 : index
    %272 = vector.load %arg19[%271, %c0_77, %c0_78] : memref<8x8x384xf32, #tpu.memory_space<vmem>>, vector<1x8x384xf32>
    %273 = vector.shape_cast %272 : vector<1x8x384xf32> to vector<8x384xf32>
    %cst_79 = arith.constant dense<0.000000e+00> : vector<8x384xf32>
    %274 = tpu.matmul %266, %17, %cst_79 {dimension_numbers = #tpu.dot_dimension_numbers<[1], [0], [0], [1], [0, 0, 1, 1], [], []>} : vector<8x128xf32>, vector<128x384xf32>, vector<8x384xf32> -> vector<8x384xf32>
    %275 = vector.broadcast %16 : vector<1x384xf32> to vector<8x384xf32>
    %276 = arith.addf %274, %275 : vector<8x384xf32>
    %277 = vector.extract_strided_slice %273 {offsets = [0, 0], sizes = [8, 128], strides = [1, 1]} : vector<8x384xf32> to vector<8x128xf32>
    %278 = vector.extract_strided_slice %276 {offsets = [0, 0], sizes = [8, 128], strides = [1, 1]} : vector<8x384xf32> to vector<8x128xf32>
    %279 = arith.addf %277, %278 : vector<8x128xf32>
    %280 = arith.negf %279 : vector<8x128xf32>
    %281 = math.exp %280 : vector<8x128xf32>
    %cst_80 = arith.constant 1.000000e+00 : f32
    %282 = vector.broadcast %cst_80 : f32 to vector<8x128xf32>
    %283 = arith.addf %282, %281 : vector<8x128xf32>
    %284 = arith.divf %282, %283 : vector<8x128xf32>
    %285 = vector.extract_strided_slice %273 {offsets = [0, 128], sizes = [8, 128], strides = [1, 1]} : vector<8x384xf32> to vector<8x128xf32>
    %286 = vector.extract_strided_slice %276 {offsets = [0, 128], sizes = [8, 128], strides = [1, 1]} : vector<8x384xf32> to vector<8x128xf32>
    %287 = arith.addf %285, %286 : vector<8x128xf32>
    %288 = arith.negf %287 : vector<8x128xf32>
    %289 = math.exp %288 : vector<8x128xf32>
    %cst_81 = arith.constant 1.000000e+00 : f32
    %290 = vector.broadcast %cst_81 : f32 to vector<8x128xf32>
    %291 = arith.addf %290, %289 : vector<8x128xf32>
    %292 = arith.divf %290, %291 : vector<8x128xf32>
    %293 = vector.extract_strided_slice %273 {offsets = [0, 256], sizes = [8, 128], strides = [1, 1]} : vector<8x384xf32> to vector<8x128xf32>
    %294 = vector.extract_strided_slice %276 {offsets = [0, 256], sizes = [8, 128], strides = [1, 1]} : vector<8x384xf32> to vector<8x128xf32>
    %295 = arith.mulf %284, %294 : vector<8x128xf32>
    %296 = arith.addf %293, %295 : vector<8x128xf32>
    %297 = math.tanh %296 : vector<8x128xf32>
    %cst_82 = arith.constant 1.000000e+00 : f32
    %298 = vector.broadcast %cst_82 : f32 to vector<8x128xf32>
    %299 = arith.subf %298, %292 : vector<8x128xf32>
    %300 = arith.mulf %299, %297 : vector<8x128xf32>
    %301 = arith.mulf %292, %266 : vector<8x128xf32>
    %302 = arith.addf %300, %301 : vector<8x128xf32>
    %303 = arith.index_cast %c7_i32 : i32 to index
    %c0_83 = arith.constant 0 : index
    %c0_84 = arith.constant 0 : index
    %304 = vector.load %arg21[%303, %c0_83, %c0_84] : memref<8x8x128xf32, #tpu.memory_space<vmem>>, vector<1x8x128xf32>
    %305 = vector.shape_cast %304 : vector<1x8x128xf32> to vector<8x128xf32>
    %306 = vector.shape_cast %302 : vector<8x128xf32> to vector<1x8x128xf32>
    tpu.vector_store %arg21[%303, %c0_83, %c0_84], %306 {strides = array<i32>} : memref<8x8x128xf32, #tpu.memory_space<vmem>>, vector<1x8x128xf32>,
    %c8_i32 = arith.constant 8 : i32
    %c1_85 = arith.constant 1 : index
    %c0_86 = arith.constant 0 : index
    %307 = vector.load %arg6[%c1_85, %c0_86] : memref<2x384xf32, #tpu.memory_space<vmem>>, vector<1x384xf32>
    %c0_87 = arith.constant 0 : index
    %c0_88 = arith.constant 0 : index
    %308 = vector.load %arg5[%c0_87, %c0_88] : memref<128x384xf32, #tpu.memory_space<vmem>>, vector<128x384xf32>
    %cst_89 = arith.constant 0.000000e+00 : f32
    %309 = vector.broadcast %cst_89 : f32 to vector<8x128xf32>
    %c0_i32_90 = arith.constant 0 : i32
    %c7_i32_91 = arith.constant 7 : i32
    %310 = arith.subi %c7_i32_91, %c0_i32_90 : i32
    %311 = arith.index_cast %310 : i32 to index
    %c0_92 = arith.constant 0 : index
    %c0_93 = arith.constant 0 : index
    %312 = vector.load %arg20[%311, %c0_92, %c0_93] : memref<8x8x384xf32, #tpu.memory_space<vmem>>, vector<1x8x384xf32>
    %313 = vector.shape_cast %312 : vector<1x8x384xf32> to vector<8x384xf32>
    %cst_94 = arith.constant dense<0.000000e+00> : vector<8x384xf32>
    %314 = tpu.matmul %309, %308, %cst_94 {dimension_numbers = #tpu.dot_dimension_numbers<[1], [0], [0], [1], [0, 0, 1, 1], [], []>} : vector<8x128xf32>, vector<128x384xf32>, vector<8x384xf32> -> vector<8x384xf32>
    %315 = vector.broadcast %307 : vector<1x384xf32> to vector<8x384xf32>
    %316 = arith.addf %314, %315 : vector<8x384xf32>
    %317 = vector.extract_strided_slice %313 {offsets = [0, 0], sizes = [8, 128], strides = [1, 1]} : vector<8x384xf32> to vector<8x128xf32>
    %318 = vector.extract_strided_slice %316 {offsets = [0, 0], sizes = [8, 128], strides = [1, 1]} : vector<8x384xf32> to vector<8x128xf32>
    %319 = arith.addf %317, %318 : vector<8x128xf32>
    %320 = arith.negf %319 : vector<8x128xf32>
    %321 = math.exp %320 : vector<8x128xf32>
    %cst_95 = arith.constant 1.000000e+00 : f32
    %322 = vector.broadcast %cst_95 : f32 to vector<8x128xf32>
    %323 = arith.addf %322, %321 : vector<8x128xf32>
    %324 = arith.divf %322, %323 : vector<8x128xf32>
    %325 = vector.extract_strided_slice %313 {offsets = [0, 128], sizes = [8, 128], strides = [1, 1]} : vector<8x384xf32> to vector<8x128xf32>
    %326 = vector.extract_strided_slice %316 {offsets = [0, 128], sizes = [8, 128], strides = [1, 1]} : vector<8x384xf32> to vector<8x128xf32>
    %327 = arith.addf %325, %326 : vector<8x128xf32>
    %328 = arith.negf %327 : vector<8x128xf32>
    %329 = math.exp %328 : vector<8x128xf32>
    %cst_96 = arith.constant 1.000000e+00 : f32
    %330 = vector.broadcast %cst_96 : f32 to vector<8x128xf32>
    %331 = arith.addf %330, %329 : vector<8x128xf32>
    %332 = arith.divf %330, %331 : vector<8x128xf32>
    %333 = vector.extract_strided_slice %313 {offsets = [0, 256], sizes = [8, 128], strides = [1, 1]} : vector<8x384xf32> to vector<8x128xf32>
    %334 = vector.extract_strided_slice %316 {offsets = [0, 256], sizes = [8, 128], strides = [1, 1]} : vector<8x384xf32> to vector<8x128xf32>
    %335 = arith.mulf %324, %334 : vector<8x128xf32>
    %336 = arith.addf %333, %335 : vector<8x128xf32>
    %337 = math.tanh %336 : vector<8x128xf32>
    %cst_97 = arith.constant 1.000000e+00 : f32
    %338 = vector.broadcast %cst_97 : f32 to vector<8x128xf32>
    %339 = arith.subf %338, %332 : vector<8x128xf32>
    %340 = arith.mulf %339, %337 : vector<8x128xf32>
    %341 = arith.mulf %332, %309 : vector<8x128xf32>
    %342 = arith.addf %340, %341 : vector<8x128xf32>
    %343 = arith.index_cast %310 : i32 to index
    %c0_98 = arith.constant 0 : index
    %c0_99 = arith.constant 0 : index
    %344 = vector.load %arg22[%343, %c0_98, %c0_99] : memref<8x8x128xf32, #tpu.memory_space<vmem>>, vector<1x8x128xf32>
    %345 = vector.shape_cast %344 : vector<1x8x128xf32> to vector<8x128xf32>
    %346 = vector.shape_cast %342 : vector<8x128xf32> to vector<1x8x128xf32>
    tpu.vector_store %arg22[%343, %c0_98, %c0_99], %346 {strides = array<i32>} : memref<8x8x128xf32, #tpu.memory_space<vmem>>, vector<1x8x128xf32>,
    %c1_i32_100 = arith.constant 1 : i32
    %c7_i32_101 = arith.constant 7 : i32
    %347 = arith.subi %c7_i32_101, %c1_i32_100 : i32
    %348 = arith.index_cast %347 : i32 to index
    %c0_102 = arith.constant 0 : index
    %c0_103 = arith.constant 0 : index
    %349 = vector.load %arg20[%348, %c0_102, %c0_103] : memref<8x8x384xf32, #tpu.memory_space<vmem>>, vector<1x8x384xf32>
    %350 = vector.shape_cast %349 : vector<1x8x384xf32> to vector<8x384xf32>
    %cst_104 = arith.constant dense<0.000000e+00> : vector<8x384xf32>
    %351 = tpu.matmul %342, %308, %cst_104 {dimension_numbers = #tpu.dot_dimension_numbers<[1], [0], [0], [1], [0, 0, 1, 1], [], []>} : vector<8x128xf32>, vector<128x384xf32>, vector<8x384xf32> -> vector<8x384xf32>
    %352 = vector.broadcast %307 : vector<1x384xf32> to vector<8x384xf32>
    %353 = arith.addf %351, %352 : vector<8x384xf32>
    %354 = vector.extract_strided_slice %350 {offsets = [0, 0], sizes = [8, 128], strides = [1, 1]} : vector<8x384xf32> to vector<8x128xf32>
    %355 = vector.extract_strided_slice %353 {offsets = [0, 0], sizes = [8, 128], strides = [1, 1]} : vector<8x384xf32> to vector<8x128xf32>
    %356 = arith.addf %354, %355 : vector<8x128xf32>
    %357 = arith.negf %356 : vector<8x128xf32>
    %358 = math.exp %357 : vector<8x128xf32>
    %cst_105 = arith.constant 1.000000e+00 : f32
    %359 = vector.broadcast %cst_105 : f32 to vector<8x128xf32>
    %360 = arith.addf %359, %358 : vector<8x128xf32>
    %361 = arith.divf %359, %360 : vector<8x128xf32>
    %362 = vector.extract_strided_slice %350 {offsets = [0, 128], sizes = [8, 128], strides = [1, 1]} : vector<8x384xf32> to vector<8x128xf32>
    %363 = vector.extract_strided_slice %353 {offsets = [0, 128], sizes = [8, 128], strides = [1, 1]} : vector<8x384xf32> to vector<8x128xf32>
    %364 = arith.addf %362, %363 : vector<8x128xf32>
    %365 = arith.negf %364 : vector<8x128xf32>
    %366 = math.exp %365 : vector<8x128xf32>
    %cst_106 = arith.constant 1.000000e+00 : f32
    %367 = vector.broadcast %cst_106 : f32 to vector<8x128xf32>
    %368 = arith.addf %367, %366 : vector<8x128xf32>
    %369 = arith.divf %367, %368 : vector<8x128xf32>
    %370 = vector.extract_strided_slice %350 {offsets = [0, 256], sizes = [8, 128], strides = [1, 1]} : vector<8x384xf32> to vector<8x128xf32>
    %371 = vector.extract_strided_slice %353 {offsets = [0, 256], sizes = [8, 128], strides = [1, 1]} : vector<8x384xf32> to vector<8x128xf32>
    %372 = arith.mulf %361, %371 : vector<8x128xf32>
    %373 = arith.addf %370, %372 : vector<8x128xf32>
    %374 = math.tanh %373 : vector<8x128xf32>
    %cst_107 = arith.constant 1.000000e+00 : f32
    %375 = vector.broadcast %cst_107 : f32 to vector<8x128xf32>
    %376 = arith.subf %375, %369 : vector<8x128xf32>
    %377 = arith.mulf %376, %374 : vector<8x128xf32>
    %378 = arith.mulf %369, %342 : vector<8x128xf32>
    %379 = arith.addf %377, %378 : vector<8x128xf32>
    %380 = arith.index_cast %347 : i32 to index
    %c0_108 = arith.constant 0 : index
    %c0_109 = arith.constant 0 : index
    %381 = vector.load %arg22[%380, %c0_108, %c0_109] : memref<8x8x128xf32, #tpu.memory_space<vmem>>, vector<1x8x128xf32>
    %382 = vector.shape_cast %381 : vector<1x8x128xf32> to vector<8x128xf32>
    %383 = vector.shape_cast %379 : vector<8x128xf32> to vector<1x8x128xf32>
    tpu.vector_store %arg22[%380, %c0_108, %c0_109], %383 {strides = array<i32>} : memref<8x8x128xf32, #tpu.memory_space<vmem>>, vector<1x8x128xf32>,
    %c2_i32_110 = arith.constant 2 : i32
    %c7_i32_111 = arith.constant 7 : i32
    %384 = arith.subi %c7_i32_111, %c2_i32_110 : i32
    %385 = arith.index_cast %384 : i32 to index
    %c0_112 = arith.constant 0 : index
    %c0_113 = arith.constant 0 : index
    %386 = vector.load %arg20[%385, %c0_112, %c0_113] : memref<8x8x384xf32, #tpu.memory_space<vmem>>, vector<1x8x384xf32>
    %387 = vector.shape_cast %386 : vector<1x8x384xf32> to vector<8x384xf32>
    %cst_114 = arith.constant dense<0.000000e+00> : vector<8x384xf32>
    %388 = tpu.matmul %379, %308, %cst_114 {dimension_numbers = #tpu.dot_dimension_numbers<[1], [0], [0], [1], [0, 0, 1, 1], [], []>} : vector<8x128xf32>, vector<128x384xf32>, vector<8x384xf32> -> vector<8x384xf32>
    %389 = vector.broadcast %307 : vector<1x384xf32> to vector<8x384xf32>
    %390 = arith.addf %388, %389 : vector<8x384xf32>
    %391 = vector.extract_strided_slice %387 {offsets = [0, 0], sizes = [8, 128], strides = [1, 1]} : vector<8x384xf32> to vector<8x128xf32>
    %392 = vector.extract_strided_slice %390 {offsets = [0, 0], sizes = [8, 128], strides = [1, 1]} : vector<8x384xf32> to vector<8x128xf32>
    %393 = arith.addf %391, %392 : vector<8x128xf32>
    %394 = arith.negf %393 : vector<8x128xf32>
    %395 = math.exp %394 : vector<8x128xf32>
    %cst_115 = arith.constant 1.000000e+00 : f32
    %396 = vector.broadcast %cst_115 : f32 to vector<8x128xf32>
    %397 = arith.addf %396, %395 : vector<8x128xf32>
    %398 = arith.divf %396, %397 : vector<8x128xf32>
    %399 = vector.extract_strided_slice %387 {offsets = [0, 128], sizes = [8, 128], strides = [1, 1]} : vector<8x384xf32> to vector<8x128xf32>
    %400 = vector.extract_strided_slice %390 {offsets = [0, 128], sizes = [8, 128], strides = [1, 1]} : vector<8x384xf32> to vector<8x128xf32>
    %401 = arith.addf %399, %400 : vector<8x128xf32>
    %402 = arith.negf %401 : vector<8x128xf32>
    %403 = math.exp %402 : vector<8x128xf32>
    %cst_116 = arith.constant 1.000000e+00 : f32
    %404 = vector.broadcast %cst_116 : f32 to vector<8x128xf32>
    %405 = arith.addf %404, %403 : vector<8x128xf32>
    %406 = arith.divf %404, %405 : vector<8x128xf32>
    %407 = vector.extract_strided_slice %387 {offsets = [0, 256], sizes = [8, 128], strides = [1, 1]} : vector<8x384xf32> to vector<8x128xf32>
    %408 = vector.extract_strided_slice %390 {offsets = [0, 256], sizes = [8, 128], strides = [1, 1]} : vector<8x384xf32> to vector<8x128xf32>
    %409 = arith.mulf %398, %408 : vector<8x128xf32>
    %410 = arith.addf %407, %409 : vector<8x128xf32>
    %411 = math.tanh %410 : vector<8x128xf32>
    %cst_117 = arith.constant 1.000000e+00 : f32
    %412 = vector.broadcast %cst_117 : f32 to vector<8x128xf32>
    %413 = arith.subf %412, %406 : vector<8x128xf32>
    %414 = arith.mulf %413, %411 : vector<8x128xf32>
    %415 = arith.mulf %406, %379 : vector<8x128xf32>
    %416 = arith.addf %414, %415 : vector<8x128xf32>
    %417 = arith.index_cast %384 : i32 to index
    %c0_118 = arith.constant 0 : index
    %c0_119 = arith.constant 0 : index
    %418 = vector.load %arg22[%417, %c0_118, %c0_119] : memref<8x8x128xf32, #tpu.memory_space<vmem>>, vector<1x8x128xf32>
    %419 = vector.shape_cast %418 : vector<1x8x128xf32> to vector<8x128xf32>
    %420 = vector.shape_cast %416 : vector<8x128xf32> to vector<1x8x128xf32>
    tpu.vector_store %arg22[%417, %c0_118, %c0_119], %420 {strides = array<i32>} : memref<8x8x128xf32, #tpu.memory_space<vmem>>, vector<1x8x128xf32>,
    %c3_i32_120 = arith.constant 3 : i32
    %c7_i32_121 = arith.constant 7 : i32
    %421 = arith.subi %c7_i32_121, %c3_i32_120 : i32
    %422 = arith.index_cast %421 : i32 to index
    %c0_122 = arith.constant 0 : index
    %c0_123 = arith.constant 0 : index
    %423 = vector.load %arg20[%422, %c0_122, %c0_123] : memref<8x8x384xf32, #tpu.memory_space<vmem>>, vector<1x8x384xf32>
    %424 = vector.shape_cast %423 : vector<1x8x384xf32> to vector<8x384xf32>
    %cst_124 = arith.constant dense<0.000000e+00> : vector<8x384xf32>
    %425 = tpu.matmul %416, %308, %cst_124 {dimension_numbers = #tpu.dot_dimension_numbers<[1], [0], [0], [1], [0, 0, 1, 1], [], []>} : vector<8x128xf32>, vector<128x384xf32>, vector<8x384xf32> -> vector<8x384xf32>
    %426 = vector.broadcast %307 : vector<1x384xf32> to vector<8x384xf32>
    %427 = arith.addf %425, %426 : vector<8x384xf32>
    %428 = vector.extract_strided_slice %424 {offsets = [0, 0], sizes = [8, 128], strides = [1, 1]} : vector<8x384xf32> to vector<8x128xf32>
    %429 = vector.extract_strided_slice %427 {offsets = [0, 0], sizes = [8, 128], strides = [1, 1]} : vector<8x384xf32> to vector<8x128xf32>
    %430 = arith.addf %428, %429 : vector<8x128xf32>
    %431 = arith.negf %430 : vector<8x128xf32>
    %432 = math.exp %431 : vector<8x128xf32>
    %cst_125 = arith.constant 1.000000e+00 : f32
    %433 = vector.broadcast %cst_125 : f32 to vector<8x128xf32>
    %434 = arith.addf %433, %432 : vector<8x128xf32>
    %435 = arith.divf %433, %434 : vector<8x128xf32>
    %436 = vector.extract_strided_slice %424 {offsets = [0, 128], sizes = [8, 128], strides = [1, 1]} : vector<8x384xf32> to vector<8x128xf32>
    %437 = vector.extract_strided_slice %427 {offsets = [0, 128], sizes = [8, 128], strides = [1, 1]} : vector<8x384xf32> to vector<8x128xf32>
    %438 = arith.addf %436, %437 : vector<8x128xf32>
    %439 = arith.negf %438 : vector<8x128xf32>
    %440 = math.exp %439 : vector<8x128xf32>
    %cst_126 = arith.constant 1.000000e+00 : f32
    %441 = vector.broadcast %cst_126 : f32 to vector<8x128xf32>
    %442 = arith.addf %441, %440 : vector<8x128xf32>
    %443 = arith.divf %441, %442 : vector<8x128xf32>
    %444 = vector.extract_strided_slice %424 {offsets = [0, 256], sizes = [8, 128], strides = [1, 1]} : vector<8x384xf32> to vector<8x128xf32>
    %445 = vector.extract_strided_slice %427 {offsets = [0, 256], sizes = [8, 128], strides = [1, 1]} : vector<8x384xf32> to vector<8x128xf32>
    %446 = arith.mulf %435, %445 : vector<8x128xf32>
    %447 = arith.addf %444, %446 : vector<8x128xf32>
    %448 = math.tanh %447 : vector<8x128xf32>
    %cst_127 = arith.constant 1.000000e+00 : f32
    %449 = vector.broadcast %cst_127 : f32 to vector<8x128xf32>
    %450 = arith.subf %449, %443 : vector<8x128xf32>
    %451 = arith.mulf %450, %448 : vector<8x128xf32>
    %452 = arith.mulf %443, %416 : vector<8x128xf32>
    %453 = arith.addf %451, %452 : vector<8x128xf32>
    %454 = arith.index_cast %421 : i32 to index
    %c0_128 = arith.constant 0 : index
    %c0_129 = arith.constant 0 : index
    %455 = vector.load %arg22[%454, %c0_128, %c0_129] : memref<8x8x128xf32, #tpu.memory_space<vmem>>, vector<1x8x128xf32>
    %456 = vector.shape_cast %455 : vector<1x8x128xf32> to vector<8x128xf32>
    %457 = vector.shape_cast %453 : vector<8x128xf32> to vector<1x8x128xf32>
    tpu.vector_store %arg22[%454, %c0_128, %c0_129], %457 {strides = array<i32>} : memref<8x8x128xf32, #tpu.memory_space<vmem>>, vector<1x8x128xf32>,
    %c4_i32_130 = arith.constant 4 : i32
    %c7_i32_131 = arith.constant 7 : i32
    %458 = arith.subi %c7_i32_131, %c4_i32_130 : i32
    %459 = arith.index_cast %458 : i32 to index
    %c0_132 = arith.constant 0 : index
    %c0_133 = arith.constant 0 : index
    %460 = vector.load %arg20[%459, %c0_132, %c0_133] : memref<8x8x384xf32, #tpu.memory_space<vmem>>, vector<1x8x384xf32>
    %461 = vector.shape_cast %460 : vector<1x8x384xf32> to vector<8x384xf32>
    %cst_134 = arith.constant dense<0.000000e+00> : vector<8x384xf32>
    %462 = tpu.matmul %453, %308, %cst_134 {dimension_numbers = #tpu.dot_dimension_numbers<[1], [0], [0], [1], [0, 0, 1, 1], [], []>} : vector<8x128xf32>, vector<128x384xf32>, vector<8x384xf32> -> vector<8x384xf32>
    %463 = vector.broadcast %307 : vector<1x384xf32> to vector<8x384xf32>
    %464 = arith.addf %462, %463 : vector<8x384xf32>
    %465 = vector.extract_strided_slice %461 {offsets = [0, 0], sizes = [8, 128], strides = [1, 1]} : vector<8x384xf32> to vector<8x128xf32>
    %466 = vector.extract_strided_slice %464 {offsets = [0, 0], sizes = [8, 128], strides = [1, 1]} : vector<8x384xf32> to vector<8x128xf32>
    %467 = arith.addf %465, %466 : vector<8x128xf32>
    %468 = arith.negf %467 : vector<8x128xf32>
    %469 = math.exp %468 : vector<8x128xf32>
    %cst_135 = arith.constant 1.000000e+00 : f32
    %470 = vector.broadcast %cst_135 : f32 to vector<8x128xf32>
    %471 = arith.addf %470, %469 : vector<8x128xf32>
    %472 = arith.divf %470, %471 : vector<8x128xf32>
    %473 = vector.extract_strided_slice %461 {offsets = [0, 128], sizes = [8, 128], strides = [1, 1]} : vector<8x384xf32> to vector<8x128xf32>
    %474 = vector.extract_strided_slice %464 {offsets = [0, 128], sizes = [8, 128], strides = [1, 1]} : vector<8x384xf32> to vector<8x128xf32>
    %475 = arith.addf %473, %474 : vector<8x128xf32>
    %476 = arith.negf %475 : vector<8x128xf32>
    %477 = math.exp %476 : vector<8x128xf32>
    %cst_136 = arith.constant 1.000000e+00 : f32
    %478 = vector.broadcast %cst_136 : f32 to vector<8x128xf32>
    %479 = arith.addf %478, %477 : vector<8x128xf32>
    %480 = arith.divf %478, %479 : vector<8x128xf32>
    %481 = vector.extract_strided_slice %461 {offsets = [0, 256], sizes = [8, 128], strides = [1, 1]} : vector<8x384xf32> to vector<8x128xf32>
    %482 = vector.extract_strided_slice %464 {offsets = [0, 256], sizes = [8, 128], strides = [1, 1]} : vector<8x384xf32> to vector<8x128xf32>
    %483 = arith.mulf %472, %482 : vector<8x128xf32>
    %484 = arith.addf %481, %483 : vector<8x128xf32>
    %485 = math.tanh %484 : vector<8x128xf32>
    %cst_137 = arith.constant 1.000000e+00 : f32
    %486 = vector.broadcast %cst_137 : f32 to vector<8x128xf32>
    %487 = arith.subf %486, %480 : vector<8x128xf32>
    %488 = arith.mulf %487, %485 : vector<8x128xf32>
    %489 = arith.mulf %480, %453 : vector<8x128xf32>
    %490 = arith.addf %488, %489 : vector<8x128xf32>
    %491 = arith.index_cast %458 : i32 to index
    %c0_138 = arith.constant 0 : index
    %c0_139 = arith.constant 0 : index
    %492 = vector.load %arg22[%491, %c0_138, %c0_139] : memref<8x8x128xf32, #tpu.memory_space<vmem>>, vector<1x8x128xf32>
    %493 = vector.shape_cast %492 : vector<1x8x128xf32> to vector<8x128xf32>
    %494 = vector.shape_cast %490 : vector<8x128xf32> to vector<1x8x128xf32>
    tpu.vector_store %arg22[%491, %c0_138, %c0_139], %494 {strides = array<i32>} : memref<8x8x128xf32, #tpu.memory_space<vmem>>, vector<1x8x128xf32>,
    %c5_i32_140 = arith.constant 5 : i32
    %c7_i32_141 = arith.constant 7 : i32
    %495 = arith.subi %c7_i32_141, %c5_i32_140 : i32
    %496 = arith.index_cast %495 : i32 to index
    %c0_142 = arith.constant 0 : index
    %c0_143 = arith.constant 0 : index
    %497 = vector.load %arg20[%496, %c0_142, %c0_143] : memref<8x8x384xf32, #tpu.memory_space<vmem>>, vector<1x8x384xf32>
    %498 = vector.shape_cast %497 : vector<1x8x384xf32> to vector<8x384xf32>
    %cst_144 = arith.constant dense<0.000000e+00> : vector<8x384xf32>
    %499 = tpu.matmul %490, %308, %cst_144 {dimension_numbers = #tpu.dot_dimension_numbers<[1], [0], [0], [1], [0, 0, 1, 1], [], []>} : vector<8x128xf32>, vector<128x384xf32>, vector<8x384xf32> -> vector<8x384xf32>
    %500 = vector.broadcast %307 : vector<1x384xf32> to vector<8x384xf32>
    %501 = arith.addf %499, %500 : vector<8x384xf32>
    %502 = vector.extract_strided_slice %498 {offsets = [0, 0], sizes = [8, 128], strides = [1, 1]} : vector<8x384xf32> to vector<8x128xf32>
    %503 = vector.extract_strided_slice %501 {offsets = [0, 0], sizes = [8, 128], strides = [1, 1]} : vector<8x384xf32> to vector<8x128xf32>
    %504 = arith.addf %502, %503 : vector<8x128xf32>
    %505 = arith.negf %504 : vector<8x128xf32>
    %506 = math.exp %505 : vector<8x128xf32>
    %cst_145 = arith.constant 1.000000e+00 : f32
    %507 = vector.broadcast %cst_145 : f32 to vector<8x128xf32>
    %508 = arith.addf %507, %506 : vector<8x128xf32>
    %509 = arith.divf %507, %508 : vector<8x128xf32>
    %510 = vector.extract_strided_slice %498 {offsets = [0, 128], sizes = [8, 128], strides = [1, 1]} : vector<8x384xf32> to vector<8x128xf32>
    %511 = vector.extract_strided_slice %501 {offsets = [0, 128], sizes = [8, 128], strides = [1, 1]} : vector<8x384xf32> to vector<8x128xf32>
    %512 = arith.addf %510, %511 : vector<8x128xf32>
    %513 = arith.negf %512 : vector<8x128xf32>
    %514 = math.exp %513 : vector<8x128xf32>
    %cst_146 = arith.constant 1.000000e+00 : f32
    %515 = vector.broadcast %cst_146 : f32 to vector<8x128xf32>
    %516 = arith.addf %515, %514 : vector<8x128xf32>
    %517 = arith.divf %515, %516 : vector<8x128xf32>
    %518 = vector.extract_strided_slice %498 {offsets = [0, 256], sizes = [8, 128], strides = [1, 1]} : vector<8x384xf32> to vector<8x128xf32>
    %519 = vector.extract_strided_slice %501 {offsets = [0, 256], sizes = [8, 128], strides = [1, 1]} : vector<8x384xf32> to vector<8x128xf32>
    %520 = arith.mulf %509, %519 : vector<8x128xf32>
    %521 = arith.addf %518, %520 : vector<8x128xf32>
    %522 = math.tanh %521 : vector<8x128xf32>
    %cst_147 = arith.constant 1.000000e+00 : f32
    %523 = vector.broadcast %cst_147 : f32 to vector<8x128xf32>
    %524 = arith.subf %523, %517 : vector<8x128xf32>
    %525 = arith.mulf %524, %522 : vector<8x128xf32>
    %526 = arith.mulf %517, %490 : vector<8x128xf32>
    %527 = arith.addf %525, %526 : vector<8x128xf32>
    %528 = arith.index_cast %495 : i32 to index
    %c0_148 = arith.constant 0 : index
    %c0_149 = arith.constant 0 : index
    %529 = vector.load %arg22[%528, %c0_148, %c0_149] : memref<8x8x128xf32, #tpu.memory_space<vmem>>, vector<1x8x128xf32>
    %530 = vector.shape_cast %529 : vector<1x8x128xf32> to vector<8x128xf32>
    %531 = vector.shape_cast %527 : vector<8x128xf32> to vector<1x8x128xf32>
    tpu.vector_store %arg22[%528, %c0_148, %c0_149], %531 {strides = array<i32>} : memref<8x8x128xf32, #tpu.memory_space<vmem>>, vector<1x8x128xf32>,
    %c6_i32_150 = arith.constant 6 : i32
    %c7_i32_151 = arith.constant 7 : i32
    %532 = arith.subi %c7_i32_151, %c6_i32_150 : i32
    %533 = arith.index_cast %532 : i32 to index
    %c0_152 = arith.constant 0 : index
    %c0_153 = arith.constant 0 : index
    %534 = vector.load %arg20[%533, %c0_152, %c0_153] : memref<8x8x384xf32, #tpu.memory_space<vmem>>, vector<1x8x384xf32>
    %535 = vector.shape_cast %534 : vector<1x8x384xf32> to vector<8x384xf32>
    %cst_154 = arith.constant dense<0.000000e+00> : vector<8x384xf32>
    %536 = tpu.matmul %527, %308, %cst_154 {dimension_numbers = #tpu.dot_dimension_numbers<[1], [0], [0], [1], [0, 0, 1, 1], [], []>} : vector<8x128xf32>, vector<128x384xf32>, vector<8x384xf32> -> vector<8x384xf32>
    %537 = vector.broadcast %307 : vector<1x384xf32> to vector<8x384xf32>
    %538 = arith.addf %536, %537 : vector<8x384xf32>
    %539 = vector.extract_strided_slice %535 {offsets = [0, 0], sizes = [8, 128], strides = [1, 1]} : vector<8x384xf32> to vector<8x128xf32>
    %540 = vector.extract_strided_slice %538 {offsets = [0, 0], sizes = [8, 128], strides = [1, 1]} : vector<8x384xf32> to vector<8x128xf32>
    %541 = arith.addf %539, %540 : vector<8x128xf32>
    %542 = arith.negf %541 : vector<8x128xf32>
    %543 = math.exp %542 : vector<8x128xf32>
    %cst_155 = arith.constant 1.000000e+00 : f32
    %544 = vector.broadcast %cst_155 : f32 to vector<8x128xf32>
    %545 = arith.addf %544, %543 : vector<8x128xf32>
    %546 = arith.divf %544, %545 : vector<8x128xf32>
    %547 = vector.extract_strided_slice %535 {offsets = [0, 128], sizes = [8, 128], strides = [1, 1]} : vector<8x384xf32> to vector<8x128xf32>
    %548 = vector.extract_strided_slice %538 {offsets = [0, 128], sizes = [8, 128], strides = [1, 1]} : vector<8x384xf32> to vector<8x128xf32>
    %549 = arith.addf %547, %548 : vector<8x128xf32>
    %550 = arith.negf %549 : vector<8x128xf32>
    %551 = math.exp %550 : vector<8x128xf32>
    %cst_156 = arith.constant 1.000000e+00 : f32
    %552 = vector.broadcast %cst_156 : f32 to vector<8x128xf32>
    %553 = arith.addf %552, %551 : vector<8x128xf32>
    %554 = arith.divf %552, %553 : vector<8x128xf32>
    %555 = vector.extract_strided_slice %535 {offsets = [0, 256], sizes = [8, 128], strides = [1, 1]} : vector<8x384xf32> to vector<8x128xf32>
    %556 = vector.extract_strided_slice %538 {offsets = [0, 256], sizes = [8, 128], strides = [1, 1]} : vector<8x384xf32> to vector<8x128xf32>
    %557 = arith.mulf %546, %556 : vector<8x128xf32>
    %558 = arith.addf %555, %557 : vector<8x128xf32>
    %559 = math.tanh %558 : vector<8x128xf32>
    %cst_157 = arith.constant 1.000000e+00 : f32
    %560 = vector.broadcast %cst_157 : f32 to vector<8x128xf32>
    %561 = arith.subf %560, %554 : vector<8x128xf32>
    %562 = arith.mulf %561, %559 : vector<8x128xf32>
    %563 = arith.mulf %554, %527 : vector<8x128xf32>
    %564 = arith.addf %562, %563 : vector<8x128xf32>
    %565 = arith.index_cast %532 : i32 to index
    %c0_158 = arith.constant 0 : index
    %c0_159 = arith.constant 0 : index
    %566 = vector.load %arg22[%565, %c0_158, %c0_159] : memref<8x8x128xf32, #tpu.memory_space<vmem>>, vector<1x8x128xf32>
    %567 = vector.shape_cast %566 : vector<1x8x128xf32> to vector<8x128xf32>
    %568 = vector.shape_cast %564 : vector<8x128xf32> to vector<1x8x128xf32>
    tpu.vector_store %arg22[%565, %c0_158, %c0_159], %568 {strides = array<i32>} : memref<8x8x128xf32, #tpu.memory_space<vmem>>, vector<1x8x128xf32>,
    %c7_i32_160 = arith.constant 7 : i32
    %c7_i32_161 = arith.constant 7 : i32
    %569 = arith.subi %c7_i32_161, %c7_i32_160 : i32
    %570 = arith.index_cast %569 : i32 to index
    %c0_162 = arith.constant 0 : index
    %c0_163 = arith.constant 0 : index
    %571 = vector.load %arg20[%570, %c0_162, %c0_163] : memref<8x8x384xf32, #tpu.memory_space<vmem>>, vector<1x8x384xf32>
    %572 = vector.shape_cast %571 : vector<1x8x384xf32> to vector<8x384xf32>
    %cst_164 = arith.constant dense<0.000000e+00> : vector<8x384xf32>
    %573 = tpu.matmul %564, %308, %cst_164 {dimension_numbers = #tpu.dot_dimension_numbers<[1], [0], [0], [1], [0, 0, 1, 1], [], []>} : vector<8x128xf32>, vector<128x384xf32>, vector<8x384xf32> -> vector<8x384xf32>
    %574 = vector.broadcast %307 : vector<1x384xf32> to vector<8x384xf32>
    %575 = arith.addf %573, %574 : vector<8x384xf32>
    %576 = vector.extract_strided_slice %572 {offsets = [0, 0], sizes = [8, 128], strides = [1, 1]} : vector<8x384xf32> to vector<8x128xf32>
    %577 = vector.extract_strided_slice %575 {offsets = [0, 0], sizes = [8, 128], strides = [1, 1]} : vector<8x384xf32> to vector<8x128xf32>
    %578 = arith.addf %576, %577 : vector<8x128xf32>
    %579 = arith.negf %578 : vector<8x128xf32>
    %580 = math.exp %579 : vector<8x128xf32>
    %cst_165 = arith.constant 1.000000e+00 : f32
    %581 = vector.broadcast %cst_165 : f32 to vector<8x128xf32>
    %582 = arith.addf %581, %580 : vector<8x128xf32>
    %583 = arith.divf %581, %582 : vector<8x128xf32>
    %584 = vector.extract_strided_slice %572 {offsets = [0, 128], sizes = [8, 128], strides = [1, 1]} : vector<8x384xf32> to vector<8x128xf32>
    %585 = vector.extract_strided_slice %575 {offsets = [0, 128], sizes = [8, 128], strides = [1, 1]} : vector<8x384xf32> to vector<8x128xf32>
    %586 = arith.addf %584, %585 : vector<8x128xf32>
    %587 = arith.negf %586 : vector<8x128xf32>
    %588 = math.exp %587 : vector<8x128xf32>
    %cst_166 = arith.constant 1.000000e+00 : f32
    %589 = vector.broadcast %cst_166 : f32 to vector<8x128xf32>
    %590 = arith.addf %589, %588 : vector<8x128xf32>
    %591 = arith.divf %589, %590 : vector<8x128xf32>
    %592 = vector.extract_strided_slice %572 {offsets = [0, 256], sizes = [8, 128], strides = [1, 1]} : vector<8x384xf32> to vector<8x128xf32>
    %593 = vector.extract_strided_slice %575 {offsets = [0, 256], sizes = [8, 128], strides = [1, 1]} : vector<8x384xf32> to vector<8x128xf32>
    %594 = arith.mulf %583, %593 : vector<8x128xf32>
    %595 = arith.addf %592, %594 : vector<8x128xf32>
    %596 = math.tanh %595 : vector<8x128xf32>
    %cst_167 = arith.constant 1.000000e+00 : f32
    %597 = vector.broadcast %cst_167 : f32 to vector<8x128xf32>
    %598 = arith.subf %597, %591 : vector<8x128xf32>
    %599 = arith.mulf %598, %596 : vector<8x128xf32>
    %600 = arith.mulf %591, %564 : vector<8x128xf32>
    %601 = arith.addf %599, %600 : vector<8x128xf32>
    %602 = arith.index_cast %569 : i32 to index
    %c0_168 = arith.constant 0 : index
    %c0_169 = arith.constant 0 : index
    %603 = vector.load %arg22[%602, %c0_168, %c0_169] : memref<8x8x128xf32, #tpu.memory_space<vmem>>, vector<1x8x128xf32>
    %604 = vector.shape_cast %603 : vector<1x8x128xf32> to vector<8x128xf32>
    %605 = vector.shape_cast %601 : vector<8x128xf32> to vector<1x8x128xf32>
    tpu.vector_store %arg22[%602, %c0_168, %c0_169], %605 {strides = array<i32>} : memref<8x8x128xf32, #tpu.memory_space<vmem>>, vector<1x8x128xf32>,
    %c8_i32_170 = arith.constant 8 : i32
    %c0_171 = arith.constant 0 : index
    %c0_172 = arith.constant 0 : index
    %c0_173 = arith.constant 0 : index
    %606 = vector.load %arg21[%c0_171, %c0_172, %c0_173] : memref<8x8x128xf32, #tpu.memory_space<vmem>>, vector<8x8x128xf32>
    %607 = vector.shape_cast %606 : vector<8x8x128xf32> to vector<64x128xf32>
    %c0_174 = arith.constant 0 : index
    %c0_175 = arith.constant 0 : index
    %c0_176 = arith.constant 0 : index
    %608 = vector.load %arg22[%c0_174, %c0_175, %c0_176] : memref<8x8x128xf32, #tpu.memory_space<vmem>>, vector<8x8x128xf32>
    %609 = vector.shape_cast %608 : vector<8x8x128xf32> to vector<64x128xf32>
    %c0_177 = arith.constant 0 : index
    %c0_178 = arith.constant 0 : index
    %610 = vector.load %arg7[%c0_177, %c0_178] : memref<128x384xf32, #tpu.memory_space<vmem>>, vector<128x384xf32>
    %cst_179 = arith.constant dense<0.000000e+00> : vector<64x384xf32>
    %611 = tpu.matmul %607, %610, %cst_179 {dimension_numbers = #tpu.dot_dimension_numbers<[1], [0], [0], [1], [0, 0, 1, 1], [], []>} : vector<64x128xf32>, vector<128x384xf32>, vector<64x384xf32> -> vector<64x384xf32>
    %c0_180 = arith.constant 0 : index
    %c0_181 = arith.constant 0 : index
    %612 = vector.load %arg8[%c0_180, %c0_181] : memref<128x384xf32, #tpu.memory_space<vmem>>, vector<128x384xf32>
    %cst_182 = arith.constant dense<0.000000e+00> : vector<64x384xf32>
    %613 = tpu.matmul %609, %612, %cst_182 {dimension_numbers = #tpu.dot_dimension_numbers<[1], [0], [0], [1], [0, 0, 1, 1], [], []>} : vector<64x128xf32>, vector<128x384xf32>, vector<64x384xf32> -> vector<64x384xf32>
    %614 = arith.addf %611, %613 : vector<64x384xf32>
    %c0_183 = arith.constant 0 : index
    %c0_184 = arith.constant 0 : index
    %615 = vector.load %arg10[%c0_183, %c0_184] : memref<2x384xf32, #tpu.memory_space<vmem>>, vector<1x384xf32>
    %616 = vector.broadcast %615 : vector<1x384xf32> to vector<64x384xf32>
    %617 = arith.addf %614, %616 : vector<64x384xf32>
    %618 = vector.shape_cast %617 : vector<64x384xf32> to vector<8x8x384xf32>
    %c0_185 = arith.constant 0 : index
    %c0_186 = arith.constant 0 : index
    %c0_187 = arith.constant 0 : index
    %619 = vector.load %arg19[%c0_185, %c0_186, %c0_187] : memref<8x8x384xf32, #tpu.memory_space<vmem>>, vector<8x8x384xf32>
    tpu.vector_store %arg19[%c0_185, %c0_186, %c0_187], %618 {strides = array<i32>} : memref<8x8x384xf32, #tpu.memory_space<vmem>>, vector<8x8x384xf32>,
    %c0_188 = arith.constant 0 : index
    %c0_189 = arith.constant 0 : index
    %620 = vector.load %arg11[%c0_188, %c0_189] : memref<128x384xf32, #tpu.memory_space<vmem>>, vector<128x384xf32>
    %cst_190 = arith.constant dense<0.000000e+00> : vector<64x384xf32>
    %621 = tpu.matmul %607, %620, %cst_190 {dimension_numbers = #tpu.dot_dimension_numbers<[1], [0], [0], [1], [0, 0, 1, 1], [], []>} : vector<64x128xf32>, vector<128x384xf32>, vector<64x384xf32> -> vector<64x384xf32>
    %c0_191 = arith.constant 0 : index
    %c0_192 = arith.constant 0 : index
    %622 = vector.load %arg12[%c0_191, %c0_192] : memref<128x384xf32, #tpu.memory_space<vmem>>, vector<128x384xf32>
    %cst_193 = arith.constant dense<0.000000e+00> : vector<64x384xf32>
    %623 = tpu.matmul %609, %622, %cst_193 {dimension_numbers = #tpu.dot_dimension_numbers<[1], [0], [0], [1], [0, 0, 1, 1], [], []>} : vector<64x128xf32>, vector<128x384xf32>, vector<64x384xf32> -> vector<64x384xf32>
    %624 = arith.addf %621, %623 : vector<64x384xf32>
    %c0_194 = arith.constant 0 : index
    %c0_195 = arith.constant 0 : index
    %625 = vector.load %arg14[%c0_194, %c0_195] : memref<2x384xf32, #tpu.memory_space<vmem>>, vector<1x384xf32>
    %626 = vector.broadcast %625 : vector<1x384xf32> to vector<64x384xf32>
    %627 = arith.addf %624, %626 : vector<64x384xf32>
    %628 = vector.shape_cast %627 : vector<64x384xf32> to vector<8x8x384xf32>
    %c0_196 = arith.constant 0 : index
    %c0_197 = arith.constant 0 : index
    %c0_198 = arith.constant 0 : index
    %629 = vector.load %arg20[%c0_196, %c0_197, %c0_198] : memref<8x8x384xf32, #tpu.memory_space<vmem>>, vector<8x8x384xf32>
    tpu.vector_store %arg20[%c0_196, %c0_197, %c0_198], %628 {strides = array<i32>} : memref<8x8x384xf32, #tpu.memory_space<vmem>>, vector<8x8x384xf32>,
    %c1_199 = arith.constant 1 : index
    %c0_200 = arith.constant 0 : index
    %630 = vector.load %arg10[%c1_199, %c0_200] : memref<2x384xf32, #tpu.memory_space<vmem>>, vector<1x384xf32>
    %c0_201 = arith.constant 0 : index
    %c0_202 = arith.constant 0 : index
    %631 = vector.load %arg9[%c0_201, %c0_202] : memref<128x384xf32, #tpu.memory_space<vmem>>, vector<128x384xf32>
    %cst_203 = arith.constant 0.000000e+00 : f32
    %632 = vector.broadcast %cst_203 : f32 to vector<8x128xf32>
    %c0_i32_204 = arith.constant 0 : i32
    %633 = arith.index_cast %c0_i32_204 : i32 to index
    %c0_205 = arith.constant 0 : index
    %c0_206 = arith.constant 0 : index
    %634 = vector.load %arg19[%633, %c0_205, %c0_206] : memref<8x8x384xf32, #tpu.memory_space<vmem>>, vector<1x8x384xf32>
    %635 = vector.shape_cast %634 : vector<1x8x384xf32> to vector<8x384xf32>
    %cst_207 = arith.constant dense<0.000000e+00> : vector<8x384xf32>
    %636 = tpu.matmul %632, %631, %cst_207 {dimension_numbers = #tpu.dot_dimension_numbers<[1], [0], [0], [1], [0, 0, 1, 1], [], []>} : vector<8x128xf32>, vector<128x384xf32>, vector<8x384xf32> -> vector<8x384xf32>
    %637 = vector.broadcast %630 : vector<1x384xf32> to vector<8x384xf32>
    %638 = arith.addf %636, %637 : vector<8x384xf32>
    %639 = vector.extract_strided_slice %635 {offsets = [0, 0], sizes = [8, 128], strides = [1, 1]} : vector<8x384xf32> to vector<8x128xf32>
    %640 = vector.extract_strided_slice %638 {offsets = [0, 0], sizes = [8, 128], strides = [1, 1]} : vector<8x384xf32> to vector<8x128xf32>
    %641 = arith.addf %639, %640 : vector<8x128xf32>
    %642 = arith.negf %641 : vector<8x128xf32>
    %643 = math.exp %642 : vector<8x128xf32>
    %cst_208 = arith.constant 1.000000e+00 : f32
    %644 = vector.broadcast %cst_208 : f32 to vector<8x128xf32>
    %645 = arith.addf %644, %643 : vector<8x128xf32>
    %646 = arith.divf %644, %645 : vector<8x128xf32>
    %647 = vector.extract_strided_slice %635 {offsets = [0, 128], sizes = [8, 128], strides = [1, 1]} : vector<8x384xf32> to vector<8x128xf32>
    %648 = vector.extract_strided_slice %638 {offsets = [0, 128], sizes = [8, 128], strides = [1, 1]} : vector<8x384xf32> to vector<8x128xf32>
    %649 = arith.addf %647, %648 : vector<8x128xf32>
    %650 = arith.negf %649 : vector<8x128xf32>
    %651 = math.exp %650 : vector<8x128xf32>
    %cst_209 = arith.constant 1.000000e+00 : f32
    %652 = vector.broadcast %cst_209 : f32 to vector<8x128xf32>
    %653 = arith.addf %652, %651 : vector<8x128xf32>
    %654 = arith.divf %652, %653 : vector<8x128xf32>
    %655 = vector.extract_strided_slice %635 {offsets = [0, 256], sizes = [8, 128], strides = [1, 1]} : vector<8x384xf32> to vector<8x128xf32>
    %656 = vector.extract_strided_slice %638 {offsets = [0, 256], sizes = [8, 128], strides = [1, 1]} : vector<8x384xf32> to vector<8x128xf32>
    %657 = arith.mulf %646, %656 : vector<8x128xf32>
    %658 = arith.addf %655, %657 : vector<8x128xf32>
    %659 = math.tanh %658 : vector<8x128xf32>
    %cst_210 = arith.constant 1.000000e+00 : f32
    %660 = vector.broadcast %cst_210 : f32 to vector<8x128xf32>
    %661 = arith.subf %660, %654 : vector<8x128xf32>
    %662 = arith.mulf %661, %659 : vector<8x128xf32>
    %663 = arith.mulf %654, %632 : vector<8x128xf32>
    %664 = arith.addf %662, %663 : vector<8x128xf32>
    %c1_i32_211 = arith.constant 1 : i32
    %665 = arith.index_cast %c1_i32_211 : i32 to index
    %c0_212 = arith.constant 0 : index
    %c0_213 = arith.constant 0 : index
    %666 = vector.load %arg19[%665, %c0_212, %c0_213] : memref<8x8x384xf32, #tpu.memory_space<vmem>>, vector<1x8x384xf32>
    %667 = vector.shape_cast %666 : vector<1x8x384xf32> to vector<8x384xf32>
    %cst_214 = arith.constant dense<0.000000e+00> : vector<8x384xf32>
    %668 = tpu.matmul %664, %631, %cst_214 {dimension_numbers = #tpu.dot_dimension_numbers<[1], [0], [0], [1], [0, 0, 1, 1], [], []>} : vector<8x128xf32>, vector<128x384xf32>, vector<8x384xf32> -> vector<8x384xf32>
    %669 = vector.broadcast %630 : vector<1x384xf32> to vector<8x384xf32>
    %670 = arith.addf %668, %669 : vector<8x384xf32>
    %671 = vector.extract_strided_slice %667 {offsets = [0, 0], sizes = [8, 128], strides = [1, 1]} : vector<8x384xf32> to vector<8x128xf32>
    %672 = vector.extract_strided_slice %670 {offsets = [0, 0], sizes = [8, 128], strides = [1, 1]} : vector<8x384xf32> to vector<8x128xf32>
    %673 = arith.addf %671, %672 : vector<8x128xf32>
    %674 = arith.negf %673 : vector<8x128xf32>
    %675 = math.exp %674 : vector<8x128xf32>
    %cst_215 = arith.constant 1.000000e+00 : f32
    %676 = vector.broadcast %cst_215 : f32 to vector<8x128xf32>
    %677 = arith.addf %676, %675 : vector<8x128xf32>
    %678 = arith.divf %676, %677 : vector<8x128xf32>
    %679 = vector.extract_strided_slice %667 {offsets = [0, 128], sizes = [8, 128], strides = [1, 1]} : vector<8x384xf32> to vector<8x128xf32>
    %680 = vector.extract_strided_slice %670 {offsets = [0, 128], sizes = [8, 128], strides = [1, 1]} : vector<8x384xf32> to vector<8x128xf32>
    %681 = arith.addf %679, %680 : vector<8x128xf32>
    %682 = arith.negf %681 : vector<8x128xf32>
    %683 = math.exp %682 : vector<8x128xf32>
    %cst_216 = arith.constant 1.000000e+00 : f32
    %684 = vector.broadcast %cst_216 : f32 to vector<8x128xf32>
    %685 = arith.addf %684, %683 : vector<8x128xf32>
    %686 = arith.divf %684, %685 : vector<8x128xf32>
    %687 = vector.extract_strided_slice %667 {offsets = [0, 256], sizes = [8, 128], strides = [1, 1]} : vector<8x384xf32> to vector<8x128xf32>
    %688 = vector.extract_strided_slice %670 {offsets = [0, 256], sizes = [8, 128], strides = [1, 1]} : vector<8x384xf32> to vector<8x128xf32>
    %689 = arith.mulf %678, %688 : vector<8x128xf32>
    %690 = arith.addf %687, %689 : vector<8x128xf32>
    %691 = math.tanh %690 : vector<8x128xf32>
    %cst_217 = arith.constant 1.000000e+00 : f32
    %692 = vector.broadcast %cst_217 : f32 to vector<8x128xf32>
    %693 = arith.subf %692, %686 : vector<8x128xf32>
    %694 = arith.mulf %693, %691 : vector<8x128xf32>
    %695 = arith.mulf %686, %664 : vector<8x128xf32>
    %696 = arith.addf %694, %695 : vector<8x128xf32>
    %c2_i32_218 = arith.constant 2 : i32
    %697 = arith.index_cast %c2_i32_218 : i32 to index
    %c0_219 = arith.constant 0 : index
    %c0_220 = arith.constant 0 : index
    %698 = vector.load %arg19[%697, %c0_219, %c0_220] : memref<8x8x384xf32, #tpu.memory_space<vmem>>, vector<1x8x384xf32>
    %699 = vector.shape_cast %698 : vector<1x8x384xf32> to vector<8x384xf32>
    %cst_221 = arith.constant dense<0.000000e+00> : vector<8x384xf32>
    %700 = tpu.matmul %696, %631, %cst_221 {dimension_numbers = #tpu.dot_dimension_numbers<[1], [0], [0], [1], [0, 0, 1, 1], [], []>} : vector<8x128xf32>, vector<128x384xf32>, vector<8x384xf32> -> vector<8x384xf32>
    %701 = vector.broadcast %630 : vector<1x384xf32> to vector<8x384xf32>
    %702 = arith.addf %700, %701 : vector<8x384xf32>
    %703 = vector.extract_strided_slice %699 {offsets = [0, 0], sizes = [8, 128], strides = [1, 1]} : vector<8x384xf32> to vector<8x128xf32>
    %704 = vector.extract_strided_slice %702 {offsets = [0, 0], sizes = [8, 128], strides = [1, 1]} : vector<8x384xf32> to vector<8x128xf32>
    %705 = arith.addf %703, %704 : vector<8x128xf32>
    %706 = arith.negf %705 : vector<8x128xf32>
    %707 = math.exp %706 : vector<8x128xf32>
    %cst_222 = arith.constant 1.000000e+00 : f32
    %708 = vector.broadcast %cst_222 : f32 to vector<8x128xf32>
    %709 = arith.addf %708, %707 : vector<8x128xf32>
    %710 = arith.divf %708, %709 : vector<8x128xf32>
    %711 = vector.extract_strided_slice %699 {offsets = [0, 128], sizes = [8, 128], strides = [1, 1]} : vector<8x384xf32> to vector<8x128xf32>
    %712 = vector.extract_strided_slice %702 {offsets = [0, 128], sizes = [8, 128], strides = [1, 1]} : vector<8x384xf32> to vector<8x128xf32>
    %713 = arith.addf %711, %712 : vector<8x128xf32>
    %714 = arith.negf %713 : vector<8x128xf32>
    %715 = math.exp %714 : vector<8x128xf32>
    %cst_223 = arith.constant 1.000000e+00 : f32
    %716 = vector.broadcast %cst_223 : f32 to vector<8x128xf32>
    %717 = arith.addf %716, %715 : vector<8x128xf32>
    %718 = arith.divf %716, %717 : vector<8x128xf32>
    %719 = vector.extract_strided_slice %699 {offsets = [0, 256], sizes = [8, 128], strides = [1, 1]} : vector<8x384xf32> to vector<8x128xf32>
    %720 = vector.extract_strided_slice %702 {offsets = [0, 256], sizes = [8, 128], strides = [1, 1]} : vector<8x384xf32> to vector<8x128xf32>
    %721 = arith.mulf %710, %720 : vector<8x128xf32>
    %722 = arith.addf %719, %721 : vector<8x128xf32>
    %723 = math.tanh %722 : vector<8x128xf32>
    %cst_224 = arith.constant 1.000000e+00 : f32
    %724 = vector.broadcast %cst_224 : f32 to vector<8x128xf32>
    %725 = arith.subf %724, %718 : vector<8x128xf32>
    %726 = arith.mulf %725, %723 : vector<8x128xf32>
    %727 = arith.mulf %718, %696 : vector<8x128xf32>
    %728 = arith.addf %726, %727 : vector<8x128xf32>
    %c3_i32_225 = arith.constant 3 : i32
    %729 = arith.index_cast %c3_i32_225 : i32 to index
    %c0_226 = arith.constant 0 : index
    %c0_227 = arith.constant 0 : index
    %730 = vector.load %arg19[%729, %c0_226, %c0_227] : memref<8x8x384xf32, #tpu.memory_space<vmem>>, vector<1x8x384xf32>
    %731 = vector.shape_cast %730 : vector<1x8x384xf32> to vector<8x384xf32>
    %cst_228 = arith.constant dense<0.000000e+00> : vector<8x384xf32>
    %732 = tpu.matmul %728, %631, %cst_228 {dimension_numbers = #tpu.dot_dimension_numbers<[1], [0], [0], [1], [0, 0, 1, 1], [], []>} : vector<8x128xf32>, vector<128x384xf32>, vector<8x384xf32> -> vector<8x384xf32>
    %733 = vector.broadcast %630 : vector<1x384xf32> to vector<8x384xf32>
    %734 = arith.addf %732, %733 : vector<8x384xf32>
    %735 = vector.extract_strided_slice %731 {offsets = [0, 0], sizes = [8, 128], strides = [1, 1]} : vector<8x384xf32> to vector<8x128xf32>
    %736 = vector.extract_strided_slice %734 {offsets = [0, 0], sizes = [8, 128], strides = [1, 1]} : vector<8x384xf32> to vector<8x128xf32>
    %737 = arith.addf %735, %736 : vector<8x128xf32>
    %738 = arith.negf %737 : vector<8x128xf32>
    %739 = math.exp %738 : vector<8x128xf32>
    %cst_229 = arith.constant 1.000000e+00 : f32
    %740 = vector.broadcast %cst_229 : f32 to vector<8x128xf32>
    %741 = arith.addf %740, %739 : vector<8x128xf32>
    %742 = arith.divf %740, %741 : vector<8x128xf32>
    %743 = vector.extract_strided_slice %731 {offsets = [0, 128], sizes = [8, 128], strides = [1, 1]} : vector<8x384xf32> to vector<8x128xf32>
    %744 = vector.extract_strided_slice %734 {offsets = [0, 128], sizes = [8, 128], strides = [1, 1]} : vector<8x384xf32> to vector<8x128xf32>
    %745 = arith.addf %743, %744 : vector<8x128xf32>
    %746 = arith.negf %745 : vector<8x128xf32>
    %747 = math.exp %746 : vector<8x128xf32>
    %cst_230 = arith.constant 1.000000e+00 : f32
    %748 = vector.broadcast %cst_230 : f32 to vector<8x128xf32>
    %749 = arith.addf %748, %747 : vector<8x128xf32>
    %750 = arith.divf %748, %749 : vector<8x128xf32>
    %751 = vector.extract_strided_slice %731 {offsets = [0, 256], sizes = [8, 128], strides = [1, 1]} : vector<8x384xf32> to vector<8x128xf32>
    %752 = vector.extract_strided_slice %734 {offsets = [0, 256], sizes = [8, 128], strides = [1, 1]} : vector<8x384xf32> to vector<8x128xf32>
    %753 = arith.mulf %742, %752 : vector<8x128xf32>
    %754 = arith.addf %751, %753 : vector<8x128xf32>
    %755 = math.tanh %754 : vector<8x128xf32>
    %cst_231 = arith.constant 1.000000e+00 : f32
    %756 = vector.broadcast %cst_231 : f32 to vector<8x128xf32>
    %757 = arith.subf %756, %750 : vector<8x128xf32>
    %758 = arith.mulf %757, %755 : vector<8x128xf32>
    %759 = arith.mulf %750, %728 : vector<8x128xf32>
    %760 = arith.addf %758, %759 : vector<8x128xf32>
    %c4_i32_232 = arith.constant 4 : i32
    %761 = arith.index_cast %c4_i32_232 : i32 to index
    %c0_233 = arith.constant 0 : index
    %c0_234 = arith.constant 0 : index
    %762 = vector.load %arg19[%761, %c0_233, %c0_234] : memref<8x8x384xf32, #tpu.memory_space<vmem>>, vector<1x8x384xf32>
    %763 = vector.shape_cast %762 : vector<1x8x384xf32> to vector<8x384xf32>
    %cst_235 = arith.constant dense<0.000000e+00> : vector<8x384xf32>
    %764 = tpu.matmul %760, %631, %cst_235 {dimension_numbers = #tpu.dot_dimension_numbers<[1], [0], [0], [1], [0, 0, 1, 1], [], []>} : vector<8x128xf32>, vector<128x384xf32>, vector<8x384xf32> -> vector<8x384xf32>
    %765 = vector.broadcast %630 : vector<1x384xf32> to vector<8x384xf32>
    %766 = arith.addf %764, %765 : vector<8x384xf32>
    %767 = vector.extract_strided_slice %763 {offsets = [0, 0], sizes = [8, 128], strides = [1, 1]} : vector<8x384xf32> to vector<8x128xf32>
    %768 = vector.extract_strided_slice %766 {offsets = [0, 0], sizes = [8, 128], strides = [1, 1]} : vector<8x384xf32> to vector<8x128xf32>
    %769 = arith.addf %767, %768 : vector<8x128xf32>
    %770 = arith.negf %769 : vector<8x128xf32>
    %771 = math.exp %770 : vector<8x128xf32>
    %cst_236 = arith.constant 1.000000e+00 : f32
    %772 = vector.broadcast %cst_236 : f32 to vector<8x128xf32>
    %773 = arith.addf %772, %771 : vector<8x128xf32>
    %774 = arith.divf %772, %773 : vector<8x128xf32>
    %775 = vector.extract_strided_slice %763 {offsets = [0, 128], sizes = [8, 128], strides = [1, 1]} : vector<8x384xf32> to vector<8x128xf32>
    %776 = vector.extract_strided_slice %766 {offsets = [0, 128], sizes = [8, 128], strides = [1, 1]} : vector<8x384xf32> to vector<8x128xf32>
    %777 = arith.addf %775, %776 : vector<8x128xf32>
    %778 = arith.negf %777 : vector<8x128xf32>
    %779 = math.exp %778 : vector<8x128xf32>
    %cst_237 = arith.constant 1.000000e+00 : f32
    %780 = vector.broadcast %cst_237 : f32 to vector<8x128xf32>
    %781 = arith.addf %780, %779 : vector<8x128xf32>
    %782 = arith.divf %780, %781 : vector<8x128xf32>
    %783 = vector.extract_strided_slice %763 {offsets = [0, 256], sizes = [8, 128], strides = [1, 1]} : vector<8x384xf32> to vector<8x128xf32>
    %784 = vector.extract_strided_slice %766 {offsets = [0, 256], sizes = [8, 128], strides = [1, 1]} : vector<8x384xf32> to vector<8x128xf32>
    %785 = arith.mulf %774, %784 : vector<8x128xf32>
    %786 = arith.addf %783, %785 : vector<8x128xf32>
    %787 = math.tanh %786 : vector<8x128xf32>
    %cst_238 = arith.constant 1.000000e+00 : f32
    %788 = vector.broadcast %cst_238 : f32 to vector<8x128xf32>
    %789 = arith.subf %788, %782 : vector<8x128xf32>
    %790 = arith.mulf %789, %787 : vector<8x128xf32>
    %791 = arith.mulf %782, %760 : vector<8x128xf32>
    %792 = arith.addf %790, %791 : vector<8x128xf32>
    %c5_i32_239 = arith.constant 5 : i32
    %793 = arith.index_cast %c5_i32_239 : i32 to index
    %c0_240 = arith.constant 0 : index
    %c0_241 = arith.constant 0 : index
    %794 = vector.load %arg19[%793, %c0_240, %c0_241] : memref<8x8x384xf32, #tpu.memory_space<vmem>>, vector<1x8x384xf32>
    %795 = vector.shape_cast %794 : vector<1x8x384xf32> to vector<8x384xf32>
    %cst_242 = arith.constant dense<0.000000e+00> : vector<8x384xf32>
    %796 = tpu.matmul %792, %631, %cst_242 {dimension_numbers = #tpu.dot_dimension_numbers<[1], [0], [0], [1], [0, 0, 1, 1], [], []>} : vector<8x128xf32>, vector<128x384xf32>, vector<8x384xf32> -> vector<8x384xf32>
    %797 = vector.broadcast %630 : vector<1x384xf32> to vector<8x384xf32>
    %798 = arith.addf %796, %797 : vector<8x384xf32>
    %799 = vector.extract_strided_slice %795 {offsets = [0, 0], sizes = [8, 128], strides = [1, 1]} : vector<8x384xf32> to vector<8x128xf32>
    %800 = vector.extract_strided_slice %798 {offsets = [0, 0], sizes = [8, 128], strides = [1, 1]} : vector<8x384xf32> to vector<8x128xf32>
    %801 = arith.addf %799, %800 : vector<8x128xf32>
    %802 = arith.negf %801 : vector<8x128xf32>
    %803 = math.exp %802 : vector<8x128xf32>
    %cst_243 = arith.constant 1.000000e+00 : f32
    %804 = vector.broadcast %cst_243 : f32 to vector<8x128xf32>
    %805 = arith.addf %804, %803 : vector<8x128xf32>
    %806 = arith.divf %804, %805 : vector<8x128xf32>
    %807 = vector.extract_strided_slice %795 {offsets = [0, 128], sizes = [8, 128], strides = [1, 1]} : vector<8x384xf32> to vector<8x128xf32>
    %808 = vector.extract_strided_slice %798 {offsets = [0, 128], sizes = [8, 128], strides = [1, 1]} : vector<8x384xf32> to vector<8x128xf32>
    %809 = arith.addf %807, %808 : vector<8x128xf32>
    %810 = arith.negf %809 : vector<8x128xf32>
    %811 = math.exp %810 : vector<8x128xf32>
    %cst_244 = arith.constant 1.000000e+00 : f32
    %812 = vector.broadcast %cst_244 : f32 to vector<8x128xf32>
    %813 = arith.addf %812, %811 : vector<8x128xf32>
    %814 = arith.divf %812, %813 : vector<8x128xf32>
    %815 = vector.extract_strided_slice %795 {offsets = [0, 256], sizes = [8, 128], strides = [1, 1]} : vector<8x384xf32> to vector<8x128xf32>
    %816 = vector.extract_strided_slice %798 {offsets = [0, 256], sizes = [8, 128], strides = [1, 1]} : vector<8x384xf32> to vector<8x128xf32>
    %817 = arith.mulf %806, %816 : vector<8x128xf32>
    %818 = arith.addf %815, %817 : vector<8x128xf32>
    %819 = math.tanh %818 : vector<8x128xf32>
    %cst_245 = arith.constant 1.000000e+00 : f32
    %820 = vector.broadcast %cst_245 : f32 to vector<8x128xf32>
    %821 = arith.subf %820, %814 : vector<8x128xf32>
    %822 = arith.mulf %821, %819 : vector<8x128xf32>
    %823 = arith.mulf %814, %792 : vector<8x128xf32>
    %824 = arith.addf %822, %823 : vector<8x128xf32>
    %c6_i32_246 = arith.constant 6 : i32
    %825 = arith.index_cast %c6_i32_246 : i32 to index
    %c0_247 = arith.constant 0 : index
    %c0_248 = arith.constant 0 : index
    %826 = vector.load %arg19[%825, %c0_247, %c0_248] : memref<8x8x384xf32, #tpu.memory_space<vmem>>, vector<1x8x384xf32>
    %827 = vector.shape_cast %826 : vector<1x8x384xf32> to vector<8x384xf32>
    %cst_249 = arith.constant dense<0.000000e+00> : vector<8x384xf32>
    %828 = tpu.matmul %824, %631, %cst_249 {dimension_numbers = #tpu.dot_dimension_numbers<[1], [0], [0], [1], [0, 0, 1, 1], [], []>} : vector<8x128xf32>, vector<128x384xf32>, vector<8x384xf32> -> vector<8x384xf32>
    %829 = vector.broadcast %630 : vector<1x384xf32> to vector<8x384xf32>
    %830 = arith.addf %828, %829 : vector<8x384xf32>
    %831 = vector.extract_strided_slice %827 {offsets = [0, 0], sizes = [8, 128], strides = [1, 1]} : vector<8x384xf32> to vector<8x128xf32>
    %832 = vector.extract_strided_slice %830 {offsets = [0, 0], sizes = [8, 128], strides = [1, 1]} : vector<8x384xf32> to vector<8x128xf32>
    %833 = arith.addf %831, %832 : vector<8x128xf32>
    %834 = arith.negf %833 : vector<8x128xf32>
    %835 = math.exp %834 : vector<8x128xf32>
    %cst_250 = arith.constant 1.000000e+00 : f32
    %836 = vector.broadcast %cst_250 : f32 to vector<8x128xf32>
    %837 = arith.addf %836, %835 : vector<8x128xf32>
    %838 = arith.divf %836, %837 : vector<8x128xf32>
    %839 = vector.extract_strided_slice %827 {offsets = [0, 128], sizes = [8, 128], strides = [1, 1]} : vector<8x384xf32> to vector<8x128xf32>
    %840 = vector.extract_strided_slice %830 {offsets = [0, 128], sizes = [8, 128], strides = [1, 1]} : vector<8x384xf32> to vector<8x128xf32>
    %841 = arith.addf %839, %840 : vector<8x128xf32>
    %842 = arith.negf %841 : vector<8x128xf32>
    %843 = math.exp %842 : vector<8x128xf32>
    %cst_251 = arith.constant 1.000000e+00 : f32
    %844 = vector.broadcast %cst_251 : f32 to vector<8x128xf32>
    %845 = arith.addf %844, %843 : vector<8x128xf32>
    %846 = arith.divf %844, %845 : vector<8x128xf32>
    %847 = vector.extract_strided_slice %827 {offsets = [0, 256], sizes = [8, 128], strides = [1, 1]} : vector<8x384xf32> to vector<8x128xf32>
    %848 = vector.extract_strided_slice %830 {offsets = [0, 256], sizes = [8, 128], strides = [1, 1]} : vector<8x384xf32> to vector<8x128xf32>
    %849 = arith.mulf %838, %848 : vector<8x128xf32>
    %850 = arith.addf %847, %849 : vector<8x128xf32>
    %851 = math.tanh %850 : vector<8x128xf32>
    %cst_252 = arith.constant 1.000000e+00 : f32
    %852 = vector.broadcast %cst_252 : f32 to vector<8x128xf32>
    %853 = arith.subf %852, %846 : vector<8x128xf32>
    %854 = arith.mulf %853, %851 : vector<8x128xf32>
    %855 = arith.mulf %846, %824 : vector<8x128xf32>
    %856 = arith.addf %854, %855 : vector<8x128xf32>
    %c7_i32_253 = arith.constant 7 : i32
    %857 = arith.index_cast %c7_i32_253 : i32 to index
    %c0_254 = arith.constant 0 : index
    %c0_255 = arith.constant 0 : index
    %858 = vector.load %arg19[%857, %c0_254, %c0_255] : memref<8x8x384xf32, #tpu.memory_space<vmem>>, vector<1x8x384xf32>
    %859 = vector.shape_cast %858 : vector<1x8x384xf32> to vector<8x384xf32>
    %cst_256 = arith.constant dense<0.000000e+00> : vector<8x384xf32>
    %860 = tpu.matmul %856, %631, %cst_256 {dimension_numbers = #tpu.dot_dimension_numbers<[1], [0], [0], [1], [0, 0, 1, 1], [], []>} : vector<8x128xf32>, vector<128x384xf32>, vector<8x384xf32> -> vector<8x384xf32>
    %861 = vector.broadcast %630 : vector<1x384xf32> to vector<8x384xf32>
    %862 = arith.addf %860, %861 : vector<8x384xf32>
    %863 = vector.extract_strided_slice %859 {offsets = [0, 0], sizes = [8, 128], strides = [1, 1]} : vector<8x384xf32> to vector<8x128xf32>
    %864 = vector.extract_strided_slice %862 {offsets = [0, 0], sizes = [8, 128], strides = [1, 1]} : vector<8x384xf32> to vector<8x128xf32>
    %865 = arith.addf %863, %864 : vector<8x128xf32>
    %866 = arith.negf %865 : vector<8x128xf32>
    %867 = math.exp %866 : vector<8x128xf32>
    %cst_257 = arith.constant 1.000000e+00 : f32
    %868 = vector.broadcast %cst_257 : f32 to vector<8x128xf32>
    %869 = arith.addf %868, %867 : vector<8x128xf32>
    %870 = arith.divf %868, %869 : vector<8x128xf32>
    %871 = vector.extract_strided_slice %859 {offsets = [0, 128], sizes = [8, 128], strides = [1, 1]} : vector<8x384xf32> to vector<8x128xf32>
    %872 = vector.extract_strided_slice %862 {offsets = [0, 128], sizes = [8, 128], strides = [1, 1]} : vector<8x384xf32> to vector<8x128xf32>
    %873 = arith.addf %871, %872 : vector<8x128xf32>
    %874 = arith.negf %873 : vector<8x128xf32>
    %875 = math.exp %874 : vector<8x128xf32>
    %cst_258 = arith.constant 1.000000e+00 : f32
    %876 = vector.broadcast %cst_258 : f32 to vector<8x128xf32>
    %877 = arith.addf %876, %875 : vector<8x128xf32>
    %878 = arith.divf %876, %877 : vector<8x128xf32>
    %879 = vector.extract_strided_slice %859 {offsets = [0, 256], sizes = [8, 128], strides = [1, 1]} : vector<8x384xf32> to vector<8x128xf32>
    %880 = vector.extract_strided_slice %862 {offsets = [0, 256], sizes = [8, 128], strides = [1, 1]} : vector<8x384xf32> to vector<8x128xf32>
    %881 = arith.mulf %870, %880 : vector<8x128xf32>
    %882 = arith.addf %879, %881 : vector<8x128xf32>
    %883 = math.tanh %882 : vector<8x128xf32>
    %cst_259 = arith.constant 1.000000e+00 : f32
    %884 = vector.broadcast %cst_259 : f32 to vector<8x128xf32>
    %885 = arith.subf %884, %878 : vector<8x128xf32>
    %886 = arith.mulf %885, %883 : vector<8x128xf32>
    %887 = arith.mulf %878, %856 : vector<8x128xf32>
    %888 = arith.addf %886, %887 : vector<8x128xf32>
    %c8_i32_260 = arith.constant 8 : i32
    %c1_261 = arith.constant 1 : index
    %c0_262 = arith.constant 0 : index
    %889 = vector.load %arg14[%c1_261, %c0_262] : memref<2x384xf32, #tpu.memory_space<vmem>>, vector<1x384xf32>
    %c0_263 = arith.constant 0 : index
    %c0_264 = arith.constant 0 : index
    %890 = vector.load %arg13[%c0_263, %c0_264] : memref<128x384xf32, #tpu.memory_space<vmem>>, vector<128x384xf32>
    %cst_265 = arith.constant 0.000000e+00 : f32
    %891 = vector.broadcast %cst_265 : f32 to vector<8x128xf32>
    %c0_i32_266 = arith.constant 0 : i32
    %c7_i32_267 = arith.constant 7 : i32
    %892 = arith.subi %c7_i32_267, %c0_i32_266 : i32
    %893 = arith.index_cast %892 : i32 to index
    %c0_268 = arith.constant 0 : index
    %c0_269 = arith.constant 0 : index
    %894 = vector.load %arg20[%893, %c0_268, %c0_269] : memref<8x8x384xf32, #tpu.memory_space<vmem>>, vector<1x8x384xf32>
    %895 = vector.shape_cast %894 : vector<1x8x384xf32> to vector<8x384xf32>
    %cst_270 = arith.constant dense<0.000000e+00> : vector<8x384xf32>
    %896 = tpu.matmul %891, %890, %cst_270 {dimension_numbers = #tpu.dot_dimension_numbers<[1], [0], [0], [1], [0, 0, 1, 1], [], []>} : vector<8x128xf32>, vector<128x384xf32>, vector<8x384xf32> -> vector<8x384xf32>
    %897 = vector.broadcast %889 : vector<1x384xf32> to vector<8x384xf32>
    %898 = arith.addf %896, %897 : vector<8x384xf32>
    %899 = vector.extract_strided_slice %895 {offsets = [0, 0], sizes = [8, 128], strides = [1, 1]} : vector<8x384xf32> to vector<8x128xf32>
    %900 = vector.extract_strided_slice %898 {offsets = [0, 0], sizes = [8, 128], strides = [1, 1]} : vector<8x384xf32> to vector<8x128xf32>
    %901 = arith.addf %899, %900 : vector<8x128xf32>
    %902 = arith.negf %901 : vector<8x128xf32>
    %903 = math.exp %902 : vector<8x128xf32>
    %cst_271 = arith.constant 1.000000e+00 : f32
    %904 = vector.broadcast %cst_271 : f32 to vector<8x128xf32>
    %905 = arith.addf %904, %903 : vector<8x128xf32>
    %906 = arith.divf %904, %905 : vector<8x128xf32>
    %907 = vector.extract_strided_slice %895 {offsets = [0, 128], sizes = [8, 128], strides = [1, 1]} : vector<8x384xf32> to vector<8x128xf32>
    %908 = vector.extract_strided_slice %898 {offsets = [0, 128], sizes = [8, 128], strides = [1, 1]} : vector<8x384xf32> to vector<8x128xf32>
    %909 = arith.addf %907, %908 : vector<8x128xf32>
    %910 = arith.negf %909 : vector<8x128xf32>
    %911 = math.exp %910 : vector<8x128xf32>
    %cst_272 = arith.constant 1.000000e+00 : f32
    %912 = vector.broadcast %cst_272 : f32 to vector<8x128xf32>
    %913 = arith.addf %912, %911 : vector<8x128xf32>
    %914 = arith.divf %912, %913 : vector<8x128xf32>
    %915 = vector.extract_strided_slice %895 {offsets = [0, 256], sizes = [8, 128], strides = [1, 1]} : vector<8x384xf32> to vector<8x128xf32>
    %916 = vector.extract_strided_slice %898 {offsets = [0, 256], sizes = [8, 128], strides = [1, 1]} : vector<8x384xf32> to vector<8x128xf32>
    %917 = arith.mulf %906, %916 : vector<8x128xf32>
    %918 = arith.addf %915, %917 : vector<8x128xf32>
    %919 = math.tanh %918 : vector<8x128xf32>
    %cst_273 = arith.constant 1.000000e+00 : f32
    %920 = vector.broadcast %cst_273 : f32 to vector<8x128xf32>
    %921 = arith.subf %920, %914 : vector<8x128xf32>
    %922 = arith.mulf %921, %919 : vector<8x128xf32>
    %923 = arith.mulf %914, %891 : vector<8x128xf32>
    %924 = arith.addf %922, %923 : vector<8x128xf32>
    %c1_i32_274 = arith.constant 1 : i32
    %c7_i32_275 = arith.constant 7 : i32
    %925 = arith.subi %c7_i32_275, %c1_i32_274 : i32
    %926 = arith.index_cast %925 : i32 to index
    %c0_276 = arith.constant 0 : index
    %c0_277 = arith.constant 0 : index
    %927 = vector.load %arg20[%926, %c0_276, %c0_277] : memref<8x8x384xf32, #tpu.memory_space<vmem>>, vector<1x8x384xf32>
    %928 = vector.shape_cast %927 : vector<1x8x384xf32> to vector<8x384xf32>
    %cst_278 = arith.constant dense<0.000000e+00> : vector<8x384xf32>
    %929 = tpu.matmul %924, %890, %cst_278 {dimension_numbers = #tpu.dot_dimension_numbers<[1], [0], [0], [1], [0, 0, 1, 1], [], []>} : vector<8x128xf32>, vector<128x384xf32>, vector<8x384xf32> -> vector<8x384xf32>
    %930 = vector.broadcast %889 : vector<1x384xf32> to vector<8x384xf32>
    %931 = arith.addf %929, %930 : vector<8x384xf32>
    %932 = vector.extract_strided_slice %928 {offsets = [0, 0], sizes = [8, 128], strides = [1, 1]} : vector<8x384xf32> to vector<8x128xf32>
    %933 = vector.extract_strided_slice %931 {offsets = [0, 0], sizes = [8, 128], strides = [1, 1]} : vector<8x384xf32> to vector<8x128xf32>
    %934 = arith.addf %932, %933 : vector<8x128xf32>
    %935 = arith.negf %934 : vector<8x128xf32>
    %936 = math.exp %935 : vector<8x128xf32>
    %cst_279 = arith.constant 1.000000e+00 : f32
    %937 = vector.broadcast %cst_279 : f32 to vector<8x128xf32>
    %938 = arith.addf %937, %936 : vector<8x128xf32>
    %939 = arith.divf %937, %938 : vector<8x128xf32>
    %940 = vector.extract_strided_slice %928 {offsets = [0, 128], sizes = [8, 128], strides = [1, 1]} : vector<8x384xf32> to vector<8x128xf32>
    %941 = vector.extract_strided_slice %931 {offsets = [0, 128], sizes = [8, 128], strides = [1, 1]} : vector<8x384xf32> to vector<8x128xf32>
    %942 = arith.addf %940, %941 : vector<8x128xf32>
    %943 = arith.negf %942 : vector<8x128xf32>
    %944 = math.exp %943 : vector<8x128xf32>
    %cst_280 = arith.constant 1.000000e+00 : f32
    %945 = vector.broadcast %cst_280 : f32 to vector<8x128xf32>
    %946 = arith.addf %945, %944 : vector<8x128xf32>
    %947 = arith.divf %945, %946 : vector<8x128xf32>
    %948 = vector.extract_strided_slice %928 {offsets = [0, 256], sizes = [8, 128], strides = [1, 1]} : vector<8x384xf32> to vector<8x128xf32>
    %949 = vector.extract_strided_slice %931 {offsets = [0, 256], sizes = [8, 128], strides = [1, 1]} : vector<8x384xf32> to vector<8x128xf32>
    %950 = arith.mulf %939, %949 : vector<8x128xf32>
    %951 = arith.addf %948, %950 : vector<8x128xf32>
    %952 = math.tanh %951 : vector<8x128xf32>
    %cst_281 = arith.constant 1.000000e+00 : f32
    %953 = vector.broadcast %cst_281 : f32 to vector<8x128xf32>
    %954 = arith.subf %953, %947 : vector<8x128xf32>
    %955 = arith.mulf %954, %952 : vector<8x128xf32>
    %956 = arith.mulf %947, %924 : vector<8x128xf32>
    %957 = arith.addf %955, %956 : vector<8x128xf32>
    %c2_i32_282 = arith.constant 2 : i32
    %c7_i32_283 = arith.constant 7 : i32
    %958 = arith.subi %c7_i32_283, %c2_i32_282 : i32
    %959 = arith.index_cast %958 : i32 to index
    %c0_284 = arith.constant 0 : index
    %c0_285 = arith.constant 0 : index
    %960 = vector.load %arg20[%959, %c0_284, %c0_285] : memref<8x8x384xf32, #tpu.memory_space<vmem>>, vector<1x8x384xf32>
    %961 = vector.shape_cast %960 : vector<1x8x384xf32> to vector<8x384xf32>
    %cst_286 = arith.constant dense<0.000000e+00> : vector<8x384xf32>
    %962 = tpu.matmul %957, %890, %cst_286 {dimension_numbers = #tpu.dot_dimension_numbers<[1], [0], [0], [1], [0, 0, 1, 1], [], []>} : vector<8x128xf32>, vector<128x384xf32>, vector<8x384xf32> -> vector<8x384xf32>
    %963 = vector.broadcast %889 : vector<1x384xf32> to vector<8x384xf32>
    %964 = arith.addf %962, %963 : vector<8x384xf32>
    %965 = vector.extract_strided_slice %961 {offsets = [0, 0], sizes = [8, 128], strides = [1, 1]} : vector<8x384xf32> to vector<8x128xf32>
    %966 = vector.extract_strided_slice %964 {offsets = [0, 0], sizes = [8, 128], strides = [1, 1]} : vector<8x384xf32> to vector<8x128xf32>
    %967 = arith.addf %965, %966 : vector<8x128xf32>
    %968 = arith.negf %967 : vector<8x128xf32>
    %969 = math.exp %968 : vector<8x128xf32>
    %cst_287 = arith.constant 1.000000e+00 : f32
    %970 = vector.broadcast %cst_287 : f32 to vector<8x128xf32>
    %971 = arith.addf %970, %969 : vector<8x128xf32>
    %972 = arith.divf %970, %971 : vector<8x128xf32>
    %973 = vector.extract_strided_slice %961 {offsets = [0, 128], sizes = [8, 128], strides = [1, 1]} : vector<8x384xf32> to vector<8x128xf32>
    %974 = vector.extract_strided_slice %964 {offsets = [0, 128], sizes = [8, 128], strides = [1, 1]} : vector<8x384xf32> to vector<8x128xf32>
    %975 = arith.addf %973, %974 : vector<8x128xf32>
    %976 = arith.negf %975 : vector<8x128xf32>
    %977 = math.exp %976 : vector<8x128xf32>
    %cst_288 = arith.constant 1.000000e+00 : f32
    %978 = vector.broadcast %cst_288 : f32 to vector<8x128xf32>
    %979 = arith.addf %978, %977 : vector<8x128xf32>
    %980 = arith.divf %978, %979 : vector<8x128xf32>
    %981 = vector.extract_strided_slice %961 {offsets = [0, 256], sizes = [8, 128], strides = [1, 1]} : vector<8x384xf32> to vector<8x128xf32>
    %982 = vector.extract_strided_slice %964 {offsets = [0, 256], sizes = [8, 128], strides = [1, 1]} : vector<8x384xf32> to vector<8x128xf32>
    %983 = arith.mulf %972, %982 : vector<8x128xf32>
    %984 = arith.addf %981, %983 : vector<8x128xf32>
    %985 = math.tanh %984 : vector<8x128xf32>
    %cst_289 = arith.constant 1.000000e+00 : f32
    %986 = vector.broadcast %cst_289 : f32 to vector<8x128xf32>
    %987 = arith.subf %986, %980 : vector<8x128xf32>
    %988 = arith.mulf %987, %985 : vector<8x128xf32>
    %989 = arith.mulf %980, %957 : vector<8x128xf32>
    %990 = arith.addf %988, %989 : vector<8x128xf32>
    %c3_i32_290 = arith.constant 3 : i32
    %c7_i32_291 = arith.constant 7 : i32
    %991 = arith.subi %c7_i32_291, %c3_i32_290 : i32
    %992 = arith.index_cast %991 : i32 to index
    %c0_292 = arith.constant 0 : index
    %c0_293 = arith.constant 0 : index
    %993 = vector.load %arg20[%992, %c0_292, %c0_293] : memref<8x8x384xf32, #tpu.memory_space<vmem>>, vector<1x8x384xf32>
    %994 = vector.shape_cast %993 : vector<1x8x384xf32> to vector<8x384xf32>
    %cst_294 = arith.constant dense<0.000000e+00> : vector<8x384xf32>
    %995 = tpu.matmul %990, %890, %cst_294 {dimension_numbers = #tpu.dot_dimension_numbers<[1], [0], [0], [1], [0, 0, 1, 1], [], []>} : vector<8x128xf32>, vector<128x384xf32>, vector<8x384xf32> -> vector<8x384xf32>
    %996 = vector.broadcast %889 : vector<1x384xf32> to vector<8x384xf32>
    %997 = arith.addf %995, %996 : vector<8x384xf32>
    %998 = vector.extract_strided_slice %994 {offsets = [0, 0], sizes = [8, 128], strides = [1, 1]} : vector<8x384xf32> to vector<8x128xf32>
    %999 = vector.extract_strided_slice %997 {offsets = [0, 0], sizes = [8, 128], strides = [1, 1]} : vector<8x384xf32> to vector<8x128xf32>
    %1000 = arith.addf %998, %999 : vector<8x128xf32>
    %1001 = arith.negf %1000 : vector<8x128xf32>
    %1002 = math.exp %1001 : vector<8x128xf32>
    %cst_295 = arith.constant 1.000000e+00 : f32
    %1003 = vector.broadcast %cst_295 : f32 to vector<8x128xf32>
    %1004 = arith.addf %1003, %1002 : vector<8x128xf32>
    %1005 = arith.divf %1003, %1004 : vector<8x128xf32>
    %1006 = vector.extract_strided_slice %994 {offsets = [0, 128], sizes = [8, 128], strides = [1, 1]} : vector<8x384xf32> to vector<8x128xf32>
    %1007 = vector.extract_strided_slice %997 {offsets = [0, 128], sizes = [8, 128], strides = [1, 1]} : vector<8x384xf32> to vector<8x128xf32>
    %1008 = arith.addf %1006, %1007 : vector<8x128xf32>
    %1009 = arith.negf %1008 : vector<8x128xf32>
    %1010 = math.exp %1009 : vector<8x128xf32>
    %cst_296 = arith.constant 1.000000e+00 : f32
    %1011 = vector.broadcast %cst_296 : f32 to vector<8x128xf32>
    %1012 = arith.addf %1011, %1010 : vector<8x128xf32>
    %1013 = arith.divf %1011, %1012 : vector<8x128xf32>
    %1014 = vector.extract_strided_slice %994 {offsets = [0, 256], sizes = [8, 128], strides = [1, 1]} : vector<8x384xf32> to vector<8x128xf32>
    %1015 = vector.extract_strided_slice %997 {offsets = [0, 256], sizes = [8, 128], strides = [1, 1]} : vector<8x384xf32> to vector<8x128xf32>
    %1016 = arith.mulf %1005, %1015 : vector<8x128xf32>
    %1017 = arith.addf %1014, %1016 : vector<8x128xf32>
    %1018 = math.tanh %1017 : vector<8x128xf32>
    %cst_297 = arith.constant 1.000000e+00 : f32
    %1019 = vector.broadcast %cst_297 : f32 to vector<8x128xf32>
    %1020 = arith.subf %1019, %1013 : vector<8x128xf32>
    %1021 = arith.mulf %1020, %1018 : vector<8x128xf32>
    %1022 = arith.mulf %1013, %990 : vector<8x128xf32>
    %1023 = arith.addf %1021, %1022 : vector<8x128xf32>
    %c4_i32_298 = arith.constant 4 : i32
    %c7_i32_299 = arith.constant 7 : i32
    %1024 = arith.subi %c7_i32_299, %c4_i32_298 : i32
    %1025 = arith.index_cast %1024 : i32 to index
    %c0_300 = arith.constant 0 : index
    %c0_301 = arith.constant 0 : index
    %1026 = vector.load %arg20[%1025, %c0_300, %c0_301] : memref<8x8x384xf32, #tpu.memory_space<vmem>>, vector<1x8x384xf32>
    %1027 = vector.shape_cast %1026 : vector<1x8x384xf32> to vector<8x384xf32>
    %cst_302 = arith.constant dense<0.000000e+00> : vector<8x384xf32>
    %1028 = tpu.matmul %1023, %890, %cst_302 {dimension_numbers = #tpu.dot_dimension_numbers<[1], [0], [0], [1], [0, 0, 1, 1], [], []>} : vector<8x128xf32>, vector<128x384xf32>, vector<8x384xf32> -> vector<8x384xf32>
    %1029 = vector.broadcast %889 : vector<1x384xf32> to vector<8x384xf32>
    %1030 = arith.addf %1028, %1029 : vector<8x384xf32>
    %1031 = vector.extract_strided_slice %1027 {offsets = [0, 0], sizes = [8, 128], strides = [1, 1]} : vector<8x384xf32> to vector<8x128xf32>
    %1032 = vector.extract_strided_slice %1030 {offsets = [0, 0], sizes = [8, 128], strides = [1, 1]} : vector<8x384xf32> to vector<8x128xf32>
    %1033 = arith.addf %1031, %1032 : vector<8x128xf32>
    %1034 = arith.negf %1033 : vector<8x128xf32>
    %1035 = math.exp %1034 : vector<8x128xf32>
    %cst_303 = arith.constant 1.000000e+00 : f32
    %1036 = vector.broadcast %cst_303 : f32 to vector<8x128xf32>
    %1037 = arith.addf %1036, %1035 : vector<8x128xf32>
    %1038 = arith.divf %1036, %1037 : vector<8x128xf32>
    %1039 = vector.extract_strided_slice %1027 {offsets = [0, 128], sizes = [8, 128], strides = [1, 1]} : vector<8x384xf32> to vector<8x128xf32>
    %1040 = vector.extract_strided_slice %1030 {offsets = [0, 128], sizes = [8, 128], strides = [1, 1]} : vector<8x384xf32> to vector<8x128xf32>
    %1041 = arith.addf %1039, %1040 : vector<8x128xf32>
    %1042 = arith.negf %1041 : vector<8x128xf32>
    %1043 = math.exp %1042 : vector<8x128xf32>
    %cst_304 = arith.constant 1.000000e+00 : f32
    %1044 = vector.broadcast %cst_304 : f32 to vector<8x128xf32>
    %1045 = arith.addf %1044, %1043 : vector<8x128xf32>
    %1046 = arith.divf %1044, %1045 : vector<8x128xf32>
    %1047 = vector.extract_strided_slice %1027 {offsets = [0, 256], sizes = [8, 128], strides = [1, 1]} : vector<8x384xf32> to vector<8x128xf32>
    %1048 = vector.extract_strided_slice %1030 {offsets = [0, 256], sizes = [8, 128], strides = [1, 1]} : vector<8x384xf32> to vector<8x128xf32>
    %1049 = arith.mulf %1038, %1048 : vector<8x128xf32>
    %1050 = arith.addf %1047, %1049 : vector<8x128xf32>
    %1051 = math.tanh %1050 : vector<8x128xf32>
    %cst_305 = arith.constant 1.000000e+00 : f32
    %1052 = vector.broadcast %cst_305 : f32 to vector<8x128xf32>
    %1053 = arith.subf %1052, %1046 : vector<8x128xf32>
    %1054 = arith.mulf %1053, %1051 : vector<8x128xf32>
    %1055 = arith.mulf %1046, %1023 : vector<8x128xf32>
    %1056 = arith.addf %1054, %1055 : vector<8x128xf32>
    %c5_i32_306 = arith.constant 5 : i32
    %c7_i32_307 = arith.constant 7 : i32
    %1057 = arith.subi %c7_i32_307, %c5_i32_306 : i32
    %1058 = arith.index_cast %1057 : i32 to index
    %c0_308 = arith.constant 0 : index
    %c0_309 = arith.constant 0 : index
    %1059 = vector.load %arg20[%1058, %c0_308, %c0_309] : memref<8x8x384xf32, #tpu.memory_space<vmem>>, vector<1x8x384xf32>
    %1060 = vector.shape_cast %1059 : vector<1x8x384xf32> to vector<8x384xf32>
    %cst_310 = arith.constant dense<0.000000e+00> : vector<8x384xf32>
    %1061 = tpu.matmul %1056, %890, %cst_310 {dimension_numbers = #tpu.dot_dimension_numbers<[1], [0], [0], [1], [0, 0, 1, 1], [], []>} : vector<8x128xf32>, vector<128x384xf32>, vector<8x384xf32> -> vector<8x384xf32>
    %1062 = vector.broadcast %889 : vector<1x384xf32> to vector<8x384xf32>
    %1063 = arith.addf %1061, %1062 : vector<8x384xf32>
    %1064 = vector.extract_strided_slice %1060 {offsets = [0, 0], sizes = [8, 128], strides = [1, 1]} : vector<8x384xf32> to vector<8x128xf32>
    %1065 = vector.extract_strided_slice %1063 {offsets = [0, 0], sizes = [8, 128], strides = [1, 1]} : vector<8x384xf32> to vector<8x128xf32>
    %1066 = arith.addf %1064, %1065 : vector<8x128xf32>
    %1067 = arith.negf %1066 : vector<8x128xf32>
    %1068 = math.exp %1067 : vector<8x128xf32>
    %cst_311 = arith.constant 1.000000e+00 : f32
    %1069 = vector.broadcast %cst_311 : f32 to vector<8x128xf32>
    %1070 = arith.addf %1069, %1068 : vector<8x128xf32>
    %1071 = arith.divf %1069, %1070 : vector<8x128xf32>
    %1072 = vector.extract_strided_slice %1060 {offsets = [0, 128], sizes = [8, 128], strides = [1, 1]} : vector<8x384xf32> to vector<8x128xf32>
    %1073 = vector.extract_strided_slice %1063 {offsets = [0, 128], sizes = [8, 128], strides = [1, 1]} : vector<8x384xf32> to vector<8x128xf32>
    %1074 = arith.addf %1072, %1073 : vector<8x128xf32>
    %1075 = arith.negf %1074 : vector<8x128xf32>
    %1076 = math.exp %1075 : vector<8x128xf32>
    %cst_312 = arith.constant 1.000000e+00 : f32
    %1077 = vector.broadcast %cst_312 : f32 to vector<8x128xf32>
    %1078 = arith.addf %1077, %1076 : vector<8x128xf32>
    %1079 = arith.divf %1077, %1078 : vector<8x128xf32>
    %1080 = vector.extract_strided_slice %1060 {offsets = [0, 256], sizes = [8, 128], strides = [1, 1]} : vector<8x384xf32> to vector<8x128xf32>
    %1081 = vector.extract_strided_slice %1063 {offsets = [0, 256], sizes = [8, 128], strides = [1, 1]} : vector<8x384xf32> to vector<8x128xf32>
    %1082 = arith.mulf %1071, %1081 : vector<8x128xf32>
    %1083 = arith.addf %1080, %1082 : vector<8x128xf32>
    %1084 = math.tanh %1083 : vector<8x128xf32>
    %cst_313 = arith.constant 1.000000e+00 : f32
    %1085 = vector.broadcast %cst_313 : f32 to vector<8x128xf32>
    %1086 = arith.subf %1085, %1079 : vector<8x128xf32>
    %1087 = arith.mulf %1086, %1084 : vector<8x128xf32>
    %1088 = arith.mulf %1079, %1056 : vector<8x128xf32>
    %1089 = arith.addf %1087, %1088 : vector<8x128xf32>
    %c6_i32_314 = arith.constant 6 : i32
    %c7_i32_315 = arith.constant 7 : i32
    %1090 = arith.subi %c7_i32_315, %c6_i32_314 : i32
    %1091 = arith.index_cast %1090 : i32 to index
    %c0_316 = arith.constant 0 : index
    %c0_317 = arith.constant 0 : index
    %1092 = vector.load %arg20[%1091, %c0_316, %c0_317] : memref<8x8x384xf32, #tpu.memory_space<vmem>>, vector<1x8x384xf32>
    %1093 = vector.shape_cast %1092 : vector<1x8x384xf32> to vector<8x384xf32>
    %cst_318 = arith.constant dense<0.000000e+00> : vector<8x384xf32>
    %1094 = tpu.matmul %1089, %890, %cst_318 {dimension_numbers = #tpu.dot_dimension_numbers<[1], [0], [0], [1], [0, 0, 1, 1], [], []>} : vector<8x128xf32>, vector<128x384xf32>, vector<8x384xf32> -> vector<8x384xf32>
    %1095 = vector.broadcast %889 : vector<1x384xf32> to vector<8x384xf32>
    %1096 = arith.addf %1094, %1095 : vector<8x384xf32>
    %1097 = vector.extract_strided_slice %1093 {offsets = [0, 0], sizes = [8, 128], strides = [1, 1]} : vector<8x384xf32> to vector<8x128xf32>
    %1098 = vector.extract_strided_slice %1096 {offsets = [0, 0], sizes = [8, 128], strides = [1, 1]} : vector<8x384xf32> to vector<8x128xf32>
    %1099 = arith.addf %1097, %1098 : vector<8x128xf32>
    %1100 = arith.negf %1099 : vector<8x128xf32>
    %1101 = math.exp %1100 : vector<8x128xf32>
    %cst_319 = arith.constant 1.000000e+00 : f32
    %1102 = vector.broadcast %cst_319 : f32 to vector<8x128xf32>
    %1103 = arith.addf %1102, %1101 : vector<8x128xf32>
    %1104 = arith.divf %1102, %1103 : vector<8x128xf32>
    %1105 = vector.extract_strided_slice %1093 {offsets = [0, 128], sizes = [8, 128], strides = [1, 1]} : vector<8x384xf32> to vector<8x128xf32>
    %1106 = vector.extract_strided_slice %1096 {offsets = [0, 128], sizes = [8, 128], strides = [1, 1]} : vector<8x384xf32> to vector<8x128xf32>
    %1107 = arith.addf %1105, %1106 : vector<8x128xf32>
    %1108 = arith.negf %1107 : vector<8x128xf32>
    %1109 = math.exp %1108 : vector<8x128xf32>
    %cst_320 = arith.constant 1.000000e+00 : f32
    %1110 = vector.broadcast %cst_320 : f32 to vector<8x128xf32>
    %1111 = arith.addf %1110, %1109 : vector<8x128xf32>
    %1112 = arith.divf %1110, %1111 : vector<8x128xf32>
    %1113 = vector.extract_strided_slice %1093 {offsets = [0, 256], sizes = [8, 128], strides = [1, 1]} : vector<8x384xf32> to vector<8x128xf32>
    %1114 = vector.extract_strided_slice %1096 {offsets = [0, 256], sizes = [8, 128], strides = [1, 1]} : vector<8x384xf32> to vector<8x128xf32>
    %1115 = arith.mulf %1104, %1114 : vector<8x128xf32>
    %1116 = arith.addf %1113, %1115 : vector<8x128xf32>
    %1117 = math.tanh %1116 : vector<8x128xf32>
    %cst_321 = arith.constant 1.000000e+00 : f32
    %1118 = vector.broadcast %cst_321 : f32 to vector<8x128xf32>
    %1119 = arith.subf %1118, %1112 : vector<8x128xf32>
    %1120 = arith.mulf %1119, %1117 : vector<8x128xf32>
    %1121 = arith.mulf %1112, %1089 : vector<8x128xf32>
    %1122 = arith.addf %1120, %1121 : vector<8x128xf32>
    %c7_i32_322 = arith.constant 7 : i32
    %c7_i32_323 = arith.constant 7 : i32
    %1123 = arith.subi %c7_i32_323, %c7_i32_322 : i32
    %1124 = arith.index_cast %1123 : i32 to index
    %c0_324 = arith.constant 0 : index
    %c0_325 = arith.constant 0 : index
    %1125 = vector.load %arg20[%1124, %c0_324, %c0_325] : memref<8x8x384xf32, #tpu.memory_space<vmem>>, vector<1x8x384xf32>
    %1126 = vector.shape_cast %1125 : vector<1x8x384xf32> to vector<8x384xf32>
    %cst_326 = arith.constant dense<0.000000e+00> : vector<8x384xf32>
    %1127 = tpu.matmul %1122, %890, %cst_326 {dimension_numbers = #tpu.dot_dimension_numbers<[1], [0], [0], [1], [0, 0, 1, 1], [], []>} : vector<8x128xf32>, vector<128x384xf32>, vector<8x384xf32> -> vector<8x384xf32>
    %1128 = vector.broadcast %889 : vector<1x384xf32> to vector<8x384xf32>
    %1129 = arith.addf %1127, %1128 : vector<8x384xf32>
    %1130 = vector.extract_strided_slice %1126 {offsets = [0, 0], sizes = [8, 128], strides = [1, 1]} : vector<8x384xf32> to vector<8x128xf32>
    %1131 = vector.extract_strided_slice %1129 {offsets = [0, 0], sizes = [8, 128], strides = [1, 1]} : vector<8x384xf32> to vector<8x128xf32>
    %1132 = arith.addf %1130, %1131 : vector<8x128xf32>
    %1133 = arith.negf %1132 : vector<8x128xf32>
    %1134 = math.exp %1133 : vector<8x128xf32>
    %cst_327 = arith.constant 1.000000e+00 : f32
    %1135 = vector.broadcast %cst_327 : f32 to vector<8x128xf32>
    %1136 = arith.addf %1135, %1134 : vector<8x128xf32>
    %1137 = arith.divf %1135, %1136 : vector<8x128xf32>
    %1138 = vector.extract_strided_slice %1126 {offsets = [0, 128], sizes = [8, 128], strides = [1, 1]} : vector<8x384xf32> to vector<8x128xf32>
    %1139 = vector.extract_strided_slice %1129 {offsets = [0, 128], sizes = [8, 128], strides = [1, 1]} : vector<8x384xf32> to vector<8x128xf32>
    %1140 = arith.addf %1138, %1139 : vector<8x128xf32>
    %1141 = arith.negf %1140 : vector<8x128xf32>
    %1142 = math.exp %1141 : vector<8x128xf32>
    %cst_328 = arith.constant 1.000000e+00 : f32
    %1143 = vector.broadcast %cst_328 : f32 to vector<8x128xf32>
    %1144 = arith.addf %1143, %1142 : vector<8x128xf32>
    %1145 = arith.divf %1143, %1144 : vector<8x128xf32>
    %1146 = vector.extract_strided_slice %1126 {offsets = [0, 256], sizes = [8, 128], strides = [1, 1]} : vector<8x384xf32> to vector<8x128xf32>
    %1147 = vector.extract_strided_slice %1129 {offsets = [0, 256], sizes = [8, 128], strides = [1, 1]} : vector<8x384xf32> to vector<8x128xf32>
    %1148 = arith.mulf %1137, %1147 : vector<8x128xf32>
    %1149 = arith.addf %1146, %1148 : vector<8x128xf32>
    %1150 = math.tanh %1149 : vector<8x128xf32>
    %cst_329 = arith.constant 1.000000e+00 : f32
    %1151 = vector.broadcast %cst_329 : f32 to vector<8x128xf32>
    %1152 = arith.subf %1151, %1145 : vector<8x128xf32>
    %1153 = arith.mulf %1152, %1150 : vector<8x128xf32>
    %1154 = arith.mulf %1145, %1122 : vector<8x128xf32>
    %1155 = arith.addf %1153, %1154 : vector<8x128xf32>
    %c8_i32_330 = arith.constant 8 : i32
    %c0_331 = arith.constant 0 : index
    %c0_332 = arith.constant 0 : index
    %1156 = vector.load %arg15[%c0_331, %c0_332] : memref<128x128xf32, #tpu.memory_space<vmem>>, vector<128x128xf32>
    %cst_333 = arith.constant dense<0.000000e+00> : vector<8x128xf32>
    %1157 = tpu.matmul %888, %1156, %cst_333 {dimension_numbers = #tpu.dot_dimension_numbers<[1], [0], [0], [1], [0, 0, 1, 1], [], []>} : vector<8x128xf32>, vector<128x128xf32>, vector<8x128xf32> -> vector<8x128xf32>
    %c0_334 = arith.constant 0 : index
    %c0_335 = arith.constant 0 : index
    %1158 = vector.load %arg16[%c0_334, %c0_335] : memref<128x128xf32, #tpu.memory_space<vmem>>, vector<128x128xf32>
    %cst_336 = arith.constant dense<0.000000e+00> : vector<8x128xf32>
    %1159 = tpu.matmul %1155, %1158, %cst_336 {dimension_numbers = #tpu.dot_dimension_numbers<[1], [0], [0], [1], [0, 0, 1, 1], [], []>} : vector<8x128xf32>, vector<128x128xf32>, vector<8x128xf32> -> vector<8x128xf32>
    %1160 = arith.addf %1157, %1159 : vector<8x128xf32>
    %c0_337 = arith.constant 0 : index
    %c0_338 = arith.constant 0 : index
    %1161 = vector.load %arg17[%c0_337, %c0_338] : memref<1x128xf32, #tpu.memory_space<vmem>>, vector<1x128xf32>
    %1162 = vector.broadcast %1161 : vector<1x128xf32> to vector<8x128xf32>
    %1163 = arith.addf %1160, %1162 : vector<8x128xf32>
    %c0_339 = arith.constant 0 : index
    %c0_340 = arith.constant 0 : index
    %1164 = vector.load %arg18[%c0_339, %c0_340] : memref<8x128xf32, #tpu.memory_space<vmem>>, vector<8x128xf32>
    tpu.vector_store %arg18[%c0_339, %c0_340], %1163 {strides = array<i32>} : memref<8x128xf32, #tpu.memory_space<vmem>>, vector<8x128xf32>,
    return
  }
}

</mosaic_0001>

<bundles_post_ra>
// kernel: tpu_custom_call.1
= control target key start
LH: loop header
LB: loop body
LE: loop exit
PB: predicated region body
PF: predicated region fallthrough
CT: control target
= control target key end

     0   :  { %s15447_s0 = inlined_call_operand.hbm [shape: f32[8,8,128], index: 0, kind: input, shape index: {}]   ;;  %s15448_s1 = inlined_call_operand.hbm [shape: f32[128,384], index: 1, kind: input, shape index: {}]   ;;  %s15449_s2 = inlined_call_operand.hbm [shape: f32[128,384], index: 2, kind: input, shape index: {}]   ;;  %s15450_s3 = inlined_call_operand.vmem [shape: f32[2,384], index: 3, kind: input, shape index: {}]   ;;  %s15451_s4 = inlined_call_operand.hbm [shape: f32[128,384], index: 4, kind: input, shape index: {}]   ;;  %s15452_s5 = inlined_call_operand.hbm [shape: f32[128,384], index: 5, kind: input, shape index: {}]   ;;  %s15453_s6 = inlined_call_operand.vmem [shape: f32[2,384], index: 6, kind: input, shape index: {}]   ;;  %s15454_s7 = inlined_call_operand.hbm [shape: f32[128,384], index: 7, kind: input, shape index: {}]   ;;  %s15455_s8 = inlined_call_operand.hbm [shape: f32[128,384], index: 8, kind: input, shape index: {}]   ;;  %s15456_s9 = inlined_call_operand.hbm [shape: f32[128,384], index: 9, kind: input, shape index: {}]   ;;  %s15457_s10 = inlined_call_operand.vmem [shape: f32[2,384], index: 10, kind: input, shape index: {}]   ;;  %s15458_s11 = inlined_call_operand.hbm [shape: f32[128,384], index: 11, kind: input, shape index: {}]   ;;  %s15459_s12 = inlined_call_operand.hbm [shape: f32[128,384], index: 12, kind: input, shape index: {}]   ;;  %s15460_s13 = inlined_call_operand.hbm [shape: f32[128,384], index: 13, kind: input, shape index: {}]   ;;  %s15461_s14 = inlined_call_operand.vmem [shape: f32[2,384], index: 14, kind: input, shape index: {}]   ;;  %s15462_s15 = inlined_call_operand.hbm [shape: f32[128,128], index: 15, kind: input, shape index: {}]   ;;  %s15463_s16 = inlined_call_operand.hbm [shape: f32[128,128], index: 16, kind: input, shape index: {}]   ;;  %s15464_s17 = inlined_call_operand.vmem [shape: f32[1,128], index: 17, kind: input, shape index: {}]   ;;  %s15465_s18 = inlined_call_operand.hbm [shape: f32[8,128], index: 18, kind: output, shape index: {}]  }
   0x1   :  { %15476 = sst [smem:[#allocation39_spill]] %s15447_s0 }
   0x2   :  { %15477 = sst [smem:[#allocation40_spill]] %s15448_s1 }
   0x3   :  { %15478 = sst [smem:[#allocation41_spill]] %s15449_s2 }
   0x4   :  { %15479 = sst [smem:[#allocation42_spill]] %s15464_s17 }
   0x5   :  { %15480 = sst [smem:[#allocation43_spill]] %s15465_s18 }
   0x6   :  { %23 = vsyncpa [#allocation7], 0 }
   0x7   :  { %24 = vsyncpa [#allocation10], 0 }
   0x8   :  { %25 = vsyncpa [#allocation13], 0 }
   0x9   :  { %26 = vsyncpa [#allocation16], 0 }
   0xa   :  { %27 = vsyncpa [#allocation19], 0 }
   0xb   :  { %28 = vsyncpa [#allocation22], 0 }
   0xc   :  { %29 = vsyncpa [#allocation25], 0 }
   0xd   :  { %30 = vsyncpa [#allocation8], 0  ;;  %s13234_s27 = smov [#allocation9]   ;;  %s15481_s0 = sld [smem:[#allocation40_spill]] }
   0xe   :  { %s48_s28 = sshll.u32 %s13234_s27, 4  ;;  %s49_s28 = int_to_ptr.vmem [resolvable:$true] %s48_s28 }
  0x13   :  { %s12910_s19 = scalar_lea.hbm %s15481_s0, 6144 }
  0x14   :  { %p12911_p0 = scmp.ne.s32.totalorder %s15481_s0, %s12910_s19  ;;  %p12914_p1 = scmp.lt.u32.totalorder %s12910_s19, %s15481_s0 }
  0x16   :  { %p12916_p2 = pnand %p12914_p1, %p12911_p0 }
  0x18   :  { %12919 = shalt.err (!%p12916_p2)
}
  0x19   :  { %s12920_s2 = scalar_lea.vmem %s49_s28, 6144  ;;  %p12925_p4 = scmp.lt.s32.totalorder %s49_s28, %s49_s28 }
  0x1a   :  { %p12921_p3 = scmp.ne.s32.totalorder %s49_s28, %s12920_s2  ;;  %p12926_p5 = scmp.lt.s32.totalorder %s12920_s2, %s12920_s2 }
  0x1c   :  { %p12927_p6 = por %p12926_p5, %p12925_p4 }
  0x1e   :  { %p12928_p7 = pnand %p12927_p6, %p12921_p3 }
  0x20   :  { %12931 = shalt.err (!%p12928_p7)
}
  0x21   :  { %s13235_s23 = smov 384   ;;  %s13236_s24 = smov 24  }
  0x22   :  { %54 = dma.hbm_to_vmem [thread:$0]  %s15481_s0, 6144, %s49_s28, [#allocation10], %s13235_s23, %s13235_s23, %s13236_s24  }
  0x23   :  { %s13237_s27 = smov [#allocation12]   ;;  %s13238_s30 = smov [#allocation15]  }
  0x24   :  { %s74_s29 = sshll.u32 %s13237_s27, 4  ;;  %s100_s19 = sshll.u32 %s13238_s30, 4  ;;  %s75_s29 = int_to_ptr.vmem [resolvable:$true] %s74_s29  ;;  %s101_s19 = int_to_ptr.vmem [resolvable:$true] %s100_s19 }
  0x25   :  { %s12932_s21 = scalar_lea.hbm %s15451_s4, 6144 }
  0x26   :  { %p12933_p8 = scmp.ne.s32.totalorder %s15451_s4, %s12932_s21  ;;  %p12936_p9 = scmp.lt.u32.totalorder %s12932_s21, %s15451_s4 }
  0x28   :  { %p12938_p10 = pnand %p12936_p9, %p12933_p8 }
  0x2a   :  { %12941 = shalt.err (!%p12938_p10)
}
  0x2b   :  { %s12942_s28 = scalar_lea.vmem %s75_s29, 6144  ;;  %p12947_p12 = scmp.lt.s32.totalorder %s75_s29, %s75_s29 }
  0x2c   :  { %p12943_p11 = scmp.ne.s32.totalorder %s75_s29, %s12942_s28  ;;  %p12948_p13 = scmp.lt.s32.totalorder %s12942_s28, %s12942_s28 }
  0x2e   :  { %p12949_p0 = por %p12948_p13, %p12947_p12 }
  0x30   :  { %p12950_p1 = pnand %p12949_p0, %p12943_p11 }
  0x32   :  { %12953 = shalt.err (!%p12950_p1)
}
  0x33   :  { %80 = dma.hbm_to_vmem [thread:$0]  %s15451_s4, 6144, %s75_s29, [#allocation13], %s13235_s23, %s13235_s23, %s13236_s24  }
  0x34   :  { %s12954_s18 = scalar_lea.hbm %s15454_s7, 6144 }
  0x35   :  { %p12955_p2 = scmp.ne.s32.totalorder %s15454_s7, %s12954_s18  ;;  %p12958_p3 = scmp.lt.u32.totalorder %s12954_s18, %s15454_s7 }
  0x37   :  { %p12960_p4 = pnand %p12958_p3, %p12955_p2 }
  0x39   :  { %12963 = shalt.err (!%p12960_p4)
}
  0x3a   :  { %s12964_s21 = scalar_lea.vmem %s101_s19, 6144  ;;  %p12969_p6 = scmp.lt.s32.totalorder %s101_s19, %s101_s19 }
  0x3b   :  { %p12965_p5 = scmp.ne.s32.totalorder %s101_s19, %s12964_s21  ;;  %p12970_p7 = scmp.lt.s32.totalorder %s12964_s21, %s12964_s21 }
  0x3d   :  { %p12971_p8 = por %p12970_p7, %p12969_p6 }
  0x3f   :  { %p12972_p9 = pnand %p12971_p8, %p12965_p5 }
  0x41   :  { %12975 = shalt.err (!%p12972_p9)
}
  0x42   :  { %106 = dma.hbm_to_vmem [thread:$0]  %s15454_s7, 6144, %s101_s19, [#allocation16], %s13235_s23, %s13235_s23, %s13236_s24  }
  0x43   :  { %s13239_s22 = smov [#allocation18]   ;;  %s13240_s28 = smov [#allocation21]  }
  0x44   :  { %s124_s2 = sshll.u32 %s13239_s22, 4  ;;  %s150_s0 = sshll.u32 %s13240_s28, 4  ;;  %s125_s2 = int_to_ptr.vmem [resolvable:$true] %s124_s2  ;;  %s151_s0 = int_to_ptr.vmem [resolvable:$true] %s150_s0 }
  0x45   :  { %s12976_s17 = scalar_lea.hbm %s15456_s9, 6144 }
  0x46   :  { %p12977_p10 = scmp.ne.s32.totalorder %s15456_s9, %s12976_s17  ;;  %p12980_p11 = scmp.lt.u32.totalorder %s12976_s17, %s15456_s9 }
  0x48   :  { %p12982_p12 = pnand %p12980_p11, %p12977_p10 }
  0x4a   :  { %12985 = shalt.err (!%p12982_p12)
}
  0x4b   :  { %s12986_s7 = scalar_lea.vmem %s125_s2, 6144  ;;  %p12991_p0 = scmp.lt.s32.totalorder %s125_s2, %s125_s2 }
  0x4c   :  { %p12987_p13 = scmp.ne.s32.totalorder %s125_s2, %s12986_s7  ;;  %p12992_p1 = scmp.lt.s32.totalorder %s12986_s7, %s12986_s7 }
  0x4e   :  { %p12993_p2 = por %p12992_p1, %p12991_p0 }
  0x50   :  { %p12994_p3 = pnand %p12993_p2, %p12987_p13 }
  0x52   :  { %12997 = shalt.err (!%p12994_p3)
}
  0x53   :  { %130 = dma.hbm_to_vmem [thread:$0]  %s15456_s9, 6144, %s125_s2, [#allocation19], %s13235_s23, %s13235_s23, %s13236_s24  }
  0x54   :  { %s12998_s29 = scalar_lea.hbm %s15459_s12, 6144 }
  0x55   :  { %p12999_p4 = scmp.ne.s32.totalorder %s15459_s12, %s12998_s29  ;;  %p13002_p5 = scmp.lt.u32.totalorder %s12998_s29, %s15459_s12 }
  0x57   :  { %p13004_p6 = pnand %p13002_p5, %p12999_p4 }
  0x59   :  { %13007 = shalt.err (!%p13004_p6)
}
  0x5a   :  { %s13008_s17 = scalar_lea.vmem %s151_s0, 6144  ;;  %p13013_p8 = scmp.lt.s32.totalorder %s151_s0, %s151_s0 }
  0x5b   :  { %p13009_p7 = scmp.ne.s32.totalorder %s151_s0, %s13008_s17  ;;  %p13014_p9 = scmp.lt.s32.totalorder %s13008_s17, %s13008_s17 }
  0x5d   :  { %p13015_p10 = por %p13014_p9, %p13013_p8 }
  0x5f   :  { %p13016_p11 = pnand %p13015_p10, %p13009_p7 }
  0x61   :  { %13019 = shalt.err (!%p13016_p11)
}
  0x62   :  { %156 = dma.hbm_to_vmem [thread:$0]  %s15459_s12, 6144, %s151_s0, [#allocation22], %s13235_s23, %s13235_s23, %s13236_s24  }
  0x63   :  { %s13241_s18 = smov [#allocation24]   ;;  %s13242_s30 = smov [#allocation6]  }
  0x64   :  { %s176_s27 = sshll.u32 %s13241_s18, 4  ;;  %s36_s1 = sshll.u32 %s13242_s30, 4  ;;  %s177_s27 = int_to_ptr.vmem [resolvable:$true] %s176_s27  ;;  %s37_s1 = int_to_ptr.vmem [resolvable:$true] %s36_s1 }
  0x65   :  { %s13020_s20 = scalar_lea.hbm %s15462_s15, 2048 }
  0x66   :  { %p13021_p12 = scmp.ne.s32.totalorder %s15462_s15, %s13020_s20  ;;  %p13024_p13 = scmp.lt.u32.totalorder %s13020_s20, %s15462_s15 }
  0x68   :  { %p13026_p0 = pnand %p13024_p13, %p13021_p12 }
  0x6a   :  { %13029 = shalt.err (!%p13026_p0)
}
  0x6b   :  { %s13030_s12 = scalar_lea.vmem %s177_s27, 2048  ;;  %p13035_p2 = scmp.lt.s32.totalorder %s177_s27, %s177_s27 }
  0x6c   :  { %p13031_p1 = scmp.ne.s32.totalorder %s177_s27, %s13030_s12  ;;  %p13036_p3 = scmp.lt.s32.totalorder %s13030_s12, %s13030_s12 }
  0x6e   :  { %p13037_p4 = por %p13036_p3, %p13035_p2 }
  0x70   :  { %p13038_p5 = pnand %p13037_p4, %p13031_p1 }
  0x72   :  { %13041 = shalt.err (!%p13038_p5)
}
  0x73   :  { %s13243_s0 = smov 128   ;;  %s13244_s28 = smov 8  }
  0x74   :  { %182 = dma.hbm_to_vmem [thread:$0]  %s15462_s15, 2048, %s177_s27, [#allocation25], %s13243_s0, %s13243_s0, %s13244_s28  }
  0x75   :  { %s15482_s2 = sld [smem:[#allocation39_spill]] }
  0x7b   :  { %s13042_s18 = scalar_lea.hbm %s15482_s2, 1024 }
  0x7c   :  { %p13043_p6 = scmp.ne.s32.totalorder %s15482_s2, %s13042_s18  ;;  %p13046_p7 = scmp.lt.u32.totalorder %s13042_s18, %s15482_s2 }
  0x7e   :  { %p13048_p8 = pnand %p13046_p7, %p13043_p6 }
  0x80   :  { %13051 = shalt.err (!%p13048_p8)
}
  0x81   :  { %s13052_s21 = scalar_lea.vmem %s37_s1, 1024  ;;  %p13057_p10 = scmp.lt.s32.totalorder %s37_s1, %s37_s1 }
  0x82   :  { %p13053_p9 = scmp.ne.s32.totalorder %s37_s1, %s13052_s21  ;;  %p13058_p11 = scmp.lt.s32.totalorder %s13052_s21, %s13052_s21 }
  0x84   :  { %p13059_p12 = por %p13058_p11, %p13057_p10 }
  0x86   :  { %p13060_p13 = pnand %p13059_p12, %p13053_p9 }
  0x88   :  { %13063 = shalt.err (!%p13060_p13)
}
  0x89   :  { %42 = dma.hbm_to_vmem [thread:$0]  %s15482_s2, 1024, %s37_s1, [#allocation7], %s13243_s0, %s13243_s0, %s13244_s28  }
  0x8a   :  { %s13245_s4 = smov [#allocation11]   ;;  %s13246_s22 = smov [#allocation14]  }
  0x8b   :  { %s60_s29 = sshll.u32 %s13245_s4, 4  ;;  %s86_s12 = sshll.u32 %s13246_s22, 4  ;;  %s61_s29 = int_to_ptr.vmem [resolvable:$true] %s60_s29  ;;  %s87_s12 = int_to_ptr.vmem [resolvable:$true] %s86_s12 }
  0x8c   :  { %s15483_s17 = sld [smem:[#allocation41_spill]] }
  0x92   :  { %s13064_s9 = scalar_lea.hbm %s15483_s17, 6144 }
  0x93   :  { %p13065_p0 = scmp.ne.s32.totalorder %s15483_s17, %s13064_s9  ;;  %p13068_p1 = scmp.lt.u32.totalorder %s13064_s9, %s15483_s17 }
  0x95   :  { %p13070_p2 = pnand %p13068_p1, %p13065_p0 }
  0x97   :  { %13073 = shalt.err (!%p13070_p2)
}
  0x98   :  { %s13074_s1 = scalar_lea.vmem %s61_s29, 6144  ;;  %p13079_p4 = scmp.lt.s32.totalorder %s61_s29, %s61_s29 }
  0x99   :  { %p13075_p3 = scmp.ne.s32.totalorder %s61_s29, %s13074_s1  ;;  %p13080_p5 = scmp.lt.s32.totalorder %s13074_s1, %s13074_s1 }
  0x9b   :  { %p13081_p6 = por %p13080_p5, %p13079_p4 }
  0x9d   :  { %p13082_p7 = pnand %p13081_p6, %p13075_p3 }
  0x9f   :  { %13085 = shalt.err (!%p13082_p7)
}
  0xa0   :  { %66 = dma.hbm_to_vmem [thread:$0]  %s15483_s17, 6144, %s61_s29, [#allocation10], %s13235_s23, %s13235_s23, %s13236_s24  }
  0xa1   :  { %s13086_s27 = scalar_lea.hbm %s15452_s5, 6144 }
  0xa2   :  { %p13087_p8 = scmp.ne.s32.totalorder %s15452_s5, %s13086_s27  ;;  %p13090_p9 = scmp.lt.u32.totalorder %s13086_s27, %s15452_s5 }
  0xa4   :  { %p13092_p10 = pnand %p13090_p9, %p13087_p8 }
  0xa6   :  { %13095 = shalt.err (!%p13092_p10)
}
  0xa7   :  { %s13096_s9 = scalar_lea.vmem %s87_s12, 6144  ;;  %p13101_p12 = scmp.lt.s32.totalorder %s87_s12, %s87_s12 }
  0xa8   :  { %p13097_p11 = scmp.ne.s32.totalorder %s87_s12, %s13096_s9  ;;  %p13102_p13 = scmp.lt.s32.totalorder %s13096_s9, %s13096_s9 }
  0xaa   :  { %p13103_p0 = por %p13102_p13, %p13101_p12 }
  0xac   :  { %p13104_p1 = pnand %p13103_p0, %p13097_p11 }
  0xae   :  { %13107 = shalt.err (!%p13104_p1)
}
  0xaf   :  { %92 = dma.hbm_to_vmem [thread:$0]  %s15452_s5, 6144, %s87_s12, [#allocation13], %s13235_s23, %s13235_s23, %s13236_s24  }
  0xb0   :  { %s13247_s18 = smov [#allocation17]   ;;  %s13248_s7 = smov [#allocation20]  }
  0xb1   :  { %s112_s30 = sshll.u32 %s13247_s18, 4  ;;  %s138_s19 = sshll.u32 %s13248_s7, 4  ;;  %s113_s30 = int_to_ptr.vmem [resolvable:$true] %s112_s30  ;;  %s139_s19 = int_to_ptr.vmem [resolvable:$true] %s138_s19 }
  0xb2   :  { %s13108_s20 = scalar_lea.hbm %s15455_s8, 6144 }
  0xb3   :  { %p13109_p2 = scmp.ne.s32.totalorder %s15455_s8, %s13108_s20  ;;  %p13112_p3 = scmp.lt.u32.totalorder %s13108_s20, %s15455_s8 }
  0xb5   :  { %p13114_p4 = pnand %p13112_p3, %p13109_p2 }
  0xb7   :  { %13117 = shalt.err (!%p13114_p4)
}
  0xb8   :  { %s13118_s5 = scalar_lea.vmem %s113_s30, 6144  ;;  %p13123_p6 = scmp.lt.s32.totalorder %s113_s30, %s113_s30 }
  0xb9   :  { %p13119_p5 = scmp.ne.s32.totalorder %s113_s30, %s13118_s5  ;;  %p13124_p7 = scmp.lt.s32.totalorder %s13118_s5, %s13118_s5 }
  0xbb   :  { %p13125_p8 = por %p13124_p7, %p13123_p6 }
  0xbd   :  { %p13126_p9 = pnand %p13125_p8, %p13119_p5 }
  0xbf   :  { %13129 = shalt.err (!%p13126_p9)
}
  0xc0   :  { %118 = dma.hbm_to_vmem [thread:$0]  %s15455_s8, 6144, %s113_s30, [#allocation16], %s13235_s23, %s13235_s23, %s13236_s24  }
  0xc1   :  { %s13130_s9 = scalar_lea.hbm %s15458_s11, 6144 }
  0xc2   :  { %p13131_p10 = scmp.ne.s32.totalorder %s15458_s11, %s13130_s9  ;;  %p13134_p11 = scmp.lt.u32.totalorder %s13130_s9, %s15458_s11 }
  0xc4   :  { %p13136_p12 = pnand %p13134_p11, %p13131_p10 }
  0xc6   :  { %13139 = shalt.err (!%p13136_p12)
}
  0xc7   :  { %s13140_s1 = scalar_lea.vmem %s139_s19, 6144  ;;  %p13145_p0 = scmp.lt.s32.totalorder %s139_s19, %s139_s19 }
  0xc8   :  { %p13141_p13 = scmp.ne.s32.totalorder %s139_s19, %s13140_s1  ;;  %p13146_p1 = scmp.lt.s32.totalorder %s13140_s1, %s13140_s1 }
  0xca   :  { %p13147_p2 = por %p13146_p1, %p13145_p0 }
  0xcc   :  { %p13148_p3 = pnand %p13147_p2, %p13141_p13 }
  0xce   :  { %13151 = shalt.err (!%p13148_p3)
}
  0xcf   :  { %144 = dma.hbm_to_vmem [thread:$0]  %s15458_s11, 6144, %s139_s19, [#allocation19], %s13235_s23, %s13235_s23, %s13236_s24  }
  0xd0   :  { %s13249_s2 = smov [#allocation23]   ;;  %s13250_s21 = smov [#allocation26]  }
  0xd1   :  { %s162_s20 = sshll.u32 %s13249_s2, 4  ;;  %s188_s15 = sshll.u32 %s13250_s21, 4  ;;  %s163_s20 = int_to_ptr.vmem [resolvable:$true] %s162_s20  ;;  %s189_s15 = int_to_ptr.vmem [resolvable:$true] %s188_s15 }
  0xd2   :  { %s13152_s5 = scalar_lea.hbm %s15460_s13, 6144 }
  0xd3   :  { %p13153_p4 = scmp.ne.s32.totalorder %s15460_s13, %s13152_s5  ;;  %p13156_p5 = scmp.lt.u32.totalorder %s13152_s5, %s15460_s13 }
  0xd5   :  { %p13158_p6 = pnand %p13156_p5, %p13153_p4 }
  0xd7   :  { %13161 = shalt.err (!%p13158_p6)
}
  0xd8   :  { %s13162_s11 = scalar_lea.vmem %s163_s20, 6144  ;;  %p13167_p8 = scmp.lt.s32.totalorder %s163_s20, %s163_s20 }
  0xd9   :  { %p13163_p7 = scmp.ne.s32.totalorder %s163_s20, %s13162_s11  ;;  %p13168_p9 = scmp.lt.s32.totalorder %s13162_s11, %s13162_s11 }
  0xdb   :  { %p13169_p10 = por %p13168_p9, %p13167_p8 }
  0xdd   :  { %p13170_p11 = pnand %p13169_p10, %p13163_p7 }
  0xdf   :  { %13173 = shalt.err (!%p13170_p11)
}
  0xe0   :  { %168 = dma.hbm_to_vmem [thread:$0]  %s15460_s13, 6144, %s163_s20, [#allocation22], %s13235_s23, %s13235_s23, %s13236_s24  }
  0xe1   :  { %s13174_s18 = scalar_lea.hbm %s15463_s16, 2048 }
  0xe2   :  { %p13175_p12 = scmp.ne.s32.totalorder %s15463_s16, %s13174_s18  ;;  %p13178_p13 = scmp.lt.u32.totalorder %s13174_s18, %s15463_s16 }
  0xe4   :  { %p13180_p0 = pnand %p13178_p13, %p13175_p12 }
  0xe6   :  { %13183 = shalt.err (!%p13180_p0)
}
  0xe7   :  { %s13184_s2 = scalar_lea.vmem %s189_s15, 2048  ;;  %p13189_p2 = scmp.lt.s32.totalorder %s189_s15, %s189_s15 }
  0xe8   :  { %p13185_p1 = scmp.ne.s32.totalorder %s189_s15, %s13184_s2  ;;  %p13190_p3 = scmp.lt.s32.totalorder %s13184_s2, %s13184_s2 }
  0xea   :  { %p13191_p4 = por %p13190_p3, %p13189_p2 }
  0xec   :  { %p13192_p5 = pnand %p13191_p4, %p13185_p1 }
  0xee   :  { %13195 = shalt.err (!%p13192_p5)
}
  0xef   :  { %194 = dma.hbm_to_vmem [thread:$0]  %s15463_s16, 2048, %s189_s15, [#allocation25], %s13243_s0, %s13243_s0, %s13244_s28  }
  0xf0   :  { %13218 = dma.done.wait [#allocation7], 1024  }
  0xf1   :  { %13219 = vsyncadd [#allocation7], 4294966272 }
  0xf2   :  { %13220 = dma.done.wait [#allocation10], 12288  }
  0xf3   :  { %13221 = vsyncadd [#allocation10], 4294955008 }
  0xf4   :  { %13222 = dma.done.wait [#allocation13], 12288  }
  0xf5   :  { %13223 = vsyncadd [#allocation13], 4294955008 }
  0xf6   :  { %13224 = dma.done.wait [#allocation16], 12288  }
  0xf7   :  { %13225 = vsyncadd [#allocation16], 4294955008 }
  0xf8   :  { %13226 = dma.done.wait [#allocation19], 12288  }
  0xf9   :  { %13227 = vsyncadd [#allocation19], 4294955008 }
  0xfa   :  { %13228 = dma.done.wait [#allocation22], 12288  }
  0xfb   :  { %13229 = vsyncadd [#allocation22], 4294955008 }
  0xfc   :  { %13230 = dma.done.wait [#allocation25], 4096  }
  0xfd   :  { %13231 = vsyncadd [#allocation25], 4294963200  ;;  %v15470_v0 = vmov 0.0   ;;  %v245_v1 = vld [vmem:[#allocation9 + $0x8] sm:$0xff]  ;;  %v248_v2 = vld [vmem:[#allocation9 + $0x20] sm:$0xff]  ;;  %vm13253_vm0 = vmmov 0  }
  0xfe   :  { %373 = vmatprep.mubr.f32.mxu0 %v15470_v0  ;;  %v244_v3 = vld [vmem:[#allocation9] sm:$0xff]  ;;  %v10103_v4 = vpack.c.bf16 %v248_v2, %v245_v1  ;;  %v247_v5 = vld [vmem:[#allocation9 + $0x18] sm:$0xff]  ;;  %v254_v7 = vld [vmem:[#allocation9 + $0x50] sm:$0xff]  ;;  %s15494_s17 = sld [smem:[#allocation42_spill]]  ;;  %s13254_s18 = smov [#allocation27]  }
  0xff   :  { %v251_v6 = vld [vmem:[#allocation9 + $0x38] sm:$0xff]  ;;  %v10105_v8 = vpack.c.bf16 %v247_v5, %v244_v3  ;;  %v250_v10 = vld [vmem:[#allocation9 + $0x30] sm:$0xff]  ;;  %v253_v11 = vld [vmem:[#allocation9 + $0x48] sm:$0xff]  ;;  %s7843_s7 = sshll.u32 %s13254_s18, 4  ;;  %s7844_s7 = int_to_ptr.vmem [resolvable:$true] %s7843_s7 }
 0x100   :  { %v10107_v9 = vpack.c.bf16 %v254_v7, %v251_v6  ;;  %v257_v12 = vld [vmem:[#allocation9 + $0x68] sm:$0xff]  ;;  %10104 = vmatprep.subr.bf16.mxu0 %v10103_v4  ;;  %v260_v13 = vld [vmem:[#allocation9 + $0x80] sm:$0xff]  ;;  %v10109_v14 = vpack.c.bf16 %v253_v11, %v250_v10  ;;  %v259_v17 = vld [vmem:[#allocation9 + $0x78] sm:$0xff]  ;;  %s13196_s1 = scalar_lea.vmem %s7844_s7, 128  ;;  %p13201_p7 = scmp.lt.s32.totalorder %s7844_s7, %s7844_s7 }
 0x101   :  { %10106 = vmatpush1.bf16.msra.mxu0 %v10105_v8  ;;  %v10111_v15 = vpack.c.bf16 %v260_v13, %v257_v12  ;;  %v256_v16 = vld [vmem:[#allocation9 + $0x60] sm:$0xff]  ;;  %v263_v18 = vld [vmem:[#allocation9 + $0x98] sm:$0xff]  ;;  %v266_v19 = vld [vmem:[#allocation9 + $0xb0] sm:$0xff]  ;;  %p13197_p6 = scmp.ne.s32.totalorder %s7844_s7, %s13196_s1  ;;  %p13202_p8 = scmp.lt.s32.totalorder %s13196_s1, %s13196_s1 }
 0x102   :  { %10108 = vmatprep.subr.bf16.mxu0 %v10107_v9  ;;  %v10113_v20 = vpack.c.bf16 %v259_v17, %v256_v16  ;;  %v262_v21 = vld [vmem:[#allocation9 + $0x90] sm:$0xff]  ;;  %v10115_v22 = vpack.c.bf16 %v266_v19, %v263_v18  ;;  %v265_v23 = vld [vmem:[#allocation9 + $0xa8] sm:$0xff]  ;;  %v272_v27 = vld [vmem:[#allocation9 + $0xe0] sm:$0xff] }
 0x103   :  { %v246_v24 = vld [vmem:[#allocation9 + $0x10] sm:$0xff]  ;;  %v249_v25 = vld [vmem:[#allocation9 + $0x28] sm:$0xff]  ;;  %v252_v29 = vld [vmem:[#allocation9 + $0x40] sm:$0xff]  ;;  %v10117_v31 = vpack.c.bf16 %v265_v23, %v262_v21  ;;  %p13203_p9 = por %p13202_p8, %p13201_p7 }
 0x104   :  { %v269_v26 = vld [vmem:[#allocation9 + $0xc8] sm:$0xff]  ;;  %v10135_v28 = vpack.c.bf16 %v249_v25, %v246_v24  ;;  %v255_v30 = vld [vmem:[#allocation9 + $0x58] sm:$0xff]  ;;  %v268_v32 = vld [vmem:[#allocation9 + $0xc0] sm:$0xff] }
 0x105   :  { %10110 = vmatpush1.bf16.msra.mxu0 %v10109_v14  ;;  %v10139_v33 = vpack.c.bf16 %v255_v30, %v252_v29  ;;  %v10119_v34 = vpack.c.bf16 %v272_v27, %v269_v26  ;;  %v271_v35 = vld [vmem:[#allocation9 + $0xd8] sm:$0xff]  ;;  %v13546_v36 = vld [vmem:[#allocation6] sm:$0xff]  ;;  %v258_v37 = vld [vmem:[#allocation9 + $0x70] sm:$0xff]  ;;  %p13204_p10 = pnand %p13203_p9, %p13197_p6 }
 0x106   :  { %10112 = vmatprep.subr.bf16.mxu0 %v10111_v15  ;;  %10136 = vmatprep.subr.bf16.mxu1 %v10135_v28  ;;  %v275_v38 = vld [vmem:[#allocation9 + $0xf8] sm:$0xff]  ;;  %v278_v39 = vld [vmem:[#allocation9 + $0x110] sm:$0xff]  ;;  %v261_v40 = vld [vmem:[#allocation9 + $0x88] sm:$0xff]  ;;  %v10121_v42 = vpack.c.bf16 %v271_v35, %v268_v32 }
 0x107   :  { %10138 = vmatpush3.bf16.msra.mxu1 %v10135_v28  ;;  %8681 = vmatprep.mubr.f32.mxu1 %v13546_v36  ;;  %v10143_v41 = vpack.c.bf16 %v261_v40, %v258_v37  ;;  %v264_v43 = vld [vmem:[#allocation9 + $0xa0] sm:$0xff]  ;;  %v267_v44 = vld [vmem:[#allocation9 + $0xb8] sm:$0xff]  ;;  %v10123_v45 = vpack.c.bf16 %v278_v39, %v275_v38  ;;  %v274_v46 = vld [vmem:[#allocation9 + $0xf0] sm:$0xff] }
 0x108   :  { %10140 = vmatprep.subr.bf16.mxu1 %v10139_v33  ;;  %v277_v47 = vld [vmem:[#allocation9 + $0x108] sm:$0xff]  ;;  %v284_v49 = vld [vmem:[#allocation9 + $0x140] sm:$0xff]  ;;  %v10147_v50 = vpack.c.bf16 %v267_v44, %v264_v43  ;;  %v270_v51 = vld [vmem:[#allocation9 + $0xd0] sm:$0xff] }
 0x109   :  { %10114 = vmatpush1.bf16.msra.mxu0 %v10113_v20  ;;  %v281_v48 = vld [vmem:[#allocation9 + $0x128] sm:$0xff]  ;;  %v10125_v53 = vpack.c.bf16 %v277_v47, %v274_v46  ;;  %v280_v55 = vld [vmem:[#allocation9 + $0x120] sm:$0xff]  ;;  %v283_v56 = vld [vmem:[#allocation9 + $0x138] sm:$0xff] }
 0x10a   :  { %10116 = vmatprep.subr.bf16.mxu0 %v10115_v22  ;;  %v273_v52 = vld [vmem:[#allocation9 + $0xe8] sm:$0xff]  ;;  %v10127_v54 = vpack.c.bf16 %v284_v49, %v281_v48  ;;  %v287_v57 = vld [vmem:[#allocation9 + $0x158] sm:$0xff]  ;;  %v290_v58 = vld [vmem:[#allocation9 + $0x170] sm:$0xff]  ;;  %v10129_v62 = vpack.c.bf16 %v283_v56, %v280_v55 }
 0x10b   :  { %10142 = vmatpush3.bf16.msra.mxu1 %v10139_v33  ;;  %v10151_v59 = vpack.c.bf16 %v273_v52, %v270_v51  ;;  %v276_v60 = vld [vmem:[#allocation9 + $0x100] sm:$0xff]  ;;  %v279_v61 = vld [vmem:[#allocation9 + $0x118] sm:$0xff]  ;;  %v10131_v63 = vpack.c.bf16 %v290_v58, %v287_v57  ;;  %v286_v1 = vld [vmem:[#allocation9 + $0x150] sm:$0xff] }
 0x10c   :  { %10144 = vmatprep.subr.bf16.mxu1 %v10143_v41  ;;  %v289_v2 = vld [vmem:[#allocation9 + $0x168] sm:$0xff]  ;;  %v555_v4 = vld [vmem:[#allocation12 + $0x20] sm:$0xff]  ;;  %v10155_v5 = vpack.c.bf16 %v279_v61, %v276_v60  ;;  %v282_v6 = vld [vmem:[#allocation9 + $0x130] sm:$0xff] }
 0x10d   :  { %10118 = vmatpush1.bf16.msra.mxu0 %v10117_v31  ;;  %v552_v3 = vld [vmem:[#allocation12 + $0x8] sm:$0xff]  ;;  %v10133_v8 = vpack.c.bf16 %v289_v2, %v286_v1  ;;  %v551_v10 = vld [vmem:[#allocation12] sm:$0xff]  ;;  %v554_v11 = vld [vmem:[#allocation12 + $0x18] sm:$0xff] }
 0x10e   :  { %10120 = vmatprep.subr.bf16.mxu0 %v10119_v34  ;;  %v285_v7 = vld [vmem:[#allocation9 + $0x148] sm:$0xff]  ;;  %v10167_v9 = vpack.c.bf16 %v555_v4, %v552_v3  ;;  %v558_v12 = vld [vmem:[#allocation12 + $0x38] sm:$0xff]  ;;  %v561_v13 = vld [vmem:[#allocation12 + $0x50] sm:$0xff]  ;;  %v10169_v17 = vpack.c.bf16 %v554_v11, %v551_v10 }
 0x10f   :  { %10146 = vmatpush3.bf16.msra.mxu1 %v10143_v41  ;;  %v10159_v14 = vpack.c.bf16 %v285_v7, %v282_v6  ;;  %v288_v15 = vld [vmem:[#allocation9 + $0x160] sm:$0xff]  ;;  %v291_v16 = vld [vmem:[#allocation9 + $0x178] sm:$0xff]  ;;  %v10171_v18 = vpack.c.bf16 %v561_v13, %v558_v12  ;;  %v557_v19 = vld [vmem:[#allocation12 + $0x30] sm:$0xff] }
 0x110   :  { %10148 = vmatprep.subr.bf16.mxu1 %v10147_v50  ;;  %v560_v20 = vld [vmem:[#allocation12 + $0x48] sm:$0xff]  ;;  %v567_v22 = vld [vmem:[#allocation12 + $0x80] sm:$0xff]  ;;  %v10163_v23 = vpack.c.bf16 %v291_v16, %v288_v15  ;;  %v553_v24 = vld [vmem:[#allocation12 + $0x10] sm:$0xff] }
 0x111   :  { %10122 = vmatpush1.bf16.msra.mxu0 %v10121_v42  ;;  %v564_v21 = vld [vmem:[#allocation12 + $0x68] sm:$0xff]  ;;  %v10173_v27 = vpack.c.bf16 %v560_v20, %v557_v19  ;;  %v563_v29 = vld [vmem:[#allocation12 + $0x60] sm:$0xff]  ;;  %v566_v30 = vld [vmem:[#allocation12 + $0x78] sm:$0xff] }
 0x112   :  { %10124 = vmatprep.subr.bf16.mxu0 %v10123_v45  ;;  %v556_v25 = vld [vmem:[#allocation12 + $0x28] sm:$0xff]  ;;  %v10175_v28 = vpack.c.bf16 %v567_v22, %v564_v21  ;;  %v570_v31 = vld [vmem:[#allocation12 + $0x98] sm:$0xff]  ;;  %v573_v32 = vld [vmem:[#allocation12 + $0xb0] sm:$0xff]  ;;  %v10177_v35 = vpack.c.bf16 %v566_v30, %v563_v29 }
 0x113   :  { %10150 = vmatpush3.bf16.msra.mxu1 %v10147_v50  ;;  %v13551_v26 = vld [vmem:[#allocation6 + $0x8] sm:$0xff]  ;;  %v10199_v33 = vpack.c.bf16 %v556_v25, %v553_v24  ;;  %v13555_v34 = vld [vmem:[#allocation6 + $0x10] sm:$0xff]  ;;  %v559_v37 = vld [vmem:[#allocation12 + $0x40] sm:$0xff]  ;;  %v10179_v39 = vpack.c.bf16 %v573_v32, %v570_v31 }
 0x114   :  { %10152 = vmatprep.subr.bf16.mxu1 %v10151_v59  ;;  %v562_v38 = vld [vmem:[#allocation12 + $0x58] sm:$0xff]  ;;  %v569_v40 = vld [vmem:[#allocation12 + $0x90] sm:$0xff]  ;;  %v572_v41 = vld [vmem:[#allocation12 + $0xa8] sm:$0xff] }
 0x115   :  { %10126 = vmatpush1.bf16.msra.mxu0 %v10125_v53  ;;  %v576_v42 = vld [vmem:[#allocation12 + $0xc8] sm:$0xff]  ;;  %v579_v43 = vld [vmem:[#allocation12 + $0xe0] sm:$0xff]  ;;  %v10203_v44 = vpack.c.bf16 %v562_v38, %v559_v37  ;;  %v13559_v45 = vld [vmem:[#allocation6 + $0x18] sm:$0xff]  ;;  %v10181_v46 = vpack.c.bf16 %v572_v41, %v569_v40 }
 0x116   :  { %10128 = vmatprep.subr.bf16.mxu0 %v10127_v54  ;;  %v565_v47 = vld [vmem:[#allocation12 + $0x70] sm:$0xff]  ;;  %v568_v48 = vld [vmem:[#allocation12 + $0x88] sm:$0xff]  ;;  %v10183_v49 = vpack.c.bf16 %v579_v43, %v576_v42  ;;  %v575_v50 = vld [vmem:[#allocation12 + $0xc0] sm:$0xff] }
 0x117   :  { %10154 = vmatpush3.bf16.msra.mxu1 %v10151_v59  ;;  %v578_v51 = vld [vmem:[#allocation12 + $0xd8] sm:$0xff]  ;;  %v585_v53 = vld [vmem:[#allocation12 + $0x110] sm:$0xff]  ;;  %v10207_v54 = vpack.c.bf16 %v568_v48, %v565_v47  ;;  %v13565_v55 = vld [vmem:[#allocation6 + $0x20] sm:$0xff] }
 0x118   :  { %10156 = vmatprep.subr.bf16.mxu1 %v10155_v5  ;;  %v582_v52 = vld [vmem:[#allocation12 + $0xf8] sm:$0xff]  ;;  %v10185_v56 = vpack.c.bf16 %v578_v51, %v575_v50  ;;  %v571_v57 = vld [vmem:[#allocation12 + $0xa0] sm:$0xff]  ;;  %v581_v60 = vld [vmem:[#allocation12 + $0xf0] sm:$0xff] }
 0x119   :  { %10130 = vmatpush1.bf16.msra.mxu0 %v10129_v62  ;;  %v574_v58 = vld [vmem:[#allocation12 + $0xb8] sm:$0xff]  ;;  %v10187_v59 = vpack.c.bf16 %v585_v53, %v582_v52  ;;  %v584_v61 = vld [vmem:[#allocation12 + $0x108] sm:$0xff]  ;;  %v577_v4 = vld [vmem:[#allocation12 + $0xd0] sm:$0xff] }
 0x11a   :  { %10132 = vmatprep.subr.bf16.mxu0 %v10131_v63  ;;  %v588_v62 = vld [vmem:[#allocation12 + $0x128] sm:$0xff]  ;;  %v591_v63 = vld [vmem:[#allocation12 + $0x140] sm:$0xff]  ;;  %v10211_v1 = vpack.c.bf16 %v574_v58, %v571_v57  ;;  %v10189_v3 = vpack.c.bf16 %v584_v61, %v581_v60  ;;  %v13573_v6 = vld [vmem:[#allocation6 + $0x30] sm:$0xff]  ;;  %v15472_v60 = vmov 0.0|0.0  }
 0x11b   :  { %10158 = vmatpush3.bf16.msra.mxu1 %v10155_v5  ;;  %v13571_v2 = vld [vmem:[#allocation6 + $0x28] sm:$0xff]  ;;  %v10191_v7 = vpack.c.bf16 %v591_v63, %v588_v62  ;;  %v594_v10 = vld [vmem:[#allocation12 + $0x158] sm:$0xff]  ;;  %v597_v11 = vld [vmem:[#allocation12 + $0x170] sm:$0xff] }
 0x11c   :  { %10160 = vmatprep.subr.bf16.mxu1 %v10159_v14  ;;  %v580_v5 = vld [vmem:[#allocation12 + $0xe8] sm:$0xff]  ;;  %v583_v15 = vld [vmem:[#allocation12 + $0x100] sm:$0xff]  ;;  %v586_v16 = vld [vmem:[#allocation12 + $0x118] sm:$0xff] }
 0x11d   :  { %10134 = vmatpush1.bf16.msra.mxu0 %v10133_v8  ;;  %v587_v8 = vld [vmem:[#allocation12 + $0x120] sm:$0xff]  ;;  %v10215_v12 = vpack.c.bf16 %v580_v5, %v577_v4  ;;  %v596_v19 = vld [vmem:[#allocation12 + $0x168] sm:$0xff]  ;;  %v10219_v22 = vpack.c.bf16 %v586_v16, %v583_v15  ;;  %v589_v24 = vld [vmem:[#allocation12 + $0x130] sm:$0xff] }
 0x11e   :  { %10168 = vmatprep.subr.bf16.mxu0 %v10167_v9  ;;  %v590_v9 = vld [vmem:[#allocation12 + $0x138] sm:$0xff]  ;;  %v861_v20 = vld [vmem:[#allocation11 + $0x8] sm:$0xff]  ;;  %v864_v21 = vld [vmem:[#allocation11 + $0x20] sm:$0xff] }
 0x11f   :  { %10162 = vmatpush3.bf16.msra.mxu1 %v10159_v14  ;;  %v10193_v13 = vpack.c.bf16 %v590_v9, %v587_v8  ;;  %v13579_v14 = vld [vmem:[#allocation6 + $0x38] sm:$0xff]  ;;  %v592_v25 = vld [vmem:[#allocation12 + $0x148] sm:$0xff]  ;;  %v870_v31 = vld [vmem:[#allocation11 + $0x50] sm:$0xff] }
 0x120   :  { %374 = vmatmul.mubr.f32.vlgmr.msra.gmra.mrb[0].mxu0 %v13546_v36  ;;  %10164 = vmatprep.subr.bf16.mxu1 %v10163_v23  ;;  %v863_v29 = vld [vmem:[#allocation11 + $0x18] sm:$0xff]  ;;  %v10223_v32 = vpack.c.bf16 %v592_v25, %v589_v24  ;;  %v869_v40 = vld [vmem:[#allocation11 + $0x48] sm:$0xff]  ;;  %v876_v42 = vld [vmem:[#allocation11 + $0x80] sm:$0xff] }
 0x121   :  { %10170 = vmatpush1.bf16.msra.mxu0 %v10169_v17  ;;  %379 = vmatprep.mubr.f32.mxu0 %v15470_v0  ;;  %v10195_v17 = vpack.c.bf16 %v597_v11, %v594_v10  ;;  %v867_v30 = vld [vmem:[#allocation11 + $0x38] sm:$0xff]  ;;  %v873_v41 = vld [vmem:[#allocation11 + $0x68] sm:$0xff]  ;;  %v872_v47 = vld [vmem:[#allocation11 + $0x60] sm:$0xff] }
 0x122   :  { %10172 = vmatprep.subr.bf16.mxu0 %v10171_v18  ;;  %v593_v18 = vld [vmem:[#allocation12 + $0x150] sm:$0xff]  ;;  %v598_v37 = vld [vmem:[#allocation12 + $0x178] sm:$0xff]  ;;  %v13592_v38 = vpack.c.bf16 %v870_v31, %v867_v30  ;;  %v865_v51 = vld [vmem:[#allocation11 + $0x28] sm:$0xff] }
 0x123   :  { %10166 = vmatpush3.bf16.msra.mxu1 %v10163_v23  ;;  %v10197_v23 = vpack.c.bf16 %v596_v19, %v593_v18  ;;  %v875_v48 = vld [vmem:[#allocation11 + $0x78] sm:$0xff]  ;;  %v882_v50 = vld [vmem:[#allocation11 + $0xb0] sm:$0xff]  ;;  %v885_v57 = vld [vmem:[#allocation11 + $0xc8] sm:$0xff] }
 0x124   :  { %380 = vmatmul.mubr.f32.gmra.mrb[2].mxu0 %v13551_v26  ;;  %10200 = vmatprep.subr.bf16.mxu1 %v10199_v33  ;;  %v13605_v52 = vpack.c.bf16 %v875_v48, %v872_v47  ;;  %v888_v58 = vld [vmem:[#allocation11 + $0xe0] sm:$0xff]  ;;  %v871_v62 = vld [vmem:[#allocation11 + $0x58] sm:$0xff]  ;;  %v874_v9 = vld [vmem:[#allocation11 + $0x70] sm:$0xff]  ;;  %v294_v47 = vlaneseq }
 0x125   :  { %10174 = vmatpush1.bf16.msra.mxu0 %v10173_v27  ;;  %385 = vmatprep.mubr.f32.mxu0 %v15470_v0  ;;  %v13585_v27 = vpack.c.bf16 %v864_v21, %v861_v20  ;;  %v868_v61 = vld [vmem:[#allocation11 + $0x40] sm:$0xff]  ;;  %v887_v4 = vld [vmem:[#allocation11 + $0xd8] sm:$0xff]  ;;  %v877_v10 = vld [vmem:[#allocation11 + $0x88] sm:$0xff] }
 0x126   :  { %10176 = vmatprep.subr.bf16.mxu0 %v10175_v28  ;;  %8682 = vmatmul.mubr.f32.vlgmr.msra.gmra.mrb[0].mxu1 %v13551_v26  ;;  %v860_v28 = vld [vmem:[#allocation11] sm:$0xff]  ;;  %v891_v5 = vld [vmem:[#allocation11 + $0xf8] sm:$0xff]  ;;  %v13623_v8 = vpack.c.bf16 %v871_v62, %v868_v61  ;;  %v13637_v16 = vpack.c.bf16 %v877_v10, %v874_v9  ;;  %v886_v24 = vld [vmem:[#allocation11 + $0xd0] sm:$0xff]  ;;  %v295_v48 = vshrl.u32 %v294_v47, 7 }
 0x127   :  { %10202 = vmatpush3.bf16.msra.mxu1 %v10199_v33  ;;  %8684 = vmatprep.mubr.f32.mxu1 %v13555_v34  ;;  %v13589_v33 = vpack.c.bf16 %v863_v29, %v860_v28  ;;  %v900_v15 = vld [vmem:[#allocation11 + $0x140] sm:$0xff]  ;;  %v883_v18 = vld [vmem:[#allocation11 + $0xb8] sm:$0xff]  ;;  %v889_v25 = vld [vmem:[#allocation11 + $0xe8] sm:$0xff] }
 0x128   :  { %386 = vmatmul.mubr.f32.gmra.mrb[4].mxu0 %v13555_v34  ;;  %10204 = vmatprep.subr.bf16.mxu1 %v10203_v44  ;;  %v896_v20 = vld [vmem:[#allocation11 + $0x120] sm:$0xff]  ;;  %v899_v21 = vld [vmem:[#allocation11 + $0x138] sm:$0xff]  ;;  %v902_v30 = vld [vmem:[#allocation11 + $0x150] sm:$0xff]  ;;  %v13782_v47 = vsub.s32 1, %v295_v48 }
 0x129   :  { %10178 = vmatpush1.bf16.msra.mxu0 %v10177_v35  ;;  %391 = vmatprep.mubr.f32.mxu0 %v15470_v0  ;;  %v595_v35 = vld [vmem:[#allocation12 + $0x160] sm:$0xff]  ;;  %v13658_v28 = vpack.c.bf16 %v899_v21, %v896_v20  ;;  %v905_v31 = vld [vmem:[#allocation11 + $0x168] sm:$0xff] }
 0x12a   :  { %10180 = vmatprep.subr.bf16.mxu0 %v10179_v39  ;;  %8685 = vmatmul.mubr.f32.gmra.mrb[2].mxu1 %v13559_v45  ;;  %v866_v39 = vld [vmem:[#allocation11 + $0x30] sm:$0xff]  ;;  %v10227_v43 = vpack.c.bf16 %v598_v37, %v595_v35  ;;  %v895_v35 = vld [vmem:[#allocation11 + $0x118] sm:$0xff]  ;;  %v13673_v37 = vpack.c.bf16 %v905_v31, %v902_v30  ;;  %15485 = vst [vmem:[#allocation37_spill] sm:$0xff] %v13782_v47 }
 0x12b   :  { %10206 = vmatpush3.bf16.msra.mxu1 %v10203_v44  ;;  %8687 = vmatprep.mubr.f32.mxu1 %v13565_v55  ;;  %v13597_v44 = vpack.c.bf16 %v869_v40, %v866_v39  ;;  %v901_v40 = vld [vmem:[#allocation11 + $0x148] sm:$0xff] }
 0x12c   :  { %392 = vmatmul.mubr.f32.gmra.mrb[6].mxu0 %v13559_v45  ;;  %10208 = vmatprep.subr.bf16.mxu1 %v10207_v54 }
 0x12d   :  { %10182 = vmatpush1.bf16.msra.mxu0 %v10181_v46  ;;  %397 = vmatprep.mubr.f32.mxu0 %v15470_v0  ;;  %v13600_v46 = vpack.c.bf16 %v876_v42, %v873_v41  ;;  %v904_v42 = vld [vmem:[#allocation11 + $0x160] sm:$0xff] }
 0x12e   :  { %10184 = vmatprep.subr.bf16.mxu0 %v10183_v49  ;;  %8688 = vmatmul.mubr.f32.gmra.mrb[4].mxu1 %v13571_v2  ;;  %v879_v49 = vld [vmem:[#allocation11 + $0x98] sm:$0xff] }
 0x12f   :  { %10210 = vmatpush3.bf16.msra.mxu1 %v10207_v54  ;;  %8690 = vmatprep.mubr.f32.mxu1 %v13573_v6  ;;  %v13608_v53 = vpack.c.bf16 %v882_v50, %v879_v49  ;;  %v878_v54 = vld [vmem:[#allocation11 + $0x90] sm:$0xff]  ;;  %v13731_v49 = vsub.s32 2, %v295_v48  ;;  %v292_v50 = vld [vmem:[%s15450_s3] ss:$2 sm:$0x7] }
 0x130   :  { %398 = vmatmul.mubr.f32.gmra.mrb[8].mxu0 %v13565_v55  ;;  %10212 = vmatprep.subr.bf16.mxu1 %v10211_v1 }
 0x131   :  { %10186 = vmatpush1.bf16.msra.mxu0 %v10185_v56  ;;  %403 = vmatprep.mubr.f32.mxu0 %v15470_v0  ;;  %v881_v56 = vld [vmem:[#allocation11 + $0xa8] sm:$0xff] }
 0x132   :  { %10188 = vmatprep.subr.bf16.mxu0 %v10187_v59  ;;  %8691 = vmatmul.mubr.f32.gmra.mrb[6].mxu1 %v13579_v14  ;;  %v13616_v63 = vpack.c.bf16 %v881_v56, %v878_v54 }
 0x133   :  { %10214 = vmatpush3.bf16.msra.mxu1 %v10211_v1  ;;  %8725 = vmatprep.mubr.f32.mxu1 %v13546_v36  ;;  %v13619_v1 = vpack.c.bf16 %v888_v58, %v885_v57 }
 0x134   :  { %404 = vmatmul.mubr.f32.gmra.mrb[10].mxu0 %v13571_v2  ;;  %10216 = vmatprep.subr.bf16.mxu1 %v10215_v12 }
 0x135   :  { %10190 = vmatpush1.bf16.msra.mxu0 %v10189_v3  ;;  %409 = vmatprep.mubr.f32.mxu0 %v15470_v0  ;;  %v884_v3 = vld [vmem:[#allocation11 + $0xc0] sm:$0xff] }
 0x136   :  { %10192 = vmatprep.subr.bf16.mxu0 %v10191_v7  ;;  %v894_v7 = vld [vmem:[#allocation11 + $0x110] sm:$0xff]  ;;  %v13630_v11 = vpack.c.bf16 %v887_v4, %v884_v3 }
 0x137   :  { %10218 = vmatpush3.bf16.msra.mxu1 %v10215_v12  ;;  %v890_v12 = vld [vmem:[#allocation11 + $0xf0] sm:$0xff] }
 0x138   :  { %410 = vmatmul.mubr.f32.gmra.mrb[12].mxu0 %v13573_v6  ;;  %10220 = vmatprep.subr.bf16.mxu1 %v10219_v22 }
 0x139   :  { %10194 = vmatpush1.bf16.msra.mxu0 %v10193_v13  ;;  %415 = vmatprep.mubr.f32.mxu0 %v15470_v0  ;;  %v893_v13 = vld [vmem:[#allocation11 + $0x108] sm:$0xff] }
 0x13a   :  { %10196 = vmatprep.subr.bf16.mxu0 %v10195_v17  ;;  %v880_v17 = vld [vmem:[#allocation11 + $0xa0] sm:$0xff]  ;;  %v13644_v19 = vpack.c.bf16 %v893_v13, %v890_v12 }
 0x13b   :  { %10222 = vmatpush3.bf16.msra.mxu1 %v10219_v22  ;;  %v903_v22 = vld [vmem:[#allocation11 + $0x158] sm:$0xff] }
 0x13c   :  { %416 = vmatmul.mubr.f32.gmra.mrb[14].mxu0 %v13579_v14  ;;  %10224 = vmatprep.subr.bf16.mxu1 %v10223_v32 }
 0x13d   :  { %10198 = vmatpush1.bf16.msra.mxu0 %v10197_v23  ;;  %680 = vmatprep.mubr.f32.mxu0 %v15470_v0  ;;  %v13651_v23 = vpack.c.bf16 %v883_v18, %v880_v17 }
 0x13e   :  { %10232 = vmatprep.subr.bf16.mxu0 %v13585_v27 }
 0x13f   :  { %10226 = vmatpush3.bf16.msra.mxu1 %v10223_v32  ;;  %v892_v32 = vld [vmem:[#allocation11 + $0x100] sm:$0xff] }
 0x140   :  { %681 = vmatmul.mubr.f32.vlgmr.msra.gmra.mrb[16].mxu0 %v13546_v36  ;;  %10228 = vmatprep.subr.bf16.mxu1 %v10227_v43  ;;  %v862_v36 = vld [vmem:[#allocation11 + $0x10] sm:$0xff]  ;;  %v13677_v39 = vpack.c.bf16 %v895_v35, %v892_v32 }
 0x141   :  { %10234 = vmatpush1.bf16.msra.mxu0 %v13589_v33  ;;  %686 = vmatprep.mubr.f32.mxu0 %v15470_v0  ;;  %v13610_v59 = vpack.c.bf16 %v865_v51, %v862_v36  ;;  %v305_v36 = vrot.slane %v292_v50, %v13731_v49 }
 0x142   :  { %10236 = vmatprep.subr.bf16.mxu0 %v13592_v38 }
 0x143   :  { %10230 = vmatpush3.bf16.msra.mxu1 %v10227_v43 }
 0x144   :  { %687 = vmatmul.mubr.f32.gmra.mrb[18].mxu0 %v13551_v26  ;;  %10263 = vmatprep.subr.bf16.mxu1 %v15472_v60 }
 0x145   :  { %10238 = vmatpush1.bf16.msra.mxu0 %v13597_v44  ;;  %692 = vmatprep.mubr.f32.mxu0 %v15470_v0 }
 0x146   :  { %10240 = vmatprep.subr.bf16.mxu0 %v13600_v46  ;;  %8726 = vmatmul.mubr.f32.vlgmr.msra.gmra.mrb[8].mxu1 %v13551_v26  ;;  %v13633_v26 = vpack.c.bf16 %v894_v7, %v891_v5 }
 0x147   :  { %10265 = vmatpush3.bf16.msra.mxu1 %v13610_v59  ;;  %8728 = vmatprep.mubr.f32.mxu1 %v13555_v34 }
 0x148   :  { %693 = vmatmul.mubr.f32.gmra.mrb[20].mxu0 %v13555_v34  ;;  %10266 = vmatprep.subr.bf16.mxu1 %v15472_v60  ;;  %v897_v34 = vld [vmem:[#allocation11 + $0x128] sm:$0xff] }
 0x149   :  { %10242 = vmatpush1.bf16.msra.mxu0 %v13605_v52  ;;  %698 = vmatprep.mubr.f32.mxu0 %v15470_v0 }
 0x14a   :  { %10244 = vmatprep.subr.bf16.mxu0 %v13608_v53  ;;  %8729 = vmatmul.mubr.f32.gmra.mrb[10].mxu1 %v13559_v45 }
 0x14b   :  { %10268 = vmatpush3.bf16.msra.mxu1 %v13623_v8  ;;  %8731 = vmatprep.mubr.f32.mxu1 %v13565_v55 }
 0x14c   :  { %699 = vmatmul.mubr.f32.gmra.mrb[22].mxu0 %v13559_v45  ;;  %10269 = vmatprep.subr.bf16.mxu1 %v15472_v60  ;;  %v13647_v45 = vpack.c.bf16 %v900_v15, %v897_v34  ;;  %v599_v34 = vld [vmem:[%s15453_s6] ss:$2 sm:$0x7] }
 0x14d   :  { %10246 = vmatpush1.bf16.msra.mxu0 %v13616_v63  ;;  %704 = vmatprep.mubr.f32.mxu0 %v15470_v0  ;;  %v13755_v15 = vrot.slane %v599_v34, %v13731_v49 }
 0x14e   :  { %10248 = vmatprep.subr.bf16.mxu0 %v13619_v1  ;;  %8732 = vmatmul.mubr.f32.gmra.mrb[12].mxu1 %v13571_v2 }
 0x14f   :  { %10271 = vmatpush3.bf16.msra.mxu1 %v13637_v16  ;;  %8734 = vmatprep.mubr.f32.mxu1 %v13573_v6 }
 0x150   :  { %705 = vmatmul.mubr.f32.gmra.mrb[24].mxu0 %v13565_v55  ;;  %v906_v55 = vld [vmem:[#allocation11 + $0x170] sm:$0xff]  ;;  %10272 = vmatprep.subr.bf16.mxu1 %v15472_v60 }
 0x151   :  { %10250 = vmatpush1.bf16.msra.mxu0 %v13630_v11  ;;  %710 = vmatprep.mubr.f32.mxu0 %v15470_v0  ;;  %v13661_v29 = vpack.c.bf16 %v906_v55, %v903_v22 }
 0x152   :  { %10252 = vmatprep.subr.bf16.mxu0 %v13633_v26  ;;  %8735 = vmatmul.mubr.f32.gmra.mrb[14].mxu1 %v13579_v14 }
 0x153   :  { %10274 = vmatpush3.bf16.msra.mxu1 %v13651_v23  ;;  %8769 = vmatprep.mubr.msk.f32.mxu1 %vm13253_vm0, %v15470_v0 }
 0x154   :  { %711 = vmatmul.mubr.f32.gmra.mrb[26].mxu0 %v13571_v2  ;;  %v13665_v2 = vpack.c.bf16 %v889_v25, %v886_v24  ;;  %10275 = vmatprep.subr.bf16.mxu1 %v15472_v60 }
 0x155   :  { %10254 = vmatpush1.bf16.msra.mxu0 %v13644_v19  ;;  %716 = vmatprep.mubr.f32.mxu0 %v15470_v0 }
 0x156   :  { %10256 = vmatprep.subr.bf16.mxu0 %v13647_v45 }
 0x157   :  { %10277 = vmatpush3.bf16.msra.mxu1 %v13665_v2 }
 0x158   :  { %717 = vmatmul.mubr.f32.gmra.mrb[28].mxu0 %v13573_v6  ;;  %10278 = vmatprep.subr.bf16.mxu1 %v15472_v60  ;;  %v898_v6 = vld [vmem:[#allocation11 + $0x130] sm:$0xff] }
 0x159   :  { %10258 = vmatpush1.bf16.msra.mxu0 %v13658_v28  ;;  %722 = vmatprep.mubr.f32.mxu0 %v15470_v0  ;;  %v13685_v41 = vpack.c.bf16 %v901_v40, %v898_v6  ;;  %v13775_v6 = vsub.s32 0, %v295_v48  ;;  %v7858_v40 = vld [vmem:[%s15450_s3 + $0x1] ss:$2 sm:$0x7] }
 0x15a   :  { %10260 = vmatprep.subr.bf16.mxu0 %v13661_v29 }
 0x15b   :  { %10280 = vmatpush3.bf16.msra.mxu1 %v13677_v39 }
 0x15c   :  { %723 = vmatmul.mubr.f32.gmra.mrb[30].mxu0 %v13579_v14  ;;  %10281 = vmatprep.subr.bf16.mxu1 %v15472_v60  ;;  %v907_v14 = vld [vmem:[#allocation11 + $0x178] sm:$0xff] }
 0x15d   :  { %10262 = vmatpush1.bf16.msra.mxu0 %v13673_v37  ;;  %991 = vmatprep.mubr.f32.mxu0 %v15470_v0  ;;  %v13693_v43 = vpack.c.bf16 %v907_v14, %v904_v42 }
 0x15e   :  { %10288 = vmatprep.subr.bf16.mxu0 %v13585_v27 }
 0x15f   :  { %10283 = vmatpush3.bf16.msra.mxu1 %v13685_v41 }
 0x160   :  { %992 = vmatmul.mubr.f32.vlgmr.msra.gmra.mrb[0].mxu0 %v15470_v0  ;;  %10284 = vmatprep.subr.bf16.mxu1 %v15472_v60 }
 0x161   :  { %10290 = vmatpush1.bf16.msra.mxu0 %v13589_v33  ;;  %1158 = vmatprep.mubr.f32.mxu0 %v15470_v0 }
 0x162   :  { %10292 = vmatprep.subr.bf16.mxu0 %v13592_v38 }
 0x163   :  { %10286 = vmatpush3.bf16.msra.mxu1 %v13693_v43 }
 0x164   :  { %10319 = vmatprep.subr.bf16.mxu1 %v15472_v60 }
 0x165   :  { %10294 = vmatpush1.bf16.msra.mxu0 %v13597_v44 }
 0x166   :  { %10296 = vmatprep.subr.bf16.mxu0 %v13600_v46  ;;  %8770 = vmatmul.mubr.f32.vlgmr.msra.gmra.mrb[16].mxu1 %v15470_v0 }
 0x167   :  { %10321 = vmatpush3.bf16.msra.mxu1 %v13610_v59  ;;  %8804 = vmatprep.mubr.msk.f32.mxu1 %vm13253_vm0, %v15470_v0 }
 0x168   :  { %10322 = vmatprep.subr.bf16.mxu1 %v15472_v60 }
 0x169   :  { %10298 = vmatpush1.bf16.msra.mxu0 %v13605_v52 }
 0x16a   :  { %10300 = vmatprep.subr.bf16.mxu0 %v13608_v53 }
 0x16b   :  { %10324 = vmatpush3.bf16.msra.mxu1 %v13623_v8 }
 0x16c   :  { %10325 = vmatprep.subr.bf16.mxu1 %v15472_v60 }
 0x16d   :  { %10302 = vmatpush1.bf16.msra.mxu0 %v13616_v63 }
 0x16e   :  { %10304 = vmatprep.subr.bf16.mxu0 %v13619_v1 }
 0x16f   :  { %10327 = vmatpush3.bf16.msra.mxu1 %v13637_v16 }
 0x170   :  { %10328 = vmatprep.subr.bf16.mxu1 %v15472_v60 }
 0x171   :  { %10306 = vmatpush1.bf16.msra.mxu0 %v13630_v11 }
 0x172   :  { %10308 = vmatprep.subr.bf16.mxu0 %v13633_v26 }
 0x173   :  { %10330 = vmatpush3.bf16.msra.mxu1 %v13651_v23 }
 0x174   :  { %10331 = vmatprep.subr.bf16.mxu1 %v15472_v60 }
 0x175   :  { %10310 = vmatpush1.bf16.msra.mxu0 %v13644_v19 }
 0x176   :  { %10312 = vmatprep.subr.bf16.mxu0 %v13647_v45 }
 0x177   :  { %10333 = vmatpush3.bf16.msra.mxu1 %v13665_v2 }
 0x178   :  { %10334 = vmatprep.subr.bf16.mxu1 %v15472_v60 }
 0x179   :  { %10314 = vmatpush1.bf16.msra.mxu0 %v13658_v28 }
 0x17a   :  { %10316 = vmatprep.subr.bf16.mxu0 %v13661_v29 }
 0x17b   :  { %10336 = vmatpush3.bf16.msra.mxu1 %v13677_v39 }
 0x17c   :  { %10337 = vmatprep.subr.bf16.mxu1 %v15472_v60 }
 0x17d   :  { %10318 = vmatpush1.bf16.msra.mxu0 %v13673_v37 }
 0x17e   :  { %10344 = vmatprep.subr.bf16.mxu0 %v13585_v27 }
 0x17f   :  { %10339 = vmatpush3.bf16.msra.mxu1 %v13685_v41 }
 0x180   :  { %10340 = vmatprep.subr.bf16.mxu1 %v15472_v60 }
 0x183   :  { %10342 = vmatpush3.bf16.msra.mxu1 %v13693_v43 }
 0x184   :  { %10375 = vmatprep.subr.bf16.mxu1 %v15472_v60 }
 0x1f9   :  { %v8683_v51 = vpop.f32.mrb[0].mxu1 }
 0x1fa   :  { %v13737_v54 = vadd.f32 %v8683_v51, %v305_v36  ;;  %v488_v56 = vpop.f32.mrb[1].mxu1 }
 0x1fb   :  { %v489_v0 = vadd.f32 %v488_v56, %v305_v36 }
 0x1fd   :  { %v8686_v57 = vpop.f32.mrb[2].mxu1 }
 0x1fe   :  { %v13739_v58 = vadd.f32 %v8686_v57, %v305_v36  ;;  %v498_v61 = vpop.f32.mrb[3].mxu1  ;;  %v297_v57 = vrot.slane %v292_v50, %v13775_v6 }
 0x1ff   :  { %v13741_v62 = vadd.f32 %v498_v61, %v305_v36  ;;  %v915_v61 = vrot.slane %v7858_v40, %v13775_v6 }
 0x201   :  { %v8689_v3 = vpop.f32.mrb[4].mxu1 }
 0x202   :  { %v13743_v4 = vadd.f32 %v8689_v3, %v305_v36  ;;  %v508_v5 = vpop.f32.mrb[5].mxu1  ;;  %v301_v3 = vrot.slane %v292_v50, %v13782_v47 }
 0x203   :  { %v13745_v7 = vadd.f32 %v508_v5, %v305_v36  ;;  %v919_v5 = vrot.slane %v7858_v40, %v13782_v47 }
 0x205   :  { %v8692_v9 = vpop.f32.mrb[6].mxu1  ;;  %v13793_v34 = vadd.f32 %v919_v5, %v301_v3 }
 0x206   :  { %v13747_v10 = vadd.f32 %v8692_v9, %v305_v36  ;;  %v518_v12 = vpop.f32.mrb[7].mxu1  ;;  %v13791_v9 = vadd.f32 %v915_v61, %v297_v57  ;;  %v13798_v57 = vrot.slane %v7858_v40, %v13731_v49 }
 0x207   :  { %v13749_v13 = vadd.f32 %v518_v12, %v305_v36  ;;  %v15486_v36 = vmov 0.0|0.0  }
 0x219   :  { %v8727_v17 = vpop.f32.mrb[8].mxu1 }
 0x21a   :  { %v13758_v18 = vadd.f32 %v8727_v17, %v13755_v15  ;;  %v795_v20 = vpop.f32.mrb[9].mxu1 }
 0x21b   :  { %v13761_v21 = vadd.f32 %v795_v20, %v13755_v15 }
 0x21d   :  { %15484 = vst [vmem:[#allocation36_spill] sm:$0xff] %v13761_v21  ;;  %v8730_v22 = vpop.f32.mrb[10].mxu1 }
 0x21e   :  { %v13764_v55 = vadd.f32 %v8730_v22, %v13755_v15  ;;  %v805_v24 = vpop.f32.mrb[11].mxu1 }
 0x21f   :  { %v13767_v25 = vadd.f32 %v805_v24, %v13755_v15 }
 0x221   :  { %v8733_v30 = vpop.f32.mrb[12].mxu1 }
 0x222   :  { %v13770_v31 = vadd.f32 %v8733_v30, %v13755_v15  ;;  %v815_v32 = vpop.f32.mrb[13].mxu1 }
 0x223   :  { %v13773_v35 = vadd.f32 %v815_v32, %v13755_v15 }
 0x225   :  { %v13780_v42 = vpop.f32.mrb[14].mxu1 }
 0x226   :  { %v825_v14 = vpop.f32.mrb[15].mxu1 }
 0x227   :  { %v13785_v51 = vadd.f32 %v825_v14, %v13755_v15 }
 0x233   :  { %v993_v12 = vpop.f32.mrb[0].mxu0 }
 0x234   :  { %v12328_v17 = vadd.f32 %v13791_v9, %v993_v12  ;;  %v995_v48 = vpop.f32.mrb[1].mxu0 }
 0x235   :  { %v12330_v22 = vadd.f32 %v13793_v34, %v995_v48 }
 0x236   :  { %v7859_v20 = vmul.f32 -1.442695, %v12328_v17 }
 0x237   :  { %v7860_v24 = vmul.f32 -1.442695, %v12330_v22 }
 0x238   :  { %12588 = vpow2.f32 %v7859_v20 }
 0x239   :  { %v1064_v30 = vpop.f32.mrb[16].mxu1  ;;  %12590 = vpow2.f32 %v7860_v24 }
 0x23a   :  { %v8771_v32 = vpop.f32.mrb[17].mxu1  ;;  %v1065_v5 = vadd.f32 %v1064_v30, %v13798_v57 }
 0x242   :  { %v12589_v14 = vpop.eup %12588 }
 0x243   :  { %v1072_v50 = vadd.f32 1.0, %v12589_v14  ;;  %v12591_v61 = vpop.eup %12590 }
 0x244   :  { %v1079_v3 = vadd.f32 1.0, %v12591_v61 }
 0x245   :  { %12592 = vrcp.f32 %v1072_v50 }
 0x246   :  { %12594 = vrcp.f32 %v1079_v3 }
 0x24f   :  { %v12593_v12 = vpop.eup %12592 }
 0x250   :  { %v1082_v17 = vmul.f32 %v12593_v12, %v1065_v5  ;;  %v12595_v20 = vpop.eup %12594 }
 0x251   :  { %v1085_v22 = vsub.f32 1.0, %v12595_v20  ;;  %v1087_v24 = vmul.f32 0.0, %v12595_v20 }
 0x252   :  { %v1083_v48 = vadd.f32 %v1082_v17, %v489_v0  ;;  %v15487_v0 = vmov 0.0  }
 0x254   :  { %12596 = vtanh.f32 %v1083_v48 }
 0x25e   :  { %v12597_v32 = vpop.eup %12596 }
 0x25f   :  { %v1086_v60 = vmul.f32 %v12597_v32, %v1085_v22 }
 0x261   :  { %v13801_v14 = vadd.f32 %v1087_v24, %v1086_v60 }
 0x263   :  { %1159 = vmatmul.mubr.f32.vlgmr.msra.gmra.mrb[2].mxu0 %v13801_v14  ;;  %8805 = vmatmul.mubr.f32.vlgmr.msra.gmra.mrb[18].mxu1 %v13801_v14 }
 0x264   :  { %10346 = vmatpush1.bf16.msra.mxu0 %v13589_v33  ;;  %10377 = vmatpush3.bf16.msra.mxu1 %v13610_v59 }
 0x265   :  { %10348 = vmatprep.subr.bf16.mxu0 %v13592_v38  ;;  %10378 = vmatprep.subr.bf16.mxu1 %v15486_v36 }
 0x266   :  { %1326 = vmatprep.mubr.f32.mxu0 %v15487_v0  ;;  %8839 = vmatprep.mubr.msk.f32.mxu1 %vm13253_vm0, %v15487_v0 }
 0x268   :  { %10350 = vmatpush1.bf16.msra.mxu0 %v13597_v44  ;;  %10380 = vmatpush3.bf16.msra.mxu1 %v13623_v8 }
 0x269   :  { %10352 = vmatprep.subr.bf16.mxu0 %v13600_v46  ;;  %10381 = vmatprep.subr.bf16.mxu1 %v15486_v36 }
 0x26c   :  { %10354 = vmatpush1.bf16.msra.mxu0 %v13605_v52  ;;  %10383 = vmatpush3.bf16.msra.mxu1 %v13637_v16 }
 0x26d   :  { %10356 = vmatprep.subr.bf16.mxu0 %v13608_v53  ;;  %10384 = vmatprep.subr.bf16.mxu1 %v15486_v36 }
 0x270   :  { %10358 = vmatpush1.bf16.msra.mxu0 %v13616_v63  ;;  %10386 = vmatpush3.bf16.msra.mxu1 %v13651_v23 }
 0x271   :  { %10360 = vmatprep.subr.bf16.mxu0 %v13619_v1  ;;  %10387 = vmatprep.subr.bf16.mxu1 %v15486_v36 }
 0x274   :  { %10362 = vmatpush1.bf16.msra.mxu0 %v13630_v11  ;;  %10389 = vmatpush3.bf16.msra.mxu1 %v13665_v2 }
 0x275   :  { %10364 = vmatprep.subr.bf16.mxu0 %v13633_v26  ;;  %10390 = vmatprep.subr.bf16.mxu1 %v15486_v36 }
 0x278   :  { %10366 = vmatpush1.bf16.msra.mxu0 %v13644_v19  ;;  %10392 = vmatpush3.bf16.msra.mxu1 %v13677_v39 }
 0x279   :  { %10368 = vmatprep.subr.bf16.mxu0 %v13647_v45  ;;  %10393 = vmatprep.subr.bf16.mxu1 %v15486_v36 }
 0x27c   :  { %10370 = vmatpush1.bf16.msra.mxu0 %v13658_v28  ;;  %10395 = vmatpush3.bf16.msra.mxu1 %v13685_v41 }
 0x27d   :  { %10372 = vmatprep.subr.bf16.mxu0 %v13661_v29  ;;  %10396 = vmatprep.subr.bf16.mxu1 %v15486_v36 }
 0x280   :  { %10374 = vmatpush1.bf16.msra.mxu0 %v13673_v37  ;;  %10398 = vmatpush3.bf16.msra.mxu1 %v13693_v43 }
 0x281   :  { %10400 = vmatprep.subr.bf16.mxu0 %v13585_v27  ;;  %10431 = vmatprep.subr.bf16.mxu1 %v15486_v36 }
 0x336   :  { %v1160_v60 = vpop.f32.mrb[2].mxu0  ;;  %v1231_v56 = vpop.f32.mrb[18].mxu1 }
 0x337   :  { %v12332_v40 = vadd.f32 %v13791_v9, %v1160_v60  ;;  %v1162_v30 = vpop.f32.mrb[3].mxu0  ;;  %v8806_v50 = vpop.f32.mrb[19].mxu1  ;;  %v1232_v22 = vadd.f32 %v1231_v56, %v13798_v57 }
 0x338   :  { %v12334_v3 = vadd.f32 %v13793_v34, %v1162_v30 }
 0x339   :  { %v7861_v61 = vmul.f32 -1.442695, %v12332_v40 }
 0x33a   :  { %v7862_v5 = vmul.f32 -1.442695, %v12334_v3 }
 0x33b   :  { %12598 = vpow2.f32 %v7861_v61 }
 0x33c   :  { %12600 = vpow2.f32 %v7862_v5 }
 0x345   :  { %v12599_v12 = vpop.eup %12598 }
 0x346   :  { %v1239_v17 = vadd.f32 1.0, %v12599_v12  ;;  %v12601_v48 = vpop.eup %12600 }
 0x347   :  { %v1246_v20 = vadd.f32 1.0, %v12601_v48 }
 0x348   :  { %12602 = vrcp.f32 %v1239_v17 }
 0x349   :  { %12604 = vrcp.f32 %v1246_v20 }
 0x352   :  { %v12603_v32 = vpop.eup %12602 }
 0x353   :  { %v1249_v24 = vmul.f32 %v12603_v32, %v1232_v22  ;;  %v12605_v50 = vpop.eup %12604 }
 0x354   :  { %v1252_v40 = vsub.f32 1.0, %v12605_v50  ;;  %v1254_v61 = vmul.f32 %v12605_v50, %v13801_v14 }
 0x355   :  { %v1250_v60 = vadd.f32 %v1249_v24, %v13737_v54 }
 0x357   :  { %12606 = vtanh.f32 %v1250_v60 }
 0x361   :  { %v12607_v21 = vpop.eup %12606 }
 0x362   :  { %v1253_v30 = vmul.f32 %v12607_v21, %v1252_v40 }
 0x364   :  { %v13845_v3 = vadd.f32 %v1254_v61, %v1253_v30 }
 0x366   :  { %1327 = vmatmul.mubr.f32.vlgmr.msra.gmra.mrb[4].mxu0 %v13845_v3  ;;  %8840 = vmatmul.mubr.f32.vlgmr.msra.gmra.mrb[20].mxu1 %v13845_v3 }
 0x367   :  { %10402 = vmatpush1.bf16.msra.mxu0 %v13589_v33  ;;  %10433 = vmatpush3.bf16.msra.mxu1 %v13610_v59 }
 0x368   :  { %10404 = vmatprep.subr.bf16.mxu0 %v13592_v38  ;;  %10434 = vmatprep.subr.bf16.mxu1 %v15486_v36 }
 0x369   :  { %1494 = vmatprep.mubr.f32.mxu0 %v15487_v0  ;;  %8874 = vmatprep.mubr.msk.f32.mxu1 %vm13253_vm0, %v15487_v0 }
 0x36b   :  { %10406 = vmatpush1.bf16.msra.mxu0 %v13597_v44  ;;  %10436 = vmatpush3.bf16.msra.mxu1 %v13623_v8 }
 0x36c   :  { %10408 = vmatprep.subr.bf16.mxu0 %v13600_v46  ;;  %10437 = vmatprep.subr.bf16.mxu1 %v15486_v36 }
 0x36f   :  { %10410 = vmatpush1.bf16.msra.mxu0 %v13605_v52  ;;  %10439 = vmatpush3.bf16.msra.mxu1 %v13637_v16 }
 0x370   :  { %10412 = vmatprep.subr.bf16.mxu0 %v13608_v53  ;;  %10440 = vmatprep.subr.bf16.mxu1 %v15486_v36 }
 0x373   :  { %10414 = vmatpush1.bf16.msra.mxu0 %v13616_v63  ;;  %10442 = vmatpush3.bf16.msra.mxu1 %v13651_v23 }
 0x374   :  { %10416 = vmatprep.subr.bf16.mxu0 %v13619_v1  ;;  %10443 = vmatprep.subr.bf16.mxu1 %v15486_v36 }
 0x377   :  { %10418 = vmatpush1.bf16.msra.mxu0 %v13630_v11  ;;  %10445 = vmatpush3.bf16.msra.mxu1 %v13665_v2 }
 0x378   :  { %10420 = vmatprep.subr.bf16.mxu0 %v13633_v26  ;;  %10446 = vmatprep.subr.bf16.mxu1 %v15486_v36 }
 0x37b   :  { %10422 = vmatpush1.bf16.msra.mxu0 %v13644_v19  ;;  %10448 = vmatpush3.bf16.msra.mxu1 %v13677_v39 }
 0x37c   :  { %10424 = vmatprep.subr.bf16.mxu0 %v13647_v45  ;;  %10449 = vmatprep.subr.bf16.mxu1 %v15486_v36 }
 0x37f   :  { %10426 = vmatpush1.bf16.msra.mxu0 %v13658_v28  ;;  %10451 = vmatpush3.bf16.msra.mxu1 %v13685_v41 }
 0x380   :  { %10428 = vmatprep.subr.bf16.mxu0 %v13661_v29  ;;  %10452 = vmatprep.subr.bf16.mxu1 %v15486_v36 }
 0x383   :  { %10430 = vmatpush1.bf16.msra.mxu0 %v13673_v37  ;;  %10454 = vmatpush3.bf16.msra.mxu1 %v13693_v43 }
 0x384   :  { %10456 = vmatprep.subr.bf16.mxu0 %v13585_v27  ;;  %10487 = vmatprep.subr.bf16.mxu1 %v15486_v36 }
 0x439   :  { %v1328_v54 = vpop.f32.mrb[4].mxu0  ;;  %v1399_v21 = vpop.f32.mrb[20].mxu1 }
 0x43a   :  { %v12336_v56 = vadd.f32 %v13791_v9, %v1328_v54  ;;  %v1330_v5 = vpop.f32.mrb[5].mxu0  ;;  %v8841_v12 = vpop.f32.mrb[21].mxu1  ;;  %v1400_v50 = vadd.f32 %v1399_v21, %v13798_v57 }
 0x43b   :  { %v12338_v48 = vadd.f32 %v13793_v34, %v1330_v5 }
 0x43c   :  { %v7863_v17 = vmul.f32 -1.442695, %v12336_v56 }
 0x43d   :  { %v7864_v20 = vmul.f32 -1.442695, %v12338_v48 }
 0x43e   :  { %12608 = vpow2.f32 %v7863_v17 }
 0x43f   :  { %12610 = vpow2.f32 %v7864_v20 }
 0x448   :  { %v12609_v22 = vpop.eup %12608 }
 0x449   :  { %v1407_v32 = vadd.f32 1.0, %v12609_v22  ;;  %v12611_v24 = vpop.eup %12610 }
 0x44a   :  { %v1414_v60 = vadd.f32 1.0, %v12611_v24 }
 0x44b   :  { %12612 = vrcp.f32 %v1407_v32 }
 0x44c   :  { %12614 = vrcp.f32 %v1414_v60 }
 0x455   :  { %v12613_v40 = vpop.eup %12612 }
 0x456   :  { %v1417_v30 = vmul.f32 %v12613_v40, %v1400_v50  ;;  %v12615_v54 = vpop.eup %12614 }
 0x457   :  { %v1420_v56 = vsub.f32 1.0, %v12615_v54  ;;  %v1422_v17 = vmul.f32 %v12615_v54, %v13845_v3 }
 0x458   :  { %v1418_v61 = vadd.f32 %v1417_v30, %v13741_v62 }
 0x45a   :  { %12616 = vtanh.f32 %v1418_v61 }
 0x464   :  { %v12617_v12 = vpop.eup %12616 }
 0x465   :  { %v1421_v5 = vmul.f32 %v12617_v12, %v1420_v56 }
 0x467   :  { %v13889_v48 = vadd.f32 %v1422_v17, %v1421_v5 }
 0x469   :  { %1495 = vmatmul.mubr.f32.vlgmr.msra.gmra.mrb[6].mxu0 %v13889_v48  ;;  %8875 = vmatmul.mubr.f32.vlgmr.msra.gmra.mrb[22].mxu1 %v13889_v48 }
 0x46a   :  { %10458 = vmatpush1.bf16.msra.mxu0 %v13589_v33  ;;  %10489 = vmatpush3.bf16.msra.mxu1 %v13610_v59 }
 0x46b   :  { %10460 = vmatprep.subr.bf16.mxu0 %v13592_v38  ;;  %10490 = vmatprep.subr.bf16.mxu1 %v15486_v36 }
 0x46c   :  { %1662 = vmatprep.mubr.f32.mxu0 %v15487_v0  ;;  %8909 = vmatprep.mubr.msk.f32.mxu1 %vm13253_vm0, %v15487_v0 }
 0x46e   :  { %10462 = vmatpush1.bf16.msra.mxu0 %v13597_v44  ;;  %10492 = vmatpush3.bf16.msra.mxu1 %v13623_v8 }
 0x46f   :  { %10464 = vmatprep.subr.bf16.mxu0 %v13600_v46  ;;  %10493 = vmatprep.subr.bf16.mxu1 %v15486_v36 }
 0x472   :  { %10466 = vmatpush1.bf16.msra.mxu0 %v13605_v52  ;;  %10495 = vmatpush3.bf16.msra.mxu1 %v13637_v16 }
 0x473   :  { %10468 = vmatprep.subr.bf16.mxu0 %v13608_v53  ;;  %10496 = vmatprep.subr.bf16.mxu1 %v15486_v36 }
 0x476   :  { %10470 = vmatpush1.bf16.msra.mxu0 %v13616_v63  ;;  %10498 = vmatpush3.bf16.msra.mxu1 %v13651_v23 }
 0x477   :  { %10472 = vmatprep.subr.bf16.mxu0 %v13619_v1  ;;  %10499 = vmatprep.subr.bf16.mxu1 %v15486_v36 }
 0x47a   :  { %10474 = vmatpush1.bf16.msra.mxu0 %v13630_v11  ;;  %10501 = vmatpush3.bf16.msra.mxu1 %v13665_v2 }
 0x47b   :  { %10476 = vmatprep.subr.bf16.mxu0 %v13633_v26  ;;  %10502 = vmatprep.subr.bf16.mxu1 %v15486_v36 }
 0x47e   :  { %10478 = vmatpush1.bf16.msra.mxu0 %v13644_v19  ;;  %10504 = vmatpush3.bf16.msra.mxu1 %v13677_v39 }
 0x47f   :  { %10480 = vmatprep.subr.bf16.mxu0 %v13647_v45  ;;  %10505 = vmatprep.subr.bf16.mxu1 %v15486_v36 }
 0x482   :  { %10482 = vmatpush1.bf16.msra.mxu0 %v13658_v28  ;;  %10507 = vmatpush3.bf16.msra.mxu1 %v13685_v41 }
 0x483   :  { %10484 = vmatprep.subr.bf16.mxu0 %v13661_v29  ;;  %10508 = vmatprep.subr.bf16.mxu1 %v15486_v36 }
 0x486   :  { %10486 = vmatpush1.bf16.msra.mxu0 %v13673_v37  ;;  %10510 = vmatpush3.bf16.msra.mxu1 %v13693_v43 }
 0x487   :  { %10512 = vmatprep.subr.bf16.mxu0 %v13585_v27  ;;  %10543 = vmatprep.subr.bf16.mxu1 %v15486_v36 }
 0x53c   :  { %v1496_v62 = vpop.f32.mrb[6].mxu0  ;;  %v1567_v21 = vpop.f32.mrb[22].mxu1 }
 0x53d   :  { %v12340_v20 = vadd.f32 %v13791_v9, %v1496_v62  ;;  %v1498_v22 = vpop.f32.mrb[7].mxu0  ;;  %v8876_v32 = vpop.f32.mrb[23].mxu1  ;;  %v1568_v56 = vadd.f32 %v1567_v21, %v13798_v57 }
 0x53e   :  { %v12342_v60 = vadd.f32 %v13793_v34, %v1498_v22 }
 0x53f   :  { %v7865_v24 = vmul.f32 -1.442695, %v12340_v20 }
 0x540   :  { %v7866_v50 = vmul.f32 -1.442695, %v12342_v60 }
 0x541   :  { %12618 = vpow2.f32 %v7865_v24 }
 0x542   :  { %12620 = vpow2.f32 %v7866_v50 }
 0x54b   :  { %v12619_v40 = vpop.eup %12618 }
 0x54c   :  { %v1575_v30 = vadd.f32 1.0, %v12619_v40  ;;  %v12621_v61 = vpop.eup %12620 }
 0x54d   :  { %v1582_v54 = vadd.f32 1.0, %v12621_v61 }
 0x54e   :  { %12622 = vrcp.f32 %v1575_v30 }
 0x54f   :  { %12624 = vrcp.f32 %v1582_v54 }
 0x558   :  { %v12623_v12 = vpop.eup %12622 }
 0x559   :  { %v1585_v5 = vmul.f32 %v12623_v12, %v1568_v56  ;;  %v12625_v62 = vpop.eup %12624 }
 0x55a   :  { %v1588_v20 = vsub.f32 1.0, %v12625_v62  ;;  %v1590_v24 = vmul.f32 %v12625_v62, %v13889_v48 }
 0x55b   :  { %v1586_v17 = vadd.f32 %v1585_v5, %v13739_v58 }
 0x55d   :  { %12626 = vtanh.f32 %v1586_v17 }
 0x567   :  { %v12627_v32 = vpop.eup %12626 }
 0x568   :  { %v1589_v22 = vmul.f32 %v12627_v32, %v1588_v20 }
 0x56a   :  { %v13933_v60 = vadd.f32 %v1590_v24, %v1589_v22 }
 0x56c   :  { %1663 = vmatmul.mubr.f32.vlgmr.msra.gmra.mrb[8].mxu0 %v13933_v60  ;;  %8910 = vmatmul.mubr.f32.vlgmr.msra.gmra.mrb[24].mxu1 %v13933_v60 }
 0x56d   :  { %10514 = vmatpush1.bf16.msra.mxu0 %v13589_v33  ;;  %10545 = vmatpush3.bf16.msra.mxu1 %v13610_v59 }
 0x56e   :  { %10516 = vmatprep.subr.bf16.mxu0 %v13592_v38  ;;  %10546 = vmatprep.subr.bf16.mxu1 %v15486_v36 }
 0x56f   :  { %1830 = vmatprep.mubr.f32.mxu0 %v15487_v0  ;;  %8944 = vmatprep.mubr.msk.f32.mxu1 %vm13253_vm0, %v15487_v0 }
 0x571   :  { %10518 = vmatpush1.bf16.msra.mxu0 %v13597_v44  ;;  %10548 = vmatpush3.bf16.msra.mxu1 %v13623_v8 }
 0x572   :  { %10520 = vmatprep.subr.bf16.mxu0 %v13600_v46  ;;  %10549 = vmatprep.subr.bf16.mxu1 %v15486_v36 }
 0x575   :  { %10522 = vmatpush1.bf16.msra.mxu0 %v13605_v52  ;;  %10551 = vmatpush3.bf16.msra.mxu1 %v13637_v16 }
 0x576   :  { %10524 = vmatprep.subr.bf16.mxu0 %v13608_v53  ;;  %10552 = vmatprep.subr.bf16.mxu1 %v15486_v36 }
 0x579   :  { %10526 = vmatpush1.bf16.msra.mxu0 %v13616_v63  ;;  %10554 = vmatpush3.bf16.msra.mxu1 %v13651_v23 }
 0x57a   :  { %10528 = vmatprep.subr.bf16.mxu0 %v13619_v1  ;;  %10555 = vmatprep.subr.bf16.mxu1 %v15486_v36 }
 0x57d   :  { %10530 = vmatpush1.bf16.msra.mxu0 %v13630_v11  ;;  %10557 = vmatpush3.bf16.msra.mxu1 %v13665_v2 }
 0x57e   :  { %10532 = vmatprep.subr.bf16.mxu0 %v13633_v26  ;;  %10558 = vmatprep.subr.bf16.mxu1 %v15486_v36 }
 0x581   :  { %10534 = vmatpush1.bf16.msra.mxu0 %v13644_v19  ;;  %10560 = vmatpush3.bf16.msra.mxu1 %v13677_v39 }
 0x582   :  { %10536 = vmatprep.subr.bf16.mxu0 %v13647_v45  ;;  %10561 = vmatprep.subr.bf16.mxu1 %v15486_v36 }
 0x585   :  { %10538 = vmatpush1.bf16.msra.mxu0 %v13658_v28  ;;  %10563 = vmatpush3.bf16.msra.mxu1 %v13685_v41 }
 0x586   :  { %10540 = vmatprep.subr.bf16.mxu0 %v13661_v29  ;;  %10564 = vmatprep.subr.bf16.mxu1 %v15486_v36 }
 0x589   :  { %10542 = vmatpush1.bf16.msra.mxu0 %v13673_v37  ;;  %10566 = vmatpush3.bf16.msra.mxu1 %v13693_v43 }
 0x58a   :  { %10568 = vmatprep.subr.bf16.mxu0 %v13585_v27  ;;  %10599 = vmatprep.subr.bf16.mxu1 %v15486_v36 }
 0x63f   :  { %v1664_v58 = vpop.f32.mrb[8].mxu0  ;;  %v1735_v21 = vpop.f32.mrb[24].mxu1 }
 0x640   :  { %v12344_v50 = vadd.f32 %v13791_v9, %v1664_v58  ;;  %v1666_v40 = vpop.f32.mrb[9].mxu0  ;;  %v8911_v30 = vpop.f32.mrb[25].mxu1  ;;  %v1736_v20 = vadd.f32 %v1735_v21, %v13798_v57 }
 0x641   :  { %v12346_v54 = vadd.f32 %v13793_v34, %v1666_v40 }
 0x642   :  { %v7867_v61 = vmul.f32 -1.442695, %v12344_v50 }
 0x643   :  { %v7868_v56 = vmul.f32 -1.442695, %v12346_v54 }
 0x644   :  { %12628 = vpow2.f32 %v7867_v61 }
 0x645   :  { %12630 = vpow2.f32 %v7868_v56 }
 0x64e   :  { %v12629_v12 = vpop.eup %12628 }
 0x64f   :  { %v1743_v5 = vadd.f32 1.0, %v12629_v12  ;;  %v12631_v17 = vpop.eup %12630 }
 0x650   :  { %v1750_v62 = vadd.f32 1.0, %v12631_v17 }
 0x651   :  { %12632 = vrcp.f32 %v1743_v5 }
 0x652   :  { %12634 = vrcp.f32 %v1750_v62 }
 0x65b   :  { %v12633_v32 = vpop.eup %12632 }
 0x65c   :  { %v1753_v22 = vmul.f32 %v12633_v32, %v1736_v20  ;;  %v12635_v58 = vpop.eup %12634 }
 0x65d   :  { %v1756_v50 = vsub.f32 1.0, %v12635_v58  ;;  %v1758_v61 = vmul.f32 %v12635_v58, %v13933_v60 }
 0x65e   :  { %v1754_v24 = vadd.f32 %v1753_v22, %v13745_v7 }
 0x660   :  { %12636 = vtanh.f32 %v1754_v24 }
 0x66a   :  { %v12637_v30 = vpop.eup %12636 }
 0x66b   :  { %v1757_v40 = vmul.f32 %v12637_v30, %v1756_v50 }
 0x66d   :  { %v13977_v54 = vadd.f32 %v1758_v61, %v1757_v40 }
 0x66f   :  { %1831 = vmatmul.mubr.f32.vlgmr.msra.gmra.mrb[10].mxu0 %v13977_v54  ;;  %8945 = vmatmul.mubr.f32.vlgmr.msra.gmra.mrb[26].mxu1 %v13977_v54 }
 0x670   :  { %10570 = vmatpush1.bf16.msra.mxu0 %v13589_v33  ;;  %10601 = vmatpush3.bf16.msra.mxu1 %v13610_v59 }
 0x671   :  { %10572 = vmatprep.subr.bf16.mxu0 %v13592_v38  ;;  %10602 = vmatprep.subr.bf16.mxu1 %v15486_v36 }
 0x672   :  { %1998 = vmatprep.mubr.f32.mxu0 %v15487_v0  ;;  %8979 = vmatprep.mubr.msk.f32.mxu1 %vm13253_vm0, %v15487_v0 }
 0x674   :  { %10574 = vmatpush1.bf16.msra.mxu0 %v13597_v44  ;;  %10604 = vmatpush3.bf16.msra.mxu1 %v13623_v8 }
 0x675   :  { %10576 = vmatprep.subr.bf16.mxu0 %v13600_v46  ;;  %10605 = vmatprep.subr.bf16.mxu1 %v15486_v36 }
 0x678   :  { %10578 = vmatpush1.bf16.msra.mxu0 %v13605_v52  ;;  %10607 = vmatpush3.bf16.msra.mxu1 %v13637_v16 }
 0x679   :  { %10580 = vmatprep.subr.bf16.mxu0 %v13608_v53  ;;  %10608 = vmatprep.subr.bf16.mxu1 %v15486_v36 }
 0x67c   :  { %10582 = vmatpush1.bf16.msra.mxu0 %v13616_v63  ;;  %10610 = vmatpush3.bf16.msra.mxu1 %v13651_v23 }
 0x67d   :  { %10584 = vmatprep.subr.bf16.mxu0 %v13619_v1  ;;  %10611 = vmatprep.subr.bf16.mxu1 %v15486_v36 }
 0x680   :  { %10586 = vmatpush1.bf16.msra.mxu0 %v13630_v11  ;;  %10613 = vmatpush3.bf16.msra.mxu1 %v13665_v2 }
 0x681   :  { %10588 = vmatprep.subr.bf16.mxu0 %v13633_v26  ;;  %10614 = vmatprep.subr.bf16.mxu1 %v15486_v36 }
 0x684   :  { %10590 = vmatpush1.bf16.msra.mxu0 %v13644_v19  ;;  %10616 = vmatpush3.bf16.msra.mxu1 %v13677_v39 }
 0x685   :  { %10592 = vmatprep.subr.bf16.mxu0 %v13647_v45  ;;  %10617 = vmatprep.subr.bf16.mxu1 %v15486_v36 }
 0x688   :  { %10594 = vmatpush1.bf16.msra.mxu0 %v13658_v28  ;;  %10619 = vmatpush3.bf16.msra.mxu1 %v13685_v41 }
 0x689   :  { %10596 = vmatprep.subr.bf16.mxu0 %v13661_v29  ;;  %10620 = vmatprep.subr.bf16.mxu1 %v15486_v36 }
 0x68c   :  { %10598 = vmatpush1.bf16.msra.mxu0 %v13673_v37  ;;  %10622 = vmatpush3.bf16.msra.mxu1 %v13693_v43 }
 0x68d   :  { %10624 = vmatprep.subr.bf16.mxu0 %v13585_v27  ;;  %10655 = vmatprep.subr.bf16.mxu1 %v15486_v36 }
 0x742   :  { %v1832_v7 = vpop.f32.mrb[10].mxu0  ;;  %v1903_v21 = vpop.f32.mrb[26].mxu1 }
 0x743   :  { %v12348_v56 = vadd.f32 %v13791_v9, %v1832_v7  ;;  %v1834_v12 = vpop.f32.mrb[11].mxu0  ;;  %v8946_v5 = vpop.f32.mrb[27].mxu1  ;;  %v1904_v27 = vadd.f32 %v1903_v21, %v13798_v57  ;;  %v2273_v21 = vld [vmem:[#allocation14 + $0x28] sm:$0xff] }
 0x744   :  { %v12350_v62 = vadd.f32 %v13793_v34, %v1834_v12 }
 0x745   :  { %v7869_v17 = vmul.f32 -1.442695, %v12348_v56 }
 0x746   :  { %v7870_v20 = vmul.f32 -1.442695, %v12350_v62 }
 0x747   :  { %12638 = vpow2.f32 %v7869_v17 }
 0x748   :  { %12640 = vpow2.f32 %v7870_v20  ;;  %v2275_v20 = vld [vmem:[#allocation14 + $0x38] sm:$0xff] }
 0x751   :  { %v12639_v32 = vpop.eup %12638 }
 0x752   :  { %v1911_v22 = vadd.f32 1.0, %v12639_v32  ;;  %v12641_v24 = vpop.eup %12640  ;;  %v2278_v32 = vld [vmem:[#allocation14 + $0x50] sm:$0xff] }
 0x753   :  { %v1918_v58 = vadd.f32 1.0, %v12641_v24 }
 0x754   :  { %12642 = vrcp.f32 %v1911_v22 }
 0x755   :  { %12644 = vrcp.f32 %v1918_v58 }
 0x75e   :  { %v12643_v50 = vpop.eup %12642 }
 0x75f   :  { %v1921_v30 = vmul.f32 %v12643_v50, %v1904_v27  ;;  %v12645_v61 = vpop.eup %12644  ;;  %v2274_v27 = vld [vmem:[#allocation14 + $0x30] sm:$0xff] }
 0x760   :  { %v1924_v7 = vsub.f32 1.0, %v12645_v61  ;;  %v1926_v5 = vmul.f32 %v12645_v61, %v13977_v54  ;;  %v2276_v61 = vld [vmem:[#allocation14 + $0x40] sm:$0xff] }
 0x761   :  { %v1922_v40 = vadd.f32 %v1921_v30, %v13743_v4  ;;  %v2270_v4 = vld [vmem:[#allocation14 + $0x10] sm:$0xff] }
 0x762   :  { %v14069_v50 = vpack.c.bf16 %v2273_v21, %v2270_v4  ;;  %v2294_v4 = vld [vmem:[#allocation14 + $0xd0] sm:$0xff]  ;;  %v2297_v21 = vld [vmem:[#allocation14 + $0xe8] sm:$0xff] }
 0x763   :  { %12646 = vtanh.f32 %v1922_v40  ;;  %v2277_v40 = vld [vmem:[#allocation14 + $0x48] sm:$0xff] }
 0x76d   :  { %v12647_v56 = vpop.eup %12646 }
 0x76e   :  { %v1925_v12 = vmul.f32 %v12647_v56, %v1924_v7  ;;  %v2279_v7 = vld [vmem:[#allocation14 + $0x58] sm:$0xff]  ;;  %v2281_v56 = vld [vmem:[#allocation14 + $0x68] sm:$0xff] }
 0x770   :  { %v14021_v17 = vadd.f32 %v1926_v5, %v1925_v12  ;;  %v2284_v12 = vld [vmem:[#allocation14 + $0x80] sm:$0xff]  ;;  %v14078_v5 = vpack.c.bf16 %v2277_v40, %v2274_v27  ;;  %v2301_v40 = vld [vmem:[#allocation14 + $0x108] sm:$0xff] }
 0x772   :  { %1999 = vmatmul.mubr.f32.vlgmr.msra.gmra.mrb[12].mxu0 %v14021_v17  ;;  %8980 = vmatmul.mubr.f32.vlgmr.msra.gmra.mrb[28].mxu1 %v14021_v17 }
 0x773   :  { %10626 = vmatpush1.bf16.msra.mxu0 %v13589_v33  ;;  %10657 = vmatpush3.bf16.msra.mxu1 %v13610_v59  ;;  %v2269_v33 = vld [vmem:[#allocation14 + $0x8] sm:$0xff] }
 0x774   :  { %10628 = vmatprep.subr.bf16.mxu0 %v13592_v38  ;;  %10658 = vmatprep.subr.bf16.mxu1 %v15486_v36  ;;  %v2272_v38 = vld [vmem:[#allocation14 + $0x20] sm:$0xff] }
 0x775   :  { %2166 = vmatprep.mubr.f32.mxu0 %v15487_v0  ;;  %9014 = vmatprep.mubr.msk.f32.mxu1 %vm13253_vm0, %v15487_v0 }
 0x777   :  { %10630 = vmatpush1.bf16.msra.mxu0 %v13597_v44  ;;  %10660 = vmatpush3.bf16.msra.mxu1 %v13623_v8  ;;  %v14059_v44 = vpack.c.bf16 %v2272_v38, %v2269_v33  ;;  %v2280_v33 = vld [vmem:[#allocation14 + $0x60] sm:$0xff]  ;;  %v14081_v38 = vpack.c.bf16 %v2279_v7, %v2276_v61  ;;  %v2303_v7 = vld [vmem:[#allocation14 + $0x118] sm:$0xff] }
 0x778   :  { %10632 = vmatprep.subr.bf16.mxu0 %v13600_v46  ;;  %10661 = vmatprep.subr.bf16.mxu1 %v15486_v36  ;;  %v2300_v61 = vld [vmem:[#allocation14 + $0x100] sm:$0xff] }
 0x77b   :  { %10634 = vmatpush1.bf16.msra.mxu0 %v13605_v52  ;;  %10663 = vmatpush3.bf16.msra.mxu1 %v13637_v16 }
 0x77c   :  { %10636 = vmatprep.subr.bf16.mxu0 %v13608_v53  ;;  %10664 = vmatprep.subr.bf16.mxu1 %v15486_v36 }
 0x77f   :  { %10638 = vmatpush1.bf16.msra.mxu0 %v13616_v63  ;;  %10666 = vmatpush3.bf16.msra.mxu1 %v13651_v23 }
 0x780   :  { %10640 = vmatprep.subr.bf16.mxu0 %v13619_v1  ;;  %10667 = vmatprep.subr.bf16.mxu1 %v15486_v36 }
 0x783   :  { %10642 = vmatpush1.bf16.msra.mxu0 %v13630_v11  ;;  %10669 = vmatpush3.bf16.msra.mxu1 %v13665_v2 }
 0x784   :  { %10644 = vmatprep.subr.bf16.mxu0 %v13633_v26  ;;  %10670 = vmatprep.subr.bf16.mxu1 %v15486_v36 }
 0x787   :  { %10646 = vmatpush1.bf16.msra.mxu0 %v13644_v19  ;;  %10672 = vmatpush3.bf16.msra.mxu1 %v13677_v39  ;;  %v2268_v39 = vld [vmem:[#allocation14] sm:$0xff] }
 0x788   :  { %10648 = vmatprep.subr.bf16.mxu0 %v13647_v45  ;;  %10673 = vmatprep.subr.bf16.mxu1 %v15486_v36 }
 0x78b   :  { %10650 = vmatpush1.bf16.msra.mxu0 %v13658_v28  ;;  %10675 = vmatpush3.bf16.msra.mxu1 %v13685_v41 }
 0x78c   :  { %10652 = vmatprep.subr.bf16.mxu0 %v13661_v29  ;;  %10676 = vmatprep.subr.bf16.mxu1 %v15486_v36 }
 0x78f   :  { %10654 = vmatpush1.bf16.msra.mxu0 %v13673_v37  ;;  %10678 = vmatpush3.bf16.msra.mxu1 %v13693_v43  ;;  %v2271_v43 = vld [vmem:[#allocation14 + $0x18] sm:$0xff] }
 0x790   :  { %10711 = vmatprep.subr.bf16.mxu1 %v15486_v36  ;;  %10680 = vmatprep.subr.bf16.mxu0 %v14059_v44  ;;  %v14067_v58 = vpack.c.bf16 %v2271_v43, %v2268_v39  ;;  %v2295_v43 = vld [vmem:[#allocation14 + $0xd8] sm:$0xff] }
 0x845   :  { %v2000_v46 = vpop.f32.mrb[12].mxu0  ;;  %v2071_v52 = vpop.f32.mrb[28].mxu1 }
 0x846   :  { %v12352_v53 = vadd.f32 %v13791_v9, %v2000_v46  ;;  %v2002_v59 = vpop.f32.mrb[13].mxu0  ;;  %v8981_v63 = vpop.f32.mrb[29].mxu1  ;;  %v2072_v23 = vadd.f32 %v2071_v52, %v13798_v57  ;;  %v14084_v46 = vpack.c.bf16 %v2284_v12, %v2281_v56  ;;  %v2283_v52 = vld [vmem:[#allocation14 + $0x78] sm:$0xff]  ;;  %v2305_v56 = vld [vmem:[#allocation14 + $0x128] sm:$0xff]  ;;  %v2308_v12 = vld [vmem:[#allocation14 + $0x140] sm:$0xff] }
 0x847   :  { %v12354_v8 = vadd.f32 %v13793_v34, %v2002_v59  ;;  %v2285_v59 = vld [vmem:[#allocation14 + $0x88] sm:$0xff]  ;;  %v2287_v63 = vld [vmem:[#allocation14 + $0x98] sm:$0xff] }
 0x848   :  { %v7871_v1 = vmul.f32 -1.442695, %v12352_v53  ;;  %v2282_v53 = vld [vmem:[#allocation14 + $0x70] sm:$0xff] }
 0x849   :  { %v7872_v11 = vmul.f32 -1.442695, %v12354_v8  ;;  %v14091_v8 = vpack.c.bf16 %v2283_v52, %v2280_v33  ;;  %v2304_v52 = vld [vmem:[#allocation14 + $0x120] sm:$0xff] }
 0x84a   :  { %12648 = vpow2.f32 %v7871_v1  ;;  %v2290_v1 = vld [vmem:[#allocation14 + $0xb0] sm:$0xff] }
 0x84b   :  { %12650 = vpow2.f32 %v7872_v11  ;;  %v2286_v11 = vld [vmem:[#allocation14 + $0x90] sm:$0xff] }
 0x854   :  { %v12649_v26 = vpop.eup %12648 }
 0x855   :  { %v2079_v16 = vadd.f32 1.0, %v12649_v26  ;;  %v12651_v19 = vpop.eup %12650  ;;  %v14094_v26 = vpack.c.bf16 %v2285_v59, %v2282_v53  ;;  %v14124_v53 = vpack.c.bf16 %v2303_v7, %v2300_v61  ;;  %v14127_v59 = vpack.c.bf16 %v2308_v12, %v2305_v56 }
 0x856   :  { %v2086_v45 = vadd.f32 1.0, %v12651_v19  ;;  %v2289_v19 = vld [vmem:[#allocation14 + $0xa8] sm:$0xff] }
 0x857   :  { %12652 = vrcp.f32 %v2079_v16  ;;  %v14097_v16 = vpack.c.bf16 %v2290_v1, %v2287_v63  ;;  %v2307_v63 = vld [vmem:[#allocation14 + $0x138] sm:$0xff]  ;;  %v2306_v1 = vld [vmem:[#allocation14 + $0x130] sm:$0xff] }
 0x858   :  { %12654 = vrcp.f32 %v2086_v45  ;;  %v2288_v45 = vld [vmem:[#allocation14 + $0xa0] sm:$0xff] }
 0x861   :  { %v12653_v28 = vpop.eup %12652 }
 0x862   :  { %v2089_v29 = vmul.f32 %v12653_v28, %v2072_v23  ;;  %v12655_v37 = vpop.eup %12654  ;;  %v2291_v23 = vld [vmem:[#allocation14 + $0xb8] sm:$0xff]  ;;  %v2293_v28 = vld [vmem:[#allocation14 + $0xc8] sm:$0xff] }
 0x863   :  { %v2092_v41 = vsub.f32 1.0, %v12655_v37  ;;  %v2094_v24 = vmul.f32 %v12655_v37, %v14021_v17  ;;  %v2292_v37 = vld [vmem:[#allocation14 + $0xc0] sm:$0xff]  ;;  %v14104_v39 = vpack.c.bf16 %v2291_v23, %v2288_v45  ;;  %v2314_v45 = vld [vmem:[#allocation14 + $0x170] sm:$0xff]  ;;  %v14131_v23 = vpack.c.bf16 %v2307_v63, %v2304_v52 }
 0x864   :  { %v2090_v2 = vadd.f32 %v2089_v29, %v13749_v13  ;;  %v14073_v13 = vpack.c.bf16 %v2278_v32, %v2275_v20  ;;  %v2296_v29 = vld [vmem:[#allocation14 + $0xe0] sm:$0xff]  ;;  %v2302_v20 = vld [vmem:[#allocation14 + $0x110] sm:$0xff]  ;;  %v14111_v32 = vpack.c.bf16 %v2295_v43, %v2292_v37  ;;  %v2313_v43 = vld [vmem:[#allocation14 + $0x168] sm:$0xff] }
 0x866   :  { %12656 = vtanh.f32 %v2090_v2  ;;  %v14101_v2 = vpack.c.bf16 %v2289_v19, %v2286_v11  ;;  %v2309_v11 = vld [vmem:[#allocation14 + $0x148] sm:$0xff]  ;;  %v2311_v19 = vld [vmem:[#allocation14 + $0x158] sm:$0xff] }
 0x867   :  { %v14137_v37 = vpack.c.bf16 %v2314_v45, %v2311_v19  ;;  %v7875_v45 = vld [vmem:[%s15453_s6 + $0x1] ss:$2 sm:$0x7] }
 0x870   :  { %v12657_v62 = vpop.eup %12656 }
 0x871   :  { %v2093_v22 = vmul.f32 %v12657_v62, %v2092_v41  ;;  %v14107_v41 = vpack.c.bf16 %v2296_v29, %v2293_v28  ;;  %v2299_v62 = vld [vmem:[#allocation14 + $0xf8] sm:$0xff]  ;;  %v2310_v28 = vld [vmem:[#allocation14 + $0x150] sm:$0xff]  ;;  %v14134_v29 = vpack.c.bf16 %v2309_v11, %v2306_v1 }
 0x872   :  { %v14117_v27 = vpack.c.bf16 %v2302_v20, %v2299_v62  ;;  %v14141_v62 = vpack.c.bf16 %v2313_v43, %v2310_v28 }
 0x873   :  { %v14071_v30 = vadd.f32 %v2094_v24, %v2093_v22  ;;  %v2298_v22 = vld [vmem:[#allocation14 + $0xf0] sm:$0xff]  ;;  %v14114_v24 = vpack.c.bf16 %v2297_v21, %v2294_v4  ;;  %v2312_v4 = vld [vmem:[#allocation14 + $0x160] sm:$0xff]  ;;  %v2315_v21 = vld [vmem:[#allocation14 + $0x178] sm:$0xff] }
 0x874   :  { %v14121_v33 = vpack.c.bf16 %v2301_v40, %v2298_v22  ;;  %v14144_v20 = vpack.c.bf16 %v2315_v21, %v2312_v4 }
 0x875   :  { %2167 = vmatmul.mubr.f32.vlgmr.msra.gmra.mrb[14].mxu0 %v14071_v30  ;;  %9015 = vmatmul.mubr.f32.vlgmr.msra.gmra.mrb[30].mxu1 %v14071_v30 }
 0x876   :  { %10682 = vmatpush1.bf16.msra.mxu0 %v14067_v58  ;;  %10713 = vmatpush3.bf16.msra.mxu1 %v14069_v50 }
 0x877   :  { %10684 = vmatprep.subr.bf16.mxu0 %v14073_v13  ;;  %10714 = vmatprep.subr.bf16.mxu1 %v15486_v36 }
 0x878   :  { %2400 = vmatprep.mubr.f32.mxu0 %v15487_v0  ;;  %9049 = vmatprep.mubr.msk.f32.mxu1 %vm13253_vm0, %v15487_v0 }
 0x87a   :  { %10686 = vmatpush1.bf16.msra.mxu0 %v14078_v5  ;;  %10716 = vmatpush3.bf16.msra.mxu1 %v14081_v38 }
 0x87b   :  { %10688 = vmatprep.subr.bf16.mxu0 %v14084_v46  ;;  %10717 = vmatprep.subr.bf16.mxu1 %v15486_v36 }
 0x87e   :  { %10690 = vmatpush1.bf16.msra.mxu0 %v14091_v8  ;;  %10719 = vmatpush3.bf16.msra.mxu1 %v14094_v26 }
 0x87f   :  { %10692 = vmatprep.subr.bf16.mxu0 %v14097_v16  ;;  %10720 = vmatprep.subr.bf16.mxu1 %v15486_v36 }
 0x882   :  { %10694 = vmatpush1.bf16.msra.mxu0 %v14101_v2  ;;  %10722 = vmatpush3.bf16.msra.mxu1 %v14104_v39 }
 0x883   :  { %10696 = vmatprep.subr.bf16.mxu0 %v14107_v41  ;;  %10723 = vmatprep.subr.bf16.mxu1 %v15486_v36 }
 0x886   :  { %10698 = vmatpush1.bf16.msra.mxu0 %v14111_v32  ;;  %10725 = vmatpush3.bf16.msra.mxu1 %v14114_v24 }
 0x887   :  { %10700 = vmatprep.subr.bf16.mxu0 %v14117_v27  ;;  %10726 = vmatprep.subr.bf16.mxu1 %v15486_v36 }
 0x88a   :  { %10702 = vmatpush1.bf16.msra.mxu0 %v14121_v33  ;;  %10728 = vmatpush3.bf16.msra.mxu1 %v14124_v53 }
 0x88b   :  { %10704 = vmatprep.subr.bf16.mxu0 %v14127_v59  ;;  %10729 = vmatprep.subr.bf16.mxu1 %v15486_v36 }
 0x88e   :  { %10706 = vmatpush1.bf16.msra.mxu0 %v14131_v23  ;;  %10731 = vmatpush3.bf16.msra.mxu1 %v14134_v29 }
 0x88f   :  { %10708 = vmatprep.subr.bf16.mxu0 %v14137_v37  ;;  %10732 = vmatprep.subr.bf16.mxu1 %v15486_v36 }
 0x892   :  { %10710 = vmatpush1.bf16.msra.mxu0 %v14141_v62  ;;  %10734 = vmatpush3.bf16.msra.mxu1 %v14144_v20 }
 0x893   :  { %10736 = vmatprep.subr.bf16.mxu0 %v14059_v44  ;;  %10767 = vmatprep.subr.bf16.mxu1 %v15486_v36 }
 0x895   :  { %2401 = vmatmul.mubr.f32.vlgmr.msra.gmra.mrb[30].mxu0 %v15487_v0  ;;  %9050 = vmatmul.mubr.f32.vlgmr.msra.gmra.mrb[32].mxu1 %v15487_v0 }
 0x896   :  { %10738 = vmatpush1.bf16.msra.mxu0 %v14067_v58  ;;  %10769 = vmatpush3.bf16.msra.mxu1 %v14069_v50 }
 0x897   :  { %10740 = vmatprep.subr.bf16.mxu0 %v14073_v13  ;;  %10770 = vmatprep.subr.bf16.mxu1 %v15486_v36 }
 0x898   :  { %2568 = vmatprep.mubr.f32.mxu0 %v15487_v0  ;;  %9084 = vmatprep.mubr.msk.f32.mxu1 %vm13253_vm0, %v15487_v0 }
 0x89a   :  { %10742 = vmatpush1.bf16.msra.mxu0 %v14078_v5  ;;  %10772 = vmatpush3.bf16.msra.mxu1 %v14081_v38 }
 0x89b   :  { %10744 = vmatprep.subr.bf16.mxu0 %v14084_v46  ;;  %10773 = vmatprep.subr.bf16.mxu1 %v15486_v36 }
 0x89e   :  { %10746 = vmatpush1.bf16.msra.mxu0 %v14091_v8  ;;  %10775 = vmatpush3.bf16.msra.mxu1 %v14094_v26 }
 0x89f   :  { %10748 = vmatprep.subr.bf16.mxu0 %v14097_v16  ;;  %10776 = vmatprep.subr.bf16.mxu1 %v15486_v36 }
 0x8a2   :  { %10750 = vmatpush1.bf16.msra.mxu0 %v14101_v2  ;;  %10778 = vmatpush3.bf16.msra.mxu1 %v14104_v39 }
 0x8a3   :  { %10752 = vmatprep.subr.bf16.mxu0 %v14107_v41  ;;  %10779 = vmatprep.subr.bf16.mxu1 %v15486_v36 }
 0x8a6   :  { %10754 = vmatpush1.bf16.msra.mxu0 %v14111_v32  ;;  %10781 = vmatpush3.bf16.msra.mxu1 %v14114_v24 }
 0x8a7   :  { %10756 = vmatprep.subr.bf16.mxu0 %v14117_v27  ;;  %10782 = vmatprep.subr.bf16.mxu1 %v15486_v36 }
 0x8aa   :  { %10758 = vmatpush1.bf16.msra.mxu0 %v14121_v33  ;;  %10784 = vmatpush3.bf16.msra.mxu1 %v14124_v53 }
 0x8ab   :  { %10760 = vmatprep.subr.bf16.mxu0 %v14127_v59  ;;  %10785 = vmatprep.subr.bf16.mxu1 %v15486_v36 }
 0x8ae   :  { %10762 = vmatpush1.bf16.msra.mxu0 %v14131_v23  ;;  %10787 = vmatpush3.bf16.msra.mxu1 %v14134_v29 }
 0x8af   :  { %10764 = vmatprep.subr.bf16.mxu0 %v14137_v37  ;;  %10788 = vmatprep.subr.bf16.mxu1 %v15486_v36 }
 0x8b2   :  { %10766 = vmatpush1.bf16.msra.mxu0 %v14141_v62  ;;  %10790 = vmatpush3.bf16.msra.mxu1 %v14144_v20 }
 0x8b3   :  { %10792 = vmatprep.subr.bf16.mxu0 %v14059_v44  ;;  %10823 = vmatprep.subr.bf16.mxu1 %v15486_v36 }
 0x948   :  { %v2168_v22 = vpop.f32.mrb[14].mxu0  ;;  %v2239_v40 = vpop.f32.mrb[30].mxu1 }
 0x949   :  { %v12356_v61 = vadd.f32 %v13791_v9, %v2168_v22  ;;  %v2170_v7 = vpop.f32.mrb[15].mxu0  ;;  %v9016_v56 = vpop.f32.mrb[31].mxu1  ;;  %v12908_v9 = vld [vmem:[%s15453_s6] ss:$2 sm:$0x7]  ;;  %v2240_v4 = vadd.f32 %v2239_v40, %v13798_v57 }
 0x94a   :  { %v12358_v52 = vadd.f32 %v13793_v34, %v2170_v7  ;;  %v604_v43 = vrot.slane %v12908_v9, %v13775_v6  ;;  %v2324_v34 = vrot.slane %v7875_v45, %v13775_v6  ;;  %v608_v22 = vrot.slane %v12908_v9, %v13782_v47 }
 0x94b   :  { %v7873_v12 = vmul.f32 -1.442695, %v12356_v61  ;;  %v2328_v61 = vrot.slane %v7875_v45, %v13782_v47 }
 0x94c   :  { %v7874_v63 = vmul.f32 -1.442695, %v12358_v52  ;;  %v14202_v56 = vadd.f32 %v2324_v34, %v604_v43 }
 0x94d   :  { %12658 = vpow2.f32 %v7873_v12 }
 0x94e   :  { %12660 = vpow2.f32 %v7874_v63  ;;  %v14205_v63 = vadd.f32 %v2328_v61, %v608_v22 }
 0x957   :  { %v12659_v1 = vpop.eup %12658 }
 0x958   :  { %v2247_v11 = vadd.f32 1.0, %v12659_v1  ;;  %v12661_v19 = vpop.eup %12660 }
 0x959   :  { %v2254_v28 = vadd.f32 1.0, %v12661_v19 }
 0x95a   :  { %12662 = vrcp.f32 %v2247_v11 }
 0x95b   :  { %12664 = vrcp.f32 %v2254_v28 }
 0x964   :  { %v12663_v21 = vpop.eup %12662 }
 0x965   :  { %v2257_v7 = vmul.f32 %v12663_v21, %v2240_v4  ;;  %v12665_v47 = vpop.eup %12664 }
 0x966   :  { %v2260_v28 = vsub.f32 1.0, %v12665_v47 }
 0x967   :  { %v2258_v12 = vadd.f32 %v2257_v7, %v13747_v10  ;;  %v2262_v10 = vmul.f32 %v12665_v47, %v14071_v30  ;;  %v14213_v7 = vrot.slane %v7875_v45, %v13731_v49 }
 0x968   :  { %v2402_v52 = vpop.f32.mrb[30].mxu0  ;;  %v2473_v1 = vpop.f32.mrb[32].mxu1 }
 0x969   :  { %12666 = vtanh.f32 %v2258_v12  ;;  %v12388_v11 = vadd.f32 %v14202_v56, %v2402_v52  ;;  %v2404_v19 = vpop.f32.mrb[31].mxu0  ;;  %v9051_v57 = vpop.f32.mrb[33].mxu1 }
 0x96a   :  { %v12390_v9 = vadd.f32 %v14205_v63, %v2404_v19  ;;  %v831_v57 = vadd.f32 %v13780_v42, %v13755_v15 }
 0x96b   :  { %v7876_v40 = vmul.f32 -1.442695, %v12388_v11  ;;  %v2474_v11 = vadd.f32 %v2473_v1, %v14213_v7 }
 0x96c   :  { %v7877_v4 = vmul.f32 -1.442695, %v12390_v9 }
 0x96d   :  { %12668 = vpow2.f32 %v7876_v40 }
 0x96e   :  { %12670 = vpow2.f32 %v7877_v4 }
 0x973   :  { %v12667_v43 = vpop.eup %12666 }
 0x974   :  { %v2261_v34 = vmul.f32 %v12667_v43, %v2260_v28 }
 0x976   :  { %v14210_v21 = vadd.f32 %v2262_v10, %v2261_v34 }
 0x977   :  { %v12669_v22 = vpop.eup %12668 }
 0x978   :  { %v2481_v61 = vadd.f32 1.0, %v12669_v22  ;;  %v12671_v12 = vpop.eup %12670 }
 0x979   :  { %v2488_v52 = vadd.f32 1.0, %v12671_v12 }
 0x97a   :  { %12672 = vrcp.f32 %v2481_v61 }
 0x97b   :  { %12674 = vrcp.f32 %v2488_v52 }
 0x984   :  { %v12673_v19 = vpop.eup %12672 }
 0x985   :  { %v2491_v40 = vmul.f32 %v12673_v19, %v2474_v11  ;;  %v12675_v47 = vpop.eup %12674 }
 0x986   :  { %v2494_v4 = vsub.f32 1.0, %v12675_v47  ;;  %v2496_v43 = vmul.f32 0.0, %v12675_v47 }
 0x987   :  { %v2492_v9 = vadd.f32 %v2491_v40, %v831_v57 }
 0x989   :  { %12676 = vtanh.f32 %v2492_v9 }
 0x993   :  { %v12677_v28 = vpop.eup %12676 }
 0x994   :  { %v2495_v34 = vmul.f32 %v12677_v28, %v2494_v4 }
 0x996   :  { %v14218_v10 = vadd.f32 %v2496_v43, %v2495_v34 }
 0x998   :  { %2569 = vmatmul.mubr.f32.vlgmr.msra.gmra.mrb[28].mxu0 %v14218_v10  ;;  %9085 = vmatmul.mubr.f32.vlgmr.msra.gmra.mrb[34].mxu1 %v14218_v10 }
 0x999   :  { %10794 = vmatpush1.bf16.msra.mxu0 %v14067_v58  ;;  %10825 = vmatpush3.bf16.msra.mxu1 %v14069_v50 }
 0x99a   :  { %10796 = vmatprep.subr.bf16.mxu0 %v14073_v13  ;;  %10826 = vmatprep.subr.bf16.mxu1 %v15486_v36 }
 0x99b   :  { %2736 = vmatprep.mubr.f32.mxu0 %v15487_v0  ;;  %9119 = vmatprep.mubr.msk.f32.mxu1 %vm13253_vm0, %v15487_v0 }
 0x99d   :  { %10798 = vmatpush1.bf16.msra.mxu0 %v14078_v5  ;;  %10828 = vmatpush3.bf16.msra.mxu1 %v14081_v38 }
 0x99e   :  { %10800 = vmatprep.subr.bf16.mxu0 %v14084_v46  ;;  %10829 = vmatprep.subr.bf16.mxu1 %v15486_v36 }
 0x9a1   :  { %10802 = vmatpush1.bf16.msra.mxu0 %v14091_v8  ;;  %10831 = vmatpush3.bf16.msra.mxu1 %v14094_v26 }
 0x9a2   :  { %10804 = vmatprep.subr.bf16.mxu0 %v14097_v16  ;;  %10832 = vmatprep.subr.bf16.mxu1 %v15486_v36 }
 0x9a5   :  { %10806 = vmatpush1.bf16.msra.mxu0 %v14101_v2  ;;  %10834 = vmatpush3.bf16.msra.mxu1 %v14104_v39 }
 0x9a6   :  { %10808 = vmatprep.subr.bf16.mxu0 %v14107_v41  ;;  %10835 = vmatprep.subr.bf16.mxu1 %v15486_v36 }
 0x9a9   :  { %10810 = vmatpush1.bf16.msra.mxu0 %v14111_v32  ;;  %10837 = vmatpush3.bf16.msra.mxu1 %v14114_v24 }
 0x9aa   :  { %10812 = vmatprep.subr.bf16.mxu0 %v14117_v27  ;;  %10838 = vmatprep.subr.bf16.mxu1 %v15486_v36 }
 0x9ad   :  { %10814 = vmatpush1.bf16.msra.mxu0 %v14121_v33  ;;  %10840 = vmatpush3.bf16.msra.mxu1 %v14124_v53 }
 0x9ae   :  { %10816 = vmatprep.subr.bf16.mxu0 %v14127_v59  ;;  %10841 = vmatprep.subr.bf16.mxu1 %v15486_v36 }
 0x9b1   :  { %10818 = vmatpush1.bf16.msra.mxu0 %v14131_v23  ;;  %10843 = vmatpush3.bf16.msra.mxu1 %v14134_v29 }
 0x9b2   :  { %10820 = vmatprep.subr.bf16.mxu0 %v14137_v37  ;;  %10844 = vmatprep.subr.bf16.mxu1 %v15486_v36 }
 0x9b5   :  { %10822 = vmatpush1.bf16.msra.mxu0 %v14141_v62  ;;  %10846 = vmatpush3.bf16.msra.mxu1 %v14144_v20 }
 0x9b6   :  { %10848 = vmatprep.subr.bf16.mxu0 %v14059_v44  ;;  %10879 = vmatprep.subr.bf16.mxu1 %v15486_v36 }
 0xa6b   :  { %v2570_v15 = vpop.f32.mrb[28].mxu0  ;;  %v2641_v42 = vpop.f32.mrb[34].mxu1 }
 0xa6c   :  { %v12384_v45 = vadd.f32 %v14202_v56, %v2570_v15  ;;  %v2572_v1 = vpop.f32.mrb[29].mxu0  ;;  %v9086_v22 = vpop.f32.mrb[35].mxu1  ;;  %v2642_v9 = vadd.f32 %v2641_v42, %v14213_v7 }
 0xa6d   :  { %v12386_v12 = vadd.f32 %v14205_v63, %v2572_v1 }
 0xa6e   :  { %v7878_v61 = vmul.f32 -1.442695, %v12384_v45 }
 0xa6f   :  { %v7879_v52 = vmul.f32 -1.442695, %v12386_v12 }
 0xa70   :  { %12678 = vpow2.f32 %v7878_v61 }
 0xa71   :  { %12680 = vpow2.f32 %v7879_v52 }
 0xa7a   :  { %v12679_v11 = vpop.eup %12678 }
 0xa7b   :  { %v2649_v19 = vadd.f32 1.0, %v12679_v11  ;;  %v12681_v57 = vpop.eup %12680 }
 0xa7c   :  { %v2656_v40 = vadd.f32 1.0, %v12681_v57 }
 0xa7d   :  { %12682 = vrcp.f32 %v2649_v19 }
 0xa7e   :  { %12684 = vrcp.f32 %v2656_v40 }
 0xa87   :  { %v12683_v47 = vpop.eup %12682 }
 0xa88   :  { %v2659_v4 = vmul.f32 %v12683_v47, %v2642_v9  ;;  %v12685_v43 = vpop.eup %12684 }
 0xa89   :  { %v2662_v34 = vsub.f32 1.0, %v12685_v43  ;;  %v2664_v1 = vmul.f32 %v12685_v43, %v14218_v10 }
 0xa8a   :  { %v2660_v28 = vadd.f32 %v2659_v4, %v13785_v51 }
 0xa8c   :  { %12686 = vtanh.f32 %v2660_v28 }
 0xa96   :  { %v12687_v15 = vpop.eup %12686 }
 0xa97   :  { %v2663_v45 = vmul.f32 %v12687_v15, %v2662_v34 }
 0xa99   :  { %v14262_v22 = vadd.f32 %v2664_v1, %v2663_v45 }
 0xa9b   :  { %2737 = vmatmul.mubr.f32.vlgmr.msra.gmra.mrb[26].mxu0 %v14262_v22  ;;  %9120 = vmatmul.mubr.f32.vlgmr.msra.gmra.mrb[36].mxu1 %v14262_v22 }
 0xa9c   :  { %10850 = vmatpush1.bf16.msra.mxu0 %v14067_v58  ;;  %10881 = vmatpush3.bf16.msra.mxu1 %v14069_v50 }
 0xa9d   :  { %10852 = vmatprep.subr.bf16.mxu0 %v14073_v13  ;;  %10882 = vmatprep.subr.bf16.mxu1 %v15486_v36 }
 0xa9e   :  { %2904 = vmatprep.mubr.f32.mxu0 %v15487_v0  ;;  %9154 = vmatprep.mubr.msk.f32.mxu1 %vm13253_vm0, %v15487_v0 }
 0xaa0   :  { %10854 = vmatpush1.bf16.msra.mxu0 %v14078_v5  ;;  %10884 = vmatpush3.bf16.msra.mxu1 %v14081_v38 }
 0xaa1   :  { %10856 = vmatprep.subr.bf16.mxu0 %v14084_v46  ;;  %10885 = vmatprep.subr.bf16.mxu1 %v15486_v36 }
 0xaa4   :  { %10858 = vmatpush1.bf16.msra.mxu0 %v14091_v8  ;;  %10887 = vmatpush3.bf16.msra.mxu1 %v14094_v26 }
 0xaa5   :  { %10860 = vmatprep.subr.bf16.mxu0 %v14097_v16  ;;  %10888 = vmatprep.subr.bf16.mxu1 %v15486_v36 }
 0xaa8   :  { %10862 = vmatpush1.bf16.msra.mxu0 %v14101_v2  ;;  %10890 = vmatpush3.bf16.msra.mxu1 %v14104_v39 }
 0xaa9   :  { %10864 = vmatprep.subr.bf16.mxu0 %v14107_v41  ;;  %10891 = vmatprep.subr.bf16.mxu1 %v15486_v36 }
 0xaac   :  { %10866 = vmatpush1.bf16.msra.mxu0 %v14111_v32  ;;  %10893 = vmatpush3.bf16.msra.mxu1 %v14114_v24 }
 0xaad   :  { %10868 = vmatprep.subr.bf16.mxu0 %v14117_v27  ;;  %10894 = vmatprep.subr.bf16.mxu1 %v15486_v36 }
 0xab0   :  { %10870 = vmatpush1.bf16.msra.mxu0 %v14121_v33  ;;  %10896 = vmatpush3.bf16.msra.mxu1 %v14124_v53 }
 0xab1   :  { %10872 = vmatprep.subr.bf16.mxu0 %v14127_v59  ;;  %10897 = vmatprep.subr.bf16.mxu1 %v15486_v36 }
 0xab4   :  { %10874 = vmatpush1.bf16.msra.mxu0 %v14131_v23  ;;  %10899 = vmatpush3.bf16.msra.mxu1 %v14134_v29 }
 0xab5   :  { %10876 = vmatprep.subr.bf16.mxu0 %v14137_v37  ;;  %10900 = vmatprep.subr.bf16.mxu1 %v15486_v36 }
 0xab8   :  { %10878 = vmatpush1.bf16.msra.mxu0 %v14141_v62  ;;  %10902 = vmatpush3.bf16.msra.mxu1 %v14144_v20 }
 0xab9   :  { %10904 = vmatprep.subr.bf16.mxu0 %v14059_v44  ;;  %10935 = vmatprep.subr.bf16.mxu1 %v15486_v36 }
 0xb6e   :  { %v2738_v51 = vpop.f32.mrb[26].mxu0  ;;  %v2809_v42 = vpop.f32.mrb[36].mxu1 }
 0xb6f   :  { %v12380_v61 = vadd.f32 %v14202_v56, %v2738_v51  ;;  %v2740_v12 = vpop.f32.mrb[27].mxu0  ;;  %v9121_v52 = vpop.f32.mrb[37].mxu1  ;;  %v2810_v28 = vadd.f32 %v2809_v42, %v14213_v7 }
 0xb70   :  { %v12382_v19 = vadd.f32 %v14205_v63, %v2740_v12 }
 0xb71   :  { %v7880_v11 = vmul.f32 -1.442695, %v12380_v61 }
 0xb72   :  { %v7881_v57 = vmul.f32 -1.442695, %v12382_v19 }
 0xb73   :  { %12688 = vpow2.f32 %v7880_v11 }
 0xb74   :  { %12690 = vpow2.f32 %v7881_v57 }
 0xb7d   :  { %v12689_v40 = vpop.eup %12688 }
 0xb7e   :  { %v2817_v9 = vadd.f32 1.0, %v12689_v40  ;;  %v12691_v47 = vpop.eup %12690 }
 0xb7f   :  { %v2824_v4 = vadd.f32 1.0, %v12691_v47 }
 0xb80   :  { %12692 = vrcp.f32 %v2817_v9 }
 0xb81   :  { %12694 = vrcp.f32 %v2824_v4 }
 0xb8a   :  { %v12693_v43 = vpop.eup %12692 }
 0xb8b   :  { %v2827_v34 = vmul.f32 %v12693_v43, %v2810_v28  ;;  %v12695_v45 = vpop.eup %12694 }
 0xb8c   :  { %v2830_v1 = vsub.f32 1.0, %v12695_v45  ;;  %v2832_v12 = vmul.f32 %v12695_v45, %v14262_v22 }
 0xb8d   :  { %v2828_v15 = vadd.f32 %v2827_v34, %v13770_v31 }
 0xb8f   :  { %12696 = vtanh.f32 %v2828_v15 }
 0xb99   :  { %v12697_v51 = vpop.eup %12696 }
 0xb9a   :  { %v2831_v61 = vmul.f32 %v12697_v51, %v2830_v1 }
 0xb9c   :  { %v14306_v52 = vadd.f32 %v2832_v12, %v2831_v61 }
 0xb9e   :  { %2905 = vmatmul.mubr.f32.vlgmr.msra.gmra.mrb[24].mxu0 %v14306_v52  ;;  %9155 = vmatmul.mubr.f32.vlgmr.msra.gmra.mrb[38].mxu1 %v14306_v52 }
 0xb9f   :  { %10906 = vmatpush1.bf16.msra.mxu0 %v14067_v58  ;;  %10937 = vmatpush3.bf16.msra.mxu1 %v14069_v50 }
 0xba0   :  { %10908 = vmatprep.subr.bf16.mxu0 %v14073_v13  ;;  %10938 = vmatprep.subr.bf16.mxu1 %v15486_v36 }
 0xba1   :  { %3072 = vmatprep.mubr.f32.mxu0 %v15487_v0  ;;  %9189 = vmatprep.mubr.msk.f32.mxu1 %vm13253_vm0, %v15487_v0 }
 0xba3   :  { %10910 = vmatpush1.bf16.msra.mxu0 %v14078_v5  ;;  %10940 = vmatpush3.bf16.msra.mxu1 %v14081_v38 }
 0xba4   :  { %10912 = vmatprep.subr.bf16.mxu0 %v14084_v46  ;;  %10941 = vmatprep.subr.bf16.mxu1 %v15486_v36 }
 0xba7   :  { %10914 = vmatpush1.bf16.msra.mxu0 %v14091_v8  ;;  %10943 = vmatpush3.bf16.msra.mxu1 %v14094_v26 }
 0xba8   :  { %10916 = vmatprep.subr.bf16.mxu0 %v14097_v16  ;;  %10944 = vmatprep.subr.bf16.mxu1 %v15486_v36 }
 0xbab   :  { %10918 = vmatpush1.bf16.msra.mxu0 %v14101_v2  ;;  %10946 = vmatpush3.bf16.msra.mxu1 %v14104_v39 }
 0xbac   :  { %10920 = vmatprep.subr.bf16.mxu0 %v14107_v41  ;;  %10947 = vmatprep.subr.bf16.mxu1 %v15486_v36 }
 0xbaf   :  { %10922 = vmatpush1.bf16.msra.mxu0 %v14111_v32  ;;  %10949 = vmatpush3.bf16.msra.mxu1 %v14114_v24 }
 0xbb0   :  { %10924 = vmatprep.subr.bf16.mxu0 %v14117_v27  ;;  %10950 = vmatprep.subr.bf16.mxu1 %v15486_v36 }
 0xbb3   :  { %10926 = vmatpush1.bf16.msra.mxu0 %v14121_v33  ;;  %10952 = vmatpush3.bf16.msra.mxu1 %v14124_v53 }
 0xbb4   :  { %10928 = vmatprep.subr.bf16.mxu0 %v14127_v59  ;;  %10953 = vmatprep.subr.bf16.mxu1 %v15486_v36 }
 0xbb7   :  { %10930 = vmatpush1.bf16.msra.mxu0 %v14131_v23  ;;  %10955 = vmatpush3.bf16.msra.mxu1 %v14134_v29 }
 0xbb8   :  { %10932 = vmatprep.subr.bf16.mxu0 %v14137_v37  ;;  %10956 = vmatprep.subr.bf16.mxu1 %v15486_v36 }
 0xbbb   :  { %10934 = vmatpush1.bf16.msra.mxu0 %v14141_v62  ;;  %10958 = vmatpush3.bf16.msra.mxu1 %v14144_v20 }
 0xbbc   :  { %10960 = vmatprep.subr.bf16.mxu0 %v14059_v44  ;;  %10991 = vmatprep.subr.bf16.mxu1 %v15486_v36 }
 0xc71   :  { %v2906_v31 = vpop.f32.mrb[24].mxu0  ;;  %v2977_v42 = vpop.f32.mrb[38].mxu1 }
 0xc72   :  { %v12376_v11 = vadd.f32 %v14202_v56, %v2906_v31  ;;  %v2908_v19 = vpop.f32.mrb[25].mxu0  ;;  %v9156_v57 = vpop.f32.mrb[39].mxu1  ;;  %v2978_v15 = vadd.f32 %v2977_v42, %v14213_v7 }
 0xc73   :  { %v12378_v9 = vadd.f32 %v14205_v63, %v2908_v19 }
 0xc74   :  { %v7882_v40 = vmul.f32 -1.442695, %v12376_v11 }
 0xc75   :  { %v7883_v47 = vmul.f32 -1.442695, %v12378_v9 }
 0xc76   :  { %12698 = vpow2.f32 %v7882_v40 }
 0xc77   :  { %12700 = vpow2.f32 %v7883_v47 }
 0xc80   :  { %v12699_v4 = vpop.eup %12698 }
 0xc81   :  { %v2985_v28 = vadd.f32 1.0, %v12699_v4  ;;  %v12701_v43 = vpop.eup %12700 }
 0xc82   :  { %v2992_v34 = vadd.f32 1.0, %v12701_v43 }
 0xc83   :  { %12702 = vrcp.f32 %v2985_v28 }
 0xc84   :  { %12704 = vrcp.f32 %v2992_v34 }
 0xc8d   :  { %v12703_v45 = vpop.eup %12702 }
 0xc8e   :  { %v2995_v1 = vmul.f32 %v12703_v45, %v2978_v15  ;;  %v12705_v61 = vpop.eup %12704 }
 0xc8f   :  { %v2998_v12 = vsub.f32 1.0, %v12705_v61  ;;  %v3000_v19 = vmul.f32 %v12705_v61, %v14306_v52 }
 0xc90   :  { %v2996_v51 = vadd.f32 %v2995_v1, %v13773_v35 }
 0xc92   :  { %12706 = vtanh.f32 %v2996_v51 }
 0xc9c   :  { %v12707_v31 = vpop.eup %12706 }
 0xc9d   :  { %v2999_v11 = vmul.f32 %v12707_v31, %v2998_v12 }
 0xc9f   :  { %v14350_v57 = vadd.f32 %v3000_v19, %v2999_v11 }
 0xca1   :  { %3073 = vmatmul.mubr.f32.vlgmr.msra.gmra.mrb[22].mxu0 %v14350_v57  ;;  %9190 = vmatmul.mubr.f32.vlgmr.msra.gmra.mrb[40].mxu1 %v14350_v57 }
 0xca2   :  { %10962 = vmatpush1.bf16.msra.mxu0 %v14067_v58  ;;  %10993 = vmatpush3.bf16.msra.mxu1 %v14069_v50 }
 0xca3   :  { %10964 = vmatprep.subr.bf16.mxu0 %v14073_v13  ;;  %10994 = vmatprep.subr.bf16.mxu1 %v15486_v36 }
 0xca4   :  { %3240 = vmatprep.mubr.f32.mxu0 %v15487_v0  ;;  %9224 = vmatprep.mubr.msk.f32.mxu1 %vm13253_vm0, %v15487_v0 }
 0xca6   :  { %10966 = vmatpush1.bf16.msra.mxu0 %v14078_v5  ;;  %10996 = vmatpush3.bf16.msra.mxu1 %v14081_v38 }
 0xca7   :  { %10968 = vmatprep.subr.bf16.mxu0 %v14084_v46  ;;  %10997 = vmatprep.subr.bf16.mxu1 %v15486_v36 }
 0xcaa   :  { %10970 = vmatpush1.bf16.msra.mxu0 %v14091_v8  ;;  %10999 = vmatpush3.bf16.msra.mxu1 %v14094_v26 }
 0xcab   :  { %10972 = vmatprep.subr.bf16.mxu0 %v14097_v16  ;;  %11000 = vmatprep.subr.bf16.mxu1 %v15486_v36 }
 0xcae   :  { %10974 = vmatpush1.bf16.msra.mxu0 %v14101_v2  ;;  %11002 = vmatpush3.bf16.msra.mxu1 %v14104_v39 }
 0xcaf   :  { %10976 = vmatprep.subr.bf16.mxu0 %v14107_v41  ;;  %11003 = vmatprep.subr.bf16.mxu1 %v15486_v36 }
 0xcb2   :  { %10978 = vmatpush1.bf16.msra.mxu0 %v14111_v32  ;;  %11005 = vmatpush3.bf16.msra.mxu1 %v14114_v24 }
 0xcb3   :  { %10980 = vmatprep.subr.bf16.mxu0 %v14117_v27  ;;  %11006 = vmatprep.subr.bf16.mxu1 %v15486_v36 }
 0xcb6   :  { %10982 = vmatpush1.bf16.msra.mxu0 %v14121_v33  ;;  %11008 = vmatpush3.bf16.msra.mxu1 %v14124_v53 }
 0xcb7   :  { %10984 = vmatprep.subr.bf16.mxu0 %v14127_v59  ;;  %11009 = vmatprep.subr.bf16.mxu1 %v15486_v36 }
 0xcba   :  { %10986 = vmatpush1.bf16.msra.mxu0 %v14131_v23  ;;  %11011 = vmatpush3.bf16.msra.mxu1 %v14134_v29 }
 0xcbb   :  { %10988 = vmatprep.subr.bf16.mxu0 %v14137_v37  ;;  %11012 = vmatprep.subr.bf16.mxu1 %v15486_v36 }
 0xcbe   :  { %10990 = vmatpush1.bf16.msra.mxu0 %v14141_v62  ;;  %11014 = vmatpush3.bf16.msra.mxu1 %v14144_v20 }
 0xcbf   :  { %11016 = vmatprep.subr.bf16.mxu0 %v14059_v44  ;;  %11047 = vmatprep.subr.bf16.mxu1 %v15486_v36 }
 0xd74   :  { %v3074_v35 = vpop.f32.mrb[22].mxu0  ;;  %v3145_v42 = vpop.f32.mrb[40].mxu1 }
 0xd75   :  { %v12372_v40 = vadd.f32 %v14202_v56, %v3074_v35  ;;  %v3076_v9 = vpop.f32.mrb[23].mxu0  ;;  %v9191_v47 = vpop.f32.mrb[41].mxu1  ;;  %v3146_v51 = vadd.f32 %v3145_v42, %v14213_v7 }
 0xd76   :  { %v12374_v28 = vadd.f32 %v14205_v63, %v3076_v9 }
 0xd77   :  { %v7884_v4 = vmul.f32 -1.442695, %v12372_v40 }
 0xd78   :  { %v7885_v43 = vmul.f32 -1.442695, %v12374_v28 }
 0xd79   :  { %12708 = vpow2.f32 %v7884_v4 }
 0xd7a   :  { %12710 = vpow2.f32 %v7885_v43 }
 0xd83   :  { %v12709_v34 = vpop.eup %12708 }
 0xd84   :  { %v3153_v15 = vadd.f32 1.0, %v12709_v34  ;;  %v12711_v45 = vpop.eup %12710 }
 0xd85   :  { %v3160_v1 = vadd.f32 1.0, %v12711_v45 }
 0xd86   :  { %12712 = vrcp.f32 %v3153_v15 }
 0xd87   :  { %12714 = vrcp.f32 %v3160_v1 }
 0xd90   :  { %v12713_v61 = vpop.eup %12712 }
 0xd91   :  { %v3163_v12 = vmul.f32 %v12713_v61, %v3146_v51  ;;  %v12715_v11 = vpop.eup %12714 }
 0xd92   :  { %v3166_v19 = vsub.f32 1.0, %v12715_v11  ;;  %v3168_v9 = vmul.f32 %v12715_v11, %v14350_v57 }
 0xd93   :  { %v3164_v31 = vadd.f32 %v3163_v12, %v13764_v55 }
 0xd95   :  { %12716 = vtanh.f32 %v3164_v31 }
 0xd9f   :  { %v12717_v35 = vpop.eup %12716 }
 0xda0   :  { %v3167_v40 = vmul.f32 %v12717_v35, %v3166_v19 }
 0xda2   :  { %v14394_v47 = vadd.f32 %v3168_v9, %v3167_v40 }
 0xda4   :  { %3241 = vmatmul.mubr.f32.vlgmr.msra.gmra.mrb[20].mxu0 %v14394_v47  ;;  %9225 = vmatmul.mubr.f32.vlgmr.msra.gmra.mrb[42].mxu1 %v14394_v47 }
 0xda5   :  { %11018 = vmatpush1.bf16.msra.mxu0 %v14067_v58  ;;  %11049 = vmatpush3.bf16.msra.mxu1 %v14069_v50 }
 0xda6   :  { %11020 = vmatprep.subr.bf16.mxu0 %v14073_v13  ;;  %11050 = vmatprep.subr.bf16.mxu1 %v15486_v36 }
 0xda7   :  { %3408 = vmatprep.mubr.f32.mxu0 %v15487_v0  ;;  %9259 = vmatprep.mubr.msk.f32.mxu1 %vm13253_vm0, %v15487_v0 }
 0xda9   :  { %11022 = vmatpush1.bf16.msra.mxu0 %v14078_v5  ;;  %11052 = vmatpush3.bf16.msra.mxu1 %v14081_v38 }
 0xdaa   :  { %11024 = vmatprep.subr.bf16.mxu0 %v14084_v46  ;;  %11053 = vmatprep.subr.bf16.mxu1 %v15486_v36 }
 0xdad   :  { %11026 = vmatpush1.bf16.msra.mxu0 %v14091_v8  ;;  %11055 = vmatpush3.bf16.msra.mxu1 %v14094_v26 }
 0xdae   :  { %11028 = vmatprep.subr.bf16.mxu0 %v14097_v16  ;;  %11056 = vmatprep.subr.bf16.mxu1 %v15486_v36 }
 0xdb1   :  { %11030 = vmatpush1.bf16.msra.mxu0 %v14101_v2  ;;  %11058 = vmatpush3.bf16.msra.mxu1 %v14104_v39 }
 0xdb2   :  { %11032 = vmatprep.subr.bf16.mxu0 %v14107_v41  ;;  %11059 = vmatprep.subr.bf16.mxu1 %v15486_v36 }
 0xdb5   :  { %11034 = vmatpush1.bf16.msra.mxu0 %v14111_v32  ;;  %11061 = vmatpush3.bf16.msra.mxu1 %v14114_v24 }
 0xdb6   :  { %11036 = vmatprep.subr.bf16.mxu0 %v14117_v27  ;;  %11062 = vmatprep.subr.bf16.mxu1 %v15486_v36 }
 0xdb9   :  { %11038 = vmatpush1.bf16.msra.mxu0 %v14121_v33  ;;  %11064 = vmatpush3.bf16.msra.mxu1 %v14124_v53 }
 0xdba   :  { %11040 = vmatprep.subr.bf16.mxu0 %v14127_v59  ;;  %11065 = vmatprep.subr.bf16.mxu1 %v15486_v36 }
 0xdbd   :  { %11042 = vmatpush1.bf16.msra.mxu0 %v14131_v23  ;;  %11067 = vmatpush3.bf16.msra.mxu1 %v14134_v29 }
 0xdbe   :  { %11044 = vmatprep.subr.bf16.mxu0 %v14137_v37  ;;  %11068 = vmatprep.subr.bf16.mxu1 %v15486_v36 }
 0xdc1   :  { %11046 = vmatpush1.bf16.msra.mxu0 %v14141_v62  ;;  %11070 = vmatpush3.bf16.msra.mxu1 %v14144_v20 }
 0xdc2   :  { %11072 = vmatprep.subr.bf16.mxu0 %v14059_v44  ;;  %11103 = vmatprep.subr.bf16.mxu1 %v15486_v36 }
 0xe77   :  { %v3242_v55 = vpop.f32.mrb[20].mxu0  ;;  %v3313_v42 = vpop.f32.mrb[42].mxu1 }
 0xe78   :  { %v12368_v4 = vadd.f32 %v14202_v56, %v3242_v55  ;;  %v3244_v28 = vpop.f32.mrb[21].mxu0  ;;  %v9226_v43 = vpop.f32.mrb[43].mxu1  ;;  %v3314_v44 = vadd.f32 %v3313_v42, %v14213_v7  ;;  %v3740_v42 = vld [vmem:[#allocation17 + $0x10] sm:$0xff] }
 0xe79   :  { %v12370_v15 = vadd.f32 %v14205_v63, %v3244_v28 }
 0xe7a   :  { %v7886_v34 = vmul.f32 -1.442695, %v12368_v4 }
 0xe7b   :  { %v7887_v45 = vmul.f32 -1.442695, %v12370_v15  ;;  %v3741_v15 = vld [vmem:[#allocation17 + $0x18] sm:$0xff] }
 0xe7c   :  { %12718 = vpow2.f32 %v7886_v34  ;;  %v3738_v34 = vld [vmem:[#allocation17] sm:$0xff] }
 0xe7d   :  { %12720 = vpow2.f32 %v7887_v45 }
 0xe86   :  { %v12719_v1 = vpop.eup %12718 }
 0xe87   :  { %v3321_v51 = vadd.f32 1.0, %v12719_v1  ;;  %v12721_v61 = vpop.eup %12720  ;;  %v11129_v1 = vpack.c.bf16 %v3741_v15, %v3738_v34  ;;  %v3770_v34 = vld [vmem:[#allocation17 + $0x100] sm:$0xff] }
 0xe88   :  { %v3328_v12 = vadd.f32 1.0, %v12721_v61  ;;  %v3748_v61 = vld [vmem:[#allocation17 + $0x50] sm:$0xff] }
 0xe89   :  { %12722 = vrcp.f32 %v3321_v51  ;;  %v3745_v51 = vld [vmem:[#allocation17 + $0x38] sm:$0xff] }
 0xe8a   :  { %12724 = vrcp.f32 %v3328_v12  ;;  %v3746_v12 = vld [vmem:[#allocation17 + $0x40] sm:$0xff] }
 0xe93   :  { %v12723_v31 = vpop.eup %12722 }
 0xe94   :  { %v3331_v11 = vmul.f32 %v12723_v31, %v3314_v44  ;;  %v12725_v35 = vpop.eup %12724  ;;  %v11131_v44 = vpack.c.bf16 %v3748_v61, %v3745_v51  ;;  %v3749_v31 = vld [vmem:[#allocation17 + $0x58] sm:$0xff]  ;;  %v3771_v51 = vld [vmem:[#allocation17 + $0x108] sm:$0xff] }
 0xe95   :  { %v3334_v40 = vsub.f32 1.0, %v12725_v35  ;;  %v3336_v4 = vmul.f32 %v12725_v35, %v14394_v47  ;;  %v11163_v35 = vpack.c.bf16 %v3749_v31, %v3746_v12  ;;  %v3778_v31 = vld [vmem:[#allocation17 + $0x140] sm:$0xff] }
 0xe96   :  { %v3332_v19 = vadd.f32 %v3331_v11, %v13767_v25  ;;  %v3744_v11 = vld [vmem:[#allocation17 + $0x30] sm:$0xff] }
 0xe98   :  { %12726 = vtanh.f32 %v3332_v19  ;;  %v3747_v19 = vld [vmem:[#allocation17 + $0x48] sm:$0xff] }
 0xea2   :  { %v12727_v9 = vpop.eup %12726 }
 0xea3   :  { %v3335_v55 = vmul.f32 %v12727_v9, %v3334_v40  ;;  %v11133_v40 = vpack.c.bf16 %v3747_v19, %v3744_v11  ;;  %v3751_v9 = vld [vmem:[#allocation17 + $0x68] sm:$0xff]  ;;  %v3776_v11 = vld [vmem:[#allocation17 + $0x130] sm:$0xff] }
 0xea5   :  { %v14438_v28 = vadd.f32 %v3336_v4, %v3335_v55  ;;  %v3754_v55 = vld [vmem:[#allocation17 + $0x80] sm:$0xff]  ;;  %v3752_v4 = vld [vmem:[#allocation17 + $0x70] sm:$0xff] }
 0xea7   :  { %3409 = vmatmul.mubr.f32.vlgmr.msra.gmra.mrb[18].mxu0 %v14438_v28  ;;  %9260 = vmatmul.mubr.f32.vlgmr.msra.gmra.mrb[44].mxu1 %v14438_v28 }
 0xea8   :  { %11074 = vmatpush1.bf16.msra.mxu0 %v14067_v58  ;;  %11105 = vmatpush3.bf16.msra.mxu1 %v14069_v50 }
 0xea9   :  { %11076 = vmatprep.subr.bf16.mxu0 %v14073_v13  ;;  %11106 = vmatprep.subr.bf16.mxu1 %v15486_v36 }
 0xeaa   :  { %3575 = vmatprep.mubr.f32.mxu0 %v15487_v0  ;;  %9294 = vmatprep.mubr.msk.f32.mxu1 %vm13253_vm0, %v15487_v0 }
 0xeac   :  { %11078 = vmatpush1.bf16.msra.mxu0 %v14078_v5  ;;  %11108 = vmatpush3.bf16.msra.mxu1 %v14081_v38 }
 0xead   :  { %11080 = vmatprep.subr.bf16.mxu0 %v14084_v46  ;;  %11109 = vmatprep.subr.bf16.mxu1 %v15486_v36 }
 0xeb0   :  { %11082 = vmatpush1.bf16.msra.mxu0 %v14091_v8  ;;  %11111 = vmatpush3.bf16.msra.mxu1 %v14094_v26 }
 0xeb1   :  { %11084 = vmatprep.subr.bf16.mxu0 %v14097_v16  ;;  %11112 = vmatprep.subr.bf16.mxu1 %v15486_v36 }
 0xeb4   :  { %11086 = vmatpush1.bf16.msra.mxu0 %v14101_v2  ;;  %11114 = vmatpush3.bf16.msra.mxu1 %v14104_v39 }
 0xeb5   :  { %11088 = vmatprep.subr.bf16.mxu0 %v14107_v41  ;;  %11115 = vmatprep.subr.bf16.mxu1 %v15486_v36 }
 0xeb8   :  { %11090 = vmatpush1.bf16.msra.mxu0 %v14111_v32  ;;  %11117 = vmatpush3.bf16.msra.mxu1 %v14114_v24 }
 0xeb9   :  { %11092 = vmatprep.subr.bf16.mxu0 %v14117_v27  ;;  %11118 = vmatprep.subr.bf16.mxu1 %v15486_v36 }
 0xebc   :  { %11094 = vmatpush1.bf16.msra.mxu0 %v14121_v33  ;;  %11120 = vmatpush3.bf16.msra.mxu1 %v14124_v53 }
 0xebd   :  { %11096 = vmatprep.subr.bf16.mxu0 %v14127_v59  ;;  %11121 = vmatprep.subr.bf16.mxu1 %v15486_v36 }
 0xec0   :  { %11098 = vmatpush1.bf16.msra.mxu0 %v14131_v23  ;;  %11123 = vmatpush3.bf16.msra.mxu1 %v14134_v29 }
 0xec1   :  { %11100 = vmatprep.subr.bf16.mxu0 %v14137_v37  ;;  %11124 = vmatprep.subr.bf16.mxu1 %v15486_v36 }
 0xec4   :  { %11102 = vmatpush1.bf16.msra.mxu0 %v14141_v62  ;;  %11126 = vmatpush3.bf16.msra.mxu1 %v14144_v20  ;;  %v3739_v62 = vld [vmem:[#allocation17 + $0x8] sm:$0xff]  ;;  %v3742_v20 = vld [vmem:[#allocation17 + $0x20] sm:$0xff] }
 0xec5   :  { %v11127_v43 = vpack.c.bf16 %v3742_v20, %v3739_v62  ;;  %v3765_v62 = vld [vmem:[#allocation17 + $0xd8] sm:$0xff] }
 0xec7   :  { %11128 = vmatprep.subr.bf16.mxu0 %v11127_v43  ;;  %v3769_v43 = vld [vmem:[#allocation17 + $0xf8] sm:$0xff] }
 0xf7a   :  { %v3410_v25 = vpop.f32.mrb[18].mxu0  ;;  %v3481_v58 = vpop.f32.mrb[44].mxu1 }
 0xf7b   :  { %v12364_v50 = vadd.f32 %v14202_v56, %v3410_v25  ;;  %v3412_v13 = vpop.f32.mrb[19].mxu0  ;;  %v9261_v5 = vpop.f32.mrb[45].mxu1  ;;  %v3482_v41 = vadd.f32 %v3481_v58, %v14213_v7  ;;  %v11135_v25 = vpack.c.bf16 %v3754_v55, %v3751_v9  ;;  %v3755_v58 = vld [vmem:[#allocation17 + $0x88] sm:$0xff]  ;;  %v3777_v9 = vld [vmem:[#allocation17 + $0x138] sm:$0xff] }
 0xf7c   :  { %v12366_v46 = vadd.f32 %v14205_v63, %v3412_v13  ;;  %v3753_v13 = vld [vmem:[#allocation17 + $0x78] sm:$0xff]  ;;  %v11167_v5 = vpack.c.bf16 %v3755_v58, %v3752_v4  ;;  %v3784_v58 = vld [vmem:[#allocation17 + $0x170] sm:$0xff] }
 0xf7d   :  { %v7888_v38 = vmul.f32 -1.442695, %v12364_v50  ;;  %v3750_v50 = vld [vmem:[#allocation17 + $0x60] sm:$0xff] }
 0xf7e   :  { %v7889_v8 = vmul.f32 -1.442695, %v12366_v46  ;;  %v3757_v46 = vld [vmem:[#allocation17 + $0x98] sm:$0xff] }
 0xf7f   :  { %12728 = vpow2.f32 %v7888_v38  ;;  %v11137_v38 = vpack.c.bf16 %v3753_v13, %v3750_v50  ;;  %v3782_v50 = vld [vmem:[#allocation17 + $0x160] sm:$0xff] }
 0xf80   :  { %12730 = vpow2.f32 %v7889_v8  ;;  %v3760_v8 = vld [vmem:[#allocation17 + $0xb0] sm:$0xff] }
 0xf89   :  { %v12729_v26 = vpop.eup %12728 }
 0xf8a   :  { %v3489_v16 = vadd.f32 1.0, %v12729_v26  ;;  %v12731_v2 = vpop.eup %12730  ;;  %v3758_v26 = vld [vmem:[#allocation17 + $0xa0] sm:$0xff] }
 0xf8b   :  { %v3496_v39 = vadd.f32 1.0, %v12731_v2  ;;  %v3761_v2 = vld [vmem:[#allocation17 + $0xb8] sm:$0xff] }
 0xf8c   :  { %12732 = vrcp.f32 %v3489_v16  ;;  %v11139_v16 = vpack.c.bf16 %v3760_v8, %v3757_v46  ;;  %v3783_v46 = vld [vmem:[#allocation17 + $0x168] sm:$0xff] }
 0xf8d   :  { %12734 = vrcp.f32 %v3496_v39  ;;  %v3756_v39 = vld [vmem:[#allocation17 + $0x90] sm:$0xff] }
 0xf96   :  { %v12733_v32 = vpop.eup %12732 }
 0xf97   :  { %v3499_v24 = vmul.f32 %v12733_v32, %v3482_v41  ;;  %v12735_v33 = vpop.eup %12734  ;;  %v3759_v41 = vld [vmem:[#allocation17 + $0xa8] sm:$0xff]  ;;  %v11171_v32 = vpack.c.bf16 %v3761_v2, %v3758_v26  ;;  %v3694_v2 = vld [vmem:[#allocation15 + $0x20] sm:$0xff] }
 0xf98   :  { %v3502_v53 = vsub.f32 1.0, %v12735_v33  ;;  %v3504_v29 = vmul.f32 %v12735_v33, %v14438_v28  ;;  %v3766_v33 = vld [vmem:[#allocation17 + $0xe0] sm:$0xff] }
 0xf99   :  { %v3500_v27 = vadd.f32 %v3499_v24, %v13758_v18  ;;  %v3743_v18 = vld [vmem:[#allocation17 + $0x28] sm:$0xff]  ;;  %v11141_v24 = vpack.c.bf16 %v3759_v41, %v3756_v39  ;;  %v3692_v39 = vld [vmem:[#allocation15 + $0x10] sm:$0xff] }
 0xf9a   :  { %v11159_v45 = vpack.c.bf16 %v3743_v18, %v3740_v42  ;;  %v3772_v18 = vld [vmem:[#allocation17 + $0x110] sm:$0xff] }
 0xf9b   :  { %12736 = vtanh.f32 %v3500_v27  ;;  %v3763_v27 = vld [vmem:[#allocation17 + $0xc8] sm:$0xff]  ;;  %v11147_v15 = vpack.c.bf16 %v3772_v18, %v3769_v43 }
 0xf9c   :  { %11160 = vmatprep.subr.bf16.mxu1 %v11159_v45 }
 0xfa5   :  { %v12737_v59 = vpop.eup %12736 }
 0xfa6   :  { %v3503_v23 = vmul.f32 %v12737_v59, %v3502_v53  ;;  %v3764_v53 = vld [vmem:[#allocation17 + $0xd0] sm:$0xff]  ;;  %v11143_v59 = vpack.c.bf16 %v3766_v33, %v3763_v27 }
 0xfa8   :  { %v14480_v37 = vadd.f32 %v3504_v29, %v3503_v23  ;;  %v3767_v23 = vld [vmem:[#allocation17 + $0xe8] sm:$0xff]  ;;  %v3762_v29 = vld [vmem:[#allocation17 + $0xc0] sm:$0xff] }
 0xfa9   :  { %v11175_v20 = vpack.c.bf16 %v3767_v23, %v3764_v53  ;;  %v11145_v42 = vpack.c.bf16 %v3765_v62, %v3762_v29 }
 0xfaa   :  { %3576 = vmatmul.mubr.f32.vlgmr.msra.gmra.mrb[16].mxu0 %v14480_v37  ;;  %9295 = vmatmul.mubr.f32.vlgmr.msra.gmra.mrb[46].mxu1 %v14480_v37 }
 0xfab   :  { %3850 = vmatprep.mubr.f32.mxu0 %v15487_v0  ;;  %11130 = vmatpush1.bf16.msra.mxu0 %v11129_v1  ;;  %v3768_v1 = vld [vmem:[#allocation17 + $0xf0] sm:$0xff] }
 0xfac   :  { %11162 = vmatpush3.bf16.msra.mxu1 %v11159_v45  ;;  %11132 = vmatprep.subr.bf16.mxu0 %v11131_v44  ;;  %v3773_v45 = vld [vmem:[#allocation17 + $0x118] sm:$0xff]  ;;  %v11149_v12 = vpack.c.bf16 %v3771_v51, %v3768_v1  ;;  %v3775_v44 = vld [vmem:[#allocation17 + $0x128] sm:$0xff] }
 0xfad   :  { %11164 = vmatprep.subr.bf16.mxu1 %v11163_v35  ;;  %v11179_v61 = vpack.c.bf16 %v3773_v45, %v3770_v34  ;;  %v11151_v19 = vpack.c.bf16 %v3778_v31, %v3775_v44  ;;  %v15488_v51 = vld [vmem:[#allocation36_spill] sm:$0xff]  ;;  %v3690_v44 = vld [vmem:[#allocation15] sm:$0xff] }
 0xfaf   :  { %11134 = vmatpush1.bf16.msra.mxu0 %v11133_v40  ;;  %v3774_v40 = vld [vmem:[#allocation17 + $0x120] sm:$0xff] }
 0xfb0   :  { %11166 = vmatpush3.bf16.msra.mxu1 %v11163_v35  ;;  %11136 = vmatprep.subr.bf16.mxu0 %v11135_v25  ;;  %v3779_v35 = vld [vmem:[#allocation17 + $0x148] sm:$0xff]  ;;  %v11153_v4 = vpack.c.bf16 %v3777_v9, %v3774_v40  ;;  %v3781_v25 = vld [vmem:[#allocation17 + $0x158] sm:$0xff]  ;;  %v3700_v40 = vld [vmem:[#allocation15 + $0x50] sm:$0xff] }
 0xfb1   :  { %11168 = vmatprep.subr.bf16.mxu1 %v11167_v5  ;;  %v11183_v55 = vpack.c.bf16 %v3779_v35, %v3776_v11  ;;  %v11155_v13 = vpack.c.bf16 %v3784_v58, %v3781_v25  ;;  %v3697_v35 = vld [vmem:[#allocation15 + $0x38] sm:$0xff]  ;;  %v3696_v25 = vld [vmem:[#allocation15 + $0x30] sm:$0xff]  ;;  %v3699_v58 = vld [vmem:[#allocation15 + $0x48] sm:$0xff] }
 0xfb3   :  { %11138 = vmatpush1.bf16.msra.mxu0 %v11137_v38  ;;  %v3780_v38 = vld [vmem:[#allocation17 + $0x150] sm:$0xff] }
 0xfb4   :  { %11170 = vmatpush3.bf16.msra.mxu1 %v11167_v5  ;;  %11140 = vmatprep.subr.bf16.mxu0 %v11139_v16  ;;  %v3785_v5 = vld [vmem:[#allocation17 + $0x178] sm:$0xff]  ;;  %v11157_v26 = vpack.c.bf16 %v3783_v46, %v3780_v38  ;;  %v3691_v16 = vld [vmem:[#allocation15 + $0x8] sm:$0xff]  ;;  %v3706_v38 = vld [vmem:[#allocation15 + $0x80] sm:$0xff]  ;;  %v11197_v46 = vpack.c.bf16 %v3699_v58, %v3696_v25 }
 0xfb5   :  { %11172 = vmatprep.subr.bf16.mxu1 %v11171_v32  ;;  %v11187_v8 = vpack.c.bf16 %v3785_v5, %v3782_v50  ;;  %v11191_v41 = vpack.c.bf16 %v3694_v2, %v3691_v16  ;;  %v11195_v50 = vpack.c.bf16 %v3700_v40, %v3697_v35  ;;  %v3703_v5 = vld [vmem:[#allocation15 + $0x68] sm:$0xff]  ;;  %v3702_v16 = vld [vmem:[#allocation15 + $0x60] sm:$0xff]  ;;  %v3705_v2 = vld [vmem:[#allocation15 + $0x78] sm:$0xff] }
 0xfb6   :  { %v3727_v40 = vld [vmem:[#allocation15 + $0x128] sm:$0xff] }
 0xfb7   :  { %11142 = vmatpush1.bf16.msra.mxu0 %v11141_v24 }
 0xfb8   :  { %11174 = vmatpush3.bf16.msra.mxu1 %v11171_v32  ;;  %11144 = vmatprep.subr.bf16.mxu0 %v11143_v59  ;;  %v3695_v32 = vld [vmem:[#allocation15 + $0x28] sm:$0xff] }
 0xfb9   :  { %11176 = vmatprep.subr.bf16.mxu1 %v11175_v20  ;;  %v11223_v24 = vpack.c.bf16 %v3695_v32, %v3692_v39  ;;  %v11199_v39 = vpack.c.bf16 %v3706_v38, %v3703_v5  ;;  %v3709_v32 = vld [vmem:[#allocation15 + $0x98] sm:$0xff] }
 0xfba   :  { %v3733_v38 = vld [vmem:[#allocation15 + $0x158] sm:$0xff] }
 0xfbb   :  { %11146 = vmatpush1.bf16.msra.mxu0 %v11145_v42 }
 0xfbc   :  { %11178 = vmatpush3.bf16.msra.mxu1 %v11175_v20  ;;  %11148 = vmatprep.subr.bf16.mxu0 %v11147_v15 }
 0xfbd   :  { %11180 = vmatprep.subr.bf16.mxu1 %v11179_v61 }
 0xfbf   :  { %11150 = vmatpush1.bf16.msra.mxu0 %v11149_v12 }
 0xfc0   :  { %11182 = vmatpush3.bf16.msra.mxu1 %v11179_v61  ;;  %11152 = vmatprep.subr.bf16.mxu0 %v11151_v19 }
 0xfc1   :  { %11184 = vmatprep.subr.bf16.mxu1 %v11183_v55 }
 0xfc3   :  { %11154 = vmatpush1.bf16.msra.mxu0 %v11153_v4  ;;  %v3701_v4 = vld [vmem:[#allocation15 + $0x58] sm:$0xff] }
 0xfc4   :  { %11186 = vmatpush3.bf16.msra.mxu1 %v11183_v55  ;;  %11156 = vmatprep.subr.bf16.mxu0 %v11155_v13  ;;  %v3698_v55 = vld [vmem:[#allocation15 + $0x40] sm:$0xff] }
 0xfc5   :  { %11188 = vmatprep.subr.bf16.mxu1 %v11187_v8  ;;  %v11227_v13 = vpack.c.bf16 %v3701_v4, %v3698_v55  ;;  %v3728_v55 = vld [vmem:[#allocation15 + $0x130] sm:$0xff]  ;;  %v3731_v4 = vld [vmem:[#allocation15 + $0x148] sm:$0xff] }
 0xfc6   :  { %v11247_v5 = vpack.c.bf16 %v3731_v4, %v3728_v55  ;;  %v4357_v55 = vld [vmem:[#allocation21 + $0xb0] sm:$0xff] }
 0xfc7   :  { %11158 = vmatpush1.bf16.msra.mxu0 %v11157_v26  ;;  %v3707_v26 = vld [vmem:[#allocation15 + $0x88] sm:$0xff] }
 0xfc8   :  { %11190 = vmatpush3.bf16.msra.mxu1 %v11187_v8  ;;  %11192 = vmatprep.subr.bf16.mxu0 %v11191_v41  ;;  %v3704_v8 = vld [vmem:[#allocation15 + $0x70] sm:$0xff] }
 0xfc9   :  { %11224 = vmatprep.subr.bf16.mxu1 %v11223_v24  ;;  %v11231_v41 = vpack.c.bf16 %v3707_v26, %v3704_v8  ;;  %v3734_v8 = vld [vmem:[#allocation15 + $0x160] sm:$0xff]  ;;  %v3737_v26 = vld [vmem:[#allocation15 + $0x178] sm:$0xff] }
0x107d   :  { %v3577_v27 = vpop.f32.mrb[16].mxu0  ;;  %v3648_v33 = vpop.f32.mrb[46].mxu1 }
0x107e   :  { %v12360_v53 = vadd.f32 %v14202_v56, %v3577_v27  ;;  %v3579_v59 = vpop.f32.mrb[17].mxu0  ;;  %v9296_v23 = vpop.f32.mrb[47].mxu1  ;;  %v3649_v15 = vadd.f32 %v3648_v33, %v14213_v7  ;;  %v3712_v27 = vld [vmem:[#allocation15 + $0xb0] sm:$0xff]  ;;  %v11201_v33 = vpack.c.bf16 %v3705_v2, %v3702_v16 }
0x107f   :  { %v12362_v62 = vadd.f32 %v14205_v63, %v3579_v59  ;;  %v3693_v63 = vld [vmem:[#allocation15 + $0x18] sm:$0xff]  ;;  %v3708_v59 = vld [vmem:[#allocation15 + $0x90] sm:$0xff]  ;;  %v3711_v23 = vld [vmem:[#allocation15 + $0xa8] sm:$0xff] }
0x1080   :  { %v7890_v29 = vmul.f32 -1.442695, %v12360_v53  ;;  %v11193_v9 = vpack.c.bf16 %v3693_v63, %v3690_v44  ;;  %v3710_v53 = vld [vmem:[#allocation15 + $0xa0] sm:$0xff]  ;;  %v3725_v44 = vld [vmem:[#allocation15 + $0x118] sm:$0xff] }
0x1081   :  { %v7891_v20 = vmul.f32 -1.442695, %v12362_v62 }
0x1082   :  { %12738 = vpow2.f32 %v7890_v29  ;;  %v11203_v29 = vpack.c.bf16 %v3712_v27, %v3709_v32  ;;  %v11251_v32 = vpack.c.bf16 %v3737_v26, %v3734_v8  ;;  %v4336_v27 = vld [vmem:[#allocation21 + $0x8] sm:$0xff]  ;;  %v4363_v8 = vld [vmem:[#allocation21 + $0xe0] sm:$0xff] }
0x1083   :  { %12740 = vpow2.f32 %v7891_v20  ;;  %v3715_v20 = vld [vmem:[#allocation15 + $0xc8] sm:$0xff] }
0x108c   :  { %v12739_v42 = vpop.eup %12738 }
0x108d   :  { %v3656_v43 = vadd.f32 1.0, %v12739_v42  ;;  %v12741_v18 = vpop.eup %12740  ;;  %v3718_v42 = vld [vmem:[#allocation15 + $0xe0] sm:$0xff] }
0x108e   :  { %v3663_v34 = vadd.f32 1.0, %v12741_v18  ;;  %v3716_v18 = vld [vmem:[#allocation15 + $0xd0] sm:$0xff] }
0x108f   :  { %12742 = vrcp.f32 %v3656_v43  ;;  %v11205_v43 = vpack.c.bf16 %v3711_v23, %v3708_v59 }
0x1090   :  { %12744 = vrcp.f32 %v3663_v34  ;;  %v3719_v34 = vld [vmem:[#allocation15 + $0xe8] sm:$0xff] }
0x1099   :  { %v12743_v45 = vpop.eup %12742 }
0x109a   :  { %v3666_v1 = vmul.f32 %v12743_v45, %v3649_v15  ;;  %v12745_v61 = vpop.eup %12744  ;;  %v3714_v15 = vld [vmem:[#allocation15 + $0xc0] sm:$0xff]  ;;  %v3717_v45 = vld [vmem:[#allocation15 + $0xd8] sm:$0xff] }
0x109b   :  { %v3669_v12 = vsub.f32 1.0, %v12745_v61  ;;  %v3671_v19 = vmul.f32 %v12745_v61, %v14480_v37  ;;  %v11239_v61 = vpack.c.bf16 %v3719_v34, %v3716_v18  ;;  %v11209_v63 = vpack.c.bf16 %v3717_v45, %v3714_v15  ;;  %v4343_v34 = vld [vmem:[#allocation21 + $0x40] sm:$0xff]  ;;  %v4346_v15 = vld [vmem:[#allocation21 + $0x58] sm:$0xff]  ;;  %v4341_v45 = vld [vmem:[#allocation21 + $0x30] sm:$0xff] }
0x109c   :  { %v3667_v56 = vadd.f32 %v3666_v1, %v15488_v51  ;;  %v11207_v1 = vpack.c.bf16 %v3718_v42, %v3715_v20  ;;  %v3721_v51 = vld [vmem:[#allocation15 + $0xf8] sm:$0xff] }
0x109d   :  { %v4342_v42 = vld [vmem:[#allocation21 + $0x38] sm:$0xff] }
0x109e   :  { %12746 = vtanh.f32 %v3667_v56  ;;  %v3724_v56 = vld [vmem:[#allocation15 + $0x110] sm:$0xff] }
0x10a8   :  { %v12747_v31 = vpop.eup %12746 }
0x10a9   :  { %v3670_v11 = vmul.f32 %v12747_v31, %v3669_v12  ;;  %v3722_v12 = vld [vmem:[#allocation15 + $0x100] sm:$0xff]  ;;  %v11211_v31 = vpack.c.bf16 %v3724_v56, %v3721_v51  ;;  %v11291_v56 = vpack.c.bf16 %v4346_v15, %v4343_v34  ;;  %v4373_v34 = vld [vmem:[#allocation21 + $0x130] sm:$0xff]  ;;  %v4376_v15 = vld [vmem:[#allocation21 + $0x148] sm:$0xff] }
0x10aa   :  { %v11243_v35 = vpack.c.bf16 %v3725_v44, %v3722_v12  ;;  %v4351_v12 = vld [vmem:[#allocation21 + $0x80] sm:$0xff] }
0x10ab   :  { %v14490_v7 = vadd.f32 %v3671_v19, %v3670_v11  ;;  %v3720_v11 = vld [vmem:[#allocation15 + $0xf0] sm:$0xff]  ;;  %v3723_v19 = vld [vmem:[#allocation15 + $0x108] sm:$0xff] }
0x10ac   :  { %v11213_v25 = vpack.c.bf16 %v3723_v19, %v3720_v11  ;;  %v4347_v11 = vld [vmem:[#allocation21 + $0x60] sm:$0xff]  ;;  %v4350_v19 = vld [vmem:[#allocation21 + $0x78] sm:$0xff] }
0x10ad   :  { %3851 = vmatmul.mubr.f32.vlgmr.msra.gmra.mrb[32].mxu0 %v14490_v7  ;;  %9329 = vmatprep.mubr.f32.mxu1 %v14490_v7  ;;  %v11265_v4 = vpack.c.bf16 %v4350_v19, %v4347_v11 }
0x10ae   :  { %9330 = vmatmul.mubr.f32.vlgmr.msra.gmra.mrb[48].mxu1 %v14480_v37  ;;  %11194 = vmatpush1.bf16.msra.mxu0 %v11193_v9  ;;  %v3730_v9 = vld [vmem:[#allocation15 + $0x140] sm:$0xff] }
0x10af   :  { %11226 = vmatpush3.bf16.msra.mxu1 %v11223_v24  ;;  %9332 = vmatprep.mubr.f32.mxu1 %v14438_v28  ;;  %v3713_v24 = vld [vmem:[#allocation15 + $0xb8] sm:$0xff]  ;;  %v11215_v58 = vpack.c.bf16 %v3730_v9, %v3727_v40 }
0x10b0   :  { %3856 = vmatprep.mubr.f32.mxu0 %v15487_v0  ;;  %11196 = vmatprep.subr.bf16.mxu0 %v11195_v50  ;;  %v11235_v62 = vpack.c.bf16 %v3713_v24, %v3710_v53  ;;  %v3726_v50 = vld [vmem:[#allocation15 + $0x120] sm:$0xff]  ;;  %v4337_v53 = vld [vmem:[#allocation21 + $0x10] sm:$0xff]  ;;  %v4340_v24 = vld [vmem:[#allocation21 + $0x28] sm:$0xff] }
0x10b1   :  { %3857 = vmatmul.mubr.f32.gmra.mrb[34].mxu0 %v14480_v37  ;;  %11228 = vmatprep.subr.bf16.mxu1 %v11227_v13  ;;  %v11287_v20 = vpack.c.bf16 %v4340_v24, %v4337_v53  ;;  %v4354_v9 = vld [vmem:[#allocation21 + $0x98] sm:$0xff]  ;;  %v4367_v24 = vld [vmem:[#allocation21 + $0x100] sm:$0xff] }
0x10b2   :  { %9333 = vmatmul.mubr.f32.gmra.mrb[50].mxu1 %v14394_v47  ;;  %11198 = vmatpush1.bf16.msra.mxu0 %v11197_v46  ;;  %v3736_v46 = vld [vmem:[#allocation15 + $0x170] sm:$0xff] }
0x10b3   :  { %11230 = vmatpush3.bf16.msra.mxu1 %v11227_v13  ;;  %9335 = vmatprep.mubr.f32.mxu1 %v14350_v57  ;;  %v3729_v13 = vld [vmem:[#allocation15 + $0x138] sm:$0xff]  ;;  %v11219_v2 = vpack.c.bf16 %v3736_v46, %v3733_v38  ;;  %v4360_v46 = vld [vmem:[#allocation21 + $0xc8] sm:$0xff] }
0x10b4   :  { %3862 = vmatprep.mubr.f32.mxu0 %v15487_v0  ;;  %11200 = vmatprep.subr.bf16.mxu0 %v11199_v39  ;;  %v11217_v16 = vpack.c.bf16 %v3729_v13, %v3726_v50  ;;  %v3732_v39 = vld [vmem:[#allocation15 + $0x150] sm:$0xff]  ;;  %v4356_v13 = vld [vmem:[#allocation21 + $0xa8] sm:$0xff] }
0x10b5   :  { %3863 = vmatmul.mubr.f32.gmra.mrb[36].mxu0 %v14438_v28  ;;  %11232 = vmatprep.subr.bf16.mxu1 %v11231_v41  ;;  %v4353_v50 = vld [vmem:[#allocation21 + $0x90] sm:$0xff] }
0x10b6   :  { %9336 = vmatmul.mubr.f32.gmra.mrb[52].mxu1 %v14306_v52  ;;  %11202 = vmatpush1.bf16.msra.mxu0 %v11201_v33  ;;  %v4339_v33 = vld [vmem:[#allocation21 + $0x20] sm:$0xff]  ;;  %v11269_v26 = vpack.c.bf16 %v4356_v13, %v4353_v50 }
0x10b7   :  { %11234 = vmatpush3.bf16.msra.mxu1 %v11231_v41  ;;  %9338 = vmatprep.mubr.f32.mxu1 %v14262_v22  ;;  %v3735_v41 = vld [vmem:[#allocation15 + $0x168] sm:$0xff]  ;;  %v11255_v23 = vpack.c.bf16 %v4339_v33, %v4336_v27  ;;  %v4366_v27 = vld [vmem:[#allocation21 + $0xf8] sm:$0xff]  ;;  %v4369_v33 = vld [vmem:[#allocation21 + $0x110] sm:$0xff] }
0x10b8   :  { %3868 = vmatprep.mubr.f32.mxu0 %v15487_v0  ;;  %11204 = vmatprep.subr.bf16.mxu0 %v11203_v29  ;;  %v11221_v59 = vpack.c.bf16 %v3735_v41, %v3732_v39  ;;  %v4335_v29 = vld [vmem:[#allocation21] sm:$0xff]  ;;  %v4362_v41 = vld [vmem:[#allocation21 + $0xd8] sm:$0xff] }
0x10b9   :  { %3869 = vmatmul.mubr.f32.gmra.mrb[38].mxu0 %v14394_v47  ;;  %11236 = vmatprep.subr.bf16.mxu1 %v11235_v62  ;;  %v4359_v39 = vld [vmem:[#allocation21 + $0xc0] sm:$0xff] }
0x10ba   :  { %9339 = vmatmul.mubr.f32.gmra.mrb[54].mxu1 %v14218_v10  ;;  %11206 = vmatpush1.bf16.msra.mxu0 %v11205_v43  ;;  %v4345_v43 = vld [vmem:[#allocation21 + $0x50] sm:$0xff] }
0x10bb   :  { %11238 = vmatpush3.bf16.msra.mxu1 %v11235_v62  ;;  %9373 = vmatprep.mubr.f32.mxu1 %v13801_v14  ;;  %v4338_v62 = vld [vmem:[#allocation21 + $0x18] sm:$0xff]  ;;  %v11259_v51 = vpack.c.bf16 %v4345_v43, %v4342_v42  ;;  %v4372_v43 = vld [vmem:[#allocation21 + $0x128] sm:$0xff] }
0x10bc   :  { %3874 = vmatprep.mubr.f32.mxu0 %v15487_v0  ;;  %11208 = vmatprep.subr.bf16.mxu0 %v11207_v1  ;;  %v11257_v18 = vpack.c.bf16 %v4338_v62, %v4335_v29  ;;  %v4344_v1 = vld [vmem:[#allocation21 + $0x48] sm:$0xff]  ;;  %v11275_v29 = vpack.c.bf16 %v4369_v33, %v4366_v27  ;;  %v4365_v62 = vld [vmem:[#allocation21 + $0xf0] sm:$0xff] }
0x10bd   :  { %3875 = vmatmul.mubr.f32.gmra.mrb[40].mxu0 %v14350_v57  ;;  %11240 = vmatprep.subr.bf16.mxu1 %v11239_v61  ;;  %v11261_v44 = vpack.c.bf16 %v4344_v1, %v4341_v45 }
0x10be   :  { %11210 = vmatpush1.bf16.msra.mxu0 %v11209_v63  ;;  %3880 = vmatprep.mubr.f32.mxu0 %v15487_v0  ;;  %v4349_v63 = vld [vmem:[#allocation21 + $0x70] sm:$0xff] }
0x10bf   :  { %11242 = vmatpush3.bf16.msra.mxu1 %v11239_v61  ;;  %11212 = vmatprep.subr.bf16.mxu0 %v11211_v31  ;;  %v4348_v61 = vld [vmem:[#allocation21 + $0x68] sm:$0xff] }
0x10c0   :  { %11244 = vmatprep.subr.bf16.mxu1 %v11243_v35  ;;  %v4352_v31 = vld [vmem:[#allocation21 + $0x88] sm:$0xff] }
0x10c1   :  { %3881 = vmatmul.mubr.f32.gmra.mrb[42].mxu0 %v14306_v52  ;;  %v11295_v40 = vpack.c.bf16 %v4352_v31, %v4349_v63  ;;  %v4379_v63 = vld [vmem:[#allocation21 + $0x160] sm:$0xff]  ;;  %v4382_v31 = vld [vmem:[#allocation21 + $0x178] sm:$0xff] }
0x10c2   :  { %11214 = vmatpush1.bf16.msra.mxu0 %v11213_v25  ;;  %3886 = vmatprep.mubr.f32.mxu0 %v15487_v0  ;;  %v4355_v25 = vld [vmem:[#allocation21 + $0xa0] sm:$0xff] }
0x10c3   :  { %11246 = vmatpush3.bf16.msra.mxu1 %v11243_v35  ;;  %11216 = vmatprep.subr.bf16.mxu0 %v11215_v58  ;;  %v11263_v35 = vpack.c.bf16 %v4351_v12, %v4348_v61  ;;  %v4358_v58 = vld [vmem:[#allocation21 + $0xb8] sm:$0xff]  ;;  %v11311_v61 = vpack.c.bf16 %v4376_v15, %v4373_v34  ;;  %v4307_v15 = vld [vmem:[#allocation20 + $0xa0] sm:$0xff] }
0x10c4   :  { %11248 = vmatprep.subr.bf16.mxu1 %v11247_v5  ;;  %v11299_v38 = vpack.c.bf16 %v4358_v58, %v4355_v25  ;;  %v4378_v12 = vld [vmem:[#allocation21 + $0x158] sm:$0xff]  ;;  %v4289_v25 = vld [vmem:[#allocation20 + $0x10] sm:$0xff]  ;;  %v4292_v58 = vld [vmem:[#allocation20 + $0x28] sm:$0xff] }
0x10c5   :  { %3887 = vmatmul.mubr.f32.gmra.mrb[44].mxu0 %v14262_v22 }
0x10c6   :  { %11218 = vmatpush1.bf16.msra.mxu0 %v11217_v16  ;;  %3892 = vmatprep.mubr.f32.mxu0 %v15487_v0  ;;  %v4361_v16 = vld [vmem:[#allocation21 + $0xd0] sm:$0xff] }
0x10c7   :  { %11250 = vmatpush3.bf16.msra.mxu1 %v11247_v5  ;;  %11220 = vmatprep.subr.bf16.mxu0 %v11219_v2  ;;  %v11267_v5 = vpack.c.bf16 %v4357_v55, %v4354_v9  ;;  %v4364_v2 = vld [vmem:[#allocation21 + $0xe8] sm:$0xff]  ;;  %v11315_v9 = vpack.c.bf16 %v4382_v31, %v4379_v63  ;;  %v4313_v63 = vld [vmem:[#allocation20 + $0xd0] sm:$0xff] }
0x10c8   :  { %11252 = vmatprep.subr.bf16.mxu1 %v11251_v32  ;;  %v11303_v53 = vpack.c.bf16 %v4364_v2, %v4361_v16  ;;  %v4288_v55 = vld [vmem:[#allocation20 + $0x8] sm:$0xff]  ;;  %v4295_v2 = vld [vmem:[#allocation20 + $0x40] sm:$0xff] }
0x10c9   :  { %3893 = vmatmul.mubr.f32.gmra.mrb[46].mxu0 %v14218_v10  ;;  %v4316_v31 = vld [vmem:[#allocation20 + $0xe8] sm:$0xff] }
0x10ca   :  { %11222 = vmatpush1.bf16.msra.mxu0 %v11221_v59  ;;  %4068 = vmatprep.mubr.f32.mxu0 %v15487_v0  ;;  %v4370_v59 = vld [vmem:[#allocation21 + $0x118] sm:$0xff] }
0x10cb   :  { %11254 = vmatpush3.bf16.msra.mxu1 %v11251_v32  ;;  %11256 = vmatprep.subr.bf16.mxu0 %v11255_v23  ;;  %v11271_v32 = vpack.c.bf16 %v4363_v8, %v4360_v46  ;;  %v11273_v23 = vpack.c.bf16 %v4362_v41, %v4359_v39  ;;  %v11307_v42 = vpack.c.bf16 %v4370_v59, %v4367_v24  ;;  %v4294_v8 = vld [vmem:[#allocation20 + $0x38] sm:$0xff]  ;;  %v4293_v41 = vld [vmem:[#allocation20 + $0x30] sm:$0xff]  ;;  %v4303_v24 = vld [vmem:[#allocation20 + $0x80] sm:$0xff] }
0x10cc   :  { %11288 = vmatprep.subr.bf16.mxu1 %v11287_v20  ;;  %v11351_v46 = vpack.c.bf16 %v4292_v58, %v4289_v25  ;;  %v4298_v39 = vld [vmem:[#allocation20 + $0x58] sm:$0xff] }
0x10cd   :  { %4069 = vmatmul.mubr.f32.vlgmr.msra.gmra.mrb[32].mxu0 %v13801_v14  ;;  %v11355_v33 = vpack.c.bf16 %v4298_v39, %v4295_v2  ;;  %v4323_v2 = vld [vmem:[#allocation20 + $0x120] sm:$0xff]  ;;  %v4326_v39 = vld [vmem:[#allocation20 + $0x138] sm:$0xff] }
0x10ce   :  { %9374 = vmatmul.mubr.f32.vlgmr.msra.gmra.mrb[48].mxu1 %v13845_v3  ;;  %11258 = vmatpush1.bf16.msra.mxu0 %v11257_v18  ;;  %v4375_v18 = vld [vmem:[#allocation21 + $0x140] sm:$0xff] }
0x10cf   :  { %9376 = vmatprep.mubr.f32.mxu1 %v13889_v48  ;;  %11290 = vmatpush3.bf16.msra.mxu1 %v11287_v20  ;;  %v4368_v20 = vld [vmem:[#allocation21 + $0x108] sm:$0xff]  ;;  %v11279_v1 = vpack.c.bf16 %v4375_v18, %v4372_v43  ;;  %v4306_v43 = vld [vmem:[#allocation20 + $0x98] sm:$0xff]  ;;  %v4309_v18 = vld [vmem:[#allocation20 + $0xb0] sm:$0xff] }
0x10d0   :  { %4074 = vmatprep.mubr.f32.mxu0 %v15487_v0  ;;  %11260 = vmatprep.subr.bf16.mxu0 %v11259_v51  ;;  %v11277_v45 = vpack.c.bf16 %v4368_v20, %v4365_v62  ;;  %v4371_v51 = vld [vmem:[#allocation21 + $0x120] sm:$0xff]  ;;  %v4302_v20 = vld [vmem:[#allocation20 + $0x78] sm:$0xff] }
0x10d1   :  { %4075 = vmatmul.mubr.f32.gmra.mrb[34].mxu0 %v13845_v3  ;;  %11292 = vmatprep.subr.bf16.mxu1 %v11291_v56  ;;  %v4299_v62 = vld [vmem:[#allocation20 + $0x60] sm:$0xff] }
0x10d2   :  { %9377 = vmatmul.mubr.f32.gmra.mrb[50].mxu1 %v13933_v60  ;;  %11262 = vmatpush1.bf16.msra.mxu0 %v11261_v44  ;;  %v4381_v44 = vld [vmem:[#allocation21 + $0x170] sm:$0xff]  ;;  %v11329_v34 = vpack.c.bf16 %v4302_v20, %v4299_v62  ;;  %v4887_v62 = vld [vmem:[#allocation18 + $0x8] sm:$0xff]  ;;  %v4890_v20 = vld [vmem:[#allocation18 + $0x20] sm:$0xff] }
0x10d3   :  { %9379 = vmatprep.mubr.f32.mxu1 %v13977_v54  ;;  %11294 = vmatpush3.bf16.msra.mxu1 %v11291_v56  ;;  %v4374_v56 = vld [vmem:[#allocation21 + $0x138] sm:$0xff]  ;;  %v11283_v19 = vpack.c.bf16 %v4381_v44, %v4378_v12  ;;  %v4315_v12 = vld [vmem:[#allocation20 + $0xe0] sm:$0xff] }
0x10d4   :  { %4080 = vmatprep.mubr.f32.mxu0 %v15487_v0  ;;  %11264 = vmatprep.subr.bf16.mxu0 %v11263_v35  ;;  %v11281_v11 = vpack.c.bf16 %v4374_v56, %v4371_v51  ;;  %v4377_v35 = vld [vmem:[#allocation21 + $0x150] sm:$0xff]  ;;  %v4308_v51 = vld [vmem:[#allocation20 + $0xa8] sm:$0xff]  ;;  %v11331_v56 = vpack.c.bf16 %v4309_v18, %v4306_v43  ;;  %v4889_v43 = vld [vmem:[#allocation18 + $0x18] sm:$0xff] }
0x10d5   :  { %4081 = vmatmul.mubr.f32.gmra.mrb[36].mxu0 %v13889_v48  ;;  %11296 = vmatprep.subr.bf16.mxu1 %v11295_v40  ;;  %v4893_v18 = vld [vmem:[#allocation18 + $0x38] sm:$0xff] }
0x10d6   :  { %9380 = vmatmul.mubr.f32.gmra.mrb[52].mxu1 %v14021_v17  ;;  %11266 = vmatpush1.bf16.msra.mxu0 %v11265_v4  ;;  %v4291_v4 = vld [vmem:[#allocation20 + $0x20] sm:$0xff] }
0x10d7   :  { %9382 = vmatprep.mubr.f32.mxu1 %v14071_v30  ;;  %11298 = vmatpush3.bf16.msra.mxu1 %v11295_v40  ;;  %v4380_v40 = vld [vmem:[#allocation21 + $0x168] sm:$0xff]  ;;  %v11319_v13 = vpack.c.bf16 %v4291_v4, %v4288_v55  ;;  %v4319_v55 = vld [vmem:[#allocation20 + $0x100] sm:$0xff]  ;;  %v4322_v4 = vld [vmem:[#allocation20 + $0x118] sm:$0xff] }
0x10d8   :  { %4086 = vmatprep.mubr.f32.mxu0 %v15487_v0  ;;  %11268 = vmatprep.subr.bf16.mxu0 %v11267_v5  ;;  %v11285_v50 = vpack.c.bf16 %v4380_v40, %v4377_v35  ;;  %v4287_v5 = vld [vmem:[#allocation20] sm:$0xff]  ;;  %v4321_v40 = vld [vmem:[#allocation20 + $0x110] sm:$0xff] }
0x10d9   :  { %4087 = vmatmul.mubr.f32.gmra.mrb[38].mxu0 %v13933_v60  ;;  %11300 = vmatprep.subr.bf16.mxu1 %v11299_v38 }
0x10da   :  { %9383 = vmatmul.mubr.f32.gmra.mrb[54].mxu1 %v14210_v21  ;;  %11270 = vmatpush1.bf16.msra.mxu0 %v11269_v26  ;;  %v4297_v26 = vld [vmem:[#allocation20 + $0x50] sm:$0xff] }
0x10db   :  { %11302 = vmatpush3.bf16.msra.mxu1 %v11299_v38  ;;  %9417 = vmatprep.mubr.f32.mxu1 %v14490_v7  ;;  %v4290_v38 = vld [vmem:[#allocation20 + $0x18] sm:$0xff]  ;;  %v11323_v27 = vpack.c.bf16 %v4297_v26, %v4294_v8  ;;  %v4328_v8 = vld [vmem:[#allocation20 + $0x148] sm:$0xff] }
0x10dc   :  { %4092 = vmatprep.mubr.f32.mxu0 %v15487_v0  ;;  %11272 = vmatprep.subr.bf16.mxu0 %v11271_v32  ;;  %v11321_v16 = vpack.c.bf16 %v4290_v38, %v4287_v5  ;;  %v4296_v32 = vld [vmem:[#allocation20 + $0x48] sm:$0xff]  ;;  %v11371_v5 = vpack.c.bf16 %v4322_v4, %v4319_v55  ;;  %v4904_v4 = vld [vmem:[#allocation18 + $0x90] sm:$0xff] }
0x10dd   :  { %4093 = vmatmul.mubr.f32.gmra.mrb[40].mxu0 %v13977_v54  ;;  %11304 = vmatprep.subr.bf16.mxu1 %v11303_v53  ;;  %v11325_v59 = vpack.c.bf16 %v4296_v32, %v4293_v41  ;;  %v4324_v38 = vld [vmem:[#allocation20 + $0x128] sm:$0xff]  ;;  %v4330_v32 = vld [vmem:[#allocation20 + $0x158] sm:$0xff] }
0x10de   :  { %11274 = vmatpush1.bf16.msra.mxu0 %v11273_v23  ;;  %4098 = vmatprep.mubr.f32.mxu0 %v15487_v0  ;;  %v4301_v23 = vld [vmem:[#allocation20 + $0x70] sm:$0xff] }
0x10df   :  { %11306 = vmatpush3.bf16.msra.mxu1 %v11303_v53  ;;  %11276 = vmatprep.subr.bf16.mxu0 %v11275_v29  ;;  %v4300_v53 = vld [vmem:[#allocation20 + $0x68] sm:$0xff] }
0x10e0   :  { %11308 = vmatprep.subr.bf16.mxu1 %v11307_v42  ;;  %v4304_v29 = vld [vmem:[#allocation20 + $0x88] sm:$0xff] }
0x10e1   :  { %4099 = vmatmul.mubr.f32.gmra.mrb[42].mxu0 %v14021_v17 }
0x10e2   :  { %11278 = vmatpush1.bf16.msra.mxu0 %v11277_v45  ;;  %4104 = vmatprep.mubr.f32.mxu0 %v15487_v0  ;;  %v4310_v45 = vld [vmem:[#allocation20 + $0xb8] sm:$0xff] }
0x10e3   :  { %11310 = vmatpush3.bf16.msra.mxu1 %v11307_v42  ;;  %11280 = vmatprep.subr.bf16.mxu0 %v11279_v1  ;;  %v11327_v42 = vpack.c.bf16 %v4303_v24, %v4300_v53  ;;  %v4305_v1 = vld [vmem:[#allocation20 + $0x90] sm:$0xff]  ;;  %v11345_v53 = vpack.c.bf16 %v4326_v39, %v4323_v2 }
0x10e4   :  { %11312 = vmatprep.subr.bf16.mxu1 %v11311_v61  ;;  %v11333_v44 = vpack.c.bf16 %v4308_v51, %v4305_v1  ;;  %v4892_v1 = vld [vmem:[#allocation18 + $0x30] sm:$0xff]  ;;  %v4895_v51 = vld [vmem:[#allocation18 + $0x48] sm:$0xff] }
0x10e5   :  { %4105 = vmatmul.mubr.f32.gmra.mrb[44].mxu0 %v14071_v30  ;;  %v4912_v39 = vld [vmem:[#allocation18 + $0xd0] sm:$0xff] }
0x10e6   :  { %11282 = vmatpush1.bf16.msra.mxu0 %v11281_v11  ;;  %4110 = vmatprep.mubr.f32.mxu0 %v15487_v0  ;;  %v4311_v11 = vld [vmem:[#allocation20 + $0xc0] sm:$0xff] }
0x10e7   :  { %11314 = vmatpush3.bf16.msra.mxu1 %v11311_v61  ;;  %11284 = vmatprep.subr.bf16.mxu0 %v11283_v19  ;;  %v4312_v61 = vld [vmem:[#allocation20 + $0xc8] sm:$0xff]  ;;  %v4314_v19 = vld [vmem:[#allocation20 + $0xd8] sm:$0xff] }
0x10e8   :  { %11316 = vmatprep.subr.bf16.mxu1 %v11315_v9  ;;  %v11335_v35 = vpack.c.bf16 %v4315_v12, %v4312_v61  ;;  %v11337_v25 = vpack.c.bf16 %v4314_v19, %v4311_v11  ;;  %v4894_v12 = vld [vmem:[#allocation18 + $0x40] sm:$0xff]  ;;  %v4901_v11 = vld [vmem:[#allocation18 + $0x78] sm:$0xff] }
0x10e9   :  { %4111 = vmatmul.mubr.f32.gmra.mrb[46].mxu0 %v14210_v21 }
0x10ea   :  { %11286 = vmatpush1.bf16.msra.mxu0 %v11285_v50  ;;  %4447 = vmatprep.mubr.f32.mxu0 %v15487_v0  ;;  %v4317_v50 = vld [vmem:[#allocation20 + $0xf0] sm:$0xff] }
0x10eb   :  { %11318 = vmatpush3.bf16.msra.mxu1 %v11315_v9  ;;  %11320 = vmatprep.subr.bf16.mxu0 %v11319_v13  ;;  %v11367_v9 = vpack.c.bf16 %v4316_v31, %v4313_v63  ;;  %v4320_v13 = vld [vmem:[#allocation20 + $0x108] sm:$0xff]  ;;  %v14578_v63 = vpack.c.bf16 %v4895_v51, %v4892_v1  ;;  %v4898_v31 = vld [vmem:[#allocation18 + $0x60] sm:$0xff]  ;;  %v4928_v1 = vld [vmem:[#allocation18 + $0x150] sm:$0xff] }
0x10ec   :  { %11352 = vmatprep.subr.bf16.mxu1 %v11351_v46  ;;  %v11341_v26 = vpack.c.bf16 %v4320_v13, %v4317_v50  ;;  %v14592_v55 = vpack.c.bf16 %v4901_v11, %v4898_v31  ;;  %v4914_v50 = vld [vmem:[#allocation18 + $0xe0] sm:$0xff]  ;;  %v4931_v51 = vld [vmem:[#allocation18 + $0x168] sm:$0xff] }
0x10ed   :  { %4448 = vmatmul.mubr.f32.vlgmr.msra.gmra.mrb[48].mxu0 %v14490_v7  ;;  %v11359_v7 = vpack.c.bf16 %v4304_v29, %v4301_v23  ;;  %v4332_v23 = vld [vmem:[#allocation20 + $0x168] sm:$0xff] }
0x10ee   :  { %9418 = vmatmul.mubr.f32.vlgmr.msra.gmra.mrb[56].mxu1 %v14480_v37  ;;  %11322 = vmatpush1.bf16.msra.mxu0 %v11321_v16 }
0x10ef   :  { %9420 = vmatprep.mubr.f32.mxu1 %v14438_v28  ;;  %11354 = vmatpush3.bf16.msra.mxu1 %v11351_v46  ;;  %v4325_v46 = vld [vmem:[#allocation20 + $0x130] sm:$0xff] }
0x10f0   :  { %4453 = vmatprep.mubr.f32.mxu0 %v15487_v0  ;;  %11324 = vmatprep.subr.bf16.mxu0 %v11323_v27  ;;  %v11375_v41 = vpack.c.bf16 %v4328_v8, %v4325_v46  ;;  %v4333_v27 = vld [vmem:[#allocation20 + $0x170] sm:$0xff]  ;;  %v4910_v8 = vld [vmem:[#allocation18 + $0xc0] sm:$0xff] }
0x10f1   :  { %4454 = vmatmul.mubr.f32.gmra.mrb[50].mxu0 %v14480_v37  ;;  %11356 = vmatprep.subr.bf16.mxu1 %v11355_v33  ;;  %v11363_v37 = vpack.c.bf16 %v4310_v45, %v4307_v15  ;;  %v11347_v24 = vpack.c.bf16 %v4333_v27, %v4330_v32  ;;  %v4888_v15 = vld [vmem:[#allocation18 + $0x10] sm:$0xff]  ;;  %v4891_v45 = vld [vmem:[#allocation18 + $0x28] sm:$0xff] }
0x10f2   :  { %9421 = vmatmul.mubr.f32.gmra.mrb[58].mxu1 %v14394_v47  ;;  %11326 = vmatpush1.bf16.msra.mxu0 %v11325_v59  ;;  %v4329_v59 = vld [vmem:[#allocation20 + $0x150] sm:$0xff]  ;;  %v14573_v61 = vpack.c.bf16 %v4891_v45, %v4888_v15 }
0x10f3   :  { %9423 = vmatprep.mubr.f32.mxu1 %v14350_v57  ;;  %11358 = vmatpush3.bf16.msra.mxu1 %v11355_v33  ;;  %v4331_v33 = vld [vmem:[#allocation20 + $0x160] sm:$0xff] }
0x10f4   :  { %4459 = vmatprep.mubr.f32.mxu0 %v15487_v0  ;;  %11328 = vmatprep.subr.bf16.mxu0 %v11327_v42  ;;  %v14563_v42 = vpack.c.bf16 %v4890_v20, %v4887_v62  ;;  %v4922_v20 = vld [vmem:[#allocation18 + $0x120] sm:$0xff] }
0x10f5   :  { %4460 = vmatmul.mubr.f32.gmra.mrb[52].mxu0 %v14438_v28  ;;  %11360 = vmatprep.subr.bf16.mxu1 %v11359_v7  ;;  %v4318_v28 = vld [vmem:[#allocation20 + $0xf8] sm:$0xff] }
0x10f6   :  { %9424 = vmatmul.mubr.f32.gmra.mrb[60].mxu1 %v14306_v52  ;;  %11330 = vmatpush1.bf16.msra.mxu0 %v11329_v34  ;;  %v11339_v58 = vpack.c.bf16 %v4321_v40, %v4318_v28  ;;  %v4896_v34 = vld [vmem:[#allocation18 + $0x50] sm:$0xff] }
0x10f7   :  { %9426 = vmatprep.mubr.f32.mxu1 %v14262_v22  ;;  %11362 = vmatpush3.bf16.msra.mxu1 %v11359_v7  ;;  %v4886_v7 = vld [vmem:[#allocation18] sm:$0xff]  ;;  %v4908_v28 = vld [vmem:[#allocation18 + $0xb0] sm:$0xff] }
0x10f8   :  { %4465 = vmatprep.mubr.f32.mxu0 %v15487_v0  ;;  %11332 = vmatprep.subr.bf16.mxu0 %v11331_v56  ;;  %v14570_v56 = vpack.c.bf16 %v4896_v34, %v4893_v18  ;;  %v4900_v40 = vld [vmem:[#allocation18 + $0x70] sm:$0xff]  ;;  %v4927_v34 = vld [vmem:[#allocation18 + $0x148] sm:$0xff] }
0x10f9   :  { %4466 = vmatmul.mubr.f32.gmra.mrb[54].mxu0 %v14394_v47  ;;  %11364 = vmatprep.subr.bf16.mxu1 %v11363_v37  ;;  %v4327_v47 = vld [vmem:[#allocation20 + $0x140] sm:$0xff]  ;;  %v4924_v18 = vld [vmem:[#allocation18 + $0x130] sm:$0xff] }
0x10fa   :  { %9427 = vmatmul.mubr.f32.gmra.mrb[62].mxu1 %v14218_v10  ;;  %11334 = vmatpush1.bf16.msra.mxu0 %v11333_v44  ;;  %v11343_v16 = vpack.c.bf16 %v4327_v47, %v4324_v38  ;;  %v4897_v44 = vld [vmem:[#allocation18 + $0x58] sm:$0xff] }
0x10fb   :  { %11366 = vmatpush3.bf16.msra.mxu1 %v11363_v37  ;;  %9461 = vmatprep.mubr.f32.mxu1 %v13801_v14  ;;  %v4899_v37 = vld [vmem:[#allocation18 + $0x68] sm:$0xff]  ;;  %v4909_v38 = vld [vmem:[#allocation18 + $0xb8] sm:$0xff] }
0x10fc   :  { %4471 = vmatprep.mubr.f32.mxu0 %v15487_v0  ;;  %11336 = vmatprep.subr.bf16.mxu0 %v11335_v35  ;;  %v14586_v35 = vpack.c.bf16 %v4897_v44, %v4894_v12  ;;  %v14659_v12 = vpack.c.bf16 %v4931_v51, %v4928_v1 }
0x10fd   :  { %4472 = vmatmul.mubr.f32.gmra.mrb[56].mxu0 %v14350_v57  ;;  %11368 = vmatprep.subr.bf16.mxu1 %v11367_v9  ;;  %v4334_v57 = vld [vmem:[#allocation20 + $0x178] sm:$0xff] }
0x10fe   :  { %11338 = vmatpush1.bf16.msra.mxu0 %v11337_v25  ;;  %4477 = vmatprep.mubr.f32.mxu0 %v15487_v0  ;;  %v11379_v29 = vpack.c.bf16 %v4334_v57, %v4331_v33  ;;  %v4907_v25 = vld [vmem:[#allocation18 + $0xa8] sm:$0xff]  ;;  %v4916_v33 = vld [vmem:[#allocation18 + $0xf0] sm:$0xff] }
0x10ff   :  { %11370 = vmatpush3.bf16.msra.mxu1 %v11367_v9  ;;  %11340 = vmatprep.subr.bf16.mxu0 %v11339_v58  ;;  %v4903_v9 = vld [vmem:[#allocation18 + $0x88] sm:$0xff]  ;;  %v14606_v47 = vpack.c.bf16 %v4907_v25, %v4904_v4 }
0x1100   :  { %11372 = vmatprep.subr.bf16.mxu1 %v11371_v5  ;;  %v4911_v58 = vld [vmem:[#allocation18 + $0xc8] sm:$0xff]  ;;  %v14600_v13 = vpack.c.bf16 %v4903_v9, %v4900_v40 }
0x1101   :  { %4478 = vmatmul.mubr.f32.gmra.mrb[58].mxu0 %v14306_v52  ;;  %v11349_v52 = vpack.c.bf16 %v4332_v23, %v4329_v59  ;;  %v14610_v46 = vpack.c.bf16 %v4914_v50, %v4911_v58  ;;  %v4919_v57 = vld [vmem:[#allocation18 + $0x108] sm:$0xff]  ;;  %v4918_v59 = vld [vmem:[#allocation18 + $0x100] sm:$0xff]  ;;  %v4921_v23 = vld [vmem:[#allocation18 + $0x118] sm:$0xff] }
0x1102   :  { %11342 = vmatpush1.bf16.msra.mxu0 %v11341_v26  ;;  %4483 = vmatprep.mubr.f32.mxu0 %v15487_v0  ;;  %v4913_v26 = vld [vmem:[#allocation18 + $0xd8] sm:$0xff] }
0x1103   :  { %11374 = vmatpush3.bf16.msra.mxu1 %v11371_v5  ;;  %11344 = vmatprep.subr.bf16.mxu0 %v11343_v16  ;;  %v4906_v5 = vld [vmem:[#allocation18 + $0xa0] sm:$0xff]  ;;  %v4920_v16 = vld [vmem:[#allocation18 + $0x110] sm:$0xff]  ;;  %v14620_v32 = vpack.c.bf16 %v4913_v26, %v4910_v8 }
0x1104   :  { %11376 = vmatprep.subr.bf16.mxu1 %v11375_v41  ;;  %v14614_v2 = vpack.c.bf16 %v4909_v38, %v4906_v5 }
0x1105   :  { %4484 = vmatmul.mubr.f32.gmra.mrb[60].mxu0 %v14262_v22  ;;  %v14567_v22 = vpack.c.bf16 %v4889_v43, %v4886_v7  ;;  %v4929_v7 = vld [vmem:[#allocation18 + $0x158] sm:$0xff]  ;;  %v4932_v43 = vld [vmem:[#allocation18 + $0x170] sm:$0xff] }
0x1106   :  { %11346 = vmatpush1.bf16.msra.mxu0 %v11345_v53  ;;  %4489 = vmatprep.mubr.f32.mxu0 %v15487_v0  ;;  %v4923_v53 = vld [vmem:[#allocation18 + $0x128] sm:$0xff]  ;;  %v14650_v45 = vpack.c.bf16 %v4932_v43, %v4929_v7 }
0x1107   :  { %11378 = vmatpush3.bf16.msra.mxu1 %v11375_v41  ;;  %11348 = vmatprep.subr.bf16.mxu0 %v11347_v24  ;;  %v4915_v41 = vld [vmem:[#allocation18 + $0xe8] sm:$0xff] }
0x1108   :  { %11380 = vmatprep.subr.bf16.mxu1 %v11379_v29  ;;  %v14627_v24 = vpack.c.bf16 %v4915_v41, %v4912_v39 }
0x1109   :  { %4490 = vmatmul.mubr.f32.gmra.mrb[62].mxu0 %v14218_v10  ;;  %v4902_v10 = vld [vmem:[#allocation18 + $0x80] sm:$0xff] }
0x110a   :  { %11350 = vmatpush1.bf16.msra.mxu0 %v11349_v52  ;;  %4665 = vmatprep.mubr.f32.mxu0 %v15487_v0  ;;  %v14583_v19 = vpack.c.bf16 %v4902_v10, %v4899_v37  ;;  %v4925_v52 = vld [vmem:[#allocation18 + $0x138] sm:$0xff]  ;;  %v14653_v37 = vpack.c.bf16 %v4927_v34, %v4924_v18 }
0x110b   :  { %11382 = vmatpush3.bf16.msra.mxu1 %v11379_v29  ;;  %11384 = vmatprep.subr.bf16.mxu0 %v14563_v42  ;;  %v14635_v29 = vpack.c.bf16 %v4919_v57, %v4916_v33  ;;  %v14647_v15 = vpack.c.bf16 %v4925_v52, %v4922_v20  ;;  %v4933_v10 = vld [vmem:[#allocation18 + $0x178] sm:$0xff] }
0x110c   :  { %11415 = vmatprep.subr.bf16.mxu1 %v15486_v36 }
0x110d   :  { %4666 = vmatmul.mubr.f32.vlgmr.msra.gmra.mrb[48].mxu0 %v13801_v14  ;;  %v4905_v14 = vld [vmem:[#allocation18 + $0x98] sm:$0xff] }
0x110e   :  { %9462 = vmatmul.mubr.f32.vlgmr.msra.gmra.mrb[56].mxu1 %v13845_v3  ;;  %11386 = vmatpush1.bf16.msra.mxu0 %v14567_v22 }
0x110f   :  { %9464 = vmatprep.mubr.f32.mxu1 %v13889_v48  ;;  %4671 = vmatprep.mubr.f32.mxu0 %v15487_v0 }
0x1110   :  { %11388 = vmatprep.subr.bf16.mxu0 %v14570_v56  ;;  %11417 = vmatpush3.bf16.msra.mxu1 %v14573_v61 }
0x1111   :  { %4672 = vmatmul.mubr.f32.gmra.mrb[50].mxu0 %v13845_v3  ;;  %11418 = vmatprep.subr.bf16.mxu1 %v15486_v36  ;;  %v14597_v3 = vpack.c.bf16 %v4908_v28, %v4905_v14 }
0x1112   :  { %9465 = vmatmul.mubr.f32.gmra.mrb[58].mxu1 %v13933_v60  ;;  %11390 = vmatpush1.bf16.msra.mxu0 %v14578_v63 }
0x1113   :  { %9467 = vmatprep.mubr.f32.mxu1 %v13977_v54  ;;  %4677 = vmatprep.mubr.f32.mxu0 %v15487_v0 }
0x1114   :  { %11392 = vmatprep.subr.bf16.mxu0 %v14583_v19  ;;  %11420 = vmatpush3.bf16.msra.mxu1 %v14586_v35 }
0x1115   :  { %4678 = vmatmul.mubr.f32.gmra.mrb[52].mxu0 %v13889_v48  ;;  %11421 = vmatprep.subr.bf16.mxu1 %v15486_v36  ;;  %v4917_v48 = vld [vmem:[#allocation18 + $0xf8] sm:$0xff] }
0x1116   :  { %9468 = vmatmul.mubr.f32.gmra.mrb[60].mxu1 %v14021_v17  ;;  %11394 = vmatpush1.bf16.msra.mxu0 %v14592_v55  ;;  %v14624_v27 = vpack.c.bf16 %v4920_v16, %v4917_v48  ;;  %v4819_v16 = vld [vmem:[%s15461_s14] ss:$2 sm:$0x7] }
0x1117   :  { %9470 = vmatprep.mubr.f32.mxu1 %v14071_v30  ;;  %4683 = vmatprep.mubr.f32.mxu0 %v15487_v0  ;;  %v14731_v39 = vrot.slane %v4819_v16, %v13731_v49 }
0x1118   :  { %11396 = vmatprep.subr.bf16.mxu0 %v14597_v3  ;;  %11423 = vmatpush3.bf16.msra.mxu1 %v14600_v13 }
0x1119   :  { %4684 = vmatmul.mubr.f32.gmra.mrb[54].mxu0 %v13933_v60  ;;  %11424 = vmatprep.subr.bf16.mxu1 %v15486_v36  ;;  %v4926_v60 = vld [vmem:[#allocation18 + $0x140] sm:$0xff] }
0x111a   :  { %9471 = vmatmul.mubr.f32.gmra.mrb[62].mxu1 %v14210_v21  ;;  %11398 = vmatpush1.bf16.msra.mxu0 %v14606_v47  ;;  %v14638_v62 = vpack.c.bf16 %v4926_v60, %v4923_v53 }
0x111b   :  { %4689 = vmatprep.mubr.f32.mxu0 %v15487_v0  ;;  %11400 = vmatprep.subr.bf16.mxu0 %v14610_v46 }
0x111c   :  { %11426 = vmatpush3.bf16.msra.mxu1 %v14614_v2  ;;  %9505 = vmatprep.mubr.msk.f32.mxu1 %vm13253_vm0, %v15487_v0 }
0x111d   :  { %4690 = vmatmul.mubr.f32.gmra.mrb[56].mxu0 %v13977_v54  ;;  %11427 = vmatprep.subr.bf16.mxu1 %v15486_v36  ;;  %v14641_v54 = vpack.c.bf16 %v4921_v23, %v4918_v59 }
0x111e   :  { %11402 = vmatpush1.bf16.msra.mxu0 %v14620_v32  ;;  %4695 = vmatprep.mubr.f32.mxu0 %v15487_v0 }
0x111f   :  { %11404 = vmatprep.subr.bf16.mxu0 %v14624_v27 }
0x1120   :  { %11429 = vmatpush3.bf16.msra.mxu1 %v14627_v24 }
0x1121   :  { %4696 = vmatmul.mubr.f32.gmra.mrb[58].mxu0 %v14021_v17  ;;  %11430 = vmatprep.subr.bf16.mxu1 %v15486_v36  ;;  %v4930_v17 = vld [vmem:[#allocation18 + $0x160] sm:$0xff] }
0x1122   :  { %11406 = vmatpush1.bf16.msra.mxu0 %v14635_v29  ;;  %4701 = vmatprep.mubr.f32.mxu0 %v15487_v0  ;;  %v14663_v44 = vpack.c.bf16 %v4933_v10, %v4930_v17  ;;  %v7892_v17 = vld [vmem:[%s15457_s10 + $0x1] ss:$2 sm:$0x7] }
0x1123   :  { %11408 = vmatprep.subr.bf16.mxu0 %v14638_v62 }
0x1124   :  { %11432 = vmatpush3.bf16.msra.mxu1 %v14641_v54 }
0x1125   :  { %4702 = vmatmul.mubr.f32.gmra.mrb[60].mxu0 %v14071_v30  ;;  %11433 = vmatprep.subr.bf16.mxu1 %v15486_v36  ;;  %v4222_v30 = vld [vmem:[%s15457_s10] ss:$2 sm:$0x7] }
0x1126   :  { %11410 = vmatpush1.bf16.msra.mxu0 %v14647_v15  ;;  %4707 = vmatprep.mubr.f32.mxu0 %v15487_v0  ;;  %v4227_v10 = vrot.slane %v4222_v30, %v13775_v6 }
0x1127   :  { %11412 = vmatprep.subr.bf16.mxu0 %v14650_v45 }
0x1128   :  { %11435 = vmatpush3.bf16.msra.mxu1 %v14653_v37 }
0x1129   :  { %4708 = vmatmul.mubr.f32.gmra.mrb[62].mxu0 %v14210_v21  ;;  %11436 = vmatprep.subr.bf16.mxu1 %v15486_v36  ;;  %v4235_v21 = vrot.slane %v4222_v30, %v13731_v49 }
0x112a   :  { %11414 = vmatpush1.bf16.msra.mxu0 %v14659_v12  ;;  %5017 = vmatprep.mubr.f32.mxu0 %v15487_v0 }
0x112b   :  { %11440 = vmatprep.subr.bf16.mxu0 %v14563_v42 }
0x112c   :  { %11438 = vmatpush3.bf16.msra.mxu1 %v14663_v44 }
0x112d   :  { %5018 = vmatmul.mubr.f32.vlgmr.msra.gmra.mrb[32].mxu0 %v15487_v0  ;;  %11471 = vmatprep.subr.bf16.mxu1 %v15486_v36 }
0x112e   :  { %11442 = vmatpush1.bf16.msra.mxu0 %v14567_v22  ;;  %5182 = vmatprep.mubr.f32.mxu0 %v15487_v0 }
0x112f   :  { %9506 = vmatmul.mubr.f32.vlgmr.msra.gmra.mrb[64].mxu1 %v15487_v0  ;;  %11444 = vmatprep.subr.bf16.mxu0 %v14570_v56 }
0x1130   :  { %11473 = vmatpush3.bf16.msra.mxu1 %v14573_v61  ;;  %9540 = vmatprep.mubr.msk.f32.mxu1 %vm13253_vm0, %v15487_v0 }
0x1131   :  { %11474 = vmatprep.subr.bf16.mxu1 %v15486_v36 }
0x1132   :  { %11446 = vmatpush1.bf16.msra.mxu0 %v14578_v63 }
0x1133   :  { %11448 = vmatprep.subr.bf16.mxu0 %v14583_v19 }
0x1134   :  { %11476 = vmatpush3.bf16.msra.mxu1 %v14586_v35 }
0x1135   :  { %11477 = vmatprep.subr.bf16.mxu1 %v15486_v36 }
0x1136   :  { %11450 = vmatpush1.bf16.msra.mxu0 %v14592_v55 }
0x1137   :  { %11452 = vmatprep.subr.bf16.mxu0 %v14597_v3 }
0x1138   :  { %11479 = vmatpush3.bf16.msra.mxu1 %v14600_v13 }
0x1139   :  { %11480 = vmatprep.subr.bf16.mxu1 %v15486_v36 }
0x113a   :  { %11454 = vmatpush1.bf16.msra.mxu0 %v14606_v47 }
0x113b   :  { %11456 = vmatprep.subr.bf16.mxu0 %v14610_v46 }
0x113c   :  { %11482 = vmatpush3.bf16.msra.mxu1 %v14614_v2 }
0x113d   :  { %11483 = vmatprep.subr.bf16.mxu1 %v15486_v36 }
0x113e   :  { %11458 = vmatpush1.bf16.msra.mxu0 %v14620_v32 }
0x113f   :  { %11460 = vmatprep.subr.bf16.mxu0 %v14624_v27 }
0x1140   :  { %11485 = vmatpush3.bf16.msra.mxu1 %v14627_v24 }
0x1141   :  { %11486 = vmatprep.subr.bf16.mxu1 %v15486_v36 }
0x1142   :  { %11462 = vmatpush1.bf16.msra.mxu0 %v14635_v29 }
0x1143   :  { %11464 = vmatprep.subr.bf16.mxu0 %v14638_v62 }
0x1144   :  { %11488 = vmatpush3.bf16.msra.mxu1 %v14641_v54 }
0x1145   :  { %11489 = vmatprep.subr.bf16.mxu1 %v15486_v36 }
0x1146   :  { %11466 = vmatpush1.bf16.msra.mxu0 %v14647_v15 }
0x1147   :  { %11468 = vmatprep.subr.bf16.mxu0 %v14650_v45 }
0x1148   :  { %11491 = vmatpush3.bf16.msra.mxu1 %v14653_v37 }
0x1149   :  { %11492 = vmatprep.subr.bf16.mxu1 %v15486_v36 }
0x114a   :  { %11470 = vmatpush1.bf16.msra.mxu0 %v14659_v12 }
0x114b   :  { %11496 = vmatprep.subr.bf16.mxu0 %v14563_v42 }
0x114c   :  { %11494 = vmatpush3.bf16.msra.mxu1 %v14663_v44 }
0x114d   :  { %11527 = vmatprep.subr.bf16.mxu1 %v15486_v36 }
0x11a1   :  { %v9375_v31 = vpop.f32.mrb[48].mxu1 }
0x11a2   :  { %v14713_v11 = vadd.f32 %v9375_v31, %v4235_v21  ;;  %v4183_v14 = vpop.f32.mrb[49].mxu1  ;;  %v4941_v31 = vrot.slane %v7892_v17, %v13775_v6 }
0x11a5   :  { %v9378_v28 = vpop.f32.mrb[50].mxu1 }
0x11a6   :  { %v14715_v40 = vadd.f32 %v9378_v28, %v4235_v21  ;;  %v4193_v9 = vpop.f32.mrb[51].mxu1  ;;  %v15491_v28 = vld [vmem:[#allocation37_spill] sm:$0xff] }
0x11a7   :  { %v14717_v4 = vadd.f32 %v4235_v21, %v4193_v9  ;;  %v4231_v9 = vrot.slane %v4222_v30, %v15491_v28 }
0x11a9   :  { %v9381_v25 = vpop.f32.mrb[52].mxu1 }
0x11aa   :  { %v14719_v58 = vadd.f32 %v9381_v25, %v4235_v21  ;;  %v4203_v50 = vpop.f32.mrb[53].mxu1  ;;  %v4945_v25 = vrot.slane %v7892_v17, %v15491_v28 }
0x11ab   :  { %v14721_v5 = vadd.f32 %v4235_v21, %v4203_v50  ;;  %v14763_v50 = vadd.f32 %v4941_v31, %v4227_v10  ;;  %v14770_v10 = vrot.slane %v7892_v17, %v13731_v49 }
0x11ad   :  { %v9384_v38 = vpop.f32.mrb[54].mxu1 }
0x11ae   :  { %v14723_v8 = vadd.f32 %v9384_v38, %v4235_v21  ;;  %v4213_v26 = vpop.f32.mrb[55].mxu1 }
0x11af   :  { %v14725_v48 = vadd.f32 %v4235_v21, %v4213_v26  ;;  %v14765_v26 = vadd.f32 %v4945_v25, %v4231_v9 }
0x11e1   :  { %v9463_v41 = vpop.f32.mrb[56].mxu1 }
0x11e2   :  { %v14734_v33 = vadd.f32 %v9463_v41, %v14731_v39  ;;  %v4780_v57 = vpop.f32.mrb[57].mxu1 }
0x11e3   :  { %v14737_v53 = vadd.f32 %v14731_v39, %v4780_v57 }
0x11e4   :  { %15489 = vst [vmem:[#allocation36_spill] sm:$0xff] %v14734_v33 }
0x11e5   :  { %15490 = vst [vmem:[#allocation38_spill] sm:$0xff] %v14737_v53  ;;  %v9466_v60 = vpop.f32.mrb[58].mxu1  ;;  %v4241_v53 = vadd.f32 %v4235_v21, %v4183_v14 }
0x11e6   :  { %v14740_v59 = vadd.f32 %v9466_v60, %v14731_v39  ;;  %v4790_v23 = vpop.f32.mrb[59].mxu1 }
0x11e7   :  { %v14743_v20 = vadd.f32 %v14731_v39, %v4790_v23 }
0x11e9   :  { %v9469_v52 = vpop.f32.mrb[60].mxu1 }
0x11ea   :  { %v14746_v7 = vadd.f32 %v9469_v52, %v14731_v39  ;;  %v4800_v43 = vpop.f32.mrb[61].mxu1 }
0x11eb   :  { %v14749_v18 = vadd.f32 %v14731_v39, %v4800_v43 }
0x11ed   :  { %v14751_v34 = vpop.f32.mrb[62].mxu1 }
0x11ee   :  { %v4810_v1 = vpop.f32.mrb[63].mxu1 }
0x11ef   :  { %v14754_v51 = vadd.f32 %v14731_v39, %v4810_v1 }
0x1200   :  { %v5019_v38 = vpop.f32.mrb[32].mxu0 }
0x1201   :  { %v12392_v16 = vadd.f32 %v14763_v50, %v5019_v38  ;;  %v5021_v41 = vpop.f32.mrb[33].mxu0 }
0x1202   :  { %v5090_v57 = vpop.f32.mrb[64].mxu1  ;;  %v12394_v52 = vadd.f32 %v14765_v26, %v5021_v41 }
0x1203   :  { %v7893_v60 = vmul.f32 -1.442695, %v12392_v16  ;;  %v9507_v23 = vpop.f32.mrb[65].mxu1  ;;  %v5091_v25 = vadd.f32 %v5090_v57, %v14770_v10 }
0x1204   :  { %v7894_v43 = vmul.f32 -1.442695, %v12394_v52 }
0x1205   :  { %12748 = vpow2.f32 %v7893_v60 }
0x1206   :  { %12750 = vpow2.f32 %v7894_v43 }
0x120f   :  { %v12749_v1 = vpop.eup %12748 }
0x1210   :  { %v5098_v30 = vadd.f32 1.0, %v12749_v1  ;;  %v12751_v31 = vpop.eup %12750 }
0x1211   :  { %v5105_v9 = vadd.f32 1.0, %v12751_v31 }
0x1212   :  { %12752 = vrcp.f32 %v5098_v30 }
0x1213   :  { %12754 = vrcp.f32 %v5105_v9 }
0x121c   :  { %v12753_v38 = vpop.eup %12752 }
0x121d   :  { %v5108_v16 = vmul.f32 %v12753_v38, %v5091_v25  ;;  %v12755_v41 = vpop.eup %12754 }
0x121e   :  { %v5111_v60 = vsub.f32 1.0, %v12755_v41  ;;  %v5113_v33 = vmul.f32 0.0, %v12755_v41 }
0x121f   :  { %v5109_v23 = vadd.f32 %v5108_v16, %v4241_v53 }
0x1221   :  { %12756 = vtanh.f32 %v5109_v23 }
0x122b   :  { %v12757_v52 = vpop.eup %12756 }
0x122c   :  { %v5112_v43 = vmul.f32 %v12757_v52, %v5111_v60 }
0x122e   :  { %v5114_v1 = vadd.f32 %v5113_v33, %v5112_v43 }
0x1230   :  { %5183 = vmatmul.mubr.f32.vlgmr.msra.gmra.mrb[34].mxu0 %v5114_v1  ;;  %9541 = vmatmul.mubr.f32.vlgmr.msra.gmra.mrb[66].mxu1 %v5114_v1 }
0x1231   :  { %11498 = vmatpush1.bf16.msra.mxu0 %v14567_v22  ;;  %11529 = vmatpush3.bf16.msra.mxu1 %v14573_v61 }
0x1232   :  { %11500 = vmatprep.subr.bf16.mxu0 %v14570_v56  ;;  %11530 = vmatprep.subr.bf16.mxu1 %v15486_v36 }
0x1233   :  { %5347 = vmatprep.mubr.f32.mxu0 %v15487_v0  ;;  %9575 = vmatprep.mubr.msk.f32.mxu1 %vm13253_vm0, %v15487_v0 }
0x1235   :  { %11502 = vmatpush1.bf16.msra.mxu0 %v14578_v63  ;;  %11532 = vmatpush3.bf16.msra.mxu1 %v14586_v35 }
0x1236   :  { %11504 = vmatprep.subr.bf16.mxu0 %v14583_v19  ;;  %11533 = vmatprep.subr.bf16.mxu1 %v15486_v36 }
0x1239   :  { %11506 = vmatpush1.bf16.msra.mxu0 %v14592_v55  ;;  %11535 = vmatpush3.bf16.msra.mxu1 %v14600_v13 }
0x123a   :  { %11508 = vmatprep.subr.bf16.mxu0 %v14597_v3  ;;  %11536 = vmatprep.subr.bf16.mxu1 %v15486_v36 }
0x123d   :  { %11510 = vmatpush1.bf16.msra.mxu0 %v14606_v47  ;;  %11538 = vmatpush3.bf16.msra.mxu1 %v14614_v2 }
0x123e   :  { %11512 = vmatprep.subr.bf16.mxu0 %v14610_v46  ;;  %11539 = vmatprep.subr.bf16.mxu1 %v15486_v36 }
0x1241   :  { %11514 = vmatpush1.bf16.msra.mxu0 %v14620_v32  ;;  %11541 = vmatpush3.bf16.msra.mxu1 %v14627_v24 }
0x1242   :  { %11516 = vmatprep.subr.bf16.mxu0 %v14624_v27  ;;  %11542 = vmatprep.subr.bf16.mxu1 %v15486_v36 }
0x1245   :  { %11518 = vmatpush1.bf16.msra.mxu0 %v14635_v29  ;;  %11544 = vmatpush3.bf16.msra.mxu1 %v14641_v54 }
0x1246   :  { %11520 = vmatprep.subr.bf16.mxu0 %v14638_v62  ;;  %11545 = vmatprep.subr.bf16.mxu1 %v15486_v36 }
0x1249   :  { %11522 = vmatpush1.bf16.msra.mxu0 %v14647_v15  ;;  %11547 = vmatpush3.bf16.msra.mxu1 %v14653_v37 }
0x124a   :  { %11524 = vmatprep.subr.bf16.mxu0 %v14650_v45  ;;  %11548 = vmatprep.subr.bf16.mxu1 %v15486_v36 }
0x124d   :  { %11526 = vmatpush1.bf16.msra.mxu0 %v14659_v12  ;;  %11550 = vmatpush3.bf16.msra.mxu1 %v14663_v44 }
0x124e   :  { %11552 = vmatprep.subr.bf16.mxu0 %v14563_v42  ;;  %11583 = vmatprep.subr.bf16.mxu1 %v15486_v36 }
0x1303   :  { %v5184_v21 = vpop.f32.mrb[34].mxu0  ;;  %v5255_v14 = vpop.f32.mrb[66].mxu1 }
0x1304   :  { %v12396_v33 = vadd.f32 %v14763_v50, %v5184_v21  ;;  %v5186_v53 = vpop.f32.mrb[35].mxu0  ;;  %v9542_v17 = vpop.f32.mrb[67].mxu1  ;;  %v5256_v23 = vadd.f32 %v5255_v14, %v14770_v10 }
0x1305   :  { %v12398_v30 = vadd.f32 %v14765_v26, %v5186_v53 }
0x1306   :  { %v7895_v57 = vmul.f32 -1.442695, %v12396_v33 }
0x1307   :  { %v7896_v31 = vmul.f32 -1.442695, %v12398_v30 }
0x1308   :  { %12758 = vpow2.f32 %v7895_v57 }
0x1309   :  { %12760 = vpow2.f32 %v7896_v31 }
0x1312   :  { %v12759_v9 = vpop.eup %12758 }
0x1313   :  { %v5263_v25 = vadd.f32 1.0, %v12759_v9  ;;  %v12761_v38 = vpop.eup %12760 }
0x1314   :  { %v5270_v16 = vadd.f32 1.0, %v12761_v38 }
0x1315   :  { %12762 = vrcp.f32 %v5263_v25 }
0x1316   :  { %12764 = vrcp.f32 %v5270_v16 }
0x131f   :  { %v12763_v41 = vpop.eup %12762 }
0x1320   :  { %v5273_v60 = vmul.f32 %v12763_v41, %v5256_v23  ;;  %v12765_v43 = vpop.eup %12764 }
0x1321   :  { %v5276_v21 = vsub.f32 1.0, %v12765_v43  ;;  %v5278_v17 = vmul.f32 %v12765_v43, %v5114_v1 }
0x1322   :  { %v5274_v52 = vadd.f32 %v5273_v60, %v14713_v11 }
0x1324   :  { %12766 = vtanh.f32 %v5274_v52 }
0x132e   :  { %v12767_v33 = vpop.eup %12766 }
0x132f   :  { %v5277_v53 = vmul.f32 %v12767_v33, %v5276_v21 }
0x1331   :  { %v5279_v57 = vadd.f32 %v5278_v17, %v5277_v53 }
0x1333   :  { %5348 = vmatmul.mubr.f32.vlgmr.msra.gmra.mrb[36].mxu0 %v5279_v57  ;;  %9576 = vmatmul.mubr.f32.vlgmr.msra.gmra.mrb[68].mxu1 %v5279_v57 }
0x1334   :  { %11554 = vmatpush1.bf16.msra.mxu0 %v14567_v22  ;;  %11585 = vmatpush3.bf16.msra.mxu1 %v14573_v61 }
0x1335   :  { %11556 = vmatprep.subr.bf16.mxu0 %v14570_v56  ;;  %11586 = vmatprep.subr.bf16.mxu1 %v15486_v36 }
0x1336   :  { %5512 = vmatprep.mubr.f32.mxu0 %v15487_v0  ;;  %9610 = vmatprep.mubr.msk.f32.mxu1 %vm13253_vm0, %v15487_v0 }
0x1338   :  { %11558 = vmatpush1.bf16.msra.mxu0 %v14578_v63  ;;  %11588 = vmatpush3.bf16.msra.mxu1 %v14586_v35 }
0x1339   :  { %11560 = vmatprep.subr.bf16.mxu0 %v14583_v19  ;;  %11589 = vmatprep.subr.bf16.mxu1 %v15486_v36 }
0x133c   :  { %11562 = vmatpush1.bf16.msra.mxu0 %v14592_v55  ;;  %11591 = vmatpush3.bf16.msra.mxu1 %v14600_v13 }
0x133d   :  { %11564 = vmatprep.subr.bf16.mxu0 %v14597_v3  ;;  %11592 = vmatprep.subr.bf16.mxu1 %v15486_v36 }
0x1340   :  { %11566 = vmatpush1.bf16.msra.mxu0 %v14606_v47  ;;  %11594 = vmatpush3.bf16.msra.mxu1 %v14614_v2 }
0x1341   :  { %11568 = vmatprep.subr.bf16.mxu0 %v14610_v46  ;;  %11595 = vmatprep.subr.bf16.mxu1 %v15486_v36 }
0x1344   :  { %11570 = vmatpush1.bf16.msra.mxu0 %v14620_v32  ;;  %11597 = vmatpush3.bf16.msra.mxu1 %v14627_v24 }
0x1345   :  { %11572 = vmatprep.subr.bf16.mxu0 %v14624_v27  ;;  %11598 = vmatprep.subr.bf16.mxu1 %v15486_v36 }
0x1348   :  { %11574 = vmatpush1.bf16.msra.mxu0 %v14635_v29  ;;  %11600 = vmatpush3.bf16.msra.mxu1 %v14641_v54 }
0x1349   :  { %11576 = vmatprep.subr.bf16.mxu0 %v14638_v62  ;;  %11601 = vmatprep.subr.bf16.mxu1 %v15486_v36 }
0x134c   :  { %11578 = vmatpush1.bf16.msra.mxu0 %v14647_v15  ;;  %11603 = vmatpush3.bf16.msra.mxu1 %v14653_v37 }
0x134d   :  { %11580 = vmatprep.subr.bf16.mxu0 %v14650_v45  ;;  %11604 = vmatprep.subr.bf16.mxu1 %v15486_v36 }
0x1350   :  { %11582 = vmatpush1.bf16.msra.mxu0 %v14659_v12  ;;  %11606 = vmatpush3.bf16.msra.mxu1 %v14663_v44 }
0x1351   :  { %11608 = vmatprep.subr.bf16.mxu0 %v14563_v42  ;;  %11639 = vmatprep.subr.bf16.mxu1 %v15486_v36 }
0x1406   :  { %v5349_v11 = vpop.f32.mrb[36].mxu0  ;;  %v5420_v1 = vpop.f32.mrb[68].mxu1 }
0x1407   :  { %v12400_v14 = vadd.f32 %v14763_v50, %v5349_v11  ;;  %v5351_v30 = vpop.f32.mrb[37].mxu0  ;;  %v9577_v31 = vpop.f32.mrb[69].mxu1  ;;  %v5421_v52 = vadd.f32 %v5420_v1, %v14770_v10 }
0x1408   :  { %v12402_v25 = vadd.f32 %v14765_v26, %v5351_v30 }
0x1409   :  { %v7897_v9 = vmul.f32 -1.442695, %v12400_v14 }
0x140a   :  { %v7898_v38 = vmul.f32 -1.442695, %v12402_v25 }
0x140b   :  { %12768 = vpow2.f32 %v7897_v9 }
0x140c   :  { %12770 = vpow2.f32 %v7898_v38 }
0x1415   :  { %v12769_v16 = vpop.eup %12768 }
0x1416   :  { %v5428_v23 = vadd.f32 1.0, %v12769_v16  ;;  %v12771_v41 = vpop.eup %12770 }
0x1417   :  { %v5435_v60 = vadd.f32 1.0, %v12771_v41 }
0x1418   :  { %12772 = vrcp.f32 %v5428_v23 }
0x1419   :  { %12774 = vrcp.f32 %v5435_v60 }
0x1422   :  { %v12773_v43 = vpop.eup %12772 }
0x1423   :  { %v5438_v21 = vmul.f32 %v12773_v43, %v5421_v52  ;;  %v12775_v53 = vpop.eup %12774 }
0x1424   :  { %v5441_v17 = vsub.f32 1.0, %v12775_v53  ;;  %v5443_v30 = vmul.f32 %v12775_v53, %v5279_v57 }
0x1425   :  { %v5439_v33 = vadd.f32 %v5438_v21, %v14717_v4 }
0x1427   :  { %12776 = vtanh.f32 %v5439_v33 }
0x1431   :  { %v12777_v11 = vpop.eup %12776 }
0x1432   :  { %v5442_v14 = vmul.f32 %v12777_v11, %v5441_v17 }
0x1434   :  { %v5444_v31 = vadd.f32 %v5443_v30, %v5442_v14 }
0x1436   :  { %5513 = vmatmul.mubr.f32.vlgmr.msra.gmra.mrb[38].mxu0 %v5444_v31  ;;  %9611 = vmatmul.mubr.f32.vlgmr.msra.gmra.mrb[70].mxu1 %v5444_v31 }
0x1437   :  { %11610 = vmatpush1.bf16.msra.mxu0 %v14567_v22  ;;  %11641 = vmatpush3.bf16.msra.mxu1 %v14573_v61 }
0x1438   :  { %11612 = vmatprep.subr.bf16.mxu0 %v14570_v56  ;;  %11642 = vmatprep.subr.bf16.mxu1 %v15486_v36 }
0x1439   :  { %5677 = vmatprep.mubr.f32.mxu0 %v15487_v0  ;;  %9645 = vmatprep.mubr.msk.f32.mxu1 %vm13253_vm0, %v15487_v0 }
0x143b   :  { %11614 = vmatpush1.bf16.msra.mxu0 %v14578_v63  ;;  %11644 = vmatpush3.bf16.msra.mxu1 %v14586_v35 }
0x143c   :  { %11616 = vmatprep.subr.bf16.mxu0 %v14583_v19  ;;  %11645 = vmatprep.subr.bf16.mxu1 %v15486_v36 }
0x143f   :  { %11618 = vmatpush1.bf16.msra.mxu0 %v14592_v55  ;;  %11647 = vmatpush3.bf16.msra.mxu1 %v14600_v13 }
0x1440   :  { %11620 = vmatprep.subr.bf16.mxu0 %v14597_v3  ;;  %11648 = vmatprep.subr.bf16.mxu1 %v15486_v36 }
0x1443   :  { %11622 = vmatpush1.bf16.msra.mxu0 %v14606_v47  ;;  %11650 = vmatpush3.bf16.msra.mxu1 %v14614_v2 }
0x1444   :  { %11624 = vmatprep.subr.bf16.mxu0 %v14610_v46  ;;  %11651 = vmatprep.subr.bf16.mxu1 %v15486_v36 }
0x1447   :  { %11626 = vmatpush1.bf16.msra.mxu0 %v14620_v32  ;;  %11653 = vmatpush3.bf16.msra.mxu1 %v14627_v24 }
0x1448   :  { %11628 = vmatprep.subr.bf16.mxu0 %v14624_v27  ;;  %11654 = vmatprep.subr.bf16.mxu1 %v15486_v36 }
0x144b   :  { %11630 = vmatpush1.bf16.msra.mxu0 %v14635_v29  ;;  %11656 = vmatpush3.bf16.msra.mxu1 %v14641_v54 }
0x144c   :  { %11632 = vmatprep.subr.bf16.mxu0 %v14638_v62  ;;  %11657 = vmatprep.subr.bf16.mxu1 %v15486_v36 }
0x144f   :  { %11634 = vmatpush1.bf16.msra.mxu0 %v14647_v15  ;;  %11659 = vmatpush3.bf16.msra.mxu1 %v14653_v37 }
0x1450   :  { %11636 = vmatprep.subr.bf16.mxu0 %v14650_v45  ;;  %11660 = vmatprep.subr.bf16.mxu1 %v15486_v36 }
0x1453   :  { %11638 = vmatpush1.bf16.msra.mxu0 %v14659_v12  ;;  %11662 = vmatpush3.bf16.msra.mxu1 %v14663_v44 }
0x1454   :  { %11664 = vmatprep.subr.bf16.mxu0 %v14563_v42  ;;  %11695 = vmatprep.subr.bf16.mxu1 %v15486_v36 }
0x1509   :  { %v5514_v4 = vpop.f32.mrb[38].mxu0  ;;  %v5585_v57 = vpop.f32.mrb[70].mxu1 }
0x150a   :  { %v12404_v1 = vadd.f32 %v14763_v50, %v5514_v4  ;;  %v5516_v9 = vpop.f32.mrb[39].mxu0  ;;  %v9612_v25 = vpop.f32.mrb[71].mxu1  ;;  %v5586_v21 = vadd.f32 %v5585_v57, %v14770_v10 }
0x150b   :  { %v12406_v16 = vadd.f32 %v14765_v26, %v5516_v9 }
0x150c   :  { %v7899_v38 = vmul.f32 -1.442695, %v12404_v1 }
0x150d   :  { %v7900_v23 = vmul.f32 -1.442695, %v12406_v16 }
0x150e   :  { %12778 = vpow2.f32 %v7899_v38 }
0x150f   :  { %12780 = vpow2.f32 %v7900_v23 }
0x1518   :  { %v12779_v41 = vpop.eup %12778 }
0x1519   :  { %v5593_v60 = vadd.f32 1.0, %v12779_v41  ;;  %v12781_v52 = vpop.eup %12780 }
0x151a   :  { %v5600_v43 = vadd.f32 1.0, %v12781_v52 }
0x151b   :  { %12782 = vrcp.f32 %v5593_v60 }
0x151c   :  { %12784 = vrcp.f32 %v5600_v43 }
0x1525   :  { %v12783_v33 = vpop.eup %12782 }
0x1526   :  { %v5603_v53 = vmul.f32 %v12783_v33, %v5586_v21  ;;  %v12785_v11 = vpop.eup %12784 }
0x1527   :  { %v5606_v14 = vsub.f32 1.0, %v12785_v11  ;;  %v5608_v1 = vmul.f32 %v12785_v11, %v5444_v31 }
0x1528   :  { %v5604_v17 = vadd.f32 %v5603_v53, %v14715_v40 }
0x152a   :  { %12786 = vtanh.f32 %v5604_v17 }
0x1534   :  { %v12787_v30 = vpop.eup %12786 }
0x1535   :  { %v5607_v4 = vmul.f32 %v12787_v30, %v5606_v14 }
0x1537   :  { %v5609_v9 = vadd.f32 %v5608_v1, %v5607_v4 }
0x1539   :  { %5678 = vmatmul.mubr.f32.vlgmr.msra.gmra.mrb[40].mxu0 %v5609_v9  ;;  %9646 = vmatmul.mubr.f32.vlgmr.msra.gmra.mrb[72].mxu1 %v5609_v9 }
0x153a   :  { %11666 = vmatpush1.bf16.msra.mxu0 %v14567_v22  ;;  %11697 = vmatpush3.bf16.msra.mxu1 %v14573_v61 }
0x153b   :  { %11668 = vmatprep.subr.bf16.mxu0 %v14570_v56  ;;  %11698 = vmatprep.subr.bf16.mxu1 %v15486_v36 }
0x153c   :  { %5842 = vmatprep.mubr.f32.mxu0 %v15487_v0  ;;  %9680 = vmatprep.mubr.msk.f32.mxu1 %vm13253_vm0, %v15487_v0 }
0x153e   :  { %11670 = vmatpush1.bf16.msra.mxu0 %v14578_v63  ;;  %11700 = vmatpush3.bf16.msra.mxu1 %v14586_v35 }
0x153f   :  { %11672 = vmatprep.subr.bf16.mxu0 %v14583_v19  ;;  %11701 = vmatprep.subr.bf16.mxu1 %v15486_v36 }
0x1542   :  { %11674 = vmatpush1.bf16.msra.mxu0 %v14592_v55  ;;  %11703 = vmatpush3.bf16.msra.mxu1 %v14600_v13 }
0x1543   :  { %11676 = vmatprep.subr.bf16.mxu0 %v14597_v3  ;;  %11704 = vmatprep.subr.bf16.mxu1 %v15486_v36 }
0x1546   :  { %11678 = vmatpush1.bf16.msra.mxu0 %v14606_v47  ;;  %11706 = vmatpush3.bf16.msra.mxu1 %v14614_v2 }
0x1547   :  { %11680 = vmatprep.subr.bf16.mxu0 %v14610_v46  ;;  %11707 = vmatprep.subr.bf16.mxu1 %v15486_v36 }
0x154a   :  { %11682 = vmatpush1.bf16.msra.mxu0 %v14620_v32  ;;  %11709 = vmatpush3.bf16.msra.mxu1 %v14627_v24 }
0x154b   :  { %11684 = vmatprep.subr.bf16.mxu0 %v14624_v27  ;;  %11710 = vmatprep.subr.bf16.mxu1 %v15486_v36 }
0x154e   :  { %11686 = vmatpush1.bf16.msra.mxu0 %v14635_v29  ;;  %11712 = vmatpush3.bf16.msra.mxu1 %v14641_v54 }
0x154f   :  { %11688 = vmatprep.subr.bf16.mxu0 %v14638_v62  ;;  %11713 = vmatprep.subr.bf16.mxu1 %v15486_v36 }
0x1552   :  { %11690 = vmatpush1.bf16.msra.mxu0 %v14647_v15  ;;  %11715 = vmatpush3.bf16.msra.mxu1 %v14653_v37 }
0x1553   :  { %11692 = vmatprep.subr.bf16.mxu0 %v14650_v45  ;;  %11716 = vmatprep.subr.bf16.mxu1 %v15486_v36 }
0x1556   :  { %11694 = vmatpush1.bf16.msra.mxu0 %v14659_v12  ;;  %11718 = vmatpush3.bf16.msra.mxu1 %v14663_v44 }
0x1557   :  { %11720 = vmatprep.subr.bf16.mxu0 %v14563_v42  ;;  %11751 = vmatprep.subr.bf16.mxu1 %v15486_v36 }
0x160c   :  { %v5679_v40 = vpop.f32.mrb[40].mxu0  ;;  %v5750_v31 = vpop.f32.mrb[72].mxu1 }
0x160d   :  { %v12408_v57 = vadd.f32 %v14763_v50, %v5679_v40  ;;  %v5681_v25 = vpop.f32.mrb[41].mxu0  ;;  %v9647_v38 = vpop.f32.mrb[73].mxu1  ;;  %v5751_v33 = vadd.f32 %v5750_v31, %v14770_v10 }
0x160e   :  { %v12410_v23 = vadd.f32 %v14765_v26, %v5681_v25 }
0x160f   :  { %v7901_v16 = vmul.f32 -1.442695, %v12408_v57 }
0x1610   :  { %v7902_v41 = vmul.f32 -1.442695, %v12410_v23 }
0x1611   :  { %12788 = vpow2.f32 %v7901_v16 }
0x1612   :  { %12790 = vpow2.f32 %v7902_v41 }
0x161b   :  { %v12789_v60 = vpop.eup %12788 }
0x161c   :  { %v5758_v52 = vadd.f32 1.0, %v12789_v60  ;;  %v12791_v43 = vpop.eup %12790 }
0x161d   :  { %v5765_v21 = vadd.f32 1.0, %v12791_v43 }
0x161e   :  { %12792 = vrcp.f32 %v5758_v52 }
0x161f   :  { %12794 = vrcp.f32 %v5765_v21 }
0x1628   :  { %v12793_v53 = vpop.eup %12792 }
0x1629   :  { %v5768_v17 = vmul.f32 %v12793_v53, %v5751_v33  ;;  %v12795_v14 = vpop.eup %12794 }
0x162a   :  { %v5771_v30 = vsub.f32 1.0, %v12795_v14  ;;  %v5773_v40 = vmul.f32 %v12795_v14, %v5609_v9 }
0x162b   :  { %v5769_v11 = vadd.f32 %v5768_v17, %v14721_v5 }
0x162d   :  { %12796 = vtanh.f32 %v5769_v11 }
0x1637   :  { %v12797_v4 = vpop.eup %12796 }
0x1638   :  { %v5772_v1 = vmul.f32 %v12797_v4, %v5771_v30 }
0x163a   :  { %v5774_v57 = vadd.f32 %v5773_v40, %v5772_v1 }
0x163c   :  { %5843 = vmatmul.mubr.f32.vlgmr.msra.gmra.mrb[42].mxu0 %v5774_v57  ;;  %9681 = vmatmul.mubr.f32.vlgmr.msra.gmra.mrb[74].mxu1 %v5774_v57 }
0x163d   :  { %11722 = vmatpush1.bf16.msra.mxu0 %v14567_v22  ;;  %11753 = vmatpush3.bf16.msra.mxu1 %v14573_v61 }
0x163e   :  { %11724 = vmatprep.subr.bf16.mxu0 %v14570_v56  ;;  %11754 = vmatprep.subr.bf16.mxu1 %v15486_v36 }
0x163f   :  { %6007 = vmatprep.mubr.f32.mxu0 %v15487_v0  ;;  %9715 = vmatprep.mubr.msk.f32.mxu1 %vm13253_vm0, %v15487_v0 }
0x1641   :  { %11726 = vmatpush1.bf16.msra.mxu0 %v14578_v63  ;;  %11756 = vmatpush3.bf16.msra.mxu1 %v14586_v35 }
0x1642   :  { %11728 = vmatprep.subr.bf16.mxu0 %v14583_v19  ;;  %11757 = vmatprep.subr.bf16.mxu1 %v15486_v36 }
0x1645   :  { %11730 = vmatpush1.bf16.msra.mxu0 %v14592_v55  ;;  %11759 = vmatpush3.bf16.msra.mxu1 %v14600_v13 }
0x1646   :  { %11732 = vmatprep.subr.bf16.mxu0 %v14597_v3  ;;  %11760 = vmatprep.subr.bf16.mxu1 %v15486_v36 }
0x1649   :  { %11734 = vmatpush1.bf16.msra.mxu0 %v14606_v47  ;;  %11762 = vmatpush3.bf16.msra.mxu1 %v14614_v2 }
0x164a   :  { %11736 = vmatprep.subr.bf16.mxu0 %v14610_v46  ;;  %11763 = vmatprep.subr.bf16.mxu1 %v15486_v36 }
0x164d   :  { %11738 = vmatpush1.bf16.msra.mxu0 %v14620_v32  ;;  %11765 = vmatpush3.bf16.msra.mxu1 %v14627_v24 }
0x164e   :  { %11740 = vmatprep.subr.bf16.mxu0 %v14624_v27  ;;  %11766 = vmatprep.subr.bf16.mxu1 %v15486_v36 }
0x1651   :  { %11742 = vmatpush1.bf16.msra.mxu0 %v14635_v29  ;;  %11768 = vmatpush3.bf16.msra.mxu1 %v14641_v54 }
0x1652   :  { %11744 = vmatprep.subr.bf16.mxu0 %v14638_v62  ;;  %11769 = vmatprep.subr.bf16.mxu1 %v15486_v36 }
0x1655   :  { %11746 = vmatpush1.bf16.msra.mxu0 %v14647_v15  ;;  %11771 = vmatpush3.bf16.msra.mxu1 %v14653_v37 }
0x1656   :  { %11748 = vmatprep.subr.bf16.mxu0 %v14650_v45  ;;  %11772 = vmatprep.subr.bf16.mxu1 %v15486_v36 }
0x1659   :  { %11750 = vmatpush1.bf16.msra.mxu0 %v14659_v12  ;;  %11774 = vmatpush3.bf16.msra.mxu1 %v14663_v44 }
0x165a   :  { %11776 = vmatprep.subr.bf16.mxu0 %v14563_v42  ;;  %11807 = vmatprep.subr.bf16.mxu1 %v15486_v36 }
0x170f   :  { %v5844_v5 = vpop.f32.mrb[42].mxu0  ;;  %v5915_v9 = vpop.f32.mrb[74].mxu1 }
0x1710   :  { %v12412_v31 = vadd.f32 %v14763_v50, %v5844_v5  ;;  %v5846_v25 = vpop.f32.mrb[43].mxu0  ;;  %v9682_v38 = vpop.f32.mrb[75].mxu1  ;;  %v5916_v42 = vadd.f32 %v5915_v9, %v14770_v10  ;;  %v6279_v9 = vld [vmem:[#allocation23 + $0x38] sm:$0xff] }
0x1711   :  { %v12414_v23 = vadd.f32 %v14765_v26, %v5846_v25 }
0x1712   :  { %v7903_v16 = vmul.f32 -1.442695, %v12412_v31  ;;  %v6282_v31 = vld [vmem:[#allocation23 + $0x50] sm:$0xff] }
0x1713   :  { %v7904_v41 = vmul.f32 -1.442695, %v12414_v23  ;;  %v6278_v23 = vld [vmem:[#allocation23 + $0x30] sm:$0xff] }
0x1714   :  { %12798 = vpow2.f32 %v7903_v16 }
0x1715   :  { %12800 = vpow2.f32 %v7904_v41 }
0x171e   :  { %v12799_v60 = vpop.eup %12798 }
0x171f   :  { %v5923_v52 = vadd.f32 1.0, %v12799_v60  ;;  %v12801_v43 = vpop.eup %12800 }
0x1720   :  { %v5930_v21 = vadd.f32 1.0, %v12801_v43  ;;  %v6280_v43 = vld [vmem:[#allocation23 + $0x40] sm:$0xff] }
0x1721   :  { %12802 = vrcp.f32 %v5923_v52  ;;  %v6281_v52 = vld [vmem:[#allocation23 + $0x48] sm:$0xff] }
0x1722   :  { %12804 = vrcp.f32 %v5930_v21  ;;  %v6283_v21 = vld [vmem:[#allocation23 + $0x58] sm:$0xff] }
0x172b   :  { %v12803_v33 = vpop.eup %12802 }
0x172c   :  { %v5933_v53 = vmul.f32 %v12803_v33, %v5916_v42  ;;  %v12805_v11 = vpop.eup %12804  ;;  %v6285_v42 = vld [vmem:[#allocation23 + $0x68] sm:$0xff]  ;;  %v6288_v33 = vld [vmem:[#allocation23 + $0x80] sm:$0xff] }
0x172d   :  { %v5936_v14 = vsub.f32 1.0, %v12805_v11  ;;  %v5938_v1 = vmul.f32 %v12805_v11, %v5774_v57  ;;  %v6277_v57 = vld [vmem:[#allocation23 + $0x28] sm:$0xff]  ;;  %v15028_v11 = vpack.c.bf16 %v6283_v21, %v6280_v43  ;;  %v6311_v21 = vld [vmem:[#allocation23 + $0x138] sm:$0xff] }
0x172e   :  { %v5934_v17 = vadd.f32 %v5933_v53, %v14719_v58  ;;  %v6274_v58 = vld [vmem:[#allocation23 + $0x10] sm:$0xff]  ;;  %v15025_v53 = vpack.c.bf16 %v6281_v52, %v6278_v23  ;;  %v6308_v23 = vld [vmem:[#allocation23 + $0x120] sm:$0xff] }
0x172f   :  { %v15016_v41 = vpack.c.bf16 %v6277_v57, %v6274_v58  ;;  %v6305_v57 = vld [vmem:[#allocation23 + $0x108] sm:$0xff] }
0x1730   :  { %12806 = vtanh.f32 %v5934_v17  ;;  %v6284_v17 = vld [vmem:[#allocation23 + $0x60] sm:$0xff] }
0x173a   :  { %v12807_v30 = vpop.eup %12806 }
0x173b   :  { %v5937_v4 = vmul.f32 %v12807_v30, %v5936_v14  ;;  %v15031_v14 = vpack.c.bf16 %v6288_v33, %v6285_v42  ;;  %v6287_v30 = vld [vmem:[#allocation23 + $0x78] sm:$0xff]  ;;  %v6310_v42 = vld [vmem:[#allocation23 + $0x130] sm:$0xff]  ;;  %v6313_v33 = vld [vmem:[#allocation23 + $0x148] sm:$0xff] }
0x173d   :  { %v14968_v40 = vadd.f32 %v5938_v1, %v5937_v4  ;;  %v6286_v4 = vld [vmem:[#allocation23 + $0x70] sm:$0xff]  ;;  %v6289_v1 = vld [vmem:[#allocation23 + $0x88] sm:$0xff] }
0x173f   :  { %6008 = vmatmul.mubr.f32.vlgmr.msra.gmra.mrb[44].mxu0 %v14968_v40  ;;  %9716 = vmatmul.mubr.f32.vlgmr.msra.gmra.mrb[76].mxu1 %v14968_v40 }
0x1740   :  { %11778 = vmatpush1.bf16.msra.mxu0 %v14567_v22  ;;  %11809 = vmatpush3.bf16.msra.mxu1 %v14573_v61  ;;  %v6273_v22 = vld [vmem:[#allocation23 + $0x8] sm:$0xff] }
0x1741   :  { %11780 = vmatprep.subr.bf16.mxu0 %v14570_v56  ;;  %11810 = vmatprep.subr.bf16.mxu1 %v15486_v36  ;;  %v6276_v56 = vld [vmem:[#allocation23 + $0x20] sm:$0xff] }
0x1742   :  { %6172 = vmatprep.mubr.f32.mxu0 %v15487_v0  ;;  %9750 = vmatprep.mubr.msk.f32.mxu1 %vm13253_vm0, %v15487_v0  ;;  %v15006_v61 = vpack.c.bf16 %v6276_v56, %v6273_v22  ;;  %v6294_v22 = vld [vmem:[#allocation23 + $0xb0] sm:$0xff]  ;;  %v15038_v56 = vpack.c.bf16 %v6287_v30, %v6284_v17  ;;  %v6315_v17 = vld [vmem:[#allocation23 + $0x158] sm:$0xff] }
0x1743   :  { %v6318_v30 = vld [vmem:[#allocation23 + $0x170] sm:$0xff] }
0x1744   :  { %11782 = vmatpush1.bf16.msra.mxu0 %v14578_v63  ;;  %11812 = vmatpush3.bf16.msra.mxu1 %v14586_v35 }
0x1745   :  { %11784 = vmatprep.subr.bf16.mxu0 %v14583_v19  ;;  %11813 = vmatprep.subr.bf16.mxu1 %v15486_v36 }
0x1748   :  { %11786 = vmatpush1.bf16.msra.mxu0 %v14592_v55  ;;  %11815 = vmatpush3.bf16.msra.mxu1 %v14600_v13 }
0x1749   :  { %11788 = vmatprep.subr.bf16.mxu0 %v14597_v3  ;;  %11816 = vmatprep.subr.bf16.mxu1 %v15486_v36 }
0x174c   :  { %11790 = vmatpush1.bf16.msra.mxu0 %v14606_v47  ;;  %11818 = vmatpush3.bf16.msra.mxu1 %v14614_v2 }
0x174d   :  { %11792 = vmatprep.subr.bf16.mxu0 %v14610_v46  ;;  %11819 = vmatprep.subr.bf16.mxu1 %v15486_v36 }
0x1750   :  { %11794 = vmatpush1.bf16.msra.mxu0 %v14620_v32  ;;  %11821 = vmatpush3.bf16.msra.mxu1 %v14627_v24 }
0x1751   :  { %11796 = vmatprep.subr.bf16.mxu0 %v14624_v27  ;;  %11822 = vmatprep.subr.bf16.mxu1 %v15486_v36 }
0x1754   :  { %11798 = vmatpush1.bf16.msra.mxu0 %v14635_v29  ;;  %11824 = vmatpush3.bf16.msra.mxu1 %v14641_v54 }
0x1755   :  { %11800 = vmatprep.subr.bf16.mxu0 %v14638_v62  ;;  %11825 = vmatprep.subr.bf16.mxu1 %v15486_v36 }
0x1758   :  { %11802 = vmatpush1.bf16.msra.mxu0 %v14647_v15  ;;  %11827 = vmatpush3.bf16.msra.mxu1 %v14653_v37  ;;  %v6272_v37 = vld [vmem:[#allocation23] sm:$0xff] }
0x1759   :  { %11804 = vmatprep.subr.bf16.mxu0 %v14650_v45  ;;  %11828 = vmatprep.subr.bf16.mxu1 %v15486_v36 }
0x175c   :  { %11806 = vmatpush1.bf16.msra.mxu0 %v14659_v12  ;;  %11830 = vmatpush3.bf16.msra.mxu1 %v14663_v44  ;;  %v6275_v44 = vld [vmem:[#allocation23 + $0x18] sm:$0xff] }
0x175d   :  { %11863 = vmatprep.subr.bf16.mxu1 %v15486_v36  ;;  %11832 = vmatprep.subr.bf16.mxu0 %v15006_v61  ;;  %v15014_v16 = vpack.c.bf16 %v6275_v44, %v6272_v37 }
0x1812   :  { %v6009_v63 = vpop.f32.mrb[44].mxu0  ;;  %v6080_v19 = vpop.f32.mrb[76].mxu1 }
0x1813   :  { %v12416_v35 = vadd.f32 %v14763_v50, %v6009_v63  ;;  %v6011_v55 = vpop.f32.mrb[45].mxu0  ;;  %v9717_v3 = vpop.f32.mrb[77].mxu1  ;;  %v6081_v29 = vadd.f32 %v6080_v19, %v14770_v10  ;;  %v6290_v63 = vld [vmem:[#allocation23 + $0x90] sm:$0xff]  ;;  %v15041_v19 = vpack.c.bf16 %v6289_v1, %v6286_v4  ;;  %v15078_v4 = vpack.c.bf16 %v6311_v21, %v6308_v23 }
0x1814   :  { %v12418_v47 = vadd.f32 %v14765_v26, %v6011_v55  ;;  %v6293_v55 = vld [vmem:[#allocation23 + $0xa8] sm:$0xff]  ;;  %v6292_v3 = vld [vmem:[#allocation23 + $0xa0] sm:$0xff]  ;;  %v6314_v1 = vld [vmem:[#allocation23 + $0x150] sm:$0xff] }
0x1815   :  { %v7905_v13 = vmul.f32 -1.442695, %v12416_v35 }
0x1816   :  { %v7906_v46 = vmul.f32 -1.442695, %v12418_v47  ;;  %v6297_v47 = vld [vmem:[#allocation23 + $0xc8] sm:$0xff] }
0x1817   :  { %12808 = vpow2.f32 %v7905_v13  ;;  %v6295_v13 = vld [vmem:[#allocation23 + $0xb8] sm:$0xff] }
0x1818   :  { %12810 = vpow2.f32 %v7906_v46  ;;  %v6300_v46 = vld [vmem:[#allocation23 + $0xe0] sm:$0xff] }
0x1821   :  { %v12809_v2 = vpop.eup %12808 }
0x1822   :  { %v6088_v32 = vadd.f32 1.0, %v12809_v2  ;;  %v12811_v27 = vpop.eup %12810  ;;  %v15048_v2 = vpack.c.bf16 %v6293_v55, %v6290_v63  ;;  %v6317_v63 = vld [vmem:[#allocation23 + $0x168] sm:$0xff]  ;;  %v6316_v55 = vld [vmem:[#allocation23 + $0x160] sm:$0xff] }
0x1823   :  { %v6095_v24 = vadd.f32 1.0, %v12811_v27  ;;  %v15051_v27 = vpack.c.bf16 %v6295_v13, %v6292_v3  ;;  %v6319_v3 = vld [vmem:[#allocation23 + $0x178] sm:$0xff]  ;;  %v15088_v13 = vpack.c.bf16 %v6317_v63, %v6314_v1 }
0x1824   :  { %12812 = vrcp.f32 %v6088_v32  ;;  %v6296_v32 = vld [vmem:[#allocation23 + $0xc0] sm:$0xff] }
0x1825   :  { %12814 = vrcp.f32 %v6095_v24  ;;  %v15054_v24 = vpack.c.bf16 %v6300_v46, %v6297_v47  ;;  %v15091_v47 = vpack.c.bf16 %v6319_v3, %v6316_v55 }
0x182e   :  { %v12813_v62 = vpop.eup %12812 }
0x182f   :  { %v6098_v54 = vmul.f32 %v12813_v62, %v6081_v29  ;;  %v12815_v45 = vpop.eup %12814  ;;  %v6299_v29 = vld [vmem:[#allocation23 + $0xd8] sm:$0xff]  ;;  %v6298_v62 = vld [vmem:[#allocation23 + $0xd0] sm:$0xff] }
0x1830   :  { %v6101_v12 = vsub.f32 1.0, %v12815_v45  ;;  %v6103_v38 = vmul.f32 %v12815_v45, %v14968_v40  ;;  %v6291_v40 = vld [vmem:[#allocation23 + $0x98] sm:$0xff]  ;;  %v6306_v45 = vld [vmem:[#allocation23 + $0x110] sm:$0xff]  ;;  %v15058_v37 = vpack.c.bf16 %v6299_v29, %v6296_v32 }
0x1831   :  { %v6099_v15 = vadd.f32 %v6098_v54, %v14725_v48  ;;  %v15020_v48 = vpack.c.bf16 %v6282_v31, %v6279_v9  ;;  %v15044_v35 = vpack.c.bf16 %v6294_v22, %v6291_v40  ;;  %v6301_v54 = vld [vmem:[#allocation23 + $0xe8] sm:$0xff]  ;;  %v6307_v9 = vld [vmem:[#allocation23 + $0x118] sm:$0xff]  ;;  %v15081_v40 = vpack.c.bf16 %v6313_v33, %v6310_v42 }
0x1832   :  { %v15061_v44 = vpack.c.bf16 %v6301_v54, %v6298_v62  ;;  %v6309_v31 = vld [vmem:[#allocation23 + $0x128] sm:$0xff]  ;;  %v15084_v22 = vpack.c.bf16 %v6318_v30, %v6315_v17 }
0x1833   :  { %12816 = vtanh.f32 %v6099_v15  ;;  %v6303_v15 = vld [vmem:[#allocation23 + $0xf8] sm:$0xff] }
0x1834   :  { %v15064_v58 = vpack.c.bf16 %v6306_v45, %v6303_v15 }
0x183d   :  { %v12817_v5 = vpop.eup %12816 }
0x183e   :  { %v6102_v25 = vmul.f32 %v12817_v5, %v6101_v12  ;;  %v6302_v12 = vld [vmem:[#allocation23 + $0xf0] sm:$0xff]  ;;  %v6304_v5 = vld [vmem:[#allocation23 + $0x100] sm:$0xff] }
0x183f   :  { %v15071_v52 = vpack.c.bf16 %v6307_v9, %v6304_v5 }
0x1840   :  { %v15018_v60 = vadd.f32 %v6103_v38, %v6102_v25  ;;  %v6312_v25 = vld [vmem:[#allocation23 + $0x140] sm:$0xff]  ;;  %v15068_v38 = vpack.c.bf16 %v6305_v57, %v6302_v12 }
0x1841   :  { %v15074_v43 = vpack.c.bf16 %v6312_v25, %v6309_v31  ;;  %v7909_v31 = vld [vmem:[%s15461_s14 + $0x1] ss:$2 sm:$0x7] }
0x1842   :  { %6173 = vmatmul.mubr.f32.vlgmr.msra.gmra.mrb[46].mxu0 %v15018_v60  ;;  %9751 = vmatmul.mubr.f32.vlgmr.msra.gmra.mrb[78].mxu1 %v15018_v60  ;;  %v6331_v17 = vrot.slane %v7909_v31, %v15491_v28 }
0x1843   :  { %11834 = vmatpush1.bf16.msra.mxu0 %v15014_v16  ;;  %11865 = vmatpush3.bf16.msra.mxu1 %v15016_v41 }
0x1844   :  { %11836 = vmatprep.subr.bf16.mxu0 %v15020_v48  ;;  %11866 = vmatprep.subr.bf16.mxu1 %v15486_v36 }
0x1845   :  { %6403 = vmatprep.mubr.f32.mxu0 %v15487_v0  ;;  %9785 = vmatprep.mubr.msk.f32.mxu1 %vm13253_vm0, %v15487_v0 }
0x1847   :  { %11838 = vmatpush1.bf16.msra.mxu0 %v15025_v53  ;;  %11868 = vmatpush3.bf16.msra.mxu1 %v15028_v11 }
0x1848   :  { %11840 = vmatprep.subr.bf16.mxu0 %v15031_v14  ;;  %11869 = vmatprep.subr.bf16.mxu1 %v15486_v36 }
0x184b   :  { %11842 = vmatpush1.bf16.msra.mxu0 %v15038_v56  ;;  %11871 = vmatpush3.bf16.msra.mxu1 %v15041_v19 }
0x184c   :  { %11844 = vmatprep.subr.bf16.mxu0 %v15044_v35  ;;  %11872 = vmatprep.subr.bf16.mxu1 %v15486_v36 }
0x184f   :  { %11846 = vmatpush1.bf16.msra.mxu0 %v15048_v2  ;;  %11874 = vmatpush3.bf16.msra.mxu1 %v15051_v27 }
0x1850   :  { %11848 = vmatprep.subr.bf16.mxu0 %v15054_v24  ;;  %11875 = vmatprep.subr.bf16.mxu1 %v15486_v36 }
0x1853   :  { %11850 = vmatpush1.bf16.msra.mxu0 %v15058_v37  ;;  %11877 = vmatpush3.bf16.msra.mxu1 %v15061_v44 }
0x1854   :  { %11852 = vmatprep.subr.bf16.mxu0 %v15064_v58  ;;  %11878 = vmatprep.subr.bf16.mxu1 %v15486_v36 }
0x1857   :  { %11854 = vmatpush1.bf16.msra.mxu0 %v15068_v38  ;;  %11880 = vmatpush3.bf16.msra.mxu1 %v15071_v52 }
0x1858   :  { %11856 = vmatprep.subr.bf16.mxu0 %v15074_v43  ;;  %11881 = vmatprep.subr.bf16.mxu1 %v15486_v36 }
0x185b   :  { %11858 = vmatpush1.bf16.msra.mxu0 %v15078_v4  ;;  %11883 = vmatpush3.bf16.msra.mxu1 %v15081_v40 }
0x185c   :  { %11860 = vmatprep.subr.bf16.mxu0 %v15084_v22  ;;  %11884 = vmatprep.subr.bf16.mxu1 %v15486_v36 }
0x185f   :  { %11862 = vmatpush1.bf16.msra.mxu0 %v15088_v13  ;;  %11886 = vmatpush3.bf16.msra.mxu1 %v15091_v47 }
0x1860   :  { %11888 = vmatprep.subr.bf16.mxu0 %v15006_v61  ;;  %11919 = vmatprep.subr.bf16.mxu1 %v15486_v36 }
0x1862   :  { %6404 = vmatmul.mubr.f32.vlgmr.msra.gmra.mrb[62].mxu0 %v15487_v0  ;;  %9786 = vmatmul.mubr.f32.vlgmr.msra.gmra.mrb[80].mxu1 %v15487_v0 }
0x1863   :  { %11890 = vmatpush1.bf16.msra.mxu0 %v15014_v16  ;;  %11921 = vmatpush3.bf16.msra.mxu1 %v15016_v41 }
0x1864   :  { %11892 = vmatprep.subr.bf16.mxu0 %v15020_v48  ;;  %11922 = vmatprep.subr.bf16.mxu1 %v15486_v36 }
0x1865   :  { %6568 = vmatprep.mubr.f32.mxu0 %v15487_v0  ;;  %9820 = vmatprep.mubr.msk.f32.mxu1 %vm13253_vm0, %v15487_v0 }
0x1867   :  { %11894 = vmatpush1.bf16.msra.mxu0 %v15025_v53  ;;  %11924 = vmatpush3.bf16.msra.mxu1 %v15028_v11 }
0x1868   :  { %11896 = vmatprep.subr.bf16.mxu0 %v15031_v14  ;;  %11925 = vmatprep.subr.bf16.mxu1 %v15486_v36 }
0x186b   :  { %11898 = vmatpush1.bf16.msra.mxu0 %v15038_v56  ;;  %11927 = vmatpush3.bf16.msra.mxu1 %v15041_v19 }
0x186c   :  { %11900 = vmatprep.subr.bf16.mxu0 %v15044_v35  ;;  %11928 = vmatprep.subr.bf16.mxu1 %v15486_v36 }
0x186f   :  { %11902 = vmatpush1.bf16.msra.mxu0 %v15048_v2  ;;  %11930 = vmatpush3.bf16.msra.mxu1 %v15051_v27 }
0x1870   :  { %11904 = vmatprep.subr.bf16.mxu0 %v15054_v24  ;;  %11931 = vmatprep.subr.bf16.mxu1 %v15486_v36 }
0x1873   :  { %11906 = vmatpush1.bf16.msra.mxu0 %v15058_v37  ;;  %11933 = vmatpush3.bf16.msra.mxu1 %v15061_v44 }
0x1874   :  { %11908 = vmatprep.subr.bf16.mxu0 %v15064_v58  ;;  %11934 = vmatprep.subr.bf16.mxu1 %v15486_v36 }
0x1877   :  { %11910 = vmatpush1.bf16.msra.mxu0 %v15068_v38  ;;  %11936 = vmatpush3.bf16.msra.mxu1 %v15071_v52 }
0x1878   :  { %11912 = vmatprep.subr.bf16.mxu0 %v15074_v43  ;;  %11937 = vmatprep.subr.bf16.mxu1 %v15486_v36 }
0x187b   :  { %11914 = vmatpush1.bf16.msra.mxu0 %v15078_v4  ;;  %11939 = vmatpush3.bf16.msra.mxu1 %v15081_v40 }
0x187c   :  { %11916 = vmatprep.subr.bf16.mxu0 %v15084_v22  ;;  %11940 = vmatprep.subr.bf16.mxu1 %v15486_v36 }
0x187f   :  { %11918 = vmatpush1.bf16.msra.mxu0 %v15088_v13  ;;  %11942 = vmatpush3.bf16.msra.mxu1 %v15091_v47 }
0x1880   :  { %11944 = vmatprep.subr.bf16.mxu0 %v15006_v61  ;;  %11975 = vmatprep.subr.bf16.mxu1 %v15486_v36 }
0x1915   :  { %v6174_v46 = vpop.f32.mrb[46].mxu0  ;;  %v6245_v32 = vpop.f32.mrb[78].mxu1 }
0x1916   :  { %v12420_v29 = vadd.f32 %v14763_v50, %v6174_v46  ;;  %v6176_v62 = vpop.f32.mrb[47].mxu0  ;;  %v9752_v54 = vpop.f32.mrb[79].mxu1  ;;  %v12909_v50 = vld [vmem:[%s15461_s14] ss:$2 sm:$0x7]  ;;  %v6246_v21 = vadd.f32 %v6245_v32, %v14770_v10 }
0x1917   :  { %v12422_v45 = vadd.f32 %v14765_v26, %v6176_v62  ;;  %v4824_v23 = vrot.slane %v12909_v50, %v13775_v6  ;;  %v6327_v26 = vrot.slane %v7909_v31, %v13775_v6  ;;  %v4828_v33 = vrot.slane %v12909_v50, %v15491_v28 }
0x1918   :  { %v7907_v15 = vmul.f32 -1.442695, %v12420_v29 }
0x1919   :  { %v7908_v12 = vmul.f32 -1.442695, %v12422_v45  ;;  %v15149_v1 = vadd.f32 %v6327_v26, %v4824_v23  ;;  %v15152_v3 = vadd.f32 %v6331_v17, %v4828_v33 }
0x191a   :  { %12818 = vpow2.f32 %v7907_v15 }
0x191b   :  { %12820 = vpow2.f32 %v7908_v12 }
0x1924   :  { %v12819_v57 = vpop.eup %12818 }
0x1925   :  { %v6253_v5 = vadd.f32 1.0, %v12819_v57  ;;  %v12821_v9 = vpop.eup %12820 }
0x1926   :  { %v6260_v25 = vadd.f32 1.0, %v12821_v9 }
0x1927   :  { %12822 = vrcp.f32 %v6253_v5 }
0x1928   :  { %12824 = vrcp.f32 %v6260_v25  ;;  %v15160_v25 = vrot.slane %v7909_v31, %v13731_v49 }
0x1931   :  { %v12823_v42 = vpop.eup %12822 }
0x1932   :  { %v6263_v30 = vmul.f32 %v12823_v42, %v6246_v21  ;;  %v12825_v28 = vpop.eup %12824  ;;  %v4859_v42 = vadd.f32 %v14751_v34, %v14731_v39 }
0x1933   :  { %v6266_v15 = vsub.f32 1.0, %v12825_v28 }
0x1934   :  { %v6264_v63 = vadd.f32 %v6263_v30, %v14723_v8  ;;  %v6268_v8 = vmul.f32 %v12825_v28, %v15018_v60 }
0x1935   :  { %v6405_v55 = vpop.f32.mrb[62].mxu0  ;;  %v6476_v46 = vpop.f32.mrb[80].mxu1 }
0x1936   :  { %12826 = vtanh.f32 %v6264_v63  ;;  %v12452_v6 = vadd.f32 %v15149_v1, %v6405_v55  ;;  %v6407_v29 = vpop.f32.mrb[63].mxu0  ;;  %v9787_v10 = vpop.f32.mrb[81].mxu1  ;;  %v6477_v26 = vadd.f32 %v6476_v46, %v15160_v25 }
0x1937   :  { %v12454_v62 = vadd.f32 %v15152_v3, %v6407_v29 }
0x1938   :  { %v7910_v32 = vmul.f32 -1.442695, %v12452_v6 }
0x1939   :  { %v7911_v54 = vmul.f32 -1.442695, %v12454_v62 }
0x193a   :  { %12828 = vpow2.f32 %v7910_v32 }
0x193b   :  { %12830 = vpow2.f32 %v7911_v54 }
0x1940   :  { %v12827_v45 = vpop.eup %12826 }
0x1941   :  { %v6267_v12 = vmul.f32 %v12827_v45, %v6266_v15 }
0x1943   :  { %v15157_v57 = vadd.f32 %v6268_v8, %v6267_v12 }
0x1944   :  { %v12829_v5 = vpop.eup %12828 }
0x1945   :  { %v6484_v9 = vadd.f32 1.0, %v12829_v5  ;;  %v12831_v50 = vpop.eup %12830 }
0x1946   :  { %v6491_v23 = vadd.f32 1.0, %v12831_v50 }
0x1947   :  { %12832 = vrcp.f32 %v6484_v9 }
0x1948   :  { %12834 = vrcp.f32 %v6491_v23 }
0x1951   :  { %v12833_v21 = vpop.eup %12832 }
0x1952   :  { %v6494_v33 = vmul.f32 %v12833_v21, %v6477_v26  ;;  %v12835_v60 = vpop.eup %12834 }
0x1953   :  { %v6497_v30 = vsub.f32 1.0, %v12835_v60  ;;  %v6499_v6 = vmul.f32 0.0, %v12835_v60 }
0x1954   :  { %v6495_v17 = vadd.f32 %v6494_v33, %v4859_v42 }
0x1956   :  { %12836 = vtanh.f32 %v6495_v17 }
0x1960   :  { %v12837_v63 = vpop.eup %12836 }
0x1961   :  { %v6498_v55 = vmul.f32 %v12837_v63, %v6497_v30 }
0x1963   :  { %v6500_v29 = vadd.f32 %v6499_v6, %v6498_v55 }
0x1965   :  { %6569 = vmatmul.mubr.f32.vlgmr.msra.gmra.mrb[60].mxu0 %v6500_v29  ;;  %9821 = vmatmul.mubr.f32.vlgmr.msra.gmra.mrb[82].mxu1 %v6500_v29 }
0x1966   :  { %11946 = vmatpush1.bf16.msra.mxu0 %v15014_v16  ;;  %11977 = vmatpush3.bf16.msra.mxu1 %v15016_v41 }
0x1967   :  { %11948 = vmatprep.subr.bf16.mxu0 %v15020_v48  ;;  %11978 = vmatprep.subr.bf16.mxu1 %v15486_v36 }
0x1968   :  { %6733 = vmatprep.mubr.f32.mxu0 %v15487_v0  ;;  %9855 = vmatprep.mubr.msk.f32.mxu1 %vm13253_vm0, %v15487_v0 }
0x196a   :  { %11950 = vmatpush1.bf16.msra.mxu0 %v15025_v53  ;;  %11980 = vmatpush3.bf16.msra.mxu1 %v15028_v11 }
0x196b   :  { %11952 = vmatprep.subr.bf16.mxu0 %v15031_v14  ;;  %11981 = vmatprep.subr.bf16.mxu1 %v15486_v36 }
0x196e   :  { %11954 = vmatpush1.bf16.msra.mxu0 %v15038_v56  ;;  %11983 = vmatpush3.bf16.msra.mxu1 %v15041_v19 }
0x196f   :  { %11956 = vmatprep.subr.bf16.mxu0 %v15044_v35  ;;  %11984 = vmatprep.subr.bf16.mxu1 %v15486_v36 }
0x1972   :  { %11958 = vmatpush1.bf16.msra.mxu0 %v15048_v2  ;;  %11986 = vmatpush3.bf16.msra.mxu1 %v15051_v27 }
0x1973   :  { %11960 = vmatprep.subr.bf16.mxu0 %v15054_v24  ;;  %11987 = vmatprep.subr.bf16.mxu1 %v15486_v36 }
0x1976   :  { %11962 = vmatpush1.bf16.msra.mxu0 %v15058_v37  ;;  %11989 = vmatpush3.bf16.msra.mxu1 %v15061_v44 }
0x1977   :  { %11964 = vmatprep.subr.bf16.mxu0 %v15064_v58  ;;  %11990 = vmatprep.subr.bf16.mxu1 %v15486_v36 }
0x197a   :  { %11966 = vmatpush1.bf16.msra.mxu0 %v15068_v38  ;;  %11992 = vmatpush3.bf16.msra.mxu1 %v15071_v52 }
0x197b   :  { %11968 = vmatprep.subr.bf16.mxu0 %v15074_v43  ;;  %11993 = vmatprep.subr.bf16.mxu1 %v15486_v36 }
0x197e   :  { %11970 = vmatpush1.bf16.msra.mxu0 %v15078_v4  ;;  %11995 = vmatpush3.bf16.msra.mxu1 %v15081_v40 }
0x197f   :  { %11972 = vmatprep.subr.bf16.mxu0 %v15084_v22  ;;  %11996 = vmatprep.subr.bf16.mxu1 %v15486_v36 }
0x1982   :  { %11974 = vmatpush1.bf16.msra.mxu0 %v15088_v13  ;;  %11998 = vmatpush3.bf16.msra.mxu1 %v15091_v47 }
0x1983   :  { %12000 = vmatprep.subr.bf16.mxu0 %v15006_v61  ;;  %12031 = vmatprep.subr.bf16.mxu1 %v15486_v36 }
0x1a38   :  { %v6570_v49 = vpop.f32.mrb[60].mxu0  ;;  %v6641_v39 = vpop.f32.mrb[82].mxu1 }
0x1a39   :  { %v12448_v34 = vadd.f32 %v15149_v1, %v6570_v49  ;;  %v6572_v31 = vpop.f32.mrb[61].mxu0  ;;  %v9822_v46 = vpop.f32.mrb[83].mxu1  ;;  %v6642_v12 = vadd.f32 %v6641_v39, %v15160_v25 }
0x1a3a   :  { %v12450_v32 = vadd.f32 %v15152_v3, %v6572_v31 }
0x1a3b   :  { %v7912_v10 = vmul.f32 -1.442695, %v12448_v34 }
0x1a3c   :  { %v7913_v62 = vmul.f32 -1.442695, %v12450_v32 }
0x1a3d   :  { %12838 = vpow2.f32 %v7912_v10 }
0x1a3e   :  { %12840 = vpow2.f32 %v7913_v62 }
0x1a47   :  { %v12839_v28 = vpop.eup %12838 }
0x1a48   :  { %v6649_v54 = vadd.f32 1.0, %v12839_v28  ;;  %v12841_v15 = vpop.eup %12840 }
0x1a49   :  { %v6656_v45 = vadd.f32 1.0, %v12841_v15 }
0x1a4a   :  { %12842 = vrcp.f32 %v6649_v54 }
0x1a4b   :  { %12844 = vrcp.f32 %v6656_v45 }
0x1a54   :  { %v12843_v8 = vpop.eup %12842 }
0x1a55   :  { %v6659_v5 = vmul.f32 %v12843_v8, %v6642_v12  ;;  %v12845_v50 = vpop.eup %12844 }
0x1a56   :  { %v6662_v23 = vsub.f32 1.0, %v12845_v50  ;;  %v6664_v42 = vmul.f32 %v12845_v50, %v6500_v29 }
0x1a57   :  { %v6660_v9 = vadd.f32 %v6659_v5, %v14754_v51 }
0x1a59   :  { %12846 = vtanh.f32 %v6660_v9 }
0x1a63   :  { %v12847_v26 = vpop.eup %12846 }
0x1a64   :  { %v6663_v21 = vmul.f32 %v12847_v26, %v6662_v23 }
0x1a66   :  { %v6665_v33 = vadd.f32 %v6664_v42, %v6663_v21 }
0x1a68   :  { %6734 = vmatmul.mubr.f32.vlgmr.msra.gmra.mrb[58].mxu0 %v6665_v33  ;;  %9856 = vmatmul.mubr.f32.vlgmr.msra.gmra.mrb[84].mxu1 %v6665_v33 }
0x1a69   :  { %12002 = vmatpush1.bf16.msra.mxu0 %v15014_v16  ;;  %12033 = vmatpush3.bf16.msra.mxu1 %v15016_v41 }
0x1a6a   :  { %12004 = vmatprep.subr.bf16.mxu0 %v15020_v48  ;;  %12034 = vmatprep.subr.bf16.mxu1 %v15486_v36 }
0x1a6b   :  { %6898 = vmatprep.mubr.f32.mxu0 %v15487_v0  ;;  %9890 = vmatprep.mubr.msk.f32.mxu1 %vm13253_vm0, %v15487_v0 }
0x1a6d   :  { %12006 = vmatpush1.bf16.msra.mxu0 %v15025_v53  ;;  %12036 = vmatpush3.bf16.msra.mxu1 %v15028_v11 }
0x1a6e   :  { %12008 = vmatprep.subr.bf16.mxu0 %v15031_v14  ;;  %12037 = vmatprep.subr.bf16.mxu1 %v15486_v36 }
0x1a71   :  { %12010 = vmatpush1.bf16.msra.mxu0 %v15038_v56  ;;  %12039 = vmatpush3.bf16.msra.mxu1 %v15041_v19 }
0x1a72   :  { %12012 = vmatprep.subr.bf16.mxu0 %v15044_v35  ;;  %12040 = vmatprep.subr.bf16.mxu1 %v15486_v36 }
0x1a75   :  { %12014 = vmatpush1.bf16.msra.mxu0 %v15048_v2  ;;  %12042 = vmatpush3.bf16.msra.mxu1 %v15051_v27 }
0x1a76   :  { %12016 = vmatprep.subr.bf16.mxu0 %v15054_v24  ;;  %12043 = vmatprep.subr.bf16.mxu1 %v15486_v36 }
0x1a79   :  { %12018 = vmatpush1.bf16.msra.mxu0 %v15058_v37  ;;  %12045 = vmatpush3.bf16.msra.mxu1 %v15061_v44 }
0x1a7a   :  { %12020 = vmatprep.subr.bf16.mxu0 %v15064_v58  ;;  %12046 = vmatprep.subr.bf16.mxu1 %v15486_v36 }
0x1a7d   :  { %12022 = vmatpush1.bf16.msra.mxu0 %v15068_v38  ;;  %12048 = vmatpush3.bf16.msra.mxu1 %v15071_v52 }
0x1a7e   :  { %12024 = vmatprep.subr.bf16.mxu0 %v15074_v43  ;;  %12049 = vmatprep.subr.bf16.mxu1 %v15486_v36 }
0x1a81   :  { %12026 = vmatpush1.bf16.msra.mxu0 %v15078_v4  ;;  %12051 = vmatpush3.bf16.msra.mxu1 %v15081_v40 }
0x1a82   :  { %12028 = vmatprep.subr.bf16.mxu0 %v15084_v22  ;;  %12052 = vmatprep.subr.bf16.mxu1 %v15486_v36 }
0x1a85   :  { %12030 = vmatpush1.bf16.msra.mxu0 %v15088_v13  ;;  %12054 = vmatpush3.bf16.msra.mxu1 %v15091_v47 }
0x1a86   :  { %12056 = vmatprep.subr.bf16.mxu0 %v15006_v61  ;;  %12087 = vmatprep.subr.bf16.mxu1 %v15486_v36 }
0x1b3b   :  { %v6735_v51 = vpop.f32.mrb[58].mxu0  ;;  %v6806_v17 = vpop.f32.mrb[84].mxu1 }
0x1b3c   :  { %v12444_v60 = vadd.f32 %v15149_v1, %v6735_v51  ;;  %v6737_v30 = vpop.f32.mrb[59].mxu0  ;;  %v9857_v63 = vpop.f32.mrb[85].mxu1  ;;  %v6807_v46 = vadd.f32 %v6806_v17, %v15160_v25 }
0x1b3d   :  { %v12446_v6 = vadd.f32 %v15152_v3, %v6737_v30 }
0x1b3e   :  { %v7914_v55 = vmul.f32 -1.442695, %v12444_v60 }
0x1b3f   :  { %v7915_v29 = vmul.f32 -1.442695, %v12446_v6 }
0x1b40   :  { %12848 = vpow2.f32 %v7914_v55 }
0x1b41   :  { %12850 = vpow2.f32 %v7915_v29 }
0x1b4a   :  { %v12849_v49 = vpop.eup %12848 }
0x1b4b   :  { %v6814_v39 = vadd.f32 1.0, %v12849_v49  ;;  %v12851_v34 = vpop.eup %12850 }
0x1b4c   :  { %v6821_v31 = vadd.f32 1.0, %v12851_v34 }
0x1b4d   :  { %12852 = vrcp.f32 %v6814_v39 }
0x1b4e   :  { %12854 = vrcp.f32 %v6821_v31 }
0x1b57   :  { %v12853_v10 = vpop.eup %12852 }
0x1b58   :  { %v6824_v32 = vmul.f32 %v12853_v10, %v6807_v46  ;;  %v12855_v28 = vpop.eup %12854 }
0x1b59   :  { %v6827_v54 = vsub.f32 1.0, %v12855_v28  ;;  %v6829_v12 = vmul.f32 %v12855_v28, %v6665_v33 }
0x1b5a   :  { %v6825_v62 = vadd.f32 %v6824_v32, %v14746_v7 }
0x1b5c   :  { %12856 = vtanh.f32 %v6825_v62 }
0x1b66   :  { %v12857_v15 = vpop.eup %12856 }
0x1b67   :  { %v6828_v45 = vmul.f32 %v12857_v15, %v6827_v54 }
0x1b69   :  { %v6830_v8 = vadd.f32 %v6829_v12, %v6828_v45 }
0x1b6b   :  { %6899 = vmatmul.mubr.f32.vlgmr.msra.gmra.mrb[56].mxu0 %v6830_v8  ;;  %9891 = vmatmul.mubr.f32.vlgmr.msra.gmra.mrb[86].mxu1 %v6830_v8 }
0x1b6c   :  { %12058 = vmatpush1.bf16.msra.mxu0 %v15014_v16  ;;  %12089 = vmatpush3.bf16.msra.mxu1 %v15016_v41 }
0x1b6d   :  { %12060 = vmatprep.subr.bf16.mxu0 %v15020_v48  ;;  %12090 = vmatprep.subr.bf16.mxu1 %v15486_v36 }
0x1b6e   :  { %7063 = vmatprep.mubr.f32.mxu0 %v15487_v0  ;;  %9925 = vmatprep.mubr.msk.f32.mxu1 %vm13253_vm0, %v15487_v0 }
0x1b70   :  { %12062 = vmatpush1.bf16.msra.mxu0 %v15025_v53  ;;  %12092 = vmatpush3.bf16.msra.mxu1 %v15028_v11 }
0x1b71   :  { %12064 = vmatprep.subr.bf16.mxu0 %v15031_v14  ;;  %12093 = vmatprep.subr.bf16.mxu1 %v15486_v36 }
0x1b74   :  { %12066 = vmatpush1.bf16.msra.mxu0 %v15038_v56  ;;  %12095 = vmatpush3.bf16.msra.mxu1 %v15041_v19 }
0x1b75   :  { %12068 = vmatprep.subr.bf16.mxu0 %v15044_v35  ;;  %12096 = vmatprep.subr.bf16.mxu1 %v15486_v36 }
0x1b78   :  { %12070 = vmatpush1.bf16.msra.mxu0 %v15048_v2  ;;  %12098 = vmatpush3.bf16.msra.mxu1 %v15051_v27 }
0x1b79   :  { %12072 = vmatprep.subr.bf16.mxu0 %v15054_v24  ;;  %12099 = vmatprep.subr.bf16.mxu1 %v15486_v36 }
0x1b7c   :  { %12074 = vmatpush1.bf16.msra.mxu0 %v15058_v37  ;;  %12101 = vmatpush3.bf16.msra.mxu1 %v15061_v44 }
0x1b7d   :  { %12076 = vmatprep.subr.bf16.mxu0 %v15064_v58  ;;  %12102 = vmatprep.subr.bf16.mxu1 %v15486_v36 }
0x1b80   :  { %12078 = vmatpush1.bf16.msra.mxu0 %v15068_v38  ;;  %12104 = vmatpush3.bf16.msra.mxu1 %v15071_v52 }
0x1b81   :  { %12080 = vmatprep.subr.bf16.mxu0 %v15074_v43  ;;  %12105 = vmatprep.subr.bf16.mxu1 %v15486_v36 }
0x1b84   :  { %12082 = vmatpush1.bf16.msra.mxu0 %v15078_v4  ;;  %12107 = vmatpush3.bf16.msra.mxu1 %v15081_v40 }
0x1b85   :  { %12084 = vmatprep.subr.bf16.mxu0 %v15084_v22  ;;  %12108 = vmatprep.subr.bf16.mxu1 %v15486_v36 }
0x1b88   :  { %12086 = vmatpush1.bf16.msra.mxu0 %v15088_v13  ;;  %12110 = vmatpush3.bf16.msra.mxu1 %v15091_v47 }
0x1b89   :  { %12112 = vmatprep.subr.bf16.mxu0 %v15006_v61  ;;  %12143 = vmatprep.subr.bf16.mxu1 %v15486_v36 }
0x1c3e   :  { %v6900_v7 = vpop.f32.mrb[56].mxu0  ;;  %v6971_v5 = vpop.f32.mrb[86].mxu1 }
0x1c3f   :  { %v12440_v9 = vadd.f32 %v15149_v1, %v6900_v7  ;;  %v6902_v50 = vpop.f32.mrb[57].mxu0  ;;  %v9892_v23 = vpop.f32.mrb[87].mxu1  ;;  %v6972_v30 = vadd.f32 %v6971_v5, %v15160_v25 }
0x1c40   :  { %v12442_v21 = vadd.f32 %v15152_v3, %v6902_v50 }
0x1c41   :  { %v7916_v26 = vmul.f32 -1.442695, %v12440_v9 }
0x1c42   :  { %v7917_v42 = vmul.f32 -1.442695, %v12442_v21 }
0x1c43   :  { %12858 = vpow2.f32 %v7916_v26 }
0x1c44   :  { %12860 = vpow2.f32 %v7917_v42 }
0x1c4d   :  { %v12859_v33 = vpop.eup %12858 }
0x1c4e   :  { %v6979_v51 = vadd.f32 1.0, %v12859_v33  ;;  %v12861_v17 = vpop.eup %12860 }
0x1c4f   :  { %v6986_v60 = vadd.f32 1.0, %v12861_v17 }
0x1c50   :  { %12862 = vrcp.f32 %v6979_v51 }
0x1c51   :  { %12864 = vrcp.f32 %v6986_v60 }
0x1c5a   :  { %v12863_v63 = vpop.eup %12862 }
0x1c5b   :  { %v6989_v55 = vmul.f32 %v12863_v63, %v6972_v30  ;;  %v12865_v29 = vpop.eup %12864 }
0x1c5c   :  { %v6992_v49 = vsub.f32 1.0, %v12865_v29  ;;  %v6994_v31 = vmul.f32 %v12865_v29, %v6830_v8 }
0x1c5d   :  { %v6990_v6 = vadd.f32 %v6989_v55, %v14749_v18 }
0x1c5f   :  { %12866 = vtanh.f32 %v6990_v6 }
0x1c69   :  { %v12867_v39 = vpop.eup %12866 }
0x1c6a   :  { %v6993_v34 = vmul.f32 %v12867_v39, %v6992_v49 }
0x1c6c   :  { %v6995_v46 = vadd.f32 %v6994_v31, %v6993_v34 }
0x1c6e   :  { %7064 = vmatmul.mubr.f32.vlgmr.msra.gmra.mrb[54].mxu0 %v6995_v46  ;;  %9926 = vmatmul.mubr.f32.vlgmr.msra.gmra.mrb[88].mxu1 %v6995_v46 }
0x1c6f   :  { %12114 = vmatpush1.bf16.msra.mxu0 %v15014_v16  ;;  %12145 = vmatpush3.bf16.msra.mxu1 %v15016_v41 }
0x1c70   :  { %12116 = vmatprep.subr.bf16.mxu0 %v15020_v48  ;;  %12146 = vmatprep.subr.bf16.mxu1 %v15486_v36 }
0x1c71   :  { %7228 = vmatprep.mubr.f32.mxu0 %v15487_v0  ;;  %9960 = vmatprep.mubr.msk.f32.mxu1 %vm13253_vm0, %v15487_v0 }
0x1c73   :  { %12118 = vmatpush1.bf16.msra.mxu0 %v15025_v53  ;;  %12148 = vmatpush3.bf16.msra.mxu1 %v15028_v11 }
0x1c74   :  { %12120 = vmatprep.subr.bf16.mxu0 %v15031_v14  ;;  %12149 = vmatprep.subr.bf16.mxu1 %v15486_v36 }
0x1c77   :  { %12122 = vmatpush1.bf16.msra.mxu0 %v15038_v56  ;;  %12151 = vmatpush3.bf16.msra.mxu1 %v15041_v19 }
0x1c78   :  { %12124 = vmatprep.subr.bf16.mxu0 %v15044_v35  ;;  %12152 = vmatprep.subr.bf16.mxu1 %v15486_v36 }
0x1c7b   :  { %12126 = vmatpush1.bf16.msra.mxu0 %v15048_v2  ;;  %12154 = vmatpush3.bf16.msra.mxu1 %v15051_v27 }
0x1c7c   :  { %12128 = vmatprep.subr.bf16.mxu0 %v15054_v24  ;;  %12155 = vmatprep.subr.bf16.mxu1 %v15486_v36 }
0x1c7f   :  { %12130 = vmatpush1.bf16.msra.mxu0 %v15058_v37  ;;  %12157 = vmatpush3.bf16.msra.mxu1 %v15061_v44 }
0x1c80   :  { %12132 = vmatprep.subr.bf16.mxu0 %v15064_v58  ;;  %12158 = vmatprep.subr.bf16.mxu1 %v15486_v36 }
0x1c83   :  { %12134 = vmatpush1.bf16.msra.mxu0 %v15068_v38  ;;  %12160 = vmatpush3.bf16.msra.mxu1 %v15071_v52 }
0x1c84   :  { %12136 = vmatprep.subr.bf16.mxu0 %v15074_v43  ;;  %12161 = vmatprep.subr.bf16.mxu1 %v15486_v36 }
0x1c87   :  { %12138 = vmatpush1.bf16.msra.mxu0 %v15078_v4  ;;  %12163 = vmatpush3.bf16.msra.mxu1 %v15081_v40 }
0x1c88   :  { %12140 = vmatprep.subr.bf16.mxu0 %v15084_v22  ;;  %12164 = vmatprep.subr.bf16.mxu1 %v15486_v36 }
0x1c8b   :  { %12142 = vmatpush1.bf16.msra.mxu0 %v15088_v13  ;;  %12166 = vmatpush3.bf16.msra.mxu1 %v15091_v47 }
0x1c8c   :  { %12168 = vmatprep.subr.bf16.mxu0 %v15006_v61  ;;  %12199 = vmatprep.subr.bf16.mxu1 %v15486_v36 }
0x1d41   :  { %v7065_v18 = vpop.f32.mrb[54].mxu0  ;;  %v7136_v10 = vpop.f32.mrb[88].mxu1 }
0x1d42   :  { %v12436_v32 = vadd.f32 %v15149_v1, %v7065_v18  ;;  %v7067_v62 = vpop.f32.mrb[55].mxu0  ;;  %v9927_v28 = vpop.f32.mrb[89].mxu1  ;;  %v7137_v9 = vadd.f32 %v7136_v10, %v15160_v25 }
0x1d43   :  { %v12438_v15 = vadd.f32 %v15152_v3, %v7067_v62 }
0x1d44   :  { %v7918_v54 = vmul.f32 -1.442695, %v12436_v32 }
0x1d45   :  { %v7919_v45 = vmul.f32 -1.442695, %v12438_v15 }
0x1d46   :  { %12868 = vpow2.f32 %v7918_v54 }
0x1d47   :  { %12870 = vpow2.f32 %v7919_v45 }
0x1d50   :  { %v12869_v12 = vpop.eup %12868 }
0x1d51   :  { %v7144_v8 = vadd.f32 1.0, %v12869_v12  ;;  %v12871_v7 = vpop.eup %12870 }
0x1d52   :  { %v7151_v5 = vadd.f32 1.0, %v12871_v7 }
0x1d53   :  { %12872 = vrcp.f32 %v7144_v8 }
0x1d54   :  { %12874 = vrcp.f32 %v7151_v5 }
0x1d5d   :  { %v12873_v50 = vpop.eup %12872 }
0x1d5e   :  { %v7154_v23 = vmul.f32 %v12873_v50, %v7137_v9  ;;  %v12875_v21 = vpop.eup %12874  ;;  %v7658_v9 = vld [vmem:[#allocation24 + $0x10] sm:$0xff]  ;;  %v7659_v50 = vld [vmem:[#allocation24 + $0x18] sm:$0xff] }
0x1d5f   :  { %v7157_v42 = vsub.f32 1.0, %v12875_v21  ;;  %v7159_v17 = vmul.f32 %v12875_v21, %v6995_v46  ;;  %v7661_v21 = vld [vmem:[#allocation24 + $0x28] sm:$0xff] }
0x1d60   :  { %v7155_v26 = vadd.f32 %v7154_v23, %v14740_v59  ;;  %v12307_v23 = vpack.c.bf16 %v7659_v50, %v7658_v9  ;;  %v15493_v9 = vld [vmem:[#allocation38_spill] sm:$0xff] }
0x1d62   :  { %12876 = vtanh.f32 %v7155_v26  ;;  %v7660_v26 = vld [vmem:[#allocation24 + $0x20] sm:$0xff] }
0x1d6c   :  { %v12877_v33 = vpop.eup %12876 }
0x1d6d   :  { %v7158_v51 = vmul.f32 %v12877_v33, %v7157_v42  ;;  %v12310_v42 = vpack.c.bf16 %v7661_v21, %v7660_v26  ;;  %v7662_v33 = vld [vmem:[#allocation24 + $0x30] sm:$0xff] }
0x1d6f   :  { %v7160_v60 = vadd.f32 %v7159_v17, %v7158_v51  ;;  %v7663_v51 = vld [vmem:[#allocation24 + $0x38] sm:$0xff] }
0x1d70   :  { %v12313_v17 = vpack.c.bf16 %v7663_v51, %v7662_v33 }
0x1d71   :  { %7229 = vmatmul.mubr.f32.vlgmr.msra.gmra.mrb[52].mxu0 %v7160_v60  ;;  %9961 = vmatmul.mubr.f32.vlgmr.msra.gmra.mrb[90].mxu1 %v7160_v60 }
0x1d72   :  { %12170 = vmatpush1.bf16.msra.mxu0 %v15014_v16  ;;  %12201 = vmatpush3.bf16.msra.mxu1 %v15016_v41 }
0x1d73   :  { %12172 = vmatprep.subr.bf16.mxu0 %v15020_v48  ;;  %12202 = vmatprep.subr.bf16.mxu1 %v15486_v36 }
0x1d74   :  { %7393 = vmatprep.mubr.f32.mxu0 %v15487_v0  ;;  %9995 = vmatprep.mubr.msk.f32.mxu1 %vm13253_vm0, %v15487_v0 }
0x1d76   :  { %12174 = vmatpush1.bf16.msra.mxu0 %v15025_v53  ;;  %12204 = vmatpush3.bf16.msra.mxu1 %v15028_v11 }
0x1d77   :  { %12176 = vmatprep.subr.bf16.mxu0 %v15031_v14  ;;  %12205 = vmatprep.subr.bf16.mxu1 %v15486_v36 }
0x1d7a   :  { %12178 = vmatpush1.bf16.msra.mxu0 %v15038_v56  ;;  %12207 = vmatpush3.bf16.msra.mxu1 %v15041_v19 }
0x1d7b   :  { %12180 = vmatprep.subr.bf16.mxu0 %v15044_v35  ;;  %12208 = vmatprep.subr.bf16.mxu1 %v15486_v36 }
0x1d7e   :  { %12182 = vmatpush1.bf16.msra.mxu0 %v15048_v2  ;;  %12210 = vmatpush3.bf16.msra.mxu1 %v15051_v27 }
0x1d7f   :  { %12184 = vmatprep.subr.bf16.mxu0 %v15054_v24  ;;  %12211 = vmatprep.subr.bf16.mxu1 %v15486_v36 }
0x1d82   :  { %12186 = vmatpush1.bf16.msra.mxu0 %v15058_v37  ;;  %12213 = vmatpush3.bf16.msra.mxu1 %v15061_v44 }
0x1d83   :  { %12188 = vmatprep.subr.bf16.mxu0 %v15064_v58  ;;  %12214 = vmatprep.subr.bf16.mxu1 %v15486_v36 }
0x1d86   :  { %12190 = vmatpush1.bf16.msra.mxu0 %v15068_v38  ;;  %12216 = vmatpush3.bf16.msra.mxu1 %v15071_v52 }
0x1d87   :  { %12192 = vmatprep.subr.bf16.mxu0 %v15074_v43  ;;  %12217 = vmatprep.subr.bf16.mxu1 %v15486_v36 }
0x1d8a   :  { %12194 = vmatpush1.bf16.msra.mxu0 %v15078_v4  ;;  %12219 = vmatpush3.bf16.msra.mxu1 %v15081_v40 }
0x1d8b   :  { %12196 = vmatprep.subr.bf16.mxu0 %v15084_v22  ;;  %12220 = vmatprep.subr.bf16.mxu1 %v15486_v36 }
0x1d8e   :  { %12198 = vmatpush1.bf16.msra.mxu0 %v15088_v13  ;;  %12222 = vmatpush3.bf16.msra.mxu1 %v15091_v47 }
0x1d8f   :  { %12255 = vmatprep.subr.bf16.mxu1 %v15486_v36  ;;  %12224 = vmatprep.subr.bf16.mxu0 %v15006_v61 }
0x1e44   :  { %v7230_v59 = vpop.f32.mrb[52].mxu0  ;;  %v7301_v30 = vpop.f32.mrb[90].mxu1 }
0x1e45   :  { %v12432_v63 = vadd.f32 %v15149_v1, %v7230_v59  ;;  %v7232_v55 = vpop.f32.mrb[53].mxu0  ;;  %v9962_v6 = vpop.f32.mrb[91].mxu1  ;;  %v7302_v10 = vadd.f32 %v7301_v30, %v15160_v25  ;;  %v7665_v59 = vld [vmem:[#allocation24 + $0x48] sm:$0xff] }
0x1e46   :  { %v12434_v49 = vadd.f32 %v15152_v3, %v7232_v55  ;;  %v7667_v55 = vld [vmem:[#allocation24 + $0x58] sm:$0xff]  ;;  %v7668_v6 = vld [vmem:[#allocation24 + $0x60] sm:$0xff] }
0x1e47   :  { %v7920_v29 = vmul.f32 -1.442695, %v12432_v63  ;;  %v7666_v63 = vld [vmem:[#allocation24 + $0x50] sm:$0xff] }
0x1e48   :  { %v7921_v39 = vmul.f32 -1.442695, %v12434_v49 }
0x1e49   :  { %12878 = vpow2.f32 %v7920_v29  ;;  %v7669_v29 = vld [vmem:[#allocation24 + $0x68] sm:$0xff] }
0x1e4a   :  { %12880 = vpow2.f32 %v7921_v39  ;;  %v12322_v49 = vpack.c.bf16 %v7669_v29, %v7668_v6  ;;  %v7670_v39 = vld [vmem:[#allocation24 + $0x70] sm:$0xff] }
0x1e53   :  { %v12879_v34 = vpop.eup %12878 }
0x1e54   :  { %v7309_v31 = vadd.f32 1.0, %v12879_v34  ;;  %v12881_v46 = vpop.eup %12880  ;;  %v7671_v34 = vld [vmem:[#allocation24 + $0x78] sm:$0xff] }
0x1e55   :  { %v7316_v18 = vadd.f32 1.0, %v12881_v46  ;;  %v7672_v46 = vld [vmem:[#allocation26] sm:$0xff] }
0x1e56   :  { %12882 = vrcp.f32 %v7309_v31  ;;  %v12325_v31 = vpack.c.bf16 %v7671_v34, %v7670_v39 }
0x1e57   :  { %12884 = vrcp.f32 %v7316_v18  ;;  %v7673_v18 = vld [vmem:[#allocation26 + $0x8] sm:$0xff] }
0x1e60   :  { %v12883_v61 = vpop.eup %12882 }
0x1e61   :  { %v7319_v32 = vmul.f32 %v12883_v61, %v7302_v10  ;;  %v12885_v28 = vpop.eup %12884  ;;  %v12280_v10 = vpack.c.bf16 %v7673_v18, %v7672_v46  ;;  %v7674_v61 = vld [vmem:[#allocation26 + $0x10] sm:$0xff] }
0x1e62   :  { %v7322_v54 = vsub.f32 1.0, %v12885_v28  ;;  %v7324_v12 = vmul.f32 %v12885_v28, %v7160_v60  ;;  %v7664_v60 = vld [vmem:[#allocation24 + $0x40] sm:$0xff] }
0x1e63   :  { %v7320_v62 = vadd.f32 %v7319_v32, %v14743_v20  ;;  %v12316_v30 = vpack.c.bf16 %v7665_v59, %v7664_v60  ;;  %v7675_v32 = vld [vmem:[#allocation26 + $0x18] sm:$0xff]  ;;  %v7676_v28 = vld [vmem:[#allocation26 + $0x20] sm:$0xff] }
0x1e65   :  { %12886 = vtanh.f32 %v7320_v62  ;;  %v12283_v62 = vpack.c.bf16 %v7675_v32, %v7674_v61 }
0x1e6f   :  { %v12887_v15 = vpop.eup %12886 }
0x1e70   :  { %v7323_v45 = vmul.f32 %v12887_v15, %v7322_v54  ;;  %v7677_v54 = vld [vmem:[#allocation26 + $0x28] sm:$0xff] }
0x1e71   :  { %v12286_v15 = vpack.c.bf16 %v7677_v54, %v7676_v28 }
0x1e72   :  { %v15360_v8 = vadd.f32 %v7324_v12, %v7323_v45  ;;  %v7678_v45 = vld [vmem:[#allocation26 + $0x30] sm:$0xff] }
0x1e74   :  { %7394 = vmatmul.mubr.f32.vlgmr.msra.gmra.mrb[50].mxu0 %v15360_v8  ;;  %9996 = vmatmul.mubr.f32.vlgmr.msra.gmra.mrb[92].mxu1 %v15360_v8 }
0x1e75   :  { %12257 = vmatpush3.bf16.msra.mxu1 %v15016_v41  ;;  %12226 = vmatpush1.bf16.msra.mxu0 %v15014_v16 }
0x1e76   :  { %12258 = vmatprep.subr.bf16.mxu1 %v15486_v36  ;;  %12228 = vmatprep.subr.bf16.mxu0 %v15020_v48 }
0x1e77   :  { %7558 = vmatprep.mubr.f32.mxu0 %v15487_v0  ;;  %10030 = vmatprep.mubr.msk.f32.mxu1 %vm13253_vm0, %v15487_v0 }
0x1e79   :  { %12260 = vmatpush3.bf16.msra.mxu1 %v15028_v11  ;;  %12230 = vmatpush1.bf16.msra.mxu0 %v15025_v53 }
0x1e7a   :  { %12261 = vmatprep.subr.bf16.mxu1 %v15486_v36  ;;  %12232 = vmatprep.subr.bf16.mxu0 %v15031_v14 }
0x1e7d   :  { %12263 = vmatpush3.bf16.msra.mxu1 %v15041_v19  ;;  %12234 = vmatpush1.bf16.msra.mxu0 %v15038_v56 }
0x1e7e   :  { %12264 = vmatprep.subr.bf16.mxu1 %v15486_v36  ;;  %12236 = vmatprep.subr.bf16.mxu0 %v15044_v35 }
0x1e81   :  { %12266 = vmatpush3.bf16.msra.mxu1 %v15051_v27  ;;  %12238 = vmatpush1.bf16.msra.mxu0 %v15048_v2 }
0x1e82   :  { %12267 = vmatprep.subr.bf16.mxu1 %v15486_v36  ;;  %12240 = vmatprep.subr.bf16.mxu0 %v15054_v24 }
0x1e85   :  { %12269 = vmatpush3.bf16.msra.mxu1 %v15061_v44  ;;  %12242 = vmatpush1.bf16.msra.mxu0 %v15058_v37 }
0x1e86   :  { %12270 = vmatprep.subr.bf16.mxu1 %v15486_v36  ;;  %12244 = vmatprep.subr.bf16.mxu0 %v15064_v58  ;;  %v15492_v58 = vld [vmem:[#allocation36_spill] sm:$0xff] }
0x1e89   :  { %12272 = vmatpush3.bf16.msra.mxu1 %v15071_v52  ;;  %12246 = vmatpush1.bf16.msra.mxu0 %v15068_v38 }
0x1e8a   :  { %12273 = vmatprep.subr.bf16.mxu1 %v15486_v36  ;;  %12248 = vmatprep.subr.bf16.mxu0 %v15074_v43 }
0x1e8d   :  { %12275 = vmatpush3.bf16.msra.mxu1 %v15081_v40  ;;  %12250 = vmatpush1.bf16.msra.mxu0 %v15078_v4  ;;  %v7656_v4 = vld [vmem:[#allocation24] sm:$0xff]  ;;  %v7657_v40 = vld [vmem:[#allocation24 + $0x8] sm:$0xff] }
0x1e8e   :  { %12276 = vmatprep.subr.bf16.mxu1 %v15486_v36  ;;  %12252 = vmatprep.subr.bf16.mxu0 %v15084_v22  ;;  %v12304_v7 = vpack.c.bf16 %v7657_v40, %v7656_v4 }
0x1e91   :  { %12278 = vmatpush3.bf16.msra.mxu1 %v15091_v47  ;;  %12254 = vmatpush1.bf16.msra.mxu0 %v15088_v13 }
0x1e92   :  { %12303 = vmatprep.subr.bf16.mxu1 %v15486_v36  ;;  %12279 = vmatprep.subr.bf16.mxu0 %v15486_v36 }
0x1f47   :  { %v7395_v20 = vpop.f32.mrb[50].mxu0  ;;  %v7466_v16 = vpop.f32.mrb[92].mxu1 }
0x1f48   :  { %v12428_v41 = vadd.f32 %v15149_v1, %v7395_v20  ;;  %v7397_v48 = vpop.f32.mrb[51].mxu0  ;;  %v9997_v53 = vpop.f32.mrb[93].mxu1  ;;  %v7467_v24 = vadd.f32 %v7466_v16, %v15160_v25  ;;  %v7681_v20 = vld [vmem:[#allocation26 + $0x48] sm:$0xff] }
0x1f49   :  { %v12430_v14 = vadd.f32 %v15152_v3, %v7397_v48  ;;  %v7683_v48 = vld [vmem:[#allocation26 + $0x58] sm:$0xff] }
0x1f4a   :  { %v7922_v11 = vmul.f32 -1.442695, %v12428_v41  ;;  %v7682_v41 = vld [vmem:[#allocation26 + $0x50] sm:$0xff] }
0x1f4b   :  { %v7923_v56 = vmul.f32 -1.442695, %v12430_v14  ;;  %v12295_v53 = vpack.c.bf16 %v7683_v48, %v7682_v41  ;;  %v7685_v14 = vld [vmem:[#allocation26 + $0x68] sm:$0xff] }
0x1f4c   :  { %12888 = vpow2.f32 %v7922_v11  ;;  %v7684_v11 = vld [vmem:[#allocation26 + $0x60] sm:$0xff] }
0x1f4d   :  { %12890 = vpow2.f32 %v7923_v56  ;;  %v12298_v56 = vpack.c.bf16 %v7685_v14, %v7684_v11 }
0x1f56   :  { %v12889_v19 = vpop.eup %12888 }
0x1f57   :  { %v7474_v35 = vadd.f32 1.0, %v12889_v19  ;;  %v12891_v2 = vpop.eup %12890  ;;  %v7686_v19 = vld [vmem:[#allocation26 + $0x70] sm:$0xff] }
0x1f58   :  { %v7481_v27 = vadd.f32 1.0, %v12891_v2 }
0x1f59   :  { %12892 = vrcp.f32 %v7474_v35  ;;  %v7687_v35 = vld [vmem:[#allocation26 + $0x78] sm:$0xff] }
0x1f5a   :  { %12894 = vrcp.f32 %v7481_v27  ;;  %v12301_v2 = vpack.c.bf16 %v7687_v35, %v7686_v19 }
0x1f63   :  { %v12893_v37 = vpop.eup %12892 }
0x1f64   :  { %v7484_v44 = vmul.f32 %v12893_v37, %v7467_v24  ;;  %v12895_v52 = vpop.eup %12894 }
0x1f65   :  { %v7487_v43 = vsub.f32 1.0, %v12895_v52  ;;  %v7489_v47 = vmul.f32 %v12895_v52, %v15360_v8  ;;  %v7680_v8 = vld [vmem:[#allocation26 + $0x40] sm:$0xff] }
0x1f66   :  { %v7485_v38 = vadd.f32 %v7484_v44, %v15492_v58  ;;  %v12292_v16 = vpack.c.bf16 %v7681_v20, %v7680_v8 }
0x1f68   :  { %12896 = vtanh.f32 %v7485_v38 }
0x1f72   :  { %v12897_v22 = vpop.eup %12896 }
0x1f73   :  { %v7488_v13 = vmul.f32 %v12897_v22, %v7487_v43 }
0x1f75   :  { %v15404_v5 = vadd.f32 %v7489_v47, %v7488_v13 }
0x1f77   :  { %7559 = vmatmul.mubr.f32.vlgmr.msra.gmra.mrb[48].mxu0 %v15404_v5  ;;  %10031 = vmatmul.mubr.f32.vlgmr.msra.gmra.mrb[94].mxu1 %v15404_v5 }
0x1f78   :  { %12305 = vmatpush3.bf16.msra.mxu1 %v12304_v7  ;;  %10100 = vmatprep.mubr.msk.f32.mxu1 %vm13253_vm0, %v15487_v0 }
0x1f79   :  { %12306 = vmatprep.subr.bf16.mxu1 %v15486_v36  ;;  %10065 = vmatprep.mubr.msk.f32.mxu0 %vm13253_vm0, %v15487_v0  ;;  %v12319_v0 = vpack.c.bf16 %v7667_v55, %v7666_v63 }
0x1f7a   :  { %12281 = vmatpush3.bf16.msra.mxu0 %v12280_v10 }
0x1f7b   :  { %12282 = vmatprep.subr.bf16.mxu0 %v15486_v36 }
0x1f7c   :  { %12308 = vmatpush3.bf16.msra.mxu1 %v12307_v23 }
0x1f7d   :  { %12309 = vmatprep.subr.bf16.mxu1 %v15486_v36 }
0x1f7e   :  { %12284 = vmatpush3.bf16.msra.mxu0 %v12283_v62 }
0x1f7f   :  { %12285 = vmatprep.subr.bf16.mxu0 %v15486_v36 }
0x1f80   :  { %12311 = vmatpush3.bf16.msra.mxu1 %v12310_v42 }
0x1f81   :  { %12312 = vmatprep.subr.bf16.mxu1 %v15486_v36 }
0x1f82   :  { %12287 = vmatpush3.bf16.msra.mxu0 %v12286_v15 }
0x1f83   :  { %12288 = vmatprep.subr.bf16.mxu0 %v15486_v36 }
0x1f84   :  { %12314 = vmatpush3.bf16.msra.mxu1 %v12313_v17 }
0x1f85   :  { %12315 = vmatprep.subr.bf16.mxu1 %v15486_v36 }
0x1f88   :  { %12317 = vmatpush3.bf16.msra.mxu1 %v12316_v30 }
0x1f89   :  { %12318 = vmatprep.subr.bf16.mxu1 %v15486_v36 }
0x1f8c   :  { %12320 = vmatpush3.bf16.msra.mxu1 %v12319_v0 }
0x1f8d   :  { %12321 = vmatprep.subr.bf16.mxu1 %v15486_v36 }
0x1f90   :  { %12323 = vmatpush3.bf16.msra.mxu1 %v12322_v49 }
0x1f91   :  { %12324 = vmatprep.subr.bf16.mxu1 %v15486_v36 }
0x1f94   :  { %12326 = vmatpush3.bf16.msra.mxu1 %v12325_v31 }
0x1f97   :  { %10101 = vmatmul.mubr.f32.vlgmr.msra.gmra.mrb[96].mxu1 %v15157_v57  ;;  %v7679_v57 = vld [vmem:[#allocation26 + $0x38] sm:$0xff] }
0x1f98   :  { %v12289_v12 = vpack.c.bf16 %v7679_v57, %v7678_v45 }
0x1f9a   :  { %12290 = vmatpush3.bf16.msra.mxu0 %v12289_v12 }
0x1f9b   :  { %12291 = vmatprep.subr.bf16.mxu0 %v15486_v36 }
0x1f9e   :  { %12293 = vmatpush3.bf16.msra.mxu0 %v12292_v16 }
0x1f9f   :  { %12294 = vmatprep.subr.bf16.mxu0 %v15486_v36 }
0x1fa2   :  { %12296 = vmatpush3.bf16.msra.mxu0 %v12295_v53 }
0x1fa3   :  { %12297 = vmatprep.subr.bf16.mxu0 %v15486_v36 }
0x1fa6   :  { %12299 = vmatpush3.bf16.msra.mxu0 %v12298_v56 }
0x1fa7   :  { %12300 = vmatprep.subr.bf16.mxu0 %v15486_v36 }
0x1faa   :  { %12302 = vmatpush3.bf16.msra.mxu0 %v12301_v2 }
0x204a   :  { %v7560_v27 = vpop.f32.mrb[48].mxu0  ;;  %v7631_v24 = vpop.f32.mrb[94].mxu1 }
0x204b   :  { %v12424_v37 = vadd.f32 %v15149_v1, %v7560_v27  ;;  %v7562_v44 = vpop.f32.mrb[49].mxu0  ;;  %v10032_v58 = vpop.f32.mrb[95].mxu1  ;;  %v7632_v36 = vadd.f32 %v7631_v24, %v15160_v25  ;;  %v7926_v25 = vld [vmem:[%s15494_s17] ss:$0 sm:$0xff] }
0x204c   :  { %v12426_v52 = vadd.f32 %v15152_v3, %v7562_v44 }
0x204d   :  { %v7924_v38 = vmul.f32 -1.442695, %v12424_v37 }
0x204e   :  { %v7925_v43 = vmul.f32 -1.442695, %v12426_v52 }
0x204f   :  { %12898 = vpow2.f32 %v7924_v38 }
0x2050   :  { %12900 = vpow2.f32 %v7925_v43 }
0x2059   :  { %v12899_v4 = vpop.eup %12898 }
0x205a   :  { %v7639_v40 = vadd.f32 1.0, %v12899_v4  ;;  %v12901_v22 = vpop.eup %12900 }
0x205b   :  { %v7646_v13 = vadd.f32 1.0, %v12901_v22 }
0x205c   :  { %12902 = vrcp.f32 %v7639_v40 }
0x205d   :  { %12904 = vrcp.f32 %v7646_v13 }
0x2066   :  { %v12903_v47 = vpop.eup %12902 }
0x2067   :  { %v7649_v7 = vmul.f32 %v12903_v47, %v7632_v36  ;;  %v12905_v26 = vpop.eup %12904 }
0x2068   :  { %v7652_v3 = vsub.f32 1.0, %v12905_v26  ;;  %v7654_v33 = vmul.f32 %v12905_v26, %v15404_v5 }
0x2069   :  { %v7650_v1 = vadd.f32 %v7649_v7, %v15493_v9 }
0x206a   :  { %v7824_v50 = vpop.f32.mrb[96].mxu1 }
0x206b   :  { %12906 = vtanh.f32 %v7650_v1  ;;  %v10102_v23 = vpop.f32.mrb[97].mxu1 }
0x2075   :  { %v12907_v21 = vpop.eup %12906 }
0x2076   :  { %v7653_v42 = vmul.f32 %v12907_v21, %v7652_v3 }
0x2078   :  { %v7655_v51 = vadd.f32 %v7654_v33, %v7653_v42 }
0x207a   :  { %10066 = vmatmul.mubr.f32.vlgmr.msra.gmra.mrb[64].mxu0 %v7655_v51 }
0x214d   :  { %v7754_v17 = vpop.f32.mrb[64].mxu0 }
0x214e   :  { %v7825_v60 = vadd.f32 %v7824_v50, %v7754_v17  ;;  %v10067_v59 = vpop.f32.mrb[65].mxu0 }
0x2150   :  { %v7835_v30 = vadd.f32 %v7926_v25, %v7825_v60 }
0x2152   :  { %7836 = vst [vmem:[#allocation27] sm:$0xff] %v7835_v30 }
0x2153   :  { %13207 = shalt.err (!%p13204_p10)
}
0x2154   :  { %s15495_s2 = sld [smem:[#allocation43_spill]] }
0x215a   :  { %s13208_s13 = scalar_lea.hbm %s15495_s2, 128 }
0x215b   :  { %p13209_p11 = scmp.ne.s32.totalorder %s15495_s2, %s13208_s13  ;;  %p13212_p12 = scmp.lt.u32.totalorder %s13208_s13, %s15495_s2 }
0x215d   :  { %p13214_p13 = pnand %p13212_p12, %p13209_p11 }
0x215f   :  { %13217 = shalt.err (!%p13214_p13)
}
0x2160   :  { %7846 = dma.vmem_to_hbm [thread:$0]  %s7844_s7, 128, %s15495_s2, [#allocation8]  }
0x2161   :  { %13232 = dma.done.wait [#allocation8], 128  }
0x2162   :  { %13233 = vsyncadd [#allocation8], 4294967168 }
0x2163   :  { %7850 = vsyncpa [#allocation7], 1 }
0x2164   :  { %7851 = vsyncpa [#allocation10], 1 }
0x2165   :  { %7852 = vsyncpa [#allocation13], 1 }
0x2166   :  { %7853 = vsyncpa [#allocation16], 1 }
0x2167   :  { %7854 = vsyncpa [#allocation19], 1 }
0x2168   :  { %7855 = vsyncpa [#allocation22], 1 }
0x2169   :  { %7856 = vsyncpa [#allocation25], 1 }
0x216a   :  { %7857 = vsyncpa [#allocation8], 1 }

</bundles_post_ra>
